<compile_context>
chip_gen: v6e
topology: v6e:2x2x1
jax: 0.10.0
libtpu: 0.0.40
codegen_flags: <defaults>
</compile_context>

<pallas_src>
import jax
import jax.numpy as jnp
from jax import lax
from jax.experimental import pallas as pl
from jax.experimental.pallas import tpu as pltpu


def _round_up(x, m):
    return (x + m - 1) // m * m


def decoder_rnn_kernel(tok_ref,                      # VMEM (T, BT, 1)  int32
                       emb_ref,                      # VMEM (Vp, H)     bf16  relu(embedding), resident
                       h0_ref,                       # VMEM (BT, H)     f32   initial hidden per block
                       wih_ref, whh_ref,             # VMEM (H, 3H)     bf16  resident
                       bih_ref, bhh_ref,             # VMEM (1, 3H)     f32   resident
                       wout_ref, bout_ref,           # VMEM (H, Vp) bf16 / (1, Vp) f32  resident
                       logp_ref,                     # VMEM (T, BT, Vp) f32 out
                       hout_ref):                    # VMEM (BT, H)     f32 out (final hidden)
    T = logp_ref.shape[0]
    BT, H = h0_ref.shape
    Vp = emb_ref.shape[0]
    cdt = wih_ref.dtype                              # bf16 compute dtype for MXU inputs

    # hoisted loop invariants
    cols = lax.broadcasted_iota(jnp.int32, (BT, Vp), 1)

    def step(t, h):
        # --- embedding lookup as an MXU one-hot gather (ReLU already baked into emb_ref) ---
        ids = tok_ref[t]                             # (BT, 1) int32, dynamic first-axis load
        onehot = (cols == ids).astype(cdt)           # (BT, Vp) bf16 one-hot
        x = jnp.dot(onehot, emb_ref[...],
                    preferred_element_type=jnp.float32).astype(cdt)   # exact bf16 rows

        # --- single GRU step (PyTorch gate order r, z, n): bf16 matmuls, f32 accumulate ---
        gi = jnp.dot(x, wih_ref[...], preferred_element_type=jnp.float32) + bih_ref[...]
        gh = jnp.dot(h.astype(cdt), whh_ref[...], preferred_element_type=jnp.float32) + bhh_ref[...]
        r = jax.nn.sigmoid(gi[:, 0:H] + gh[:, 0:H])
        z = jax.nn.sigmoid(gi[:, H:2 * H] + gh[:, H:2 * H])
        n = jnp.tanh(gi[:, 2 * H:3 * H] + r * gh[:, 2 * H:3 * H])
        h_new = (1.0 - z) * n + z * h

        # --- output projection + LogSoftmax (padded vocab cols carry -1e30 bias -> exp()==0) ---
        logits = jnp.dot(h_new.astype(cdt), wout_ref[...],
                         preferred_element_type=jnp.float32) + bout_ref[...]
        m = jnp.max(logits, axis=-1, keepdims=True)
        lse = jnp.log(jnp.sum(jnp.exp(logits - m), axis=-1, keepdims=True)) + m
        logp_ref[t] = logits - lse
        return h_new

    hout_ref[...] = lax.fori_loop(0, T, step, h0_ref[...], unroll=True)


def decode_sequence(tokens, hidden0, params, *, block_b=16):
    """tokens: (T, B) int32 ids; hidden0: (B, H) f32.  Returns ((T, B, V) log-probs, (B, H) hidden).

    block_b=16 puts all streams in one block (best for single-TC v5e/v6e);
    on v7x pass block_b=8 so two batch blocks feed both TensorCores.
    """
    T, B = tokens.shape
    H, V = params["H"], params["V"]
    V_pad = params["b_out"].shape[1]

    block_b = min(block_b, _round_up(B, 8))
    B_pad = _round_up(B, block_b)
    if B_pad != B:                                   # pad dummy streams, sliced off below
        tokens = jnp.pad(tokens, ((0, 0), (0, B_pad - B)))
        hidden0 = jnp.pad(hidden0, ((0, B_pad - B), (0, 0)))
    tokens = tokens.astype(jnp.int32).reshape(T, B_pad, 1)
    hidden0 = hidden0.astype(jnp.float32)
    # ReLU baked into the gathered table (selection commutes with elementwise ReLU).
    emb_relu = jnp.maximum(params["emb"], 0)

    nb = B_pad // block_b
    const = lambda i: (0, 0)                         # grid-resident operands

    logp, h_out = pl.pallas_call(
        decoder_rnn_kernel,
        out_shape=(
            jax.ShapeDtypeStruct((T, B_pad, V_pad), jnp.float32),
            jax.ShapeDtypeStruct((B_pad, H), jnp.float32),
        ),
        grid_spec=pltpu.PrefetchScalarGridSpec(
            num_scalar_prefetch=0,
            grid=(nb,),
            in_specs=[
                pl.BlockSpec((T, block_b, 1), lambda i: (0, i, 0)),   # token ids per batch block
                pl.BlockSpec((V_pad, H), const),                      # relu(embedding) (resident, bf16)
                pl.BlockSpec((block_b, H), lambda i: (i, 0)),         # initial hidden per batch block
                pl.BlockSpec((H, 3 * H), const),                      # W_ih^T (resident, bf16)
                pl.BlockSpec((H, 3 * H), const),                      # W_hh^T (resident, bf16)
                pl.BlockSpec((1, 3 * H), const),                      # b_ih
                pl.BlockSpec((1, 3 * H), const),                      # b_hh
                pl.BlockSpec((H, V_pad), const),                      # W_out^T (resident, bf16)
                pl.BlockSpec((1, V_pad), const),                      # b_out (padded cols = -1e30)
            ],
            out_specs=(
                pl.BlockSpec((T, block_b, V_pad), lambda i: (0, i, 0)),  # lane-dense log-probs
                pl.BlockSpec((block_b, H), lambda i: (i, 0)),            # final hidden
            ),
        ),
        compiler_params=pltpu.CompilerParams(
            dimension_semantics=("parallel",),
            vmem_limit_bytes=32 * 1024 * 1024),
    )(tokens, emb_relu, hidden0, params["w_ih_t"], params["w_hh_t"],
      params["b_ih"], params["b_hh"], params["w_out_t"], params["b_out"])

    return logp[:, :B, :V], h_out[:B]


def decoder_rnn_forward(token_idx, hidden, params):
    """Faithful DecoderRNN.forward: single token, hidden (1,1,H) -> ((1,V) log-probs, (1,1,H))."""
    H = params["H"]
    toks = jnp.reshape(token_idx, (1, 1)).astype(jnp.int32)   # (T=1, B=1)
    h0 = jnp.reshape(hidden, (1, H)).astype(jnp.float32)
    logp, h1 = decode_sequence(toks, h0, params)
    return logp[0], jnp.reshape(h1, (1, 1, H))


def init_params(key, hidden_size, output_size):
    H, V = hidden_size, output_size
    assert H % 128 == 0, "hidden_size must be a multiple of 128 (lane-aligned gate slices)"
    V_pad = _round_up(V, 128)      # lane-dense embedding rows / projection / log-softmax

    k = jax.random.split(key, 7)
    bound = 1.0 / (float(H) ** 0.5)
    u = lambda kk, shape: jax.random.uniform(kk, shape, jnp.float32, -bound, bound)

    emb = jnp.zeros((V_pad, H), jnp.float32).at[:V].set(
        jax.random.normal(k[0], (V, H), jnp.float32)).astype(jnp.bfloat16)   # nn.Embedding ~ N(0,1)

    w_out = jnp.zeros((H, V_pad), jnp.float32).at[:, :V].set(u(k[5], (H, V)))
    b_out = jnp.full((1, V_pad), -1e30, jnp.float32).at[:, :V].set(u(k[6], (1, V)))

    return {
        "H": H, "V": V,
        "emb": emb,                                            # (V_pad, H) bf16
        "w_ih_t": u(k[1], (H, 3 * H)).astype(jnp.bfloat16),    # gate order [r | z | n]
        "w_hh_t": u(k[2], (H, 3 * H)).astype(jnp.bfloat16),
        "b_ih": u(k[3], (1, 3 * H)),
        "b_hh": u(k[4], (1, 3 * H)),
        "w_out_t": w_out.astype(jnp.bfloat16),                 # (H, V_pad) bf16, padded cols zero
        "b_out": b_out,                                        # (1, V_pad) f32, padded cols -1e30
    }


def reference_decode(tokens, hidden0, params):
    """Pure-JAX reference with identical numerics (bf16 embedding + matmuls, f32 accumulate)."""
    H, V = params["H"], params["V"]
    emb = jnp.maximum(params["emb"][:V], 0)                    # relu(embedding), bf16
    w_ih, w_hh = params["w_ih_t"], params["w_hh_t"]
    b_ih, b_hh = params["b_ih"], params["b_hh"]
    w_out, b_out = params["w_out_t"][:, :V], params["b_out"][:, :V]

    h = hidden0.astype(jnp.float32)
    outs = []
    for t in range(tokens.shape[0]):
        x = emb[tokens[t]]                                     # (B, H) bf16
        gi = jnp.dot(x, w_ih, preferred_element_type=jnp.float32) + b_ih
        gh = jnp.dot(h.astype(jnp.bfloat16), w_hh, preferred_element_type=jnp.float32) + b_hh
        r = jax.nn.sigmoid(gi[:, :H] + gh[:, :H])
        z = jax.nn.sigmoid(gi[:, H:2 * H] + gh[:, H:2 * H])
        n = jnp.tanh(gi[:, 2 * H:] + r * gh[:, 2 * H:])
        h = (1.0 - z) * n + z * h
        logits = jnp.dot(h.astype(jnp.bfloat16), w_out, preferred_element_type=jnp.float32) + b_out
        outs.append(jax.nn.log_softmax(logits, axis=-1))
    return jnp.stack(outs, axis=0), h


if __name__ == "__main__":
    H = 256      # matches the original module's hidden_size (and is 128-lane aligned)
    V = 300      # small synthetic target-language vocab (padded to 384 internally)
    B = 16       # independent decode streams (module itself is B=1; B=1/T=1 reproduces it)
    T = 6        # decode steps fused into one pallas_call

    params = init_params(jax.random.PRNGKey(0), H, V)

    kt, _ = jax.random.split(jax.random.PRNGKey(0))
    tokens = jax.random.randint(kt, (T, B), 0, V, dtype=jnp.int32)
    hidden0 = jnp.zeros((B, H), jnp.float32)                   # initHidden() per stream

    logp, hT = decode_sequence(tokens, hidden0, params)
    jax.block_until_ready((logp, hT))

    assert logp.shape == (T, B, V)
    assert hT.shape == (B, H)

    # rows are valid log-probabilities
    prob_sums = jnp.sum(jnp.exp(logp), axis=-1)
    assert bool(jnp.all(jnp.abs(prob_sums - 1.0) < 1e-3))

    # match the pure-JAX reference (same bf16/f32 numerics)
    ref_logp, ref_h = reference_decode(tokens, hidden0, params)
    assert bool(jnp.max(jnp.abs(logp - ref_logp)) < 2e-2)
    assert bool(jnp.max(jnp.abs(hT - ref_h)) < 2e-2)

    # module-faithful single-step call (exactly DecoderRNN.forward semantics)
    out1, h1 = decoder_rnn_forward(jnp.array([[5]], jnp.int32),
                                   jnp.zeros((1, 1, H), jnp.float32), params)
    jax.block_until_ready((out1, h1))
    assert out1.shape == (1, V) and h1.shape == (1, 1, H)
    assert abs(float(jnp.sum(jnp.exp(out1))) - 1.0) < 1e-3

    print("KERNEL_OK")
</pallas_src>

<mosaic_0001>
module attributes {stable_mosaic.version = 11 : i64} {
  func.func @decoder_rnn_kernel(%arg0: i32, %arg1: memref<6x16x1xi32, #tpu.memory_space<vmem>>, %arg2: memref<384x256xbf16, #tpu.memory_space<vmem>>, %arg3: memref<16x256xf32, #tpu.memory_space<vmem>>, %arg4: memref<256x768xbf16, #tpu.memory_space<vmem>>, %arg5: memref<256x768xbf16, #tpu.memory_space<vmem>>, %arg6: memref<1x768xf32, #tpu.memory_space<vmem>>, %arg7: memref<1x768xf32, #tpu.memory_space<vmem>>, %arg8: memref<256x384xbf16, #tpu.memory_space<vmem>>, %arg9: memref<1x384xf32, #tpu.memory_space<vmem>>, %arg10: memref<6x16x384xf32, #tpu.memory_space<vmem>>, %arg11: memref<16x256xf32, #tpu.memory_space<vmem>>) attributes {dimension_semantics = [#tpu.dimension_semantics<parallel>], iteration_bounds = array<i64: 1>, scalar_prefetch = 0 : i64, scratch_operands = 0 : i64, tpu.core_type = #tpu.core_type<tc>, window_params = [{transform_indices = @transform_0, window_bounds = array<i64: 6, 16, 1>}, {pipeline_mode = #tpu.pipeline_mode<synchronous>, transform_indices = @transform_1, window_bounds = array<i64: 384, 256>}, {transform_indices = @transform_2, window_bounds = array<i64: 16, 256>}, {pipeline_mode = #tpu.pipeline_mode<synchronous>, transform_indices = @transform_3, window_bounds = array<i64: 256, 768>}, {pipeline_mode = #tpu.pipeline_mode<synchronous>, transform_indices = @transform_4, window_bounds = array<i64: 256, 768>}, {pipeline_mode = #tpu.pipeline_mode<synchronous>, transform_indices = @transform_5, window_bounds = array<i64: 1, 768>}, {pipeline_mode = #tpu.pipeline_mode<synchronous>, transform_indices = @transform_6, window_bounds = array<i64: 1, 768>}, {pipeline_mode = #tpu.pipeline_mode<synchronous>, transform_indices = @transform_7, window_bounds = array<i64: 256, 384>}, {pipeline_mode = #tpu.pipeline_mode<synchronous>, transform_indices = @transform_8, window_bounds = array<i64: 1, 384>}, {transform_indices = @transform_9, window_bounds = array<i64: 6, 16, 384>}, {transform_indices = @transform_10, window_bounds = array<i64: 16, 256>}]} {
    %0 = tpu.iota {dimensions = array<i32: 1>} : vector<16x384xi32>
    %c0 = arith.constant 0 : index
    %c0_0 = arith.constant 0 : index
    %1 = vector.load %arg3[%c0, %c0_0] : memref<16x256xf32, #tpu.memory_space<vmem>>, vector<16x256xf32>
    %c0_i32 = arith.constant 0 : i32
    %2 = arith.index_cast %c0_i32 : i32 to index
    %c0_1 = arith.constant 0 : index
    %c0_2 = arith.constant 0 : index
    %3 = vector.load %arg1[%2, %c0_1, %c0_2] : memref<6x16x1xi32, #tpu.memory_space<vmem>>, vector<1x16x1xi32>
    %4 = vector.shape_cast %3 : vector<1x16x1xi32> to vector<16x1xi32>
    %5 = vector.broadcast %4 : vector<16x1xi32> to vector<16x384xi32>
    %6 = arith.cmpi eq, %0, %5 : vector<16x384xi32>
    %7 = arith.extui %6 : vector<16x384xi1> to vector<16x384xi32>
    %8 = arith.sitofp %7 : vector<16x384xi32> to vector<16x384xf32>
    %9 = arith.truncf %8 : vector<16x384xf32> to vector<16x384xbf16>
    %c0_3 = arith.constant 0 : index
    %c0_4 = arith.constant 0 : index
    %10 = vector.load %arg2[%c0_3, %c0_4] : memref<384x256xbf16, #tpu.memory_space<vmem>>, vector<384x256xbf16>
    %cst = arith.constant dense<0.000000e+00> : vector<16x256xf32>
    %11 = tpu.matmul %9, %10, %cst {dimension_numbers = #tpu.dot_dimension_numbers<[1], [0], [0], [1], [0, 0, 1, 1], [], []>} : vector<16x384xbf16>, vector<384x256xbf16>, vector<16x256xf32> -> vector<16x256xf32>
    %12 = arith.truncf %11 : vector<16x256xf32> to vector<16x256xbf16>
    %c0_5 = arith.constant 0 : index
    %c0_6 = arith.constant 0 : index
    %13 = vector.load %arg4[%c0_5, %c0_6] : memref<256x768xbf16, #tpu.memory_space<vmem>>, vector<256x768xbf16>
    %cst_7 = arith.constant dense<0.000000e+00> : vector<16x768xf32>
    %14 = tpu.matmul %12, %13, %cst_7 {dimension_numbers = #tpu.dot_dimension_numbers<[1], [0], [0], [1], [0, 0, 1, 1], [], []>} : vector<16x256xbf16>, vector<256x768xbf16>, vector<16x768xf32> -> vector<16x768xf32>
    %c0_8 = arith.constant 0 : index
    %c0_9 = arith.constant 0 : index
    %15 = vector.load %arg6[%c0_8, %c0_9] : memref<1x768xf32, #tpu.memory_space<vmem>>, vector<1x768xf32>
    %16 = vector.broadcast %15 : vector<1x768xf32> to vector<16x768xf32>
    %17 = arith.addf %14, %16 : vector<16x768xf32>
    %18 = arith.truncf %1 : vector<16x256xf32> to vector<16x256xbf16>
    %c0_10 = arith.constant 0 : index
    %c0_11 = arith.constant 0 : index
    %19 = vector.load %arg5[%c0_10, %c0_11] : memref<256x768xbf16, #tpu.memory_space<vmem>>, vector<256x768xbf16>
    %cst_12 = arith.constant dense<0.000000e+00> : vector<16x768xf32>
    %20 = tpu.matmul %18, %19, %cst_12 {dimension_numbers = #tpu.dot_dimension_numbers<[1], [0], [0], [1], [0, 0, 1, 1], [], []>} : vector<16x256xbf16>, vector<256x768xbf16>, vector<16x768xf32> -> vector<16x768xf32>
    %c0_13 = arith.constant 0 : index
    %c0_14 = arith.constant 0 : index
    %21 = vector.load %arg7[%c0_13, %c0_14] : memref<1x768xf32, #tpu.memory_space<vmem>>, vector<1x768xf32>
    %22 = vector.broadcast %21 : vector<1x768xf32> to vector<16x768xf32>
    %23 = arith.addf %20, %22 : vector<16x768xf32>
    %24 = vector.extract_strided_slice %17 {offsets = [0, 0], sizes = [16, 256], strides = [1, 1]} : vector<16x768xf32> to vector<16x256xf32>
    %25 = vector.extract_strided_slice %23 {offsets = [0, 0], sizes = [16, 256], strides = [1, 1]} : vector<16x768xf32> to vector<16x256xf32>
    %26 = arith.addf %24, %25 : vector<16x256xf32>
    %27 = arith.negf %26 : vector<16x256xf32>
    %28 = math.exp %27 : vector<16x256xf32>
    %cst_15 = arith.constant 1.000000e+00 : f32
    %29 = vector.broadcast %cst_15 : f32 to vector<16x256xf32>
    %30 = arith.addf %29, %28 : vector<16x256xf32>
    %31 = arith.divf %29, %30 : vector<16x256xf32>
    %32 = vector.extract_strided_slice %17 {offsets = [0, 256], sizes = [16, 256], strides = [1, 1]} : vector<16x768xf32> to vector<16x256xf32>
    %33 = vector.extract_strided_slice %23 {offsets = [0, 256], sizes = [16, 256], strides = [1, 1]} : vector<16x768xf32> to vector<16x256xf32>
    %34 = arith.addf %32, %33 : vector<16x256xf32>
    %35 = arith.negf %34 : vector<16x256xf32>
    %36 = math.exp %35 : vector<16x256xf32>
    %cst_16 = arith.constant 1.000000e+00 : f32
    %37 = vector.broadcast %cst_16 : f32 to vector<16x256xf32>
    %38 = arith.addf %37, %36 : vector<16x256xf32>
    %39 = arith.divf %37, %38 : vector<16x256xf32>
    %40 = vector.extract_strided_slice %17 {offsets = [0, 512], sizes = [16, 256], strides = [1, 1]} : vector<16x768xf32> to vector<16x256xf32>
    %41 = vector.extract_strided_slice %23 {offsets = [0, 512], sizes = [16, 256], strides = [1, 1]} : vector<16x768xf32> to vector<16x256xf32>
    %42 = arith.mulf %31, %41 : vector<16x256xf32>
    %43 = arith.addf %40, %42 : vector<16x256xf32>
    %44 = math.tanh %43 : vector<16x256xf32>
    %cst_17 = arith.constant 1.000000e+00 : f32
    %45 = vector.broadcast %cst_17 : f32 to vector<16x256xf32>
    %46 = arith.subf %45, %39 : vector<16x256xf32>
    %47 = arith.mulf %46, %44 : vector<16x256xf32>
    %48 = arith.mulf %39, %1 : vector<16x256xf32>
    %49 = arith.addf %47, %48 : vector<16x256xf32>
    %50 = arith.truncf %49 : vector<16x256xf32> to vector<16x256xbf16>
    %c0_18 = arith.constant 0 : index
    %c0_19 = arith.constant 0 : index
    %51 = vector.load %arg8[%c0_18, %c0_19] : memref<256x384xbf16, #tpu.memory_space<vmem>>, vector<256x384xbf16>
    %cst_20 = arith.constant dense<0.000000e+00> : vector<16x384xf32>
    %52 = tpu.matmul %50, %51, %cst_20 {dimension_numbers = #tpu.dot_dimension_numbers<[1], [0], [0], [1], [0, 0, 1, 1], [], []>} : vector<16x256xbf16>, vector<256x384xbf16>, vector<16x384xf32> -> vector<16x384xf32>
    %c0_21 = arith.constant 0 : index
    %c0_22 = arith.constant 0 : index
    %53 = vector.load %arg9[%c0_21, %c0_22] : memref<1x384xf32, #tpu.memory_space<vmem>>, vector<1x384xf32>
    %54 = vector.broadcast %53 : vector<1x384xf32> to vector<16x384xf32>
    %55 = arith.addf %52, %54 : vector<16x384xf32>
    %cst_23 = arith.constant dense<0xFF800000> : vector<16xf32>
    %56 = vector.multi_reduction <maximumf>, %55, %cst_23 [1] : vector<16x384xf32> to vector<16xf32>
    %57 = vector.shape_cast %56 : vector<16xf32> to vector<16x1xf32>
    %58 = vector.broadcast %57 : vector<16x1xf32> to vector<16x384xf32>
    %59 = arith.subf %55, %58 : vector<16x384xf32>
    %60 = math.exp %59 : vector<16x384xf32>
    %cst_24 = arith.constant dense<0.000000e+00> : vector<16xf32>
    %61 = vector.multi_reduction <add>, %60, %cst_24 [1] : vector<16x384xf32> to vector<16xf32>
    %62 = vector.shape_cast %61 : vector<16xf32> to vector<16x1xf32>
    %63 = math.log %62 : vector<16x1xf32>
    %64 = arith.addf %63, %57 : vector<16x1xf32>
    %65 = vector.broadcast %64 : vector<16x1xf32> to vector<16x384xf32>
    %66 = arith.subf %55, %65 : vector<16x384xf32>
    %67 = arith.index_cast %c0_i32 : i32 to index
    %c0_25 = arith.constant 0 : index
    %c0_26 = arith.constant 0 : index
    %68 = vector.load %arg10[%67, %c0_25, %c0_26] : memref<6x16x384xf32, #tpu.memory_space<vmem>>, vector<1x16x384xf32>
    %69 = vector.shape_cast %68 : vector<1x16x384xf32> to vector<16x384xf32>
    %70 = vector.shape_cast %66 : vector<16x384xf32> to vector<1x16x384xf32>
    tpu.vector_store %arg10[%67, %c0_25, %c0_26], %70 {strides = array<i32>} : memref<6x16x384xf32, #tpu.memory_space<vmem>>, vector<1x16x384xf32>,
    %c1_i32 = arith.constant 1 : i32
    %71 = arith.index_cast %c1_i32 : i32 to index
    %c0_27 = arith.constant 0 : index
    %c0_28 = arith.constant 0 : index
    %72 = vector.load %arg1[%71, %c0_27, %c0_28] : memref<6x16x1xi32, #tpu.memory_space<vmem>>, vector<1x16x1xi32>
    %73 = vector.shape_cast %72 : vector<1x16x1xi32> to vector<16x1xi32>
    %74 = vector.broadcast %73 : vector<16x1xi32> to vector<16x384xi32>
    %75 = arith.cmpi eq, %0, %74 : vector<16x384xi32>
    %76 = arith.extui %75 : vector<16x384xi1> to vector<16x384xi32>
    %77 = arith.sitofp %76 : vector<16x384xi32> to vector<16x384xf32>
    %78 = arith.truncf %77 : vector<16x384xf32> to vector<16x384xbf16>
    %c0_29 = arith.constant 0 : index
    %c0_30 = arith.constant 0 : index
    %79 = vector.load %arg2[%c0_29, %c0_30] : memref<384x256xbf16, #tpu.memory_space<vmem>>, vector<384x256xbf16>
    %cst_31 = arith.constant dense<0.000000e+00> : vector<16x256xf32>
    %80 = tpu.matmul %78, %79, %cst_31 {dimension_numbers = #tpu.dot_dimension_numbers<[1], [0], [0], [1], [0, 0, 1, 1], [], []>} : vector<16x384xbf16>, vector<384x256xbf16>, vector<16x256xf32> -> vector<16x256xf32>
    %81 = arith.truncf %80 : vector<16x256xf32> to vector<16x256xbf16>
    %c0_32 = arith.constant 0 : index
    %c0_33 = arith.constant 0 : index
    %82 = vector.load %arg4[%c0_32, %c0_33] : memref<256x768xbf16, #tpu.memory_space<vmem>>, vector<256x768xbf16>
    %cst_34 = arith.constant dense<0.000000e+00> : vector<16x768xf32>
    %83 = tpu.matmul %81, %82, %cst_34 {dimension_numbers = #tpu.dot_dimension_numbers<[1], [0], [0], [1], [0, 0, 1, 1], [], []>} : vector<16x256xbf16>, vector<256x768xbf16>, vector<16x768xf32> -> vector<16x768xf32>
    %c0_35 = arith.constant 0 : index
    %c0_36 = arith.constant 0 : index
    %84 = vector.load %arg6[%c0_35, %c0_36] : memref<1x768xf32, #tpu.memory_space<vmem>>, vector<1x768xf32>
    %85 = vector.broadcast %84 : vector<1x768xf32> to vector<16x768xf32>
    %86 = arith.addf %83, %85 : vector<16x768xf32>
    %87 = arith.truncf %49 : vector<16x256xf32> to vector<16x256xbf16>
    %c0_37 = arith.constant 0 : index
    %c0_38 = arith.constant 0 : index
    %88 = vector.load %arg5[%c0_37, %c0_38] : memref<256x768xbf16, #tpu.memory_space<vmem>>, vector<256x768xbf16>
    %cst_39 = arith.constant dense<0.000000e+00> : vector<16x768xf32>
    %89 = tpu.matmul %87, %88, %cst_39 {dimension_numbers = #tpu.dot_dimension_numbers<[1], [0], [0], [1], [0, 0, 1, 1], [], []>} : vector<16x256xbf16>, vector<256x768xbf16>, vector<16x768xf32> -> vector<16x768xf32>
    %c0_40 = arith.constant 0 : index
    %c0_41 = arith.constant 0 : index
    %90 = vector.load %arg7[%c0_40, %c0_41] : memref<1x768xf32, #tpu.memory_space<vmem>>, vector<1x768xf32>
    %91 = vector.broadcast %90 : vector<1x768xf32> to vector<16x768xf32>
    %92 = arith.addf %89, %91 : vector<16x768xf32>
    %93 = vector.extract_strided_slice %86 {offsets = [0, 0], sizes = [16, 256], strides = [1, 1]} : vector<16x768xf32> to vector<16x256xf32>
    %94 = vector.extract_strided_slice %92 {offsets = [0, 0], sizes = [16, 256], strides = [1, 1]} : vector<16x768xf32> to vector<16x256xf32>
    %95 = arith.addf %93, %94 : vector<16x256xf32>
    %96 = arith.negf %95 : vector<16x256xf32>
    %97 = math.exp %96 : vector<16x256xf32>
    %cst_42 = arith.constant 1.000000e+00 : f32
    %98 = vector.broadcast %cst_42 : f32 to vector<16x256xf32>
    %99 = arith.addf %98, %97 : vector<16x256xf32>
    %100 = arith.divf %98, %99 : vector<16x256xf32>
    %101 = vector.extract_strided_slice %86 {offsets = [0, 256], sizes = [16, 256], strides = [1, 1]} : vector<16x768xf32> to vector<16x256xf32>
    %102 = vector.extract_strided_slice %92 {offsets = [0, 256], sizes = [16, 256], strides = [1, 1]} : vector<16x768xf32> to vector<16x256xf32>
    %103 = arith.addf %101, %102 : vector<16x256xf32>
    %104 = arith.negf %103 : vector<16x256xf32>
    %105 = math.exp %104 : vector<16x256xf32>
    %cst_43 = arith.constant 1.000000e+00 : f32
    %106 = vector.broadcast %cst_43 : f32 to vector<16x256xf32>
    %107 = arith.addf %106, %105 : vector<16x256xf32>
    %108 = arith.divf %106, %107 : vector<16x256xf32>
    %109 = vector.extract_strided_slice %86 {offsets = [0, 512], sizes = [16, 256], strides = [1, 1]} : vector<16x768xf32> to vector<16x256xf32>
    %110 = vector.extract_strided_slice %92 {offsets = [0, 512], sizes = [16, 256], strides = [1, 1]} : vector<16x768xf32> to vector<16x256xf32>
    %111 = arith.mulf %100, %110 : vector<16x256xf32>
    %112 = arith.addf %109, %111 : vector<16x256xf32>
    %113 = math.tanh %112 : vector<16x256xf32>
    %cst_44 = arith.constant 1.000000e+00 : f32
    %114 = vector.broadcast %cst_44 : f32 to vector<16x256xf32>
    %115 = arith.subf %114, %108 : vector<16x256xf32>
    %116 = arith.mulf %115, %113 : vector<16x256xf32>
    %117 = arith.mulf %108, %49 : vector<16x256xf32>
    %118 = arith.addf %116, %117 : vector<16x256xf32>
    %119 = arith.truncf %118 : vector<16x256xf32> to vector<16x256xbf16>
    %c0_45 = arith.constant 0 : index
    %c0_46 = arith.constant 0 : index
    %120 = vector.load %arg8[%c0_45, %c0_46] : memref<256x384xbf16, #tpu.memory_space<vmem>>, vector<256x384xbf16>
    %cst_47 = arith.constant dense<0.000000e+00> : vector<16x384xf32>
    %121 = tpu.matmul %119, %120, %cst_47 {dimension_numbers = #tpu.dot_dimension_numbers<[1], [0], [0], [1], [0, 0, 1, 1], [], []>} : vector<16x256xbf16>, vector<256x384xbf16>, vector<16x384xf32> -> vector<16x384xf32>
    %c0_48 = arith.constant 0 : index
    %c0_49 = arith.constant 0 : index
    %122 = vector.load %arg9[%c0_48, %c0_49] : memref<1x384xf32, #tpu.memory_space<vmem>>, vector<1x384xf32>
    %123 = vector.broadcast %122 : vector<1x384xf32> to vector<16x384xf32>
    %124 = arith.addf %121, %123 : vector<16x384xf32>
    %cst_50 = arith.constant dense<0xFF800000> : vector<16xf32>
    %125 = vector.multi_reduction <maximumf>, %124, %cst_50 [1] : vector<16x384xf32> to vector<16xf32>
    %126 = vector.shape_cast %125 : vector<16xf32> to vector<16x1xf32>
    %127 = vector.broadcast %126 : vector<16x1xf32> to vector<16x384xf32>
    %128 = arith.subf %124, %127 : vector<16x384xf32>
    %129 = math.exp %128 : vector<16x384xf32>
    %cst_51 = arith.constant dense<0.000000e+00> : vector<16xf32>
    %130 = vector.multi_reduction <add>, %129, %cst_51 [1] : vector<16x384xf32> to vector<16xf32>
    %131 = vector.shape_cast %130 : vector<16xf32> to vector<16x1xf32>
    %132 = math.log %131 : vector<16x1xf32>
    %133 = arith.addf %132, %126 : vector<16x1xf32>
    %134 = vector.broadcast %133 : vector<16x1xf32> to vector<16x384xf32>
    %135 = arith.subf %124, %134 : vector<16x384xf32>
    %136 = arith.index_cast %c1_i32 : i32 to index
    %c0_52 = arith.constant 0 : index
    %c0_53 = arith.constant 0 : index
    %137 = vector.load %arg10[%136, %c0_52, %c0_53] : memref<6x16x384xf32, #tpu.memory_space<vmem>>, vector<1x16x384xf32>
    %138 = vector.shape_cast %137 : vector<1x16x384xf32> to vector<16x384xf32>
    %139 = vector.shape_cast %135 : vector<16x384xf32> to vector<1x16x384xf32>
    tpu.vector_store %arg10[%136, %c0_52, %c0_53], %139 {strides = array<i32>} : memref<6x16x384xf32, #tpu.memory_space<vmem>>, vector<1x16x384xf32>,
    %c2_i32 = arith.constant 2 : i32
    %140 = arith.index_cast %c2_i32 : i32 to index
    %c0_54 = arith.constant 0 : index
    %c0_55 = arith.constant 0 : index
    %141 = vector.load %arg1[%140, %c0_54, %c0_55] : memref<6x16x1xi32, #tpu.memory_space<vmem>>, vector<1x16x1xi32>
    %142 = vector.shape_cast %141 : vector<1x16x1xi32> to vector<16x1xi32>
    %143 = vector.broadcast %142 : vector<16x1xi32> to vector<16x384xi32>
    %144 = arith.cmpi eq, %0, %143 : vector<16x384xi32>
    %145 = arith.extui %144 : vector<16x384xi1> to vector<16x384xi32>
    %146 = arith.sitofp %145 : vector<16x384xi32> to vector<16x384xf32>
    %147 = arith.truncf %146 : vector<16x384xf32> to vector<16x384xbf16>
    %c0_56 = arith.constant 0 : index
    %c0_57 = arith.constant 0 : index
    %148 = vector.load %arg2[%c0_56, %c0_57] : memref<384x256xbf16, #tpu.memory_space<vmem>>, vector<384x256xbf16>
    %cst_58 = arith.constant dense<0.000000e+00> : vector<16x256xf32>
    %149 = tpu.matmul %147, %148, %cst_58 {dimension_numbers = #tpu.dot_dimension_numbers<[1], [0], [0], [1], [0, 0, 1, 1], [], []>} : vector<16x384xbf16>, vector<384x256xbf16>, vector<16x256xf32> -> vector<16x256xf32>
    %150 = arith.truncf %149 : vector<16x256xf32> to vector<16x256xbf16>
    %c0_59 = arith.constant 0 : index
    %c0_60 = arith.constant 0 : index
    %151 = vector.load %arg4[%c0_59, %c0_60] : memref<256x768xbf16, #tpu.memory_space<vmem>>, vector<256x768xbf16>
    %cst_61 = arith.constant dense<0.000000e+00> : vector<16x768xf32>
    %152 = tpu.matmul %150, %151, %cst_61 {dimension_numbers = #tpu.dot_dimension_numbers<[1], [0], [0], [1], [0, 0, 1, 1], [], []>} : vector<16x256xbf16>, vector<256x768xbf16>, vector<16x768xf32> -> vector<16x768xf32>
    %c0_62 = arith.constant 0 : index
    %c0_63 = arith.constant 0 : index
    %153 = vector.load %arg6[%c0_62, %c0_63] : memref<1x768xf32, #tpu.memory_space<vmem>>, vector<1x768xf32>
    %154 = vector.broadcast %153 : vector<1x768xf32> to vector<16x768xf32>
    %155 = arith.addf %152, %154 : vector<16x768xf32>
    %156 = arith.truncf %118 : vector<16x256xf32> to vector<16x256xbf16>
    %c0_64 = arith.constant 0 : index
    %c0_65 = arith.constant 0 : index
    %157 = vector.load %arg5[%c0_64, %c0_65] : memref<256x768xbf16, #tpu.memory_space<vmem>>, vector<256x768xbf16>
    %cst_66 = arith.constant dense<0.000000e+00> : vector<16x768xf32>
    %158 = tpu.matmul %156, %157, %cst_66 {dimension_numbers = #tpu.dot_dimension_numbers<[1], [0], [0], [1], [0, 0, 1, 1], [], []>} : vector<16x256xbf16>, vector<256x768xbf16>, vector<16x768xf32> -> vector<16x768xf32>
    %c0_67 = arith.constant 0 : index
    %c0_68 = arith.constant 0 : index
    %159 = vector.load %arg7[%c0_67, %c0_68] : memref<1x768xf32, #tpu.memory_space<vmem>>, vector<1x768xf32>
    %160 = vector.broadcast %159 : vector<1x768xf32> to vector<16x768xf32>
    %161 = arith.addf %158, %160 : vector<16x768xf32>
    %162 = vector.extract_strided_slice %155 {offsets = [0, 0], sizes = [16, 256], strides = [1, 1]} : vector<16x768xf32> to vector<16x256xf32>
    %163 = vector.extract_strided_slice %161 {offsets = [0, 0], sizes = [16, 256], strides = [1, 1]} : vector<16x768xf32> to vector<16x256xf32>
    %164 = arith.addf %162, %163 : vector<16x256xf32>
    %165 = arith.negf %164 : vector<16x256xf32>
    %166 = math.exp %165 : vector<16x256xf32>
    %cst_69 = arith.constant 1.000000e+00 : f32
    %167 = vector.broadcast %cst_69 : f32 to vector<16x256xf32>
    %168 = arith.addf %167, %166 : vector<16x256xf32>
    %169 = arith.divf %167, %168 : vector<16x256xf32>
    %170 = vector.extract_strided_slice %155 {offsets = [0, 256], sizes = [16, 256], strides = [1, 1]} : vector<16x768xf32> to vector<16x256xf32>
    %171 = vector.extract_strided_slice %161 {offsets = [0, 256], sizes = [16, 256], strides = [1, 1]} : vector<16x768xf32> to vector<16x256xf32>
    %172 = arith.addf %170, %171 : vector<16x256xf32>
    %173 = arith.negf %172 : vector<16x256xf32>
    %174 = math.exp %173 : vector<16x256xf32>
    %cst_70 = arith.constant 1.000000e+00 : f32
    %175 = vector.broadcast %cst_70 : f32 to vector<16x256xf32>
    %176 = arith.addf %175, %174 : vector<16x256xf32>
    %177 = arith.divf %175, %176 : vector<16x256xf32>
    %178 = vector.extract_strided_slice %155 {offsets = [0, 512], sizes = [16, 256], strides = [1, 1]} : vector<16x768xf32> to vector<16x256xf32>
    %179 = vector.extract_strided_slice %161 {offsets = [0, 512], sizes = [16, 256], strides = [1, 1]} : vector<16x768xf32> to vector<16x256xf32>
    %180 = arith.mulf %169, %179 : vector<16x256xf32>
    %181 = arith.addf %178, %180 : vector<16x256xf32>
    %182 = math.tanh %181 : vector<16x256xf32>
    %cst_71 = arith.constant 1.000000e+00 : f32
    %183 = vector.broadcast %cst_71 : f32 to vector<16x256xf32>
    %184 = arith.subf %183, %177 : vector<16x256xf32>
    %185 = arith.mulf %184, %182 : vector<16x256xf32>
    %186 = arith.mulf %177, %118 : vector<16x256xf32>
    %187 = arith.addf %185, %186 : vector<16x256xf32>
    %188 = arith.truncf %187 : vector<16x256xf32> to vector<16x256xbf16>
    %c0_72 = arith.constant 0 : index
    %c0_73 = arith.constant 0 : index
    %189 = vector.load %arg8[%c0_72, %c0_73] : memref<256x384xbf16, #tpu.memory_space<vmem>>, vector<256x384xbf16>
    %cst_74 = arith.constant dense<0.000000e+00> : vector<16x384xf32>
    %190 = tpu.matmul %188, %189, %cst_74 {dimension_numbers = #tpu.dot_dimension_numbers<[1], [0], [0], [1], [0, 0, 1, 1], [], []>} : vector<16x256xbf16>, vector<256x384xbf16>, vector<16x384xf32> -> vector<16x384xf32>
    %c0_75 = arith.constant 0 : index
    %c0_76 = arith.constant 0 : index
    %191 = vector.load %arg9[%c0_75, %c0_76] : memref<1x384xf32, #tpu.memory_space<vmem>>, vector<1x384xf32>
    %192 = vector.broadcast %191 : vector<1x384xf32> to vector<16x384xf32>
    %193 = arith.addf %190, %192 : vector<16x384xf32>
    %cst_77 = arith.constant dense<0xFF800000> : vector<16xf32>
    %194 = vector.multi_reduction <maximumf>, %193, %cst_77 [1] : vector<16x384xf32> to vector<16xf32>
    %195 = vector.shape_cast %194 : vector<16xf32> to vector<16x1xf32>
    %196 = vector.broadcast %195 : vector<16x1xf32> to vector<16x384xf32>
    %197 = arith.subf %193, %196 : vector<16x384xf32>
    %198 = math.exp %197 : vector<16x384xf32>
    %cst_78 = arith.constant dense<0.000000e+00> : vector<16xf32>
    %199 = vector.multi_reduction <add>, %198, %cst_78 [1] : vector<16x384xf32> to vector<16xf32>
    %200 = vector.shape_cast %199 : vector<16xf32> to vector<16x1xf32>
    %201 = math.log %200 : vector<16x1xf32>
    %202 = arith.addf %201, %195 : vector<16x1xf32>
    %203 = vector.broadcast %202 : vector<16x1xf32> to vector<16x384xf32>
    %204 = arith.subf %193, %203 : vector<16x384xf32>
    %205 = arith.index_cast %c2_i32 : i32 to index
    %c0_79 = arith.constant 0 : index
    %c0_80 = arith.constant 0 : index
    %206 = vector.load %arg10[%205, %c0_79, %c0_80] : memref<6x16x384xf32, #tpu.memory_space<vmem>>, vector<1x16x384xf32>
    %207 = vector.shape_cast %206 : vector<1x16x384xf32> to vector<16x384xf32>
    %208 = vector.shape_cast %204 : vector<16x384xf32> to vector<1x16x384xf32>
    tpu.vector_store %arg10[%205, %c0_79, %c0_80], %208 {strides = array<i32>} : memref<6x16x384xf32, #tpu.memory_space<vmem>>, vector<1x16x384xf32>,
    %c3_i32 = arith.constant 3 : i32
    %209 = arith.index_cast %c3_i32 : i32 to index
    %c0_81 = arith.constant 0 : index
    %c0_82 = arith.constant 0 : index
    %210 = vector.load %arg1[%209, %c0_81, %c0_82] : memref<6x16x1xi32, #tpu.memory_space<vmem>>, vector<1x16x1xi32>
    %211 = vector.shape_cast %210 : vector<1x16x1xi32> to vector<16x1xi32>
    %212 = vector.broadcast %211 : vector<16x1xi32> to vector<16x384xi32>
    %213 = arith.cmpi eq, %0, %212 : vector<16x384xi32>
    %214 = arith.extui %213 : vector<16x384xi1> to vector<16x384xi32>
    %215 = arith.sitofp %214 : vector<16x384xi32> to vector<16x384xf32>
    %216 = arith.truncf %215 : vector<16x384xf32> to vector<16x384xbf16>
    %c0_83 = arith.constant 0 : index
    %c0_84 = arith.constant 0 : index
    %217 = vector.load %arg2[%c0_83, %c0_84] : memref<384x256xbf16, #tpu.memory_space<vmem>>, vector<384x256xbf16>
    %cst_85 = arith.constant dense<0.000000e+00> : vector<16x256xf32>
    %218 = tpu.matmul %216, %217, %cst_85 {dimension_numbers = #tpu.dot_dimension_numbers<[1], [0], [0], [1], [0, 0, 1, 1], [], []>} : vector<16x384xbf16>, vector<384x256xbf16>, vector<16x256xf32> -> vector<16x256xf32>
    %219 = arith.truncf %218 : vector<16x256xf32> to vector<16x256xbf16>
    %c0_86 = arith.constant 0 : index
    %c0_87 = arith.constant 0 : index
    %220 = vector.load %arg4[%c0_86, %c0_87] : memref<256x768xbf16, #tpu.memory_space<vmem>>, vector<256x768xbf16>
    %cst_88 = arith.constant dense<0.000000e+00> : vector<16x768xf32>
    %221 = tpu.matmul %219, %220, %cst_88 {dimension_numbers = #tpu.dot_dimension_numbers<[1], [0], [0], [1], [0, 0, 1, 1], [], []>} : vector<16x256xbf16>, vector<256x768xbf16>, vector<16x768xf32> -> vector<16x768xf32>
    %c0_89 = arith.constant 0 : index
    %c0_90 = arith.constant 0 : index
    %222 = vector.load %arg6[%c0_89, %c0_90] : memref<1x768xf32, #tpu.memory_space<vmem>>, vector<1x768xf32>
    %223 = vector.broadcast %222 : vector<1x768xf32> to vector<16x768xf32>
    %224 = arith.addf %221, %223 : vector<16x768xf32>
    %225 = arith.truncf %187 : vector<16x256xf32> to vector<16x256xbf16>
    %c0_91 = arith.constant 0 : index
    %c0_92 = arith.constant 0 : index
    %226 = vector.load %arg5[%c0_91, %c0_92] : memref<256x768xbf16, #tpu.memory_space<vmem>>, vector<256x768xbf16>
    %cst_93 = arith.constant dense<0.000000e+00> : vector<16x768xf32>
    %227 = tpu.matmul %225, %226, %cst_93 {dimension_numbers = #tpu.dot_dimension_numbers<[1], [0], [0], [1], [0, 0, 1, 1], [], []>} : vector<16x256xbf16>, vector<256x768xbf16>, vector<16x768xf32> -> vector<16x768xf32>
    %c0_94 = arith.constant 0 : index
    %c0_95 = arith.constant 0 : index
    %228 = vector.load %arg7[%c0_94, %c0_95] : memref<1x768xf32, #tpu.memory_space<vmem>>, vector<1x768xf32>
    %229 = vector.broadcast %228 : vector<1x768xf32> to vector<16x768xf32>
    %230 = arith.addf %227, %229 : vector<16x768xf32>
    %231 = vector.extract_strided_slice %224 {offsets = [0, 0], sizes = [16, 256], strides = [1, 1]} : vector<16x768xf32> to vector<16x256xf32>
    %232 = vector.extract_strided_slice %230 {offsets = [0, 0], sizes = [16, 256], strides = [1, 1]} : vector<16x768xf32> to vector<16x256xf32>
    %233 = arith.addf %231, %232 : vector<16x256xf32>
    %234 = arith.negf %233 : vector<16x256xf32>
    %235 = math.exp %234 : vector<16x256xf32>
    %cst_96 = arith.constant 1.000000e+00 : f32
    %236 = vector.broadcast %cst_96 : f32 to vector<16x256xf32>
    %237 = arith.addf %236, %235 : vector<16x256xf32>
    %238 = arith.divf %236, %237 : vector<16x256xf32>
    %239 = vector.extract_strided_slice %224 {offsets = [0, 256], sizes = [16, 256], strides = [1, 1]} : vector<16x768xf32> to vector<16x256xf32>
    %240 = vector.extract_strided_slice %230 {offsets = [0, 256], sizes = [16, 256], strides = [1, 1]} : vector<16x768xf32> to vector<16x256xf32>
    %241 = arith.addf %239, %240 : vector<16x256xf32>
    %242 = arith.negf %241 : vector<16x256xf32>
    %243 = math.exp %242 : vector<16x256xf32>
    %cst_97 = arith.constant 1.000000e+00 : f32
    %244 = vector.broadcast %cst_97 : f32 to vector<16x256xf32>
    %245 = arith.addf %244, %243 : vector<16x256xf32>
    %246 = arith.divf %244, %245 : vector<16x256xf32>
    %247 = vector.extract_strided_slice %224 {offsets = [0, 512], sizes = [16, 256], strides = [1, 1]} : vector<16x768xf32> to vector<16x256xf32>
    %248 = vector.extract_strided_slice %230 {offsets = [0, 512], sizes = [16, 256], strides = [1, 1]} : vector<16x768xf32> to vector<16x256xf32>
    %249 = arith.mulf %238, %248 : vector<16x256xf32>
    %250 = arith.addf %247, %249 : vector<16x256xf32>
    %251 = math.tanh %250 : vector<16x256xf32>
    %cst_98 = arith.constant 1.000000e+00 : f32
    %252 = vector.broadcast %cst_98 : f32 to vector<16x256xf32>
    %253 = arith.subf %252, %246 : vector<16x256xf32>
    %254 = arith.mulf %253, %251 : vector<16x256xf32>
    %255 = arith.mulf %246, %187 : vector<16x256xf32>
    %256 = arith.addf %254, %255 : vector<16x256xf32>
    %257 = arith.truncf %256 : vector<16x256xf32> to vector<16x256xbf16>
    %c0_99 = arith.constant 0 : index
    %c0_100 = arith.constant 0 : index
    %258 = vector.load %arg8[%c0_99, %c0_100] : memref<256x384xbf16, #tpu.memory_space<vmem>>, vector<256x384xbf16>
    %cst_101 = arith.constant dense<0.000000e+00> : vector<16x384xf32>
    %259 = tpu.matmul %257, %258, %cst_101 {dimension_numbers = #tpu.dot_dimension_numbers<[1], [0], [0], [1], [0, 0, 1, 1], [], []>} : vector<16x256xbf16>, vector<256x384xbf16>, vector<16x384xf32> -> vector<16x384xf32>
    %c0_102 = arith.constant 0 : index
    %c0_103 = arith.constant 0 : index
    %260 = vector.load %arg9[%c0_102, %c0_103] : memref<1x384xf32, #tpu.memory_space<vmem>>, vector<1x384xf32>
    %261 = vector.broadcast %260 : vector<1x384xf32> to vector<16x384xf32>
    %262 = arith.addf %259, %261 : vector<16x384xf32>
    %cst_104 = arith.constant dense<0xFF800000> : vector<16xf32>
    %263 = vector.multi_reduction <maximumf>, %262, %cst_104 [1] : vector<16x384xf32> to vector<16xf32>
    %264 = vector.shape_cast %263 : vector<16xf32> to vector<16x1xf32>
    %265 = vector.broadcast %264 : vector<16x1xf32> to vector<16x384xf32>
    %266 = arith.subf %262, %265 : vector<16x384xf32>
    %267 = math.exp %266 : vector<16x384xf32>
    %cst_105 = arith.constant dense<0.000000e+00> : vector<16xf32>
    %268 = vector.multi_reduction <add>, %267, %cst_105 [1] : vector<16x384xf32> to vector<16xf32>
    %269 = vector.shape_cast %268 : vector<16xf32> to vector<16x1xf32>
    %270 = math.log %269 : vector<16x1xf32>
    %271 = arith.addf %270, %264 : vector<16x1xf32>
    %272 = vector.broadcast %271 : vector<16x1xf32> to vector<16x384xf32>
    %273 = arith.subf %262, %272 : vector<16x384xf32>
    %274 = arith.index_cast %c3_i32 : i32 to index
    %c0_106 = arith.constant 0 : index
    %c0_107 = arith.constant 0 : index
    %275 = vector.load %arg10[%274, %c0_106, %c0_107] : memref<6x16x384xf32, #tpu.memory_space<vmem>>, vector<1x16x384xf32>
    %276 = vector.shape_cast %275 : vector<1x16x384xf32> to vector<16x384xf32>
    %277 = vector.shape_cast %273 : vector<16x384xf32> to vector<1x16x384xf32>
    tpu.vector_store %arg10[%274, %c0_106, %c0_107], %277 {strides = array<i32>} : memref<6x16x384xf32, #tpu.memory_space<vmem>>, vector<1x16x384xf32>,
    %c4_i32 = arith.constant 4 : i32
    %278 = arith.index_cast %c4_i32 : i32 to index
    %c0_108 = arith.constant 0 : index
    %c0_109 = arith.constant 0 : index
    %279 = vector.load %arg1[%278, %c0_108, %c0_109] : memref<6x16x1xi32, #tpu.memory_space<vmem>>, vector<1x16x1xi32>
    %280 = vector.shape_cast %279 : vector<1x16x1xi32> to vector<16x1xi32>
    %281 = vector.broadcast %280 : vector<16x1xi32> to vector<16x384xi32>
    %282 = arith.cmpi eq, %0, %281 : vector<16x384xi32>
    %283 = arith.extui %282 : vector<16x384xi1> to vector<16x384xi32>
    %284 = arith.sitofp %283 : vector<16x384xi32> to vector<16x384xf32>
    %285 = arith.truncf %284 : vector<16x384xf32> to vector<16x384xbf16>
    %c0_110 = arith.constant 0 : index
    %c0_111 = arith.constant 0 : index
    %286 = vector.load %arg2[%c0_110, %c0_111] : memref<384x256xbf16, #tpu.memory_space<vmem>>, vector<384x256xbf16>
    %cst_112 = arith.constant dense<0.000000e+00> : vector<16x256xf32>
    %287 = tpu.matmul %285, %286, %cst_112 {dimension_numbers = #tpu.dot_dimension_numbers<[1], [0], [0], [1], [0, 0, 1, 1], [], []>} : vector<16x384xbf16>, vector<384x256xbf16>, vector<16x256xf32> -> vector<16x256xf32>
    %288 = arith.truncf %287 : vector<16x256xf32> to vector<16x256xbf16>
    %c0_113 = arith.constant 0 : index
    %c0_114 = arith.constant 0 : index
    %289 = vector.load %arg4[%c0_113, %c0_114] : memref<256x768xbf16, #tpu.memory_space<vmem>>, vector<256x768xbf16>
    %cst_115 = arith.constant dense<0.000000e+00> : vector<16x768xf32>
    %290 = tpu.matmul %288, %289, %cst_115 {dimension_numbers = #tpu.dot_dimension_numbers<[1], [0], [0], [1], [0, 0, 1, 1], [], []>} : vector<16x256xbf16>, vector<256x768xbf16>, vector<16x768xf32> -> vector<16x768xf32>
    %c0_116 = arith.constant 0 : index
    %c0_117 = arith.constant 0 : index
    %291 = vector.load %arg6[%c0_116, %c0_117] : memref<1x768xf32, #tpu.memory_space<vmem>>, vector<1x768xf32>
    %292 = vector.broadcast %291 : vector<1x768xf32> to vector<16x768xf32>
    %293 = arith.addf %290, %292 : vector<16x768xf32>
    %294 = arith.truncf %256 : vector<16x256xf32> to vector<16x256xbf16>
    %c0_118 = arith.constant 0 : index
    %c0_119 = arith.constant 0 : index
    %295 = vector.load %arg5[%c0_118, %c0_119] : memref<256x768xbf16, #tpu.memory_space<vmem>>, vector<256x768xbf16>
    %cst_120 = arith.constant dense<0.000000e+00> : vector<16x768xf32>
    %296 = tpu.matmul %294, %295, %cst_120 {dimension_numbers = #tpu.dot_dimension_numbers<[1], [0], [0], [1], [0, 0, 1, 1], [], []>} : vector<16x256xbf16>, vector<256x768xbf16>, vector<16x768xf32> -> vector<16x768xf32>
    %c0_121 = arith.constant 0 : index
    %c0_122 = arith.constant 0 : index
    %297 = vector.load %arg7[%c0_121, %c0_122] : memref<1x768xf32, #tpu.memory_space<vmem>>, vector<1x768xf32>
    %298 = vector.broadcast %297 : vector<1x768xf32> to vector<16x768xf32>
    %299 = arith.addf %296, %298 : vector<16x768xf32>
    %300 = vector.extract_strided_slice %293 {offsets = [0, 0], sizes = [16, 256], strides = [1, 1]} : vector<16x768xf32> to vector<16x256xf32>
    %301 = vector.extract_strided_slice %299 {offsets = [0, 0], sizes = [16, 256], strides = [1, 1]} : vector<16x768xf32> to vector<16x256xf32>
    %302 = arith.addf %300, %301 : vector<16x256xf32>
    %303 = arith.negf %302 : vector<16x256xf32>
    %304 = math.exp %303 : vector<16x256xf32>
    %cst_123 = arith.constant 1.000000e+00 : f32
    %305 = vector.broadcast %cst_123 : f32 to vector<16x256xf32>
    %306 = arith.addf %305, %304 : vector<16x256xf32>
    %307 = arith.divf %305, %306 : vector<16x256xf32>
    %308 = vector.extract_strided_slice %293 {offsets = [0, 256], sizes = [16, 256], strides = [1, 1]} : vector<16x768xf32> to vector<16x256xf32>
    %309 = vector.extract_strided_slice %299 {offsets = [0, 256], sizes = [16, 256], strides = [1, 1]} : vector<16x768xf32> to vector<16x256xf32>
    %310 = arith.addf %308, %309 : vector<16x256xf32>
    %311 = arith.negf %310 : vector<16x256xf32>
    %312 = math.exp %311 : vector<16x256xf32>
    %cst_124 = arith.constant 1.000000e+00 : f32
    %313 = vector.broadcast %cst_124 : f32 to vector<16x256xf32>
    %314 = arith.addf %313, %312 : vector<16x256xf32>
    %315 = arith.divf %313, %314 : vector<16x256xf32>
    %316 = vector.extract_strided_slice %293 {offsets = [0, 512], sizes = [16, 256], strides = [1, 1]} : vector<16x768xf32> to vector<16x256xf32>
    %317 = vector.extract_strided_slice %299 {offsets = [0, 512], sizes = [16, 256], strides = [1, 1]} : vector<16x768xf32> to vector<16x256xf32>
    %318 = arith.mulf %307, %317 : vector<16x256xf32>
    %319 = arith.addf %316, %318 : vector<16x256xf32>
    %320 = math.tanh %319 : vector<16x256xf32>
    %cst_125 = arith.constant 1.000000e+00 : f32
    %321 = vector.broadcast %cst_125 : f32 to vector<16x256xf32>
    %322 = arith.subf %321, %315 : vector<16x256xf32>
    %323 = arith.mulf %322, %320 : vector<16x256xf32>
    %324 = arith.mulf %315, %256 : vector<16x256xf32>
    %325 = arith.addf %323, %324 : vector<16x256xf32>
    %326 = arith.truncf %325 : vector<16x256xf32> to vector<16x256xbf16>
    %c0_126 = arith.constant 0 : index
    %c0_127 = arith.constant 0 : index
    %327 = vector.load %arg8[%c0_126, %c0_127] : memref<256x384xbf16, #tpu.memory_space<vmem>>, vector<256x384xbf16>
    %cst_128 = arith.constant dense<0.000000e+00> : vector<16x384xf32>
    %328 = tpu.matmul %326, %327, %cst_128 {dimension_numbers = #tpu.dot_dimension_numbers<[1], [0], [0], [1], [0, 0, 1, 1], [], []>} : vector<16x256xbf16>, vector<256x384xbf16>, vector<16x384xf32> -> vector<16x384xf32>
    %c0_129 = arith.constant 0 : index
    %c0_130 = arith.constant 0 : index
    %329 = vector.load %arg9[%c0_129, %c0_130] : memref<1x384xf32, #tpu.memory_space<vmem>>, vector<1x384xf32>
    %330 = vector.broadcast %329 : vector<1x384xf32> to vector<16x384xf32>
    %331 = arith.addf %328, %330 : vector<16x384xf32>
    %cst_131 = arith.constant dense<0xFF800000> : vector<16xf32>
    %332 = vector.multi_reduction <maximumf>, %331, %cst_131 [1] : vector<16x384xf32> to vector<16xf32>
    %333 = vector.shape_cast %332 : vector<16xf32> to vector<16x1xf32>
    %334 = vector.broadcast %333 : vector<16x1xf32> to vector<16x384xf32>
    %335 = arith.subf %331, %334 : vector<16x384xf32>
    %336 = math.exp %335 : vector<16x384xf32>
    %cst_132 = arith.constant dense<0.000000e+00> : vector<16xf32>
    %337 = vector.multi_reduction <add>, %336, %cst_132 [1] : vector<16x384xf32> to vector<16xf32>
    %338 = vector.shape_cast %337 : vector<16xf32> to vector<16x1xf32>
    %339 = math.log %338 : vector<16x1xf32>
    %340 = arith.addf %339, %333 : vector<16x1xf32>
    %341 = vector.broadcast %340 : vector<16x1xf32> to vector<16x384xf32>
    %342 = arith.subf %331, %341 : vector<16x384xf32>
    %343 = arith.index_cast %c4_i32 : i32 to index
    %c0_133 = arith.constant 0 : index
    %c0_134 = arith.constant 0 : index
    %344 = vector.load %arg10[%343, %c0_133, %c0_134] : memref<6x16x384xf32, #tpu.memory_space<vmem>>, vector<1x16x384xf32>
    %345 = vector.shape_cast %344 : vector<1x16x384xf32> to vector<16x384xf32>
    %346 = vector.shape_cast %342 : vector<16x384xf32> to vector<1x16x384xf32>
    tpu.vector_store %arg10[%343, %c0_133, %c0_134], %346 {strides = array<i32>} : memref<6x16x384xf32, #tpu.memory_space<vmem>>, vector<1x16x384xf32>,
    %c5_i32 = arith.constant 5 : i32
    %347 = arith.index_cast %c5_i32 : i32 to index
    %c0_135 = arith.constant 0 : index
    %c0_136 = arith.constant 0 : index
    %348 = vector.load %arg1[%347, %c0_135, %c0_136] : memref<6x16x1xi32, #tpu.memory_space<vmem>>, vector<1x16x1xi32>
    %349 = vector.shape_cast %348 : vector<1x16x1xi32> to vector<16x1xi32>
    %350 = vector.broadcast %349 : vector<16x1xi32> to vector<16x384xi32>
    %351 = arith.cmpi eq, %0, %350 : vector<16x384xi32>
    %352 = arith.extui %351 : vector<16x384xi1> to vector<16x384xi32>
    %353 = arith.sitofp %352 : vector<16x384xi32> to vector<16x384xf32>
    %354 = arith.truncf %353 : vector<16x384xf32> to vector<16x384xbf16>
    %c0_137 = arith.constant 0 : index
    %c0_138 = arith.constant 0 : index
    %355 = vector.load %arg2[%c0_137, %c0_138] : memref<384x256xbf16, #tpu.memory_space<vmem>>, vector<384x256xbf16>
    %cst_139 = arith.constant dense<0.000000e+00> : vector<16x256xf32>
    %356 = tpu.matmul %354, %355, %cst_139 {dimension_numbers = #tpu.dot_dimension_numbers<[1], [0], [0], [1], [0, 0, 1, 1], [], []>} : vector<16x384xbf16>, vector<384x256xbf16>, vector<16x256xf32> -> vector<16x256xf32>
    %357 = arith.truncf %356 : vector<16x256xf32> to vector<16x256xbf16>
    %c0_140 = arith.constant 0 : index
    %c0_141 = arith.constant 0 : index
    %358 = vector.load %arg4[%c0_140, %c0_141] : memref<256x768xbf16, #tpu.memory_space<vmem>>, vector<256x768xbf16>
    %cst_142 = arith.constant dense<0.000000e+00> : vector<16x768xf32>
    %359 = tpu.matmul %357, %358, %cst_142 {dimension_numbers = #tpu.dot_dimension_numbers<[1], [0], [0], [1], [0, 0, 1, 1], [], []>} : vector<16x256xbf16>, vector<256x768xbf16>, vector<16x768xf32> -> vector<16x768xf32>
    %c0_143 = arith.constant 0 : index
    %c0_144 = arith.constant 0 : index
    %360 = vector.load %arg6[%c0_143, %c0_144] : memref<1x768xf32, #tpu.memory_space<vmem>>, vector<1x768xf32>
    %361 = vector.broadcast %360 : vector<1x768xf32> to vector<16x768xf32>
    %362 = arith.addf %359, %361 : vector<16x768xf32>
    %363 = arith.truncf %325 : vector<16x256xf32> to vector<16x256xbf16>
    %c0_145 = arith.constant 0 : index
    %c0_146 = arith.constant 0 : index
    %364 = vector.load %arg5[%c0_145, %c0_146] : memref<256x768xbf16, #tpu.memory_space<vmem>>, vector<256x768xbf16>
    %cst_147 = arith.constant dense<0.000000e+00> : vector<16x768xf32>
    %365 = tpu.matmul %363, %364, %cst_147 {dimension_numbers = #tpu.dot_dimension_numbers<[1], [0], [0], [1], [0, 0, 1, 1], [], []>} : vector<16x256xbf16>, vector<256x768xbf16>, vector<16x768xf32> -> vector<16x768xf32>
    %c0_148 = arith.constant 0 : index
    %c0_149 = arith.constant 0 : index
    %366 = vector.load %arg7[%c0_148, %c0_149] : memref<1x768xf32, #tpu.memory_space<vmem>>, vector<1x768xf32>
    %367 = vector.broadcast %366 : vector<1x768xf32> to vector<16x768xf32>
    %368 = arith.addf %365, %367 : vector<16x768xf32>
    %369 = vector.extract_strided_slice %362 {offsets = [0, 0], sizes = [16, 256], strides = [1, 1]} : vector<16x768xf32> to vector<16x256xf32>
    %370 = vector.extract_strided_slice %368 {offsets = [0, 0], sizes = [16, 256], strides = [1, 1]} : vector<16x768xf32> to vector<16x256xf32>
    %371 = arith.addf %369, %370 : vector<16x256xf32>
    %372 = arith.negf %371 : vector<16x256xf32>
    %373 = math.exp %372 : vector<16x256xf32>
    %cst_150 = arith.constant 1.000000e+00 : f32
    %374 = vector.broadcast %cst_150 : f32 to vector<16x256xf32>
    %375 = arith.addf %374, %373 : vector<16x256xf32>
    %376 = arith.divf %374, %375 : vector<16x256xf32>
    %377 = vector.extract_strided_slice %362 {offsets = [0, 256], sizes = [16, 256], strides = [1, 1]} : vector<16x768xf32> to vector<16x256xf32>
    %378 = vector.extract_strided_slice %368 {offsets = [0, 256], sizes = [16, 256], strides = [1, 1]} : vector<16x768xf32> to vector<16x256xf32>
    %379 = arith.addf %377, %378 : vector<16x256xf32>
    %380 = arith.negf %379 : vector<16x256xf32>
    %381 = math.exp %380 : vector<16x256xf32>
    %cst_151 = arith.constant 1.000000e+00 : f32
    %382 = vector.broadcast %cst_151 : f32 to vector<16x256xf32>
    %383 = arith.addf %382, %381 : vector<16x256xf32>
    %384 = arith.divf %382, %383 : vector<16x256xf32>
    %385 = vector.extract_strided_slice %362 {offsets = [0, 512], sizes = [16, 256], strides = [1, 1]} : vector<16x768xf32> to vector<16x256xf32>
    %386 = vector.extract_strided_slice %368 {offsets = [0, 512], sizes = [16, 256], strides = [1, 1]} : vector<16x768xf32> to vector<16x256xf32>
    %387 = arith.mulf %376, %386 : vector<16x256xf32>
    %388 = arith.addf %385, %387 : vector<16x256xf32>
    %389 = math.tanh %388 : vector<16x256xf32>
    %cst_152 = arith.constant 1.000000e+00 : f32
    %390 = vector.broadcast %cst_152 : f32 to vector<16x256xf32>
    %391 = arith.subf %390, %384 : vector<16x256xf32>
    %392 = arith.mulf %391, %389 : vector<16x256xf32>
    %393 = arith.mulf %384, %325 : vector<16x256xf32>
    %394 = arith.addf %392, %393 : vector<16x256xf32>
    %395 = arith.truncf %394 : vector<16x256xf32> to vector<16x256xbf16>
    %c0_153 = arith.constant 0 : index
    %c0_154 = arith.constant 0 : index
    %396 = vector.load %arg8[%c0_153, %c0_154] : memref<256x384xbf16, #tpu.memory_space<vmem>>, vector<256x384xbf16>
    %cst_155 = arith.constant dense<0.000000e+00> : vector<16x384xf32>
    %397 = tpu.matmul %395, %396, %cst_155 {dimension_numbers = #tpu.dot_dimension_numbers<[1], [0], [0], [1], [0, 0, 1, 1], [], []>} : vector<16x256xbf16>, vector<256x384xbf16>, vector<16x384xf32> -> vector<16x384xf32>
    %c0_156 = arith.constant 0 : index
    %c0_157 = arith.constant 0 : index
    %398 = vector.load %arg9[%c0_156, %c0_157] : memref<1x384xf32, #tpu.memory_space<vmem>>, vector<1x384xf32>
    %399 = vector.broadcast %398 : vector<1x384xf32> to vector<16x384xf32>
    %400 = arith.addf %397, %399 : vector<16x384xf32>
    %cst_158 = arith.constant dense<0xFF800000> : vector<16xf32>
    %401 = vector.multi_reduction <maximumf>, %400, %cst_158 [1] : vector<16x384xf32> to vector<16xf32>
    %402 = vector.shape_cast %401 : vector<16xf32> to vector<16x1xf32>
    %403 = vector.broadcast %402 : vector<16x1xf32> to vector<16x384xf32>
    %404 = arith.subf %400, %403 : vector<16x384xf32>
    %405 = math.exp %404 : vector<16x384xf32>
    %cst_159 = arith.constant dense<0.000000e+00> : vector<16xf32>
    %406 = vector.multi_reduction <add>, %405, %cst_159 [1] : vector<16x384xf32> to vector<16xf32>
    %407 = vector.shape_cast %406 : vector<16xf32> to vector<16x1xf32>
    %408 = math.log %407 : vector<16x1xf32>
    %409 = arith.addf %408, %402 : vector<16x1xf32>
    %410 = vector.broadcast %409 : vector<16x1xf32> to vector<16x384xf32>
    %411 = arith.subf %400, %410 : vector<16x384xf32>
    %412 = arith.index_cast %c5_i32 : i32 to index
    %c0_160 = arith.constant 0 : index
    %c0_161 = arith.constant 0 : index
    %413 = vector.load %arg10[%412, %c0_160, %c0_161] : memref<6x16x384xf32, #tpu.memory_space<vmem>>, vector<1x16x384xf32>
    %414 = vector.shape_cast %413 : vector<1x16x384xf32> to vector<16x384xf32>
    %415 = vector.shape_cast %411 : vector<16x384xf32> to vector<1x16x384xf32>
    tpu.vector_store %arg10[%412, %c0_160, %c0_161], %415 {strides = array<i32>} : memref<6x16x384xf32, #tpu.memory_space<vmem>>, vector<1x16x384xf32>,
    %c6_i32 = arith.constant 6 : i32
    %c0_162 = arith.constant 0 : index
    %c0_163 = arith.constant 0 : index
    %416 = vector.load %arg11[%c0_162, %c0_163] : memref<16x256xf32, #tpu.memory_space<vmem>>, vector<16x256xf32>
    tpu.vector_store %arg11[%c0_162, %c0_163], %394 {strides = array<i32>} : memref<16x256xf32, #tpu.memory_space<vmem>>, vector<16x256xf32>,
    return
  }
  func.func @transform_0(%arg0: i32) -> (i32, i32, i32) {
    %c0_i32 = arith.constant 0 : i32
    %c0_i32_0 = arith.constant 0 : i32
    %c0_i32_1 = arith.constant 0 : i32
    return %c0_i32, %arg0, %c0_i32_0 : i32, i32, i32
  }
  func.func @transform_1(%arg0: i32) -> (i32, i32) {
    %c0_i32 = arith.constant 0 : i32
    %c0_i32_0 = arith.constant 0 : i32
    %c0_i32_1 = arith.constant 0 : i32
    return %c0_i32, %c0_i32_0 : i32, i32
  }
  func.func @transform_2(%arg0: i32) -> (i32, i32) {
    %c0_i32 = arith.constant 0 : i32
    %c0_i32_0 = arith.constant 0 : i32
    return %arg0, %c0_i32 : i32, i32
  }
  func.func @transform_3(%arg0: i32) -> (i32, i32) {
    %c0_i32 = arith.constant 0 : i32
    %c0_i32_0 = arith.constant 0 : i32
    %c0_i32_1 = arith.constant 0 : i32
    return %c0_i32, %c0_i32_0 : i32, i32
  }
  func.func @transform_4(%arg0: i32) -> (i32, i32) {
    %c0_i32 = arith.constant 0 : i32
    %c0_i32_0 = arith.constant 0 : i32
    %c0_i32_1 = arith.constant 0 : i32
    return %c0_i32, %c0_i32_0 : i32, i32
  }
  func.func @transform_5(%arg0: i32) -> (i32, i32) {
    %c0_i32 = arith.constant 0 : i32
    %c0_i32_0 = arith.constant 0 : i32
    %c0_i32_1 = arith.constant 0 : i32
    return %c0_i32, %c0_i32_0 : i32, i32
  }
  func.func @transform_6(%arg0: i32) -> (i32, i32) {
    %c0_i32 = arith.constant 0 : i32
    %c0_i32_0 = arith.constant 0 : i32
    %c0_i32_1 = arith.constant 0 : i32
    return %c0_i32, %c0_i32_0 : i32, i32
  }
  func.func @transform_7(%arg0: i32) -> (i32, i32) {
    %c0_i32 = arith.constant 0 : i32
    %c0_i32_0 = arith.constant 0 : i32
    %c0_i32_1 = arith.constant 0 : i32
    return %c0_i32, %c0_i32_0 : i32, i32
  }
  func.func @transform_8(%arg0: i32) -> (i32, i32) {
    %c0_i32 = arith.constant 0 : i32
    %c0_i32_0 = arith.constant 0 : i32
    %c0_i32_1 = arith.constant 0 : i32
    return %c0_i32, %c0_i32_0 : i32, i32
  }
  func.func @transform_9(%arg0: i32) -> (i32, i32, i32) {
    %c0_i32 = arith.constant 0 : i32
    %c0_i32_0 = arith.constant 0 : i32
    %c0_i32_1 = arith.constant 0 : i32
    return %c0_i32, %arg0, %c0_i32_0 : i32, i32, i32
  }
  func.func @transform_10(%arg0: i32) -> (i32, i32) {
    %c0_i32 = arith.constant 0 : i32
    %c0_i32_0 = arith.constant 0 : i32
    return %arg0, %c0_i32 : i32, i32
  }
}

</mosaic_0001>

<bundles_post_ra>
// kernel: tpu_custom_call.1
= control target key start
LH: loop header
LB: loop body
LE: loop exit
PB: predicated region body
PF: predicated region fallthrough
CT: control target
= control target key end

     0   :  { %16 = vsyncpa [#allocation3], 0  ;;  %s20941_s0 = inlined_call_operand.vmem [shape: s32[6,16,1], index: 0, kind: input, shape index: {}]   ;;  %s20942_s1 = inlined_call_operand.hbm [shape: bf16[384,256], index: 1, kind: input, shape index: {}]   ;;  %s20943_s2 = inlined_call_operand.vmem [shape: f32[16,256], index: 2, kind: input, shape index: {}]   ;;  %s20944_s3 = inlined_call_operand.hbm [shape: bf16[256,768], index: 3, kind: input, shape index: {}]   ;;  %s20945_s4 = inlined_call_operand.hbm [shape: bf16[256,768], index: 4, kind: input, shape index: {}]   ;;  %s20946_s5 = inlined_call_operand.vmem [shape: f32[1,768], index: 5, kind: input, shape index: {}]   ;;  %s20947_s6 = inlined_call_operand.vmem [shape: f32[1,768], index: 6, kind: input, shape index: {}]   ;;  %s20948_s7 = inlined_call_operand.hbm [shape: bf16[256,384], index: 7, kind: input, shape index: {}]   ;;  %s20949_s8 = inlined_call_operand.vmem [shape: f32[1,384], index: 8, kind: input, shape index: {}]   ;;  %s20950_s9 = inlined_call_operand.hbm [shape: f32[6,16,384], index: 9, kind: output, shape index: {0}]   ;;  %s20951_s10 = inlined_call_operand.hbm [shape: f32[16,256], index: 10, kind: output, shape index: {1}]  }
   0x1   :  { %17 = vsyncpa [#allocation6], 0 }
   0x2   :  { %18 = vsyncpa [#allocation9], 0 }
   0x3   :  { %19 = vsyncpa [#allocation4], 0 }
   0x4   :  { %20 = vsyncpa [#allocation12], 0  ;;  %s19801_s13 = smov [#allocation5]  }
   0x5   :  { %s42_s14 = sshll.u32 %s19801_s13, 4  ;;  %s43_s14 = int_to_ptr.vmem [resolvable:$true] %s42_s14 }
   0x6   :  { %s19679_s15 = scalar_lea.vmem %s43_s14, 12288  ;;  %p19684_p1 = scmp.lt.s32.totalorder %s43_s14, %s43_s14 }
   0x7   :  { %p19680_p0 = scmp.ne.s32.totalorder %s43_s14, %s19679_s15  ;;  %p19685_p2 = scmp.lt.s32.totalorder %s19679_s15, %s19679_s15 }
   0x9   :  { %p19686_p3 = por %p19685_p2, %p19684_p1 }
   0xb   :  { %p19687_p4 = pnand %p19686_p3, %p19680_p0 }
   0xd   :  { %19690 = shalt.err (!%p19687_p4)
}
   0xe   :  { %s19802_s16 = smov 384   ;;  %s19803_s17 = smov 24  }
   0xf   :  { %48 = dma.hbm_to_vmem [thread:$0]  %s20944_s3, 12288, %s43_s14, [#allocation6], %s19802_s16, %s19802_s16, %s19803_s17  }
  0x10   :  { %s19804_s20 = smov [#allocation2]  }
  0x11   :  { %s28_s21 = sshll.u32 %s19804_s20, 4  ;;  %s29_s21 = int_to_ptr.vmem [resolvable:$true] %s28_s21 }
  0x12   :  { %s19699_s22 = scalar_lea.vmem %s29_s21, 6144  ;;  %p19704_p6 = scmp.lt.s32.totalorder %s29_s21, %s29_s21 }
  0x13   :  { %p19700_p5 = scmp.ne.s32.totalorder %s29_s21, %s19699_s22  ;;  %p19705_p7 = scmp.lt.s32.totalorder %s19699_s22, %s19699_s22 }
  0x15   :  { %p19706_p8 = por %p19705_p7, %p19704_p6 }
  0x17   :  { %p19707_p9 = pnand %p19706_p8, %p19700_p5 }
  0x19   :  { %19710 = shalt.err (!%p19707_p9)
}
  0x1a   :  { %s19805_s23 = smov 128   ;;  %s19806_s24 = smov 8  }
  0x1b   :  { %34 = dma.hbm_to_vmem [thread:$0]  %s20942_s1, 6144, %s29_s21, [#allocation3], %s19805_s23, %s19805_s23, %s19806_s24  }
  0x1c   :  { %s19807_s27 = smov [#allocation7]   ;;  %s19808_s29 = smov [#allocation8]  }
  0x1d   :  { %s54_s28 = sshll.u32 %s19807_s27, 4  ;;  %s70_s3 = sshll.u32 %s19808_s29, 4  ;;  %s55_s28 = int_to_ptr.vmem [resolvable:$true] %s54_s28  ;;  %s71_s3 = int_to_ptr.vmem [resolvable:$true] %s70_s3 }
  0x1e   :  { %s19719_s30 = scalar_lea.vmem %s55_s28, 12288  ;;  %p19724_p11 = scmp.lt.s32.totalorder %s55_s28, %s55_s28 }
  0x1f   :  { %p19720_p10 = scmp.ne.s32.totalorder %s55_s28, %s19719_s30  ;;  %p19725_p12 = scmp.lt.s32.totalorder %s19719_s30, %s19719_s30 }
  0x21   :  { %p19726_p13 = por %p19725_p12, %p19724_p11 }
  0x23   :  { %p19727_p0 = pnand %p19726_p13, %p19720_p10 }
  0x25   :  { %19730 = shalt.err (!%p19727_p0)
}
  0x26   :  { %60 = dma.hbm_to_vmem [thread:$0]  %s20945_s4, 12288, %s55_s28, [#allocation6], %s19802_s16, %s19802_s16, %s19803_s17  }
  0x27   :  { %s19739_s1 = scalar_lea.vmem %s71_s3, 6144  ;;  %p19744_p2 = scmp.lt.s32.totalorder %s71_s3, %s71_s3 }
  0x28   :  { %p19740_p1 = scmp.ne.s32.totalorder %s71_s3, %s19739_s1  ;;  %p19745_p3 = scmp.lt.s32.totalorder %s19739_s1, %s19739_s1 }
  0x2a   :  { %p19746_p4 = por %p19745_p3, %p19744_p2 }
  0x2c   :  { %p19747_p5 = pnand %p19746_p4, %p19740_p1 }
  0x2e   :  { %19750 = shalt.err (!%p19747_p5)
}
  0x2f   :  { %s19809_s13 = smov 192   ;;  %s19810_s14 = smov 12  }
  0x30   :  { %76 = dma.hbm_to_vmem [thread:$0]  %s20948_s7, 6144, %s71_s3, [#allocation9], %s19809_s13, %s19809_s13, %s19810_s14  }
  0x31   :  { %19791 = dma.done.wait [#allocation3], 6144  }
  0x32   :  { %19792 = vsyncadd [#allocation3], 4294961152 }
  0x33   :  { %19793 = dma.done.wait [#allocation6], 24576  }
  0x34   :  { %19794 = vsyncadd [#allocation6], 4294942720 }
  0x35   :  { %19795 = dma.done.wait [#allocation9], 6144  }
  0x36   :  { %19796 = vsyncadd [#allocation9], 4294961152  ;;  %v19811_v0 = vmov 0   ;;  %v15087_v1 = vld [vmem:[%s20941_s0 + $0x10] sm:$0xff]  ;;  %v100_v2 = vld [vmem:[%s20941_s0] sm:$0xff]  ;;  %v92_v63 = vlaneseq }
  0x37   :  { %16786 = vset.pattern.permute.xlu1 %v19811_v0  ;;  %16785 = vset.pattern.permute.xlu0 %v19811_v0  ;;  %v15088_v3 = vld [vmem:[%s20941_s0 + $0x18] sm:$0xff]  ;;  %v101_v4 = vld [vmem:[%s20941_s0 + $0x8] sm:$0xff]  ;;  %v15397_v8 = vld [vmem:[%s20941_s0 + $0x20] sm:$0xff] }
  0x38   :  { %492 = vmatprep.mubr.bf16.mxu1 %v19811_v0  ;;  %2544 = vperm.xlu1 %16786, %v15087_v1   ;;  %v15398_v5 = vld [vmem:[%s20941_s0 + $0x28] sm:$0xff]  ;;  %v16787_v6 = vld [vmem:[#allocation2 + $0x74] ss:$8 sps:$4 sm:$0xff]   ;;  %v16789_v7 = vld [vmem:[#allocation2 + $0x70] ss:$8 sps:$4 sm:$0xff]   ;;  %v19930_v1 = vand.u32 127, %v92_v63 }
  0x39   :  { %103 = vperm.xlu0 %16785, %v100_v2   ;;  %417 = vmatprep.subr.bf16.mxu0 %v16787_v6  ;;  %v16790_v9 = vld [vmem:[#allocation2 + $0x64] ss:$8 sps:$4 sm:$0xff]   ;;  %v16792_v10 = vld [vmem:[#allocation2 + $0x60] ss:$8 sps:$4 sm:$0xff]   ;;  %v16793_v11 = vld [vmem:[#allocation2 + $0x54] ss:$8 sps:$4 sm:$0xff]  }
  0x3a   :  { %418 = vmatpush1.bf16.msra.mxu0 %v16789_v7  ;;  %v15708_v12 = vld [vmem:[%s20941_s0 + $0x38] sm:$0xff]  ;;  %v15707_v13 = vld [vmem:[%s20941_s0 + $0x30] sm:$0xff]  ;;  %v16796_v15 = vld [vmem:[#allocation2 + $0x44] ss:$8 sps:$4 sm:$0xff]  }
  0x3b   :  { %419 = vmatprep.subr.bf16.mxu0 %v16790_v9  ;;  %v16795_v14 = vld [vmem:[#allocation2 + $0x50] ss:$8 sps:$4 sm:$0xff]   ;;  %v16018_v16 = vld [vmem:[%s20941_s0 + $0x48] sm:$0xff]  ;;  %v16017_v17 = vld [vmem:[%s20941_s0 + $0x40] sm:$0xff] }
  0x3c   :  { %2547 = vperm.xlu1 %16786, %v15088_v3   ;;  %v16798_v18 = vld [vmem:[#allocation2 + $0x40] ss:$8 sps:$4 sm:$0xff]   ;;  %v16811_v19 = vld [vmem:[#allocation2 + $0x174] ss:$8 sps:$4 sm:$0xff]   ;;  %v16815_v22 = vld [vmem:[#allocation2 + $0x170] ss:$8 sps:$4 sm:$0xff]  }
  0x3d   :  { %106 = vperm.xlu0 %16785, %v101_v4   ;;  %v16328_v20 = vld [vmem:[%s20941_s0 + $0x58] sm:$0xff]  ;;  %v16327_v23 = vld [vmem:[%s20941_s0 + $0x50] sm:$0xff]  ;;  %460 = vmatprep.subr.bf16.mxu1 %v16811_v19  ;;  %v16817_v24 = vld [vmem:[#allocation2 + $0x164] ss:$8 sps:$4 sm:$0xff]   ;;  %v19935_v4 = vadd.s32 128, %v19930_v1 }
  0x3e   :  { %420 = vmatpush1.bf16.msra.mxu0 %v16792_v10  ;;  %v16799_v21 = vld [vmem:[#allocation2 + $0x34] ss:$8 sps:$4 sm:$0xff]   ;;  %v16801_v25 = vld [vmem:[#allocation2 + $0x30] ss:$8 sps:$4 sm:$0xff]   ;;  %v16802_v26 = vld [vmem:[#allocation2 + $0x24] ss:$8 sps:$4 sm:$0xff]   ;;  %461 = vmatpush1.bf16.msra.mxu1 %v16815_v22 }
  0x3f   :  { %421 = vmatprep.subr.bf16.mxu0 %v16793_v11  ;;  %v16821_v27 = vld [vmem:[#allocation2 + $0x160] ss:$8 sps:$4 sm:$0xff]   ;;  %462 = vmatprep.subr.bf16.mxu1 %v16817_v24  ;;  %v16823_v28 = vld [vmem:[#allocation2 + $0x154] ss:$8 sps:$4 sm:$0xff]   ;;  %v16827_v30 = vld [vmem:[#allocation2 + $0x150] ss:$8 sps:$4 sm:$0xff]  }
  0x40   :  { %4987 = vperm.xlu1 %16786, %v15398_v5   ;;  %v16804_v29 = vld [vmem:[#allocation2 + $0x20] ss:$8 sps:$4 sm:$0xff]   ;;  %v16805_v31 = vld [vmem:[#allocation2 + $0x14] ss:$8 sps:$4 sm:$0xff]   ;;  %v16829_v32 = vld [vmem:[#allocation2 + $0x144] ss:$8 sps:$4 sm:$0xff]  }
  0x41   :  { %4984 = vperm.xlu0 %16785, %v15397_v8   ;;  %v16807_v33 = vld [vmem:[#allocation2 + $0x10] ss:$8 sps:$4 sm:$0xff]   ;;  %v16808_v34 = vld [vmem:[#allocation2 + $0x4] ss:$8 sps:$4 sm:$0xff]   ;;  %v16833_v35 = vld [vmem:[#allocation2 + $0x140] ss:$8 sps:$4 sm:$0xff]  }
  0x42   :  { %422 = vmatpush1.bf16.msra.mxu0 %v16795_v14  ;;  %463 = vmatpush1.bf16.msra.mxu1 %v16821_v27  ;;  %v16835_v36 = vld [vmem:[#allocation2 + $0x134] ss:$8 sps:$4 sm:$0xff]   ;;  %v16810_v37 = vld [vmem:[#allocation2] ss:$8 sps:$4 sm:$0xff]   ;;  %v16839_v38 = vld [vmem:[#allocation2 + $0x130] ss:$8 sps:$4 sm:$0xff]  }
  0x43   :  { %423 = vmatprep.subr.bf16.mxu0 %v16796_v15  ;;  %464 = vmatprep.subr.bf16.mxu1 %v16823_v28  ;;  %v16813_v39 = vld [vmem:[#allocation2 + $0xf4] ss:$8 sps:$4 sm:$0xff]   ;;  %v16841_v40 = vld [vmem:[#allocation2 + $0x124] ss:$8 sps:$4 sm:$0xff]   ;;  %v16816_v41 = vld [vmem:[#allocation2 + $0xf0] ss:$8 sps:$4 sm:$0xff]  }
  0x44   :  { %7427 = vperm.xlu1 %16786, %v15708_v12   ;;  %v16819_v42 = vld [vmem:[#allocation2 + $0xe4] ss:$8 sps:$4 sm:$0xff]   ;;  %v16845_v43 = vld [vmem:[#allocation2 + $0x120] ss:$8 sps:$4 sm:$0xff]   ;;  %v16847_v44 = vld [vmem:[#allocation2 + $0x114] ss:$8 sps:$4 sm:$0xff]  }
  0x45   :  { %7424 = vperm.xlu0 %16785, %v15707_v13   ;;  %v16822_v45 = vld [vmem:[#allocation2 + $0xe0] ss:$8 sps:$4 sm:$0xff]   ;;  %v16825_v46 = vld [vmem:[#allocation2 + $0xd4] ss:$8 sps:$4 sm:$0xff]   ;;  %v16851_v47 = vld [vmem:[#allocation2 + $0x110] ss:$8 sps:$4 sm:$0xff]  }
  0x46   :  { %424 = vmatpush1.bf16.msra.mxu0 %v16798_v18  ;;  %465 = vmatpush1.bf16.msra.mxu1 %v16827_v30  ;;  %v16853_v48 = vld [vmem:[#allocation2 + $0x104] ss:$8 sps:$4 sm:$0xff]   ;;  %v16828_v49 = vld [vmem:[#allocation2 + $0xd0] ss:$8 sps:$4 sm:$0xff]   ;;  %v16857_v51 = vld [vmem:[#allocation2 + $0x100] ss:$8 sps:$4 sm:$0xff]  }
  0x47   :  { %425 = vmatprep.subr.bf16.mxu0 %v16799_v21  ;;  %466 = vmatprep.subr.bf16.mxu1 %v16829_v32  ;;  %v16831_v50 = vld [vmem:[#allocation2 + $0xc4] ss:$8 sps:$4 sm:$0xff]   ;;  %v16834_v53 = vld [vmem:[#allocation2 + $0xc0] ss:$8 sps:$4 sm:$0xff]   ;;  %v16837_v54 = vld [vmem:[#allocation2 + $0xb4] ss:$8 sps:$4 sm:$0xff]  }
  0x48   :  { %9867 = vperm.xlu1 %16786, %v16018_v16   ;;  %v16861_v52 = vld [vmem:[#allocation5 + $0x154] ss:$24 sps:$4 sm:$0xff]   ;;  %v16840_v55 = vld [vmem:[#allocation2 + $0xb0] ss:$8 sps:$4 sm:$0xff]   ;;  %v16846_v57 = vld [vmem:[#allocation2 + $0xa0] ss:$8 sps:$4 sm:$0xff]  }
  0x49   :  { %9864 = vperm.xlu0 %16785, %v16017_v17   ;;  %v16843_v56 = vld [vmem:[#allocation2 + $0xa4] ss:$8 sps:$4 sm:$0xff]   ;;  %v16849_v58 = vld [vmem:[#allocation2 + $0x94] ss:$8 sps:$4 sm:$0xff]   ;;  %v16852_v59 = vld [vmem:[#allocation2 + $0x90] ss:$8 sps:$4 sm:$0xff]  }
  0x4a   :  { %426 = vmatpush1.bf16.msra.mxu0 %v16801_v25  ;;  %467 = vmatpush1.bf16.msra.mxu1 %v16833_v35  ;;  %v16855_v60 = vld [vmem:[#allocation2 + $0x84] ss:$8 sps:$4 sm:$0xff]   ;;  %v16858_v61 = vld [vmem:[#allocation2 + $0x80] ss:$8 sps:$4 sm:$0xff]   ;;  %v16864_v62 = vld [vmem:[#allocation5 + $0x15c] ss:$24 sps:$4 sm:$0xff]  }
  0x4b   :  { %427 = vmatprep.subr.bf16.mxu0 %v16802_v26  ;;  %468 = vmatprep.subr.bf16.mxu1 %v16835_v36  ;;  %v19938_v5 = vadd.s32 256, %v19930_v1  ;;  %v16859_v8 = vld [vmem:[#allocation5 + $0x150] ss:$24 sps:$4 sm:$0xff]   ;;  %v16867_v10 = vld [vmem:[#allocation5 + $0x124] ss:$24 sps:$4 sm:$0xff]  }
  0x4c   :  { %12307 = vperm.xlu1 %16786, %v16328_v20   ;;  %v16862_v9 = vld [vmem:[#allocation5 + $0x158] ss:$24 sps:$4 sm:$0xff]   ;;  %v16870_v11 = vld [vmem:[#allocation5 + $0x12c] ss:$24 sps:$4 sm:$0xff]   ;;  %v19812_v14 = vmov 1.0|1.0  }
  0x4d   :  { %12304 = vperm.xlu0 %16785, %v16327_v23   ;;  %v16865_v15 = vld [vmem:[#allocation5 + $0x120] ss:$24 sps:$4 sm:$0xff]   ;;  %v16873_v17 = vld [vmem:[#allocation5 + $0xf4] ss:$24 sps:$4 sm:$0xff]   ;;  %v16871_v23 = vld [vmem:[#allocation5 + $0xf0] ss:$24 sps:$4 sm:$0xff]  }
  0x4e   :  { %428 = vmatpush1.bf16.msra.mxu0 %v16804_v29  ;;  %469 = vmatpush1.bf16.msra.mxu1 %v16839_v38  ;;  %v16868_v16 = vld [vmem:[#allocation5 + $0x128] ss:$24 sps:$4 sm:$0xff]   ;;  %v16876_v19 = vld [vmem:[#allocation5 + $0xfc] ss:$24 sps:$4 sm:$0xff]   ;;  %v16874_v25 = vld [vmem:[#allocation5 + $0xf8] ss:$24 sps:$4 sm:$0xff]  }
  0x4f   :  { %429 = vmatprep.subr.bf16.mxu0 %v16805_v31  ;;  %470 = vmatprep.subr.bf16.mxu1 %v16841_v40  ;;  %v16879_v26 = vld [vmem:[#allocation5 + $0xc4] ss:$24 sps:$4 sm:$0xff]   ;;  %v16877_v31 = vld [vmem:[#allocation5 + $0xc0] ss:$24 sps:$4 sm:$0xff]  }
  0x50   :  { %v16882_v28 = vld [vmem:[#allocation5 + $0xcc] ss:$24 sps:$4 sm:$0xff]   ;;  %v16888_v36 = vld [vmem:[#allocation5 + $0x9c] ss:$24 sps:$4 sm:$0xff]   ;;  %v16886_v38 = vld [vmem:[#allocation5 + $0x98] ss:$24 sps:$4 sm:$0xff]  }
  0x51   :  { %v16894_v40 = vld [vmem:[#allocation5 + $0x6c] ss:$24 sps:$4 sm:$0xff]   ;;  %v17703_v20 = vld [vmem:[#allocation2 + $0x94] ss:$8 sps:$4 sm:$0xff]   ;;  %v17722_v18 = vld [vmem:[#allocation5 + $0xf8] ss:$24 sps:$4 sm:$0xff]  }
  0x52   :  { %430 = vmatpush1.bf16.msra.mxu0 %v16807_v33  ;;  %471 = vmatpush1.bf16.msra.mxu1 %v16845_v43  ;;  %v16880_v33 = vld [vmem:[#allocation5 + $0xc8] ss:$24 sps:$4 sm:$0xff]   ;;  %v16897_v43 = vld [vmem:[#allocation5 + $0x34] ss:$24 sps:$4 sm:$0xff]   ;;  %v18146_v24 = vld [vmem:[#allocation5 + $0xf8] ss:$24 sps:$4 sm:$0xff]  }
  0x53   :  { %431 = vmatprep.subr.bf16.mxu0 %v16808_v34  ;;  %472 = vmatprep.subr.bf16.mxu1 %v16847_v44  ;;  %v16885_v34 = vld [vmem:[#allocation5 + $0x94] ss:$24 sps:$4 sm:$0xff]   ;;  %v18570_v32 = vld [vmem:[#allocation5 + $0xf8] ss:$24 sps:$4 sm:$0xff]  }
  0x54   :  { %v16900_v44 = vld [vmem:[#allocation5 + $0x3c] ss:$24 sps:$4 sm:$0xff]  }
  0x55   :  { %v18127_v27 = vld [vmem:[#allocation2 + $0x94] ss:$8 sps:$4 sm:$0xff]  }
  0x56   :  { %432 = vmatpush1.bf16.msra.mxu0 %v16810_v37  ;;  %473 = vmatpush1.bf16.msra.mxu1 %v16851_v47  ;;  %v16883_v37 = vld [vmem:[#allocation5 + $0x90] ss:$24 sps:$4 sm:$0xff]   ;;  %v16903_v47 = vld [vmem:[#allocation5 + $0x4] ss:$24 sps:$4 sm:$0xff]  }
  0x57   :  { %433 = vmatprep.subr.bf16.mxu0 %v16813_v39  ;;  %474 = vmatprep.subr.bf16.mxu1 %v16853_v48  ;;  %v16891_v39 = vld [vmem:[#allocation5 + $0x64] ss:$24 sps:$4 sm:$0xff]  }
  0x58   :  { %v16906_v48 = vld [vmem:[#allocation5 + $0xc] ss:$24 sps:$4 sm:$0xff]   ;;  %v18551_v35 = vld [vmem:[#allocation2 + $0x94] ss:$8 sps:$4 sm:$0xff]  }
  0x5a   :  { %434 = vmatpush2.bf16.msra.mxu0 %v16816_v41  ;;  %475 = vmatpush1.bf16.msra.mxu1 %v16857_v51  ;;  %v16889_v41 = vld [vmem:[#allocation5 + $0x60] ss:$24 sps:$4 sm:$0xff]   ;;  %v16909_v51 = vld [vmem:[#allocation5 + $0x2d4] ss:$24 sps:$4 sm:$0xff]  }
  0x5b   :  { %435 = vmatprep.subr.bf16.mxu0 %v16819_v42  ;;  %1113 = vmatprep.subr.bf16.mxu1 %v16861_v52  ;;  %v16892_v42 = vld [vmem:[#allocation5 + $0x68] ss:$24 sps:$4 sm:$0xff]   ;;  %v16912_v52 = vld [vmem:[#allocation5 + $0x2dc] ss:$24 sps:$4 sm:$0xff]  }
  0x5e   :  { %436 = vmatpush2.bf16.msra.mxu0 %v16822_v45  ;;  %v16895_v45 = vld [vmem:[#allocation5 + $0x30] ss:$24 sps:$4 sm:$0xff]  }
  0x5f   :  { %437 = vmatprep.subr.bf16.mxu0 %v16825_v46  ;;  %v16898_v46 = vld [vmem:[#allocation5 + $0x38] ss:$24 sps:$4 sm:$0xff]  }
  0x62   :  { %438 = vmatpush2.bf16.msra.mxu0 %v16828_v49  ;;  %v16901_v49 = vld [vmem:[#allocation5] ss:$24 sps:$4 sm:$0xff]  }
  0x63   :  { %439 = vmatprep.subr.bf16.mxu0 %v16831_v50  ;;  %v16904_v50 = vld [vmem:[#allocation5 + $0x8] ss:$24 sps:$4 sm:$0xff]  }
  0x66   :  { %440 = vmatpush2.bf16.msra.mxu0 %v16834_v53  ;;  %v16907_v53 = vld [vmem:[#allocation5 + $0x2d0] ss:$24 sps:$4 sm:$0xff]  }
  0x67   :  { %441 = vmatprep.subr.bf16.mxu0 %v16837_v54  ;;  %v16910_v54 = vld [vmem:[#allocation5 + $0x2d8] ss:$24 sps:$4 sm:$0xff]  }
  0x6a   :  { %442 = vmatpush2.bf16.msra.mxu0 %v16840_v55  ;;  %v16915_v55 = vld [vmem:[#allocation5 + $0x2a4] ss:$24 sps:$4 sm:$0xff]  }
  0x6b   :  { %443 = vmatprep.subr.bf16.mxu0 %v16843_v56  ;;  %v16918_v56 = vld [vmem:[#allocation5 + $0x2ac] ss:$24 sps:$4 sm:$0xff]  }
  0x6e   :  { %444 = vmatpush2.bf16.msra.mxu0 %v16846_v57  ;;  %v16913_v57 = vld [vmem:[#allocation5 + $0x2a0] ss:$24 sps:$4 sm:$0xff]  }
  0x6f   :  { %445 = vmatprep.subr.bf16.mxu0 %v16849_v58  ;;  %v16916_v58 = vld [vmem:[#allocation5 + $0x2a8] ss:$24 sps:$4 sm:$0xff]  }
  0x72   :  { %446 = vmatpush2.bf16.msra.mxu0 %v16852_v59  ;;  %v16921_v59 = vld [vmem:[#allocation5 + $0x274] ss:$24 sps:$4 sm:$0xff]  }
  0x73   :  { %447 = vmatprep.subr.bf16.mxu0 %v16855_v60  ;;  %v16924_v60 = vld [vmem:[#allocation5 + $0x27c] ss:$24 sps:$4 sm:$0xff]  }
  0x76   :  { %448 = vmatpush2.bf16.msra.mxu0 %v16858_v61  ;;  %v16919_v61 = vld [vmem:[#allocation5 + $0x270] ss:$24 sps:$4 sm:$0xff]  }
  0x77   :  { %1156 = vmatprep.subr.bf16.mxu0 %v16864_v62  ;;  %v16922_v62 = vld [vmem:[#allocation5 + $0x278] ss:$24 sps:$4 sm:$0xff]  }
  0xb3   :  { %v19932_v2 = vpop.permute.xlu1 %2544 }
  0xb4   :  { %v104_v3 = vpop.permute.xlu0 %103 }
  0xb5   :  { %vm109_vm3 = vcmp.eq.s32.totalorder %v19935_v4, %v104_v3  ;;  %vm108_vm4 = vcmp.eq.s32.totalorder %v19930_v1, %v104_v3  ;;  %vm110_vm5 = vcmp.eq.s32.totalorder %v19938_v5, %v104_v3  ;;  %v16927_v3 = vld [vmem:[#allocation5 + $0x244] ss:$24 sps:$4 sm:$0xff]  }
  0xb7   :  { %v19940_v6 = vpop.permute.xlu1 %2547 }
  0xb8   :  { %v107_v7 = vpop.permute.xlu0 %106 }
  0xb9   :  { %vm113_vm0 = vcmp.eq.s32.totalorder %v19938_v5, %v107_v7  ;;  %vm112_vm1 = vcmp.eq.s32.totalorder %v19935_v4, %v107_v7  ;;  %vm111_vm2 = vcmp.eq.s32.totalorder %v19930_v1, %v107_v7  ;;  %v16930_v7 = vld [vmem:[#allocation5 + $0x24c] ss:$24 sps:$4 sm:$0xff]  }
  0xba   :  { %vm14833_vm6 = vmpackc.low %vm112_vm1, %vm109_vm3 }
  0xbb   :  { %v19948_v12 = vpop.permute.xlu1 %4987  ;;  %14834 = vmatprep.mubr.msk.bf16.mxu0 %vm14833_vm6, %v19812_v14  ;;  %vm14837_vm7 = vmpackc.low %vm113_vm0, %vm110_vm5 }
  0xbc   :  { %v19950_v13 = vpop.permute.xlu0 %4984  ;;  %vm4992_vm8 = vcmp.eq.s32.totalorder %v19930_v1, %v19948_v12  ;;  %vm4993_vm9 = vcmp.eq.s32.totalorder %v19935_v4, %v19948_v12  ;;  %vm4994_vm10 = vcmp.eq.s32.totalorder %v19938_v5, %v19948_v12  ;;  %14838 = vmatmul.mubr.msk.bf16.vlgmr.msra.gmra.mxu1 %vm14837_vm7, %v19812_v14  ;;  %vm14835_vm12 = vmpackc.low %vm111_vm2, %vm108_vm4  ;;  %v99_v12 = vld [vmem:[%s20943_s2 + $0x18] sm:$0xff] }
  0xbd   :  { %vm4989_vm11 = vcmp.eq.s32.totalorder %v19930_v1, %v19950_v13  ;;  %vm4990_vm13 = vcmp.eq.s32.totalorder %v19935_v4, %v19950_v13  ;;  %vm4991_vm14 = vcmp.eq.s32.totalorder %v19938_v5, %v19950_v13  ;;  %14836 = vmatmul.mubr.msk.bf16.vlgmr.msra.gmra.mxu0 %vm14835_vm12, %v19812_v14  ;;  %1114 = vmatpush1.bf16.msra.mxu1 %v16859_v8  ;;  %v16925_v8 = vld [vmem:[#allocation5 + $0x240] ss:$24 sps:$4 sm:$0xff]   ;;  %v97_v13 = vld [vmem:[%s20943_s2 + $0x8] sm:$0xff] }
  0xbe   :  { %vm19969_vm15 = vmpackc.low %vm4992_vm8, %vm4989_vm11  ;;  %1157 = vmatpush1.bf16.msra.mxu0 %v16862_v9  ;;  %1115 = vmatprep.subr.bf16.mxu1 %v16867_v10  ;;  %v16928_v9 = vld [vmem:[#allocation5 + $0x248] ss:$24 sps:$4 sm:$0xff]   ;;  %v16933_v10 = vld [vmem:[#allocation5 + $0x214] ss:$24 sps:$4 sm:$0xff]  }
  0xbf   :  { %vm19973_vm0 = vmpackc.low %vm4994_vm10, %vm4991_vm14  ;;  %v19977_v21 = vpop.permute.xlu1 %7427  ;;  %1158 = vmatprep.subr.bf16.mxu0 %v16870_v11  ;;  %v16936_v11 = vld [vmem:[#allocation5 + $0x21c] ss:$24 sps:$4 sm:$0xff]  }
  0xc0   :  { %v19979_v22 = vpop.permute.xlu0 %7424  ;;  %vm7432_vm1 = vcmp.eq.s32.totalorder %v19930_v1, %v19977_v21  ;;  %vm7433_vm2 = vcmp.eq.s32.totalorder %v19935_v4, %v19977_v21  ;;  %vm7434_vm3 = vcmp.eq.s32.totalorder %v19938_v5, %v19977_v21  ;;  %v17060_v21 = vld [vmem:[#allocation7 + $0x130] ss:$24 sps:$4 sm:$0xff]  }
  0xc1   :  { %vm7429_vm4 = vcmp.eq.s32.totalorder %v19930_v1, %v19979_v22  ;;  %vm7430_vm5 = vcmp.eq.s32.totalorder %v19935_v4, %v19979_v22  ;;  %vm7431_vm6 = vcmp.eq.s32.totalorder %v19938_v5, %v19979_v22  ;;  %1116 = vmatpush1.bf16.msra.mxu1 %v16865_v15  ;;  %v16931_v15 = vld [vmem:[#allocation5 + $0x210] ss:$24 sps:$4 sm:$0xff]  }
  0xc2   :  { %vm19993_vm7 = vmpackc.low %vm7432_vm1, %vm7429_vm4  ;;  %1159 = vmatpush1.bf16.msra.mxu0 %v16868_v16  ;;  %1117 = vmatprep.subr.bf16.mxu1 %v16873_v17  ;;  %v16934_v16 = vld [vmem:[#allocation5 + $0x218] ss:$24 sps:$4 sm:$0xff]   ;;  %v16939_v17 = vld [vmem:[#allocation5 + $0x1e4] ss:$24 sps:$4 sm:$0xff]  }
  0xc3   :  { %vm19997_vm8 = vmpackc.low %vm7434_vm3, %vm7431_vm6  ;;  %v20001_v29 = vpop.permute.xlu1 %9867  ;;  %1160 = vmatprep.subr.bf16.mxu0 %v16876_v19  ;;  %v16942_v19 = vld [vmem:[#allocation5 + $0x1ec] ss:$24 sps:$4 sm:$0xff]   ;;  %v17057_v22 = vld [vmem:[#allocation7 + $0x128] ss:$24 sps:$4 sm:$0xff]  }
  0xc4   :  { %v20003_v30 = vpop.permute.xlu0 %9864  ;;  %vm9872_vm10 = vcmp.eq.s32.totalorder %v19930_v1, %v20001_v29  ;;  %vm9873_vm11 = vcmp.eq.s32.totalorder %v19935_v4, %v20001_v29  ;;  %vm9874_vm12 = vcmp.eq.s32.totalorder %v19938_v5, %v20001_v29  ;;  %v17162_v29 = vld [vmem:[#allocation8 + $0x30] ss:$12 sps:$4 sm:$0xff]  }
  0xc5   :  { %vm9869_vm14 = vcmp.eq.s32.totalorder %v19930_v1, %v20003_v30  ;;  %vm9870_vm1 = vcmp.eq.s32.totalorder %v19935_v4, %v20003_v30  ;;  %vm9871_vm3 = vcmp.eq.s32.totalorder %v19938_v5, %v20003_v30  ;;  %1118 = vmatpush1.bf16.msra.mxu1 %v16871_v23  ;;  %v16937_v23 = vld [vmem:[#allocation5 + $0x1e0] ss:$24 sps:$4 sm:$0xff]  }
  0xc6   :  { %vm20017_vm4 = vmpackc.low %vm9872_vm10, %vm9869_vm14  ;;  %1161 = vmatpush1.bf16.msra.mxu0 %v16874_v25  ;;  %1119 = vmatprep.subr.bf16.mxu1 %v16879_v26  ;;  %v16940_v25 = vld [vmem:[#allocation5 + $0x1e8] ss:$24 sps:$4 sm:$0xff]   ;;  %v16945_v26 = vld [vmem:[#allocation5 + $0x1b4] ss:$24 sps:$4 sm:$0xff]   ;;  %vm2554_vm14 = vcmp.eq.s32.totalorder %v19938_v5, %v19940_v6 }
  0xc7   :  { %vm20021_vm6 = vmpackc.low %vm9874_vm12, %vm9871_vm3  ;;  %1162 = vmatprep.subr.bf16.mxu0 %v16882_v28  ;;  %v16948_v28 = vld [vmem:[#allocation5 + $0x1bc] ss:$24 sps:$4 sm:$0xff]   ;;  %vm2551_vm12 = vcmp.eq.s32.totalorder %v19938_v5, %v19932_v2  ;;  %vm2549_vm3 = vcmp.eq.s32.totalorder %v19930_v1, %v19932_v2 }
  0xc8   :  { %vm20031_vm10 = vmpackc.low %vm4993_vm9, %vm4990_vm13  ;;  %v17164_v30 = vld [vmem:[#allocation8 + $0x34] ss:$12 sps:$4 sm:$0xff]  }
  0xc9   :  { %1120 = vmatpush1.bf16.msra.mxu1 %v16877_v31  ;;  %v16943_v31 = vld [vmem:[#allocation5 + $0x1b0] ss:$24 sps:$4 sm:$0xff]   ;;  %vm20060_vm9 = vmpackc.low %vm7433_vm2, %vm7430_vm5  ;;  %vm2550_vm2 = vcmp.eq.s32.totalorder %v19935_v4, %v19932_v2  ;;  %vm2553_vm5 = vcmp.eq.s32.totalorder %v19935_v4, %v19940_v6 }
  0xca   :  { %1163 = vmatpush1.bf16.msra.mxu0 %v16880_v33  ;;  %1121 = vmatprep.subr.bf16.mxu1 %v16885_v34  ;;  %v16946_v33 = vld [vmem:[#allocation5 + $0x1b8] ss:$24 sps:$4 sm:$0xff]   ;;  %v16951_v34 = vld [vmem:[#allocation5 + $0x184] ss:$24 sps:$4 sm:$0xff]   ;;  %vm20078_vm13 = vmpackc.low %vm9873_vm11, %vm9870_vm1 }
  0xcb   :  { %1164 = vmatprep.subr.bf16.mxu0 %v16888_v36  ;;  %v16954_v36 = vld [vmem:[#allocation5 + $0x18c] ss:$24 sps:$4 sm:$0xff]   ;;  %vm20162_vm11 = vmpackc.low %vm2553_vm5, %vm2550_vm2  ;;  %vm2552_vm2 = vcmp.eq.s32.totalorder %v19930_v1, %v19940_v6  ;;  %v17292_v2 = vld [vmem:[#allocation5 + $0x128] ss:$24 sps:$4 sm:$0xff]  }
  0xcc   :  { %vm15147_vm1 = vmpackc.low %vm2554_vm14, %vm2551_vm12  ;;  %v17295_v6 = vld [vmem:[#allocation5 + $0xf0] ss:$24 sps:$4 sm:$0xff]  }
  0xcd   :  { %1122 = vmatpush1.bf16.msra.mxu1 %v16883_v37  ;;  %v16949_v37 = vld [vmem:[#allocation5 + $0x180] ss:$24 sps:$4 sm:$0xff]   ;;  %vm15145_vm5 = vmpackc.low %vm2552_vm2, %vm2549_vm3 }
  0xce   :  { %1165 = vmatpush1.bf16.msra.mxu0 %v16886_v38  ;;  %1123 = vmatprep.subr.bf16.mxu1 %v16891_v39  ;;  %v16952_v38 = vld [vmem:[#allocation5 + $0x188] ss:$24 sps:$4 sm:$0xff]   ;;  %v16957_v39 = vld [vmem:[#allocation5 + $0x164] ss:$24 sps:$4 sm:$0xff]  }
  0xcf   :  { %1166 = vmatprep.subr.bf16.mxu0 %v16894_v40  ;;  %v16960_v40 = vld [vmem:[#allocation7 + $0x154] ss:$24 sps:$4 sm:$0xff]  }
  0xd1   :  { %1124 = vmatpush1.bf16.msra.mxu1 %v16889_v41  ;;  %v17661_v41 = vld [vmem:[#allocation2 + $0x34] ss:$8 sps:$4 sm:$0xff]  }
  0xd2   :  { %1167 = vmatpush1.bf16.msra.mxu0 %v16892_v42  ;;  %1125 = vmatprep.subr.bf16.mxu1 %v16897_v43 }
  0xd3   :  { %1168 = vmatprep.subr.bf16.mxu0 %v16900_v44 }
  0xd5   :  { %1126 = vmatpush1.bf16.msra.mxu1 %v16895_v45 }
  0xd6   :  { %1169 = vmatpush1.bf16.msra.mxu0 %v16898_v46  ;;  %1127 = vmatprep.subr.bf16.mxu1 %v16903_v47 }
  0xd7   :  { %1170 = vmatprep.subr.bf16.mxu0 %v16906_v48 }
  0xd9   :  { %1128 = vmatpush1.bf16.msra.mxu1 %v16901_v49 }
  0xda   :  { %1171 = vmatpush1.bf16.msra.mxu0 %v16904_v50  ;;  %1129 = vmatprep.subr.bf16.mxu1 %v16909_v51 }
  0xdb   :  { %1172 = vmatprep.subr.bf16.mxu0 %v16912_v52 }
  0xdd   :  { %1130 = vmatpush2.bf16.msra.mxu1 %v16907_v53  ;;  %v16955_v53 = vld [vmem:[#allocation5 + $0x160] ss:$24 sps:$4 sm:$0xff]  }
  0xde   :  { %1173 = vmatpush2.bf16.msra.mxu0 %v16910_v54  ;;  %1131 = vmatprep.subr.bf16.mxu1 %v16915_v55  ;;  %v16958_v54 = vld [vmem:[#allocation7 + $0x150] ss:$24 sps:$4 sm:$0xff]  }
  0xdf   :  { %1174 = vmatprep.subr.bf16.mxu0 %v16918_v56  ;;  %v16963_v56 = vld [vmem:[#allocation5 + $0x134] ss:$24 sps:$4 sm:$0xff]  }
  0xe1   :  { %1132 = vmatpush2.bf16.msra.mxu1 %v16913_v57 }
  0xe2   :  { %1175 = vmatpush2.bf16.msra.mxu0 %v16916_v58  ;;  %1133 = vmatprep.subr.bf16.mxu1 %v16921_v59  ;;  %v16966_v58 = vld [vmem:[#allocation7 + $0x124] ss:$24 sps:$4 sm:$0xff]  }
  0xe3   :  { %1176 = vmatprep.subr.bf16.mxu0 %v16924_v60  ;;  %v16961_v60 = vld [vmem:[#allocation5 + $0x130] ss:$24 sps:$4 sm:$0xff]  }
  0xe5   :  { %1134 = vmatpush2.bf16.msra.mxu1 %v16919_v61  ;;  %v16964_v61 = vld [vmem:[#allocation7 + $0x120] ss:$24 sps:$4 sm:$0xff]  }
  0xe6   :  { %1177 = vmatpush2.bf16.msra.mxu0 %v16922_v62  ;;  %1135 = vmatprep.subr.bf16.mxu1 %v16927_v3  ;;  %v20043_v62 = vpack.c.bf16 %v99_v12, %v97_v13  ;;  %v16969_v3 = vld [vmem:[#allocation5 + $0x104] ss:$24 sps:$4 sm:$0xff]   ;;  %v17012_v13 = vld [vmem:[#allocation7 + $0x2a0] ss:$24 sps:$4 sm:$0xff]  }
  0xe7   :  { %1178 = vmatprep.subr.bf16.mxu0 %v16930_v7  ;;  %v16972_v7 = vld [vmem:[#allocation7 + $0xf4] ss:$24 sps:$4 sm:$0xff]   ;;  %v17017_v12 = vld [vmem:[#allocation5 + $0x284] ss:$24 sps:$4 sm:$0xff]  }
  0xe9   :  { %1136 = vmatpush2.bf16.msra.mxu1 %v16925_v8  ;;  %v16967_v8 = vld [vmem:[#allocation5 + $0x100] ss:$24 sps:$4 sm:$0xff]  }
  0xea   :  { %1179 = vmatpush2.bf16.msra.mxu0 %v16928_v9  ;;  %1137 = vmatprep.subr.bf16.mxu1 %v16933_v10  ;;  %v16970_v9 = vld [vmem:[#allocation7 + $0xf0] ss:$24 sps:$4 sm:$0xff]   ;;  %v16975_v10 = vld [vmem:[#allocation5 + $0xd4] ss:$24 sps:$4 sm:$0xff]  }
  0xeb   :  { %1180 = vmatprep.subr.bf16.mxu0 %v16936_v11  ;;  %v16978_v11 = vld [vmem:[#allocation7 + $0xc4] ss:$24 sps:$4 sm:$0xff]  }
  0xed   :  { %1138 = vmatpush2.bf16.msra.mxu1 %v16931_v15  ;;  %v16973_v15 = vld [vmem:[#allocation5 + $0xd0] ss:$24 sps:$4 sm:$0xff]  }
  0xee   :  { %1181 = vmatpush2.bf16.msra.mxu0 %v16934_v16  ;;  %1139 = vmatprep.subr.bf16.mxu1 %v16939_v17  ;;  %v16976_v16 = vld [vmem:[#allocation7 + $0xc0] ss:$24 sps:$4 sm:$0xff]   ;;  %v16981_v17 = vld [vmem:[#allocation5 + $0xa4] ss:$24 sps:$4 sm:$0xff]  }
  0xef   :  { %1182 = vmatprep.subr.bf16.mxu0 %v16942_v19  ;;  %v16984_v19 = vld [vmem:[#allocation7 + $0x94] ss:$24 sps:$4 sm:$0xff]  }
  0xf1   :  { %1140 = vmatpush2.bf16.msra.mxu1 %v16937_v23  ;;  %v16979_v23 = vld [vmem:[#allocation5 + $0xa0] ss:$24 sps:$4 sm:$0xff]  }
  0xf2   :  { %1183 = vmatpush2.bf16.msra.mxu0 %v16940_v25  ;;  %1141 = vmatprep.subr.bf16.mxu1 %v16945_v26  ;;  %v16982_v25 = vld [vmem:[#allocation7 + $0x90] ss:$24 sps:$4 sm:$0xff]   ;;  %v16987_v26 = vld [vmem:[#allocation5 + $0x74] ss:$24 sps:$4 sm:$0xff]  }
  0xf3   :  { %1184 = vmatprep.subr.bf16.mxu0 %v16948_v28  ;;  %v16990_v28 = vld [vmem:[#allocation7 + $0x64] ss:$24 sps:$4 sm:$0xff]  }
  0xf5   :  { %1142 = vmatpush2.bf16.msra.mxu1 %v16943_v31  ;;  %v16985_v31 = vld [vmem:[#allocation5 + $0x70] ss:$24 sps:$4 sm:$0xff]  }
  0xf6   :  { %1185 = vmatpush2.bf16.msra.mxu0 %v16946_v33  ;;  %1143 = vmatprep.subr.bf16.mxu1 %v16951_v34  ;;  %v16988_v33 = vld [vmem:[#allocation7 + $0x60] ss:$24 sps:$4 sm:$0xff]   ;;  %v16993_v34 = vld [vmem:[#allocation5 + $0x44] ss:$24 sps:$4 sm:$0xff]  }
  0xf7   :  { %1186 = vmatprep.subr.bf16.mxu0 %v16954_v36  ;;  %v16996_v36 = vld [vmem:[#allocation7 + $0x34] ss:$24 sps:$4 sm:$0xff]  }
  0xf9   :  { %1144 = vmatpush2.bf16.msra.mxu1 %v16949_v37  ;;  %v16991_v37 = vld [vmem:[#allocation5 + $0x40] ss:$24 sps:$4 sm:$0xff]  }
  0xfa   :  { %1187 = vmatpush2.bf16.msra.mxu0 %v16952_v38  ;;  %1199 = vmatprep.subr.bf16.mxu1 %v16957_v39  ;;  %v16994_v38 = vld [vmem:[#allocation7 + $0x30] ss:$24 sps:$4 sm:$0xff]   ;;  %v16999_v39 = vld [vmem:[#allocation5 + $0x14] ss:$24 sps:$4 sm:$0xff]  }
  0xfb   :  { %1852 = vmatprep.subr.bf16.mxu0 %v16960_v40  ;;  %v17002_v40 = vld [vmem:[#allocation7 + $0x4] ss:$24 sps:$4 sm:$0xff]  }
 0x17c   :  { %v494_v42 = vpop.f32.mrf.mxu1 }
 0x17d   :  { %v451_v43 = vpop.f32.mrf.mxu0 }
 0x17e   :  { %v496_v44 = vpop.f32.mrf.mxu1  ;;  %v495_v55 = vadd.f32 %v494_v42, %v451_v43  ;;  %v16997_v42 = vld [vmem:[#allocation5 + $0x10] ss:$24 sps:$4 sm:$0xff]   ;;  %v17000_v43 = vld [vmem:[#allocation7] ss:$24 sps:$4 sm:$0xff]  }
 0x17f   :  { %v453_v45 = vpop.f32.mrf.mxu0 }
 0x180   :  { %v498_v46 = vpop.f32.mrf.mxu1  ;;  %v497_v51 = vadd.f32 %v496_v44, %v453_v45  ;;  %v17005_v44 = vld [vmem:[#allocation5 + $0x2e4] ss:$24 sps:$4 sm:$0xff]   ;;  %v17008_v45 = vld [vmem:[#allocation7 + $0x2d4] ss:$24 sps:$4 sm:$0xff]  }
 0x181   :  { %v455_v47 = vpop.f32.mrf.mxu0 }
 0x182   :  { %v500_v48 = vpop.f32.mrf.mxu1  ;;  %v499_v49 = vadd.f32 %v498_v46, %v455_v47  ;;  %v17003_v46 = vld [vmem:[#allocation5 + $0x2e0] ss:$24 sps:$4 sm:$0xff]   ;;  %v17006_v47 = vld [vmem:[#allocation7 + $0x2d0] ss:$24 sps:$4 sm:$0xff]  }
 0x183   :  { %v457_v50 = vpop.f32.mrf.mxu0 }
 0x184   :  { %v501_v52 = vadd.f32 %v500_v48, %v457_v50  ;;  %v20041_v59 = vpack.c.bf16 %v499_v49, %v495_v55  ;;  %v17011_v48 = vld [vmem:[#allocation5 + $0x2b4] ss:$24 sps:$4 sm:$0xff]   ;;  %v17014_v49 = vld [vmem:[#allocation7 + $0x2a4] ss:$24 sps:$4 sm:$0xff]   ;;  %v17009_v50 = vld [vmem:[#allocation5 + $0x2b0] ss:$24 sps:$4 sm:$0xff]  }
 0x185   :  { %v17026_v55 = vld [vmem:[#allocation7 + $0x244] ss:$24 sps:$4 sm:$0xff]  }
 0x186   :  { %v504_v57 = vpack.c.bf16 %v501_v52, %v497_v51  ;;  %v17020_v51 = vld [vmem:[#allocation7 + $0x274] ss:$24 sps:$4 sm:$0xff]   ;;  %v17015_v52 = vld [vmem:[#allocation5 + $0x280] ss:$24 sps:$4 sm:$0xff]  }
 0x188   :  { %1145 = vmatprep.mubr.bf16.mxu1 %v504_v57  ;;  %1188 = vmatprep.mubr.bf16.mxu0 %v504_v57 }
 0x189   :  { %1146 = vmatmul.mubr.bf16.vlgmr.msra.gmra.mxu1 %v20041_v59  ;;  %1189 = vmatmul.mubr.bf16.vlgmr.msra.gmra.mxu0 %v20041_v59 }
 0x18a   :  { %1200 = vmatpush1.bf16.msra.mxu1 %v16955_v53  ;;  %1853 = vmatpush1.bf16.msra.mxu0 %v16958_v54  ;;  %v17018_v53 = vld [vmem:[#allocation7 + $0x270] ss:$24 sps:$4 sm:$0xff]   ;;  %v17023_v54 = vld [vmem:[#allocation5 + $0x254] ss:$24 sps:$4 sm:$0xff]  }
 0x18b   :  { %1231 = vmatprep.mubr.bf16.mxu1 %v504_v57  ;;  %1201 = vmatprep.subr.bf16.mxu1 %v16963_v56  ;;  %v17021_v56 = vld [vmem:[#allocation5 + $0x250] ss:$24 sps:$4 sm:$0xff]   ;;  %v17024_v57 = vld [vmem:[#allocation7 + $0x240] ss:$24 sps:$4 sm:$0xff]  }
 0x18c   :  { %1854 = vmatprep.subr.bf16.mxu0 %v16966_v58  ;;  %1884 = vmatprep.mubr.bf16.mxu0 %v20043_v62  ;;  %v17029_v58 = vld [vmem:[#allocation5 + $0x224] ss:$24 sps:$4 sm:$0xff]  }
 0x18e   :  { %1202 = vmatpush1.bf16.msra.mxu1 %v16961_v60  ;;  %1855 = vmatpush1.bf16.msra.mxu0 %v16964_v61  ;;  %v17032_v60 = vld [vmem:[#allocation7 + $0x214] ss:$24 sps:$4 sm:$0xff]   ;;  %v17027_v61 = vld [vmem:[#allocation5 + $0x220] ss:$24 sps:$4 sm:$0xff]  }
 0x18f   :  { %1203 = vmatprep.subr.bf16.mxu1 %v16969_v3  ;;  %1856 = vmatprep.subr.bf16.mxu0 %v16972_v7  ;;  %v17030_v3 = vld [vmem:[#allocation7 + $0x210] ss:$24 sps:$4 sm:$0xff]   ;;  %v17035_v7 = vld [vmem:[#allocation5 + $0x1f4] ss:$24 sps:$4 sm:$0xff]  }
 0x192   :  { %1204 = vmatpush1.bf16.msra.mxu1 %v16967_v8  ;;  %1857 = vmatpush1.bf16.msra.mxu0 %v16970_v9  ;;  %v17038_v8 = vld [vmem:[#allocation7 + $0x1e4] ss:$24 sps:$4 sm:$0xff]   ;;  %v17033_v9 = vld [vmem:[#allocation5 + $0x1f0] ss:$24 sps:$4 sm:$0xff]  }
 0x193   :  { %1205 = vmatprep.subr.bf16.mxu1 %v16975_v10  ;;  %1858 = vmatprep.subr.bf16.mxu0 %v16978_v11  ;;  %v17036_v10 = vld [vmem:[#allocation7 + $0x1e0] ss:$24 sps:$4 sm:$0xff]   ;;  %v17041_v11 = vld [vmem:[#allocation5 + $0x1c4] ss:$24 sps:$4 sm:$0xff]  }
 0x196   :  { %1206 = vmatpush1.bf16.msra.mxu1 %v16973_v15  ;;  %1859 = vmatpush1.bf16.msra.mxu0 %v16976_v16  ;;  %v17044_v15 = vld [vmem:[#allocation7 + $0x1b4] ss:$24 sps:$4 sm:$0xff]   ;;  %v17039_v16 = vld [vmem:[#allocation5 + $0x1c0] ss:$24 sps:$4 sm:$0xff]  }
 0x197   :  { %1207 = vmatprep.subr.bf16.mxu1 %v16981_v17  ;;  %1860 = vmatprep.subr.bf16.mxu0 %v16984_v19  ;;  %v17042_v17 = vld [vmem:[#allocation7 + $0x1b0] ss:$24 sps:$4 sm:$0xff]   ;;  %v17047_v19 = vld [vmem:[#allocation5 + $0x194] ss:$24 sps:$4 sm:$0xff]  }
 0x19a   :  { %1208 = vmatpush1.bf16.msra.mxu1 %v16979_v23  ;;  %1861 = vmatpush1.bf16.msra.mxu0 %v16982_v25  ;;  %v17050_v23 = vld [vmem:[#allocation7 + $0x184] ss:$24 sps:$4 sm:$0xff]   ;;  %v17045_v25 = vld [vmem:[#allocation5 + $0x190] ss:$24 sps:$4 sm:$0xff]  }
 0x19b   :  { %1209 = vmatprep.subr.bf16.mxu1 %v16987_v26  ;;  %1862 = vmatprep.subr.bf16.mxu0 %v16990_v28  ;;  %v17048_v26 = vld [vmem:[#allocation7 + $0x180] ss:$24 sps:$4 sm:$0xff]  }
 0x19c   :  { %v96_v28 = vld [vmem:[%s20943_s2] sm:$0xff] }
 0x19e   :  { %1210 = vmatpush1.bf16.msra.mxu1 %v16985_v31  ;;  %1863 = vmatpush1.bf16.msra.mxu0 %v16988_v33  ;;  %v98_v31 = vld [vmem:[%s20943_s2 + $0x10] sm:$0xff] }
 0x19f   :  { %1211 = vmatprep.subr.bf16.mxu1 %v16993_v34  ;;  %1864 = vmatprep.subr.bf16.mxu0 %v16996_v36  ;;  %v17053_v33 = vld [vmem:[#allocation7 + $0x15c] ss:$24 sps:$4 sm:$0xff]  }
 0x1a0   :  { %v17056_v34 = vld [vmem:[#allocation7 + $0x164] ss:$24 sps:$4 sm:$0xff]  }
 0x1a1   :  { %v18085_v36 = vld [vmem:[#allocation2 + $0x34] ss:$8 sps:$4 sm:$0xff]  }
 0x1a2   :  { %1212 = vmatpush1.bf16.msra.mxu1 %v16991_v37  ;;  %1865 = vmatpush1.bf16.msra.mxu0 %v16994_v38  ;;  %v17051_v37 = vld [vmem:[#allocation7 + $0x158] ss:$24 sps:$4 sm:$0xff]  }
 0x1a3   :  { %1213 = vmatprep.subr.bf16.mxu1 %v16999_v39  ;;  %1866 = vmatprep.subr.bf16.mxu0 %v17002_v40  ;;  %v17054_v38 = vld [vmem:[#allocation7 + $0x160] ss:$24 sps:$4 sm:$0xff]   ;;  %v20064_v39 = vpack.c.bf16 %v98_v31, %v96_v28  ;;  %v17059_v40 = vld [vmem:[#allocation7 + $0x12c] ss:$24 sps:$4 sm:$0xff]  }
 0x1a4   :  { %v17114_v28 = vld [vmem:[#allocation7 + $0x280] ss:$24 sps:$4 sm:$0xff]   ;;  %v17119_v31 = vld [vmem:[#allocation7 + $0x24c] ss:$24 sps:$4 sm:$0xff]  }
 0x1a6   :  { %1214 = vmatpush1.bf16.msra.mxu1 %v16997_v42  ;;  %1867 = vmatpush1.bf16.msra.mxu0 %v17000_v43  ;;  %v17062_v42 = vld [vmem:[#allocation7 + $0x134] ss:$24 sps:$4 sm:$0xff]  }
 0x1a7   :  { %1215 = vmatprep.subr.bf16.mxu1 %v17005_v44  ;;  %1868 = vmatprep.subr.bf16.mxu0 %v17008_v45  ;;  %v17065_v43 = vld [vmem:[#allocation7 + $0xfc] ss:$24 sps:$4 sm:$0xff]   ;;  %v17063_v45 = vld [vmem:[#allocation7 + $0xf8] ss:$24 sps:$4 sm:$0xff]  }
 0x1a8   :  { %v17068_v44 = vld [vmem:[#allocation7 + $0x104] ss:$24 sps:$4 sm:$0xff]  }
 0x1aa   :  { %1216 = vmatpush2.bf16.msra.mxu1 %v17003_v46  ;;  %1869 = vmatpush2.bf16.msra.mxu0 %v17006_v47  ;;  %v17066_v46 = vld [vmem:[#allocation7 + $0x100] ss:$24 sps:$4 sm:$0xff]   ;;  %v17071_v47 = vld [vmem:[#allocation7 + $0xcc] ss:$24 sps:$4 sm:$0xff]  }
 0x1ab   :  { %1217 = vmatprep.subr.bf16.mxu1 %v17011_v48  ;;  %1870 = vmatprep.subr.bf16.mxu0 %v17014_v49  ;;  %v17074_v48 = vld [vmem:[#allocation7 + $0xd4] ss:$24 sps:$4 sm:$0xff]   ;;  %v17072_v49 = vld [vmem:[#allocation7 + $0xd0] ss:$24 sps:$4 sm:$0xff]  }
 0x1ae   :  { %1218 = vmatpush2.bf16.msra.mxu1 %v17009_v50  ;;  %1871 = vmatpush2.bf16.msra.mxu0 %v17012_v13  ;;  %v17077_v50 = vld [vmem:[#allocation7 + $0x9c] ss:$24 sps:$4 sm:$0xff]  }
 0x1af   :  { %1219 = vmatprep.subr.bf16.mxu1 %v17017_v12  ;;  %1872 = vmatprep.subr.bf16.mxu0 %v17020_v51  ;;  %v17080_v13 = vld [vmem:[#allocation7 + $0xa4] ss:$24 sps:$4 sm:$0xff]   ;;  %v17075_v12 = vld [vmem:[#allocation7 + $0x98] ss:$24 sps:$4 sm:$0xff]  }
 0x1b0   :  { %v17078_v51 = vld [vmem:[#allocation7 + $0xa0] ss:$24 sps:$4 sm:$0xff]  }
 0x1b2   :  { %1220 = vmatpush2.bf16.msra.mxu1 %v17015_v52  ;;  %1873 = vmatpush2.bf16.msra.mxu0 %v17018_v53  ;;  %v17083_v52 = vld [vmem:[#allocation7 + $0x6c] ss:$24 sps:$4 sm:$0xff]  }
 0x1b3   :  { %1221 = vmatprep.subr.bf16.mxu1 %v17023_v54  ;;  %1874 = vmatprep.subr.bf16.mxu0 %v17026_v55  ;;  %v17086_v53 = vld [vmem:[#allocation7 + $0x74] ss:$24 sps:$4 sm:$0xff]   ;;  %v17084_v54 = vld [vmem:[#allocation7 + $0x70] ss:$24 sps:$4 sm:$0xff]  }
 0x1b4   :  { %v17089_v55 = vld [vmem:[#allocation7 + $0x3c] ss:$24 sps:$4 sm:$0xff]  }
 0x1b6   :  { %1222 = vmatpush2.bf16.msra.mxu1 %v17021_v56  ;;  %1875 = vmatpush2.bf16.msra.mxu0 %v17024_v57  ;;  %v17092_v56 = vld [vmem:[#allocation7 + $0x44] ss:$24 sps:$4 sm:$0xff]   ;;  %v17087_v57 = vld [vmem:[#allocation7 + $0x38] ss:$24 sps:$4 sm:$0xff]  }
 0x1b7   :  { %1223 = vmatprep.subr.bf16.mxu1 %v17029_v58  ;;  %1876 = vmatprep.subr.bf16.mxu0 %v17032_v60  ;;  %v17090_v58 = vld [vmem:[#allocation7 + $0x40] ss:$24 sps:$4 sm:$0xff]   ;;  %v17095_v60 = vld [vmem:[#allocation7 + $0xc] ss:$24 sps:$4 sm:$0xff]  }
 0x1ba   :  { %1224 = vmatpush2.bf16.msra.mxu1 %v17027_v61  ;;  %1877 = vmatpush2.bf16.msra.mxu0 %v17030_v3  ;;  %v17098_v61 = vld [vmem:[#allocation7 + $0x14] ss:$24 sps:$4 sm:$0xff]   ;;  %v17093_v3 = vld [vmem:[#allocation7 + $0x8] ss:$24 sps:$4 sm:$0xff]  }
 0x1bb   :  { %1225 = vmatprep.subr.bf16.mxu1 %v17035_v7  ;;  %1878 = vmatprep.subr.bf16.mxu0 %v17038_v8  ;;  %v17096_v7 = vld [vmem:[#allocation7 + $0x10] ss:$24 sps:$4 sm:$0xff]   ;;  %v17101_v8 = vld [vmem:[#allocation7 + $0x2dc] ss:$24 sps:$4 sm:$0xff]  }
 0x1be   :  { %1226 = vmatpush2.bf16.msra.mxu1 %v17033_v9  ;;  %1879 = vmatpush2.bf16.msra.mxu0 %v17036_v10  ;;  %v17104_v9 = vld [vmem:[#allocation7 + $0x2e4] ss:$24 sps:$4 sm:$0xff]   ;;  %v17099_v10 = vld [vmem:[#allocation7 + $0x2d8] ss:$24 sps:$4 sm:$0xff]  }
 0x1bf   :  { %1227 = vmatprep.subr.bf16.mxu1 %v17041_v11  ;;  %1880 = vmatprep.subr.bf16.mxu0 %v17044_v15  ;;  %v17102_v11 = vld [vmem:[#allocation7 + $0x2e0] ss:$24 sps:$4 sm:$0xff]   ;;  %v17107_v15 = vld [vmem:[#allocation7 + $0x2ac] ss:$24 sps:$4 sm:$0xff]  }
 0x1c2   :  { %1228 = vmatpush2.bf16.msra.mxu1 %v17039_v16  ;;  %1881 = vmatpush2.bf16.msra.mxu0 %v17042_v17  ;;  %v17110_v16 = vld [vmem:[#allocation7 + $0x2b4] ss:$24 sps:$4 sm:$0xff]   ;;  %v17105_v17 = vld [vmem:[#allocation7 + $0x2a8] ss:$24 sps:$4 sm:$0xff]  }
 0x1c3   :  { %1229 = vmatprep.subr.bf16.mxu1 %v17047_v19  ;;  %1882 = vmatprep.subr.bf16.mxu0 %v17050_v23  ;;  %v17108_v19 = vld [vmem:[#allocation7 + $0x2b0] ss:$24 sps:$4 sm:$0xff]   ;;  %v17113_v23 = vld [vmem:[#allocation7 + $0x27c] ss:$24 sps:$4 sm:$0xff]  }
 0x1c6   :  { %1230 = vmatpush2.bf16.msra.mxu1 %v17045_v25  ;;  %1883 = vmatpush2.bf16.msra.mxu0 %v17048_v26  ;;  %v17116_v25 = vld [vmem:[#allocation7 + $0x284] ss:$24 sps:$4 sm:$0xff]   ;;  %v17111_v26 = vld [vmem:[#allocation7 + $0x278] ss:$24 sps:$4 sm:$0xff]  }
 0x1c7   :  { %1895 = vmatprep.subr.bf16.mxu1 %v17053_v33  ;;  %1938 = vmatprep.subr.bf16.mxu0 %v17056_v34  ;;  %v17122_v33 = vld [vmem:[#allocation7 + $0x254] ss:$24 sps:$4 sm:$0xff]   ;;  %v17117_v34 = vld [vmem:[#allocation7 + $0x248] ss:$24 sps:$4 sm:$0xff]  }
 0x1c9   :  { %1232 = vmatmul.mubr.bf16.vlgmr.msra.gmra.mxu1 %v20041_v59  ;;  %1885 = vmatmul.mubr.bf16.vlgmr.msra.gmra.mxu0 %v20064_v39  ;;  %v17069_v59 = vld [vmem:[#allocation7 + $0xc8] ss:$24 sps:$4 sm:$0xff]  }
 0x1ca   :  { %1896 = vmatpush1.bf16.msra.mxu1 %v17051_v37  ;;  %1939 = vmatpush1.bf16.msra.mxu0 %v17054_v38  ;;  %v17120_v37 = vld [vmem:[#allocation7 + $0x250] ss:$24 sps:$4 sm:$0xff]   ;;  %v17125_v38 = vld [vmem:[#allocation7 + $0x21c] ss:$24 sps:$4 sm:$0xff]  }
 0x1cb   :  { %1897 = vmatprep.subr.bf16.mxu1 %v17059_v40  ;;  %1940 = vmatprep.subr.bf16.mxu0 %v17062_v42  ;;  %v17128_v40 = vld [vmem:[#allocation7 + $0x224] ss:$24 sps:$4 sm:$0xff]   ;;  %v17123_v42 = vld [vmem:[#allocation7 + $0x218] ss:$24 sps:$4 sm:$0xff]  }
 0x1cc   :  { %1927 = vmatprep.mubr.bf16.mxu1 %v20043_v62  ;;  %1970 = vmatprep.mubr.bf16.mxu0 %v20043_v62  ;;  %v17081_v62 = vld [vmem:[#allocation7 + $0x68] ss:$24 sps:$4 sm:$0xff]  }
 0x1ce   :  { %1898 = vmatpush1.bf16.msra.mxu1 %v17057_v22  ;;  %1941 = vmatpush1.bf16.msra.mxu0 %v17060_v21  ;;  %v17126_v22 = vld [vmem:[#allocation7 + $0x220] ss:$24 sps:$4 sm:$0xff]   ;;  %v17131_v21 = vld [vmem:[#allocation7 + $0x1ec] ss:$24 sps:$4 sm:$0xff]  }
 0x1cf   :  { %1899 = vmatprep.subr.bf16.mxu1 %v17065_v43  ;;  %1942 = vmatprep.subr.bf16.mxu0 %v17068_v44  ;;  %v17134_v43 = vld [vmem:[#allocation7 + $0x1f4] ss:$24 sps:$4 sm:$0xff]   ;;  %v17129_v44 = vld [vmem:[#allocation7 + $0x1e8] ss:$24 sps:$4 sm:$0xff]  }
 0x1d2   :  { %1900 = vmatpush1.bf16.msra.mxu1 %v17063_v45  ;;  %1943 = vmatpush1.bf16.msra.mxu0 %v17066_v46  ;;  %v17132_v45 = vld [vmem:[#allocation7 + $0x1f0] ss:$24 sps:$4 sm:$0xff]   ;;  %v17137_v46 = vld [vmem:[#allocation7 + $0x1bc] ss:$24 sps:$4 sm:$0xff]  }
 0x1d3   :  { %1901 = vmatprep.subr.bf16.mxu1 %v17071_v47  ;;  %1944 = vmatprep.subr.bf16.mxu0 %v17074_v48  ;;  %v17140_v47 = vld [vmem:[#allocation7 + $0x1c4] ss:$24 sps:$4 sm:$0xff]   ;;  %v17135_v48 = vld [vmem:[#allocation7 + $0x1b8] ss:$24 sps:$4 sm:$0xff]  }
 0x1d6   :  { %1902 = vmatpush1.bf16.msra.mxu1 %v17069_v59  ;;  %1945 = vmatpush1.bf16.msra.mxu0 %v17072_v49  ;;  %v17138_v59 = vld [vmem:[#allocation7 + $0x1c0] ss:$24 sps:$4 sm:$0xff]   ;;  %v17143_v49 = vld [vmem:[#allocation7 + $0x18c] ss:$24 sps:$4 sm:$0xff]  }
 0x1d7   :  { %1903 = vmatprep.subr.bf16.mxu1 %v17077_v50  ;;  %1946 = vmatprep.subr.bf16.mxu0 %v17080_v13  ;;  %v17146_v50 = vld [vmem:[#allocation7 + $0x194] ss:$24 sps:$4 sm:$0xff]   ;;  %v17141_v13 = vld [vmem:[#allocation7 + $0x188] ss:$24 sps:$4 sm:$0xff]  }
 0x1da   :  { %1904 = vmatpush1.bf16.msra.mxu1 %v17075_v12  ;;  %1947 = vmatpush1.bf16.msra.mxu0 %v17078_v51  ;;  %v17144_v12 = vld [vmem:[#allocation7 + $0x190] ss:$24 sps:$4 sm:$0xff]  }
 0x1db   :  { %1905 = vmatprep.subr.bf16.mxu1 %v17083_v52  ;;  %1948 = vmatprep.subr.bf16.mxu0 %v17086_v53  ;;  %v17147_v51 = vld [vmem:[#allocation8 + $0xa8] ss:$12 sps:$4 sm:$0xff]   ;;  %v17149_v52 = vld [vmem:[#allocation8 + $0xac] ss:$12 sps:$4 sm:$0xff]   ;;  %v17150_v53 = vld [vmem:[#allocation8 + $0x90] ss:$12 sps:$4 sm:$0xff]  }
 0x1de   :  { %1906 = vmatpush1.bf16.msra.mxu1 %v17081_v62  ;;  %1949 = vmatpush1.bf16.msra.mxu0 %v17084_v54  ;;  %v17152_v62 = vld [vmem:[#allocation8 + $0x94] ss:$12 sps:$4 sm:$0xff]   ;;  %v17155_v54 = vld [vmem:[#allocation8 + $0x7c] ss:$12 sps:$4 sm:$0xff]  }
 0x1df   :  { %1907 = vmatprep.subr.bf16.mxu1 %v17089_v55  ;;  %1950 = vmatprep.subr.bf16.mxu0 %v17092_v56  ;;  %v17153_v56 = vld [vmem:[#allocation8 + $0x78] ss:$12 sps:$4 sm:$0xff]   ;;  %v18509_v55 = vld [vmem:[#allocation2 + $0x34] ss:$8 sps:$4 sm:$0xff]  }
 0x1e2   :  { %1908 = vmatpush1.bf16.msra.mxu1 %v17087_v57  ;;  %1951 = vmatpush1.bf16.msra.mxu0 %v17090_v58  ;;  %v17156_v57 = vld [vmem:[#allocation8 + $0x60] ss:$12 sps:$4 sm:$0xff]  }
 0x1e3   :  { %1909 = vmatprep.subr.bf16.mxu1 %v17095_v60  ;;  %1952 = vmatprep.subr.bf16.mxu0 %v17098_v61  ;;  %v17161_v58 = vld [vmem:[#allocation8 + $0x4c] ss:$12 sps:$4 sm:$0xff]   ;;  %v17159_v60 = vld [vmem:[#allocation8 + $0x48] ss:$12 sps:$4 sm:$0xff]  }
 0x1e4   :  { %v17167_v61 = vld [vmem:[#allocation8 + $0x1c] ss:$12 sps:$4 sm:$0xff]  }
 0x1e6   :  { %1910 = vmatpush1.bf16.msra.mxu1 %v17093_v3  ;;  %1953 = vmatpush1.bf16.msra.mxu0 %v17096_v7  ;;  %v17165_v3 = vld [vmem:[#allocation8 + $0x18] ss:$12 sps:$4 sm:$0xff]  }
 0x1e7   :  { %1911 = vmatprep.subr.bf16.mxu1 %v17101_v8  ;;  %1954 = vmatprep.subr.bf16.mxu0 %v17104_v9  ;;  %v17170_v7 = vld [vmem:[#allocation8 + $0x4] ss:$12 sps:$4 sm:$0xff]   ;;  %v17168_v8 = vld [vmem:[#allocation8] ss:$12 sps:$4 sm:$0xff]  }
 0x1e8   :  { %v17171_v9 = vld [vmem:[#allocation8 + $0x170] ss:$12 sps:$4 sm:$0xff]  }
 0x1ea   :  { %1912 = vmatpush2.bf16.msra.mxu1 %v17099_v10  ;;  %1955 = vmatpush2.bf16.msra.mxu0 %v17102_v11  ;;  %v17174_v10 = vld [vmem:[#allocation8 + $0x16c] ss:$12 sps:$4 sm:$0xff]   ;;  %v17175_v11 = vld [vmem:[#allocation8 + $0xb0] ss:$12 sps:$4 sm:$0xff]  }
 0x1eb   :  { %1913 = vmatprep.subr.bf16.mxu1 %v17107_v15  ;;  %1956 = vmatprep.subr.bf16.mxu0 %v17110_v16  ;;  %v17172_v15 = vld [vmem:[#allocation8 + $0x168] ss:$12 sps:$4 sm:$0xff]   ;;  %v17176_v16 = vld [vmem:[#allocation8 + $0x158] ss:$12 sps:$4 sm:$0xff]  }
 0x1ee   :  { %1914 = vmatpush2.bf16.msra.mxu1 %v17105_v17  ;;  %1957 = vmatpush2.bf16.msra.mxu0 %v17108_v19  ;;  %v17179_v17 = vld [vmem:[#allocation8 + $0x154] ss:$12 sps:$4 sm:$0xff]   ;;  %v17180_v19 = vld [vmem:[#allocation8 + $0x98] ss:$12 sps:$4 sm:$0xff]  }
 0x1ef   :  { %1915 = vmatprep.subr.bf16.mxu1 %v17113_v23  ;;  %1958 = vmatprep.subr.bf16.mxu0 %v17116_v25  ;;  %v17177_v23 = vld [vmem:[#allocation8 + $0x150] ss:$12 sps:$4 sm:$0xff]   ;;  %v17181_v25 = vld [vmem:[#allocation8 + $0x140] ss:$12 sps:$4 sm:$0xff]  }
 0x1f2   :  { %1916 = vmatpush2.bf16.msra.mxu1 %v17111_v26  ;;  %1959 = vmatpush2.bf16.msra.mxu0 %v17114_v28  ;;  %v17184_v26 = vld [vmem:[#allocation8 + $0x13c] ss:$12 sps:$4 sm:$0xff]   ;;  %v17185_v28 = vld [vmem:[#allocation8 + $0x80] ss:$12 sps:$4 sm:$0xff]  }
 0x1f3   :  { %1917 = vmatprep.subr.bf16.mxu1 %v17119_v31  ;;  %1960 = vmatprep.subr.bf16.mxu0 %v17122_v33  ;;  %v17182_v31 = vld [vmem:[#allocation8 + $0x138] ss:$12 sps:$4 sm:$0xff]   ;;  %v17186_v33 = vld [vmem:[#allocation8 + $0x128] ss:$12 sps:$4 sm:$0xff]  }
 0x1f6   :  { %1918 = vmatpush2.bf16.msra.mxu1 %v17117_v34  ;;  %1961 = vmatpush2.bf16.msra.mxu0 %v17120_v37  ;;  %v17189_v34 = vld [vmem:[#allocation8 + $0x124] ss:$12 sps:$4 sm:$0xff]   ;;  %v17187_v37 = vld [vmem:[#allocation8 + $0x120] ss:$12 sps:$4 sm:$0xff]  }
 0x1f7   :  { %1919 = vmatprep.subr.bf16.mxu1 %v17125_v38  ;;  %1962 = vmatprep.subr.bf16.mxu0 %v17128_v40  ;;  %v17190_v38 = vld [vmem:[#allocation8 + $0x68] ss:$12 sps:$4 sm:$0xff]   ;;  %v17191_v40 = vld [vmem:[#allocation8 + $0x110] ss:$12 sps:$4 sm:$0xff]  }
 0x1fa   :  { %1920 = vmatpush2.bf16.msra.mxu1 %v17123_v42  ;;  %1963 = vmatpush2.bf16.msra.mxu0 %v17126_v22  ;;  %v17194_v42 = vld [vmem:[#allocation8 + $0x10c] ss:$12 sps:$4 sm:$0xff]   ;;  %v17195_v22 = vld [vmem:[#allocation8 + $0x50] ss:$12 sps:$4 sm:$0xff]  }
 0x1fb   :  { %1921 = vmatprep.subr.bf16.mxu1 %v17131_v21  ;;  %1964 = vmatprep.subr.bf16.mxu0 %v17134_v43  ;;  %v17192_v21 = vld [vmem:[#allocation8 + $0x108] ss:$12 sps:$4 sm:$0xff]   ;;  %v17196_v43 = vld [vmem:[#allocation8 + $0xf8] ss:$12 sps:$4 sm:$0xff]  }
 0x1fe   :  { %1922 = vmatpush2.bf16.msra.mxu1 %v17129_v44  ;;  %1965 = vmatpush2.bf16.msra.mxu0 %v17132_v45  ;;  %v17199_v44 = vld [vmem:[#allocation8 + $0xf4] ss:$12 sps:$4 sm:$0xff]   ;;  %v17200_v45 = vld [vmem:[#allocation8 + $0x38] ss:$12 sps:$4 sm:$0xff]  }
 0x1ff   :  { %1923 = vmatprep.subr.bf16.mxu1 %v17137_v46  ;;  %1966 = vmatprep.subr.bf16.mxu0 %v17140_v47  ;;  %v17197_v46 = vld [vmem:[#allocation8 + $0xf0] ss:$12 sps:$4 sm:$0xff]   ;;  %v17201_v47 = vld [vmem:[#allocation8 + $0xe0] ss:$12 sps:$4 sm:$0xff]  }
 0x202   :  { %1924 = vmatpush2.bf16.msra.mxu1 %v17135_v48  ;;  %1967 = vmatpush2.bf16.msra.mxu0 %v17138_v59  ;;  %v17204_v48 = vld [vmem:[#allocation8 + $0xdc] ss:$12 sps:$4 sm:$0xff]   ;;  %v17205_v59 = vld [vmem:[#allocation8 + $0x20] ss:$12 sps:$4 sm:$0xff]  }
 0x203   :  { %1925 = vmatprep.subr.bf16.mxu1 %v17143_v49  ;;  %1968 = vmatprep.subr.bf16.mxu0 %v17146_v50  ;;  %v17202_v49 = vld [vmem:[#allocation8 + $0xd8] ss:$12 sps:$4 sm:$0xff]   ;;  %v17206_v50 = vld [vmem:[#allocation8 + $0xc8] ss:$12 sps:$4 sm:$0xff]  }
 0x206   :  { %1926 = vmatpush2.bf16.msra.mxu1 %v17141_v13  ;;  %1969 = vmatpush2.bf16.msra.mxu0 %v17144_v12  ;;  %v17209_v13 = vld [vmem:[#allocation8 + $0xc4] ss:$12 sps:$4 sm:$0xff]   ;;  %v17210_v12 = vld [vmem:[#allocation8 + $0x8] ss:$12 sps:$4 sm:$0xff]  }
 0x207   :  { %2404 = vmatprep.subr.bf16.mxu1 %v17149_v52  ;;  %16637 = vmatprep.subr.bf16.mxu0 %v17171_v9  ;;  %v17213_v52 = vld [vmem:[#allocation2 + $0x74] ss:$8 sps:$4 sm:$0xff]  }
 0x209   :  { %1928 = vmatmul.mubr.bf16.vlgmr.msra.gmra.mxu1 %v20064_v39  ;;  %1971 = vmatmul.mubr.bf16.vlgmr.msra.gmra.mxu0 %v20064_v39  ;;  %v17158_v39 = vld [vmem:[#allocation8 + $0x64] ss:$12 sps:$4 sm:$0xff]  }
 0x20a   :  { %2405 = vmatpush1.bf16.msra.mxu1 %v17147_v51  ;;  %16638 = vmatpush3.bf16.msra.mxu0 %v17175_v11  ;;  %v17207_v51 = vld [vmem:[#allocation8 + $0xc0] ss:$12 sps:$4 sm:$0xff]  }
 0x20b   :  { %2406 = vmatprep.subr.bf16.mxu1 %v17152_v62  ;;  %16639 = vmatprep.subr.bf16.mxu0 %v17176_v16 }
 0x20e   :  { %2407 = vmatpush1.bf16.msra.mxu1 %v17150_v53  ;;  %16640 = vmatpush3.bf16.msra.mxu0 %v17180_v19  ;;  %v17231_v53 = vld [vmem:[#allocation2 + $0x174] ss:$8 sps:$4 sm:$0xff]  }
 0x20f   :  { %2408 = vmatprep.subr.bf16.mxu1 %v17155_v54  ;;  %16641 = vmatprep.subr.bf16.mxu0 %v17181_v25 }
 0x212   :  { %2409 = vmatpush1.bf16.msra.mxu1 %v17153_v56  ;;  %16642 = vmatpush3.bf16.msra.mxu0 %v17185_v28 }
 0x213   :  { %2410 = vmatprep.subr.bf16.mxu1 %v17158_v39  ;;  %16643 = vmatprep.subr.bf16.mxu0 %v17186_v33 }
 0x216   :  { %2411 = vmatpush1.bf16.msra.mxu1 %v17156_v57  ;;  %16644 = vmatpush3.bf16.msra.mxu0 %v17190_v38 }
 0x217   :  { %2412 = vmatprep.subr.bf16.mxu1 %v17161_v58  ;;  %16645 = vmatprep.subr.bf16.mxu0 %v17191_v40  ;;  %v20087_v58 = vshrl.u32 %v92_v63, 7  ;;  %v20105_v63 = vld [vmem:[%s20946_s5] sm:$0x3f] }
 0x21a   :  { %2413 = vmatpush1.bf16.msra.mxu1 %v17159_v60  ;;  %16646 = vmatpush3.bf16.msra.mxu0 %v17195_v22 }
 0x21b   :  { %2414 = vmatprep.subr.bf16.mxu1 %v17164_v30  ;;  %16647 = vmatprep.subr.bf16.mxu0 %v17196_v43  ;;  %v20090_v30 = vsub.s32 1, %v20087_v58 }
 0x21d   :  { %v610_v9 = vrot.slane %v20105_v63, %v20090_v30 }
 0x21e   :  { %2415 = vmatpush1.bf16.msra.mxu1 %v17162_v29  ;;  %16648 = vmatpush3.bf16.msra.mxu0 %v17200_v45 }
 0x21f   :  { %2416 = vmatprep.subr.bf16.mxu1 %v17167_v61  ;;  %16649 = vmatprep.subr.bf16.mxu0 %v17201_v47  ;;  %v20095_v61 = vld [vmem:[%s20947_s6] sm:$0x3f] }
 0x222   :  { %2417 = vmatpush1.bf16.msra.mxu1 %v17165_v3  ;;  %16650 = vmatpush3.bf16.msra.mxu0 %v17205_v59 }
 0x223   :  { %2418 = vmatprep.subr.bf16.mxu1 %v17170_v7  ;;  %16651 = vmatprep.subr.bf16.mxu0 %v17206_v50  ;;  %v1349_v7 = vrot.slane %v20095_v61, %v20090_v30 }
 0x226   :  { %2419 = vmatpush1.bf16.msra.mxu1 %v17168_v8  ;;  %16652 = vmatpush3.bf16.msra.mxu0 %v17210_v12  ;;  %v20100_v8 = vsub.s32 0, %v20087_v58 }
 0x227   :  { %2420 = vmatprep.subr.bf16.mxu1 %v17174_v10  ;;  %2858 = vmatprep.subr.bf16.mxu0 %v17213_v52 }
 0x228   :  { %v1345_v11 = vrot.slane %v20095_v61, %v20100_v8 }
 0x22a   :  { %2421 = vmatpush2.bf16.msra.mxu1 %v17172_v15 }
 0x22b   :  { %2422 = vmatprep.subr.bf16.mxu1 %v17179_v17  ;;  %v606_v17 = vrot.slane %v20105_v63, %v20100_v8 }
 0x22e   :  { %2423 = vmatpush2.bf16.msra.mxu1 %v17177_v23 }
 0x22f   :  { %2424 = vmatprep.subr.bf16.mxu1 %v17184_v26 }
 0x232   :  { %2425 = vmatpush2.bf16.msra.mxu1 %v17182_v31 }
 0x233   :  { %2426 = vmatprep.subr.bf16.mxu1 %v17189_v34 }
 0x236   :  { %2427 = vmatpush2.bf16.msra.mxu1 %v17187_v37 }
 0x237   :  { %2428 = vmatprep.subr.bf16.mxu1 %v17194_v42 }
 0x23a   :  { %2429 = vmatpush2.bf16.msra.mxu1 %v17192_v21 }
 0x23b   :  { %2430 = vmatprep.subr.bf16.mxu1 %v17199_v44 }
 0x23e   :  { %2431 = vmatpush2.bf16.msra.mxu1 %v17197_v46 }
 0x23f   :  { %2432 = vmatprep.subr.bf16.mxu1 %v17204_v48  ;;  %v20118_v48 = vsub.s32 2, %v20087_v58 }
 0x241   :  { %v614_v50 = vrot.slane %v20105_v63, %v20118_v48 }
 0x242   :  { %2433 = vmatpush2.bf16.msra.mxu1 %v17202_v49  ;;  %v20123_v49 = vsub.s32 3, %v20087_v58 }
 0x243   :  { %2434 = vmatprep.subr.bf16.mxu1 %v17209_v13  ;;  %v1353_v13 = vrot.slane %v20095_v61, %v20118_v48 }
 0x246   :  { %2435 = vmatpush2.bf16.msra.mxu1 %v17207_v51 }
 0x247   :  { %2901 = vmatprep.subr.bf16.mxu1 %v17231_v53  ;;  %v618_v53 = vrot.slane %v20105_v63, %v20123_v49 }
 0x249   :  { %v1190_v62 = vpop.f32.mrf.mxu0  ;;  %v1147_v60 = vpop.f32.mrf.mxu1 }
 0x24a   :  { %v1148_v34 = vadd.f32 %v1147_v60, %v606_v17 }
 0x24b   :  { %v1192_v54 = vpop.f32.mrf.mxu0  ;;  %v1149_v3 = vpop.f32.mrf.mxu1 }
 0x24c   :  { %v1150_v23 = vadd.f32 %v1149_v3, %v610_v9  ;;  %v1191_v3 = vadd.f32 %v1190_v62, %v614_v50 }
 0x24d   :  { %v20082_v56 = vpop.f32.mrf.mxu0  ;;  %v1151_v15 = vpop.f32.mrf.mxu1 }
 0x24e   :  { %v1152_v26 = vadd.f32 %v1151_v15, %v606_v17 }
 0x24f   :  { %v20084_v39 = vpop.f32.mrf.mxu0  ;;  %v1153_v31 = vpop.f32.mrf.mxu1 }
 0x250   :  { %v1154_v40 = vadd.f32 %v1153_v31, %v610_v9 }
 0x289   :  { %v1886_v57 = vpop.f32.mrf.mxu0  ;;  %v20113_v45 = vpop.f32.mrf.mxu1 }
 0x28a   :  { %v1887_v28 = vadd.f32 %v1886_v57, %v1345_v11  ;;  %v1357_v57 = vrot.slane %v20095_v61, %v20123_v49 }
 0x28b   :  { %v1888_v29 = vpop.f32.mrf.mxu0  ;;  %v20115_v47 = vpop.f32.mrf.mxu1 }
 0x28c   :  { %v1889_v16 = vadd.f32 %v1888_v29, %v1349_v7  ;;  %v1981_v42 = vadd.f32 %v1887_v28, %v1148_v34 }
 0x28d   :  { %v1890_v10 = vpop.f32.mrf.mxu0  ;;  %v20120_v59 = vpop.f32.mrf.mxu1 }
 0x28e   :  { %v1891_v19 = vadd.f32 %v1890_v10, %v1345_v11  ;;  %v1982_v33 = vadd.f32 %v1889_v16, %v1150_v23  ;;  %v15031_v44 = vmul.f32 -1.442695, %v1981_v42  ;;  %v1193_v16 = vadd.f32 %v1192_v54, %v618_v53 }
 0x28f   :  { %v1892_v25 = vpop.f32.mrf.mxu0  ;;  %v20129_v51 = vpop.f32.mrf.mxu1 }
 0x290   :  { %v1983_v37 = vadd.f32 %v1891_v19, %v1152_v26  ;;  %v1893_v38 = vadd.f32 %v1892_v25, %v1349_v7  ;;  %v15032_v22 = vmul.f32 -1.442695, %v1982_v33  ;;  %v1195_v33 = vadd.f32 %v20082_v56, %v614_v50 }
 0x292   :  { %v15033_v21 = vmul.f32 -1.442695, %v1983_v37  ;;  %v1984_v43 = vadd.f32 %v1893_v38, %v1154_v40  ;;  %19331 = vpow2.f32 %v15032_v22  ;;  %v1197_v38 = vadd.f32 %v20084_v39, %v618_v53 }
 0x293   :  { %v20138_v22 = vsub.s32 5, %v20087_v58  ;;  %v20143_v39 = vsub.s32 4, %v20087_v58 }
 0x294   :  { %19333 = vpow2.f32 %v15033_v21  ;;  %v15034_v46 = vmul.f32 -1.442695, %v1984_v43 }
 0x295   :  { %19335 = vpow2.f32 %v15031_v44  ;;  %v1365_v56 = vrot.slane %v20095_v61, %v20138_v22  ;;  %v622_v58 = vrot.slane %v20105_v63, %v20143_v39 }
 0x296   :  { %19337 = vpow2.f32 %v15034_v46 }
 0x29f   :  { %v19332_v12 = vpop.eup %19331 }
 0x2a0   :  { %v1998_v7 = vadd.f32 1.0, %v19332_v12 }
 0x2a1   :  { %v19334_v52 = vpop.eup %19333 }
 0x2a2   :  { %v19336_v29 = vpop.eup %19335  ;;  %v1999_v10 = vadd.f32 1.0, %v19334_v52  ;;  %19339 = vrcp.f32 %v1998_v7  ;;  %v626_v52 = vrot.slane %v20105_v63, %v20138_v22 }
 0x2a3   :  { %v19338_v15 = vpop.eup %19337  ;;  %v1997_v23 = vadd.f32 1.0, %v19336_v29 }
 0x2a4   :  { %19341 = vrcp.f32 %v1999_v10  ;;  %v2000_v34 = vadd.f32 1.0, %v19338_v15  ;;  %v1236_v15 = vadd.f32 %v20115_v47, %v626_v52  ;;  %v1240_v63 = vadd.f32 %v20129_v51, %v626_v52 }
 0x2c9   :  { %v1929_v60 = vpop.f32.mrf.mxu1  ;;  %v1972_v28 = vpop.f32.mrf.mxu0 }
 0x2ca   :  { %v1930_v9 = vadd.f32 %v1929_v60, %v1353_v13  ;;  %v19340_v60 = vpop.eup %19339 }
 0x2cb   :  { %v1931_v11 = vpop.f32.mrf.mxu1  ;;  %v1974_v21 = vpop.f32.mrf.mxu0 }
 0x2cc   :  { %v2009_v17 = vadd.f32 %v1930_v9, %v1191_v3  ;;  %v1932_v19 = vadd.f32 %v1931_v11, %v1357_v57  ;;  %v1975_v12 = vadd.f32 %v1974_v21, %v1365_v56  ;;  %v19342_v29 = vpop.eup %19341 }
 0x2cd   :  { %v1933_v25 = vpop.f32.mrf.mxu1  ;;  %v1976_v50 = vpop.f32.mrf.mxu0 }
 0x2ce   :  { %v15035_v26 = vmul.f32 -1.442695, %v2009_v17  ;;  %v2010_v31 = vadd.f32 %v1932_v19, %v1193_v16  ;;  %v1934_v37 = vadd.f32 %v1933_v25, %v1353_v13  ;;  %v1361_v13 = vrot.slane %v20095_v61, %v20143_v39 }
 0x2cf   :  { %v1935_v62 = vpop.f32.mrf.mxu1  ;;  %v2038_v7 = vmul.f32 %v19340_v60, %v1975_v12  ;;  %v19667_v60 = vld [vmem:[%s20943_s2 + $0x10] sm:$0xff] }
 0x2d0   :  { %19343 = vpow2.f32 %v15035_v26  ;;  %v15036_v40 = vmul.f32 -1.442695, %v2010_v31  ;;  %v1936_v42 = vadd.f32 %v1935_v62, %v1357_v57  ;;  %v2011_v54 = vadd.f32 %v1934_v37, %v1195_v33  ;;  %v1978_v57 = vpop.f32.mrf.mxu0 }
 0x2d1   :  { %19345 = vrcp.f32 %v1997_v23  ;;  %v1977_v53 = vadd.f32 %v1976_v50, %v1361_v13  ;;  %v1973_v3 = vadd.f32 %v1972_v28, %v1361_v13  ;;  %v1979_v10 = vadd.f32 %v1978_v57, %v1365_v56 }
 0x2d2   :  { %19347 = vpow2.f32 %v15036_v40  ;;  %v2012_v43 = vadd.f32 %v1936_v42, %v1197_v38  ;;  %v15037_v44 = vmul.f32 -1.442695, %v2011_v54  ;;  %v1238_v23 = vadd.f32 %v20120_v59, %v622_v58 }
 0x2d3   :  { %19349 = vrcp.f32 %v2000_v34  ;;  %v2039_v61 = vmul.f32 %v19342_v29, %v1977_v53  ;;  %v2042_v31 = vadd.f32 %v2038_v7, %v1236_v15  ;;  %v1234_v34 = vadd.f32 %v20113_v45, %v622_v58  ;;  %v19670_v15 = vld [vmem:[%s20943_s2] sm:$0xff] }
 0x2d4   :  { %v15038_v46 = vmul.f32 -1.442695, %v2012_v43  ;;  %19351 = vpow2.f32 %v15037_v44 }
 0x2d5   :  { %v2043_v37 = vadd.f32 %v2039_v61, %v1238_v23  ;;  %v17211_v23 = vld [vmem:[#allocation2 + $0x70] ss:$8 sps:$4 sm:$0xff]  }
 0x2d6   :  { %19353 = vpow2.f32 %v15038_v46 }
 0x2dd   :  { %v19344_v9 = vpop.eup %19343 }
 0x2de   :  { %v19346_v11 = vpop.eup %19345  ;;  %v2025_v16 = vadd.f32 1.0, %v19344_v9  ;;  %v19668_v9 = vld [vmem:[%s20943_s2 + $0x8] sm:$0xff] }
 0x2df   :  { %v19348_v17 = vpop.eup %19347  ;;  %v2037_v25 = vmul.f32 %v19346_v11, %v1973_v3  ;;  %v19669_v11 = vld [vmem:[%s20943_s2 + $0x18] sm:$0xff]  ;;  %v17238_v3 = vld [vmem:[#allocation2] ss:$8 sps:$4 sm:$0xff]  }
 0x2e0   :  { %v19350_v19 = vpop.eup %19349  ;;  %v2026_v26 = vadd.f32 1.0, %v19348_v17  ;;  %19355 = vrcp.f32 %v2025_v16 }
 0x2e1   :  { %v2040_v28 = vmul.f32 %v19350_v19, %v1979_v10  ;;  %v19352_v33 = vpop.eup %19351  ;;  %v2041_v38 = vadd.f32 %v2037_v25, %v1234_v34  ;;  %v17229_v25 = vld [vmem:[#allocation2 + $0x170] ss:$8 sps:$4 sm:$0xff]  }
 0x2e2   :  { %19357 = vrcp.f32 %v2026_v26  ;;  %v2027_v62 = vadd.f32 1.0, %v19352_v33 }
 0x2e3   :  { %v19354_v47 = vpop.eup %19353  ;;  %19359 = vtanh.f32 %v2042_v31  ;;  %v2044_v42 = vadd.f32 %v2040_v28, %v1240_v63  ;;  %v17216_v31 = vld [vmem:[#allocation2 + $0x64] ss:$8 sps:$4 sm:$0xff]   ;;  %v17235_v63 = vld [vmem:[#allocation2 + $0x160] ss:$8 sps:$4 sm:$0xff]  }
 0x2e4   :  { %19361 = vrcp.f32 %v2027_v62  ;;  %v2028_v40 = vadd.f32 1.0, %v19354_v47  ;;  %v17237_v28 = vld [vmem:[#allocation2 + $0x164] ss:$8 sps:$4 sm:$0xff]   ;;  %v17219_v62 = vld [vmem:[#allocation2 + $0x54] ss:$8 sps:$4 sm:$0xff]  }
 0x2e5   :  { %19363 = vtanh.f32 %v2043_v37  ;;  %v17214_v37 = vld [vmem:[#allocation2 + $0x60] ss:$8 sps:$4 sm:$0xff]   ;;  %v17243_v47 = vld [vmem:[#allocation2 + $0x154] ss:$8 sps:$4 sm:$0xff]  }
 0x2e6   :  { %19365 = vrcp.f32 %v2028_v40  ;;  %v17241_v40 = vld [vmem:[#allocation2 + $0x150] ss:$8 sps:$4 sm:$0xff]  }
 0x2e7   :  { %19367 = vtanh.f32 %v2041_v38  ;;  %v17217_v38 = vld [vmem:[#allocation2 + $0x50] ss:$8 sps:$4 sm:$0xff]  }
 0x2e8   :  { %19369 = vtanh.f32 %v2044_v42  ;;  %v17222_v42 = vld [vmem:[#allocation2 + $0x44] ss:$8 sps:$4 sm:$0xff]  }
 0x2ed   :  { %v19356_v59 = vpop.eup %19355 }
 0x2ee   :  { %v2049_v44 = vsub.f32 1.0, %v19356_v59  ;;  %v2057_v16 = vmul.f32 %v19670_v15, %v19356_v59  ;;  %v17249_v59 = vld [vmem:[#allocation2 + $0x144] ss:$8 sps:$4 sm:$0xff]   ;;  %v17258_v15 = vld [vmem:[#allocation2 + $0xd4] ss:$8 sps:$4 sm:$0xff]  }
 0x2ef   :  { %v19358_v54 = vpop.eup %19357 }
 0x2f0   :  { %v19360_v21 = vpop.eup %19359  ;;  %v2050_v43 = vsub.f32 1.0, %v19358_v54  ;;  %v2058_v10 = vmul.f32 %v19668_v9, %v19358_v54  ;;  %v17220_v54 = vld [vmem:[#allocation2 + $0x40] ss:$8 sps:$4 sm:$0xff]   ;;  %v17246_v9 = vld [vmem:[#allocation2 + $0xf4] ss:$8 sps:$4 sm:$0xff]  }
 0x2f1   :  { %v19362_v45 = vpop.eup %19361 }
 0x2f2   :  { %v19364_v56 = vpop.eup %19363  ;;  %v2051_v51 = vsub.f32 1.0, %v19362_v45  ;;  %v2054_v12 = vmul.f32 %v19360_v21, %v2050_v43  ;;  %v2059_v29 = vmul.f32 %v19667_v60, %v19362_v45  ;;  %v17247_v21 = vld [vmem:[#allocation2 + $0x140] ss:$8 sps:$4 sm:$0xff]   ;;  %v17225_v43 = vld [vmem:[#allocation2 + $0x34] ss:$8 sps:$4 sm:$0xff]  }
 0x2f3   :  { %v19366_v46 = vpop.eup %19365  ;;  %v17255_v45 = vld [vmem:[#allocation2 + $0x134] ss:$8 sps:$4 sm:$0xff]   ;;  %v17240_v60 = vld [vmem:[#allocation2 + $0x4] ss:$8 sps:$4 sm:$0xff]  }
 0x2f4   :  { %v19368_v50 = vpop.eup %19367  ;;  %v2052_v13 = vsub.f32 1.0, %v19366_v46  ;;  %v2055_v52 = vmul.f32 %v19364_v56, %v2051_v51  ;;  %v2060_v58 = vmul.f32 %v19669_v11, %v19366_v46  ;;  %v20177_v17 = vadd.f32 %v2058_v10, %v2054_v12  ;;  %v17253_v56 = vld [vmem:[#allocation2 + $0x130] ss:$8 sps:$4 sm:$0xff]   ;;  %v17228_v51 = vld [vmem:[#allocation2 + $0x24] ss:$8 sps:$4 sm:$0xff]  }
 0x2f5   :  { %v19370_v53 = vpop.eup %19369  ;;  %v2053_v57 = vmul.f32 %v19368_v50, %v2049_v44  ;;  %v17223_v44 = vld [vmem:[#allocation2 + $0x30] ss:$8 sps:$4 sm:$0xff]   ;;  %v17261_v46 = vld [vmem:[#allocation2 + $0x124] ss:$8 sps:$4 sm:$0xff]   ;;  %v17226_v50 = vld [vmem:[#allocation2 + $0x20] ss:$8 sps:$4 sm:$0xff]  }
 0x2f6   :  { %v2056_v7 = vmul.f32 %v19370_v53, %v2052_v13  ;;  %v20175_v61 = vadd.f32 %v2059_v29, %v2055_v52  ;;  %v17259_v13 = vld [vmem:[#allocation2 + $0x120] ss:$8 sps:$4 sm:$0xff]   ;;  %v17234_v12 = vld [vmem:[#allocation2 + $0x14] ss:$8 sps:$4 sm:$0xff]   ;;  %v17232_v53 = vld [vmem:[#allocation2 + $0x10] ss:$8 sps:$4 sm:$0xff]  }
 0x2f7   :  { %v20181_v26 = vadd.f32 %v2057_v16, %v2053_v57  ;;  %v17267_v52 = vld [vmem:[#allocation2 + $0x114] ss:$8 sps:$4 sm:$0xff]   ;;  %v17265_v57 = vld [vmem:[#allocation2 + $0x110] ss:$8 sps:$4 sm:$0xff]   ;;  %v17273_v29 = vld [vmem:[#allocation2 + $0x104] ss:$8 sps:$4 sm:$0xff]  }
 0x2f8   :  { %v20179_v19 = vadd.f32 %v2060_v58, %v2056_v7  ;;  %v17271_v7 = vld [vmem:[#allocation2 + $0x100] ss:$8 sps:$4 sm:$0xff]   ;;  %v17244_v10 = vld [vmem:[#allocation2 + $0xf0] ss:$8 sps:$4 sm:$0xff]   ;;  %v17252_v11 = vld [vmem:[#allocation2 + $0xe4] ss:$8 sps:$4 sm:$0xff]  }
 0x2f9   :  { %v20189_v34 = vpack.c.bf16 %v20175_v61, %v20181_v26  ;;  %v17250_v58 = vld [vmem:[#allocation2 + $0xe0] ss:$8 sps:$4 sm:$0xff]   ;;  %v17256_v16 = vld [vmem:[#allocation2 + $0xd0] ss:$8 sps:$4 sm:$0xff]  }
 0x2fa   :  { %v20185_v33 = vpack.c.bf16 %v20179_v19, %v20177_v17 }
 0x2fc   :  { %2436 = vmatprep.mubr.bf16.mxu1 %v20185_v33  ;;  %2479 = vmatprep.mubr.bf16.mxu0 %v20185_v33 }
 0x2fd   :  { %2437 = vmatmul.mubr.bf16.vlgmr.msra.gmra.mxu1 %v20189_v34  ;;  %2480 = vmatmul.mubr.bf16.vlgmr.msra.gmra.mxu0 %v20189_v34 }
 0x2fe   :  { %2859 = vmatpush1.bf16.msra.mxu0 %v17211_v23  ;;  %2902 = vmatpush1.bf16.msra.mxu1 %v17229_v25  ;;  %v17264_v23 = vld [vmem:[#allocation2 + $0xc4] ss:$8 sps:$4 sm:$0xff]   ;;  %v17262_v25 = vld [vmem:[#allocation2 + $0xc0] ss:$8 sps:$4 sm:$0xff]  }
 0x2ff   :  { %2860 = vmatprep.subr.bf16.mxu0 %v17216_v31  ;;  %2903 = vmatprep.subr.bf16.mxu1 %v17237_v28  ;;  %v17270_v31 = vld [vmem:[#allocation2 + $0xb4] ss:$8 sps:$4 sm:$0xff]   ;;  %v17268_v28 = vld [vmem:[#allocation2 + $0xb0] ss:$8 sps:$4 sm:$0xff]  }
 0x300   :  { %2933 = vmatprep.mubr.bf16.mxu1 %v19811_v0  ;;  %15144 = vmatprep.mubr.msk.bf16.mxu0 %vm20162_vm11, %v19812_v14 }
 0x302   :  { %2861 = vmatpush1.bf16.msra.mxu0 %v17214_v37  ;;  %2904 = vmatpush1.bf16.msra.mxu1 %v17235_v63  ;;  %v17276_v37 = vld [vmem:[#allocation2 + $0xa4] ss:$8 sps:$4 sm:$0xff]   ;;  %v17274_v63 = vld [vmem:[#allocation2 + $0xa0] ss:$8 sps:$4 sm:$0xff]  }
 0x303   :  { %2862 = vmatprep.subr.bf16.mxu0 %v17219_v62  ;;  %2905 = vmatprep.subr.bf16.mxu1 %v17243_v47  ;;  %v17279_v62 = vld [vmem:[#allocation2 + $0x94] ss:$8 sps:$4 sm:$0xff]   ;;  %v17277_v47 = vld [vmem:[#allocation2 + $0x90] ss:$8 sps:$4 sm:$0xff]  }
 0x306   :  { %2863 = vmatpush1.bf16.msra.mxu0 %v17217_v38  ;;  %2906 = vmatpush1.bf16.msra.mxu1 %v17241_v40  ;;  %v17282_v38 = vld [vmem:[#allocation2 + $0x84] ss:$8 sps:$4 sm:$0xff]   ;;  %v17280_v40 = vld [vmem:[#allocation2 + $0x80] ss:$8 sps:$4 sm:$0xff]  }
 0x307   :  { %2864 = vmatprep.subr.bf16.mxu0 %v17222_v42  ;;  %2907 = vmatprep.subr.bf16.mxu1 %v17249_v59  ;;  %v17283_v42 = vld [vmem:[#allocation5 + $0x150] ss:$24 sps:$4 sm:$0xff]   ;;  %v17285_v59 = vld [vmem:[#allocation5 + $0x154] ss:$24 sps:$4 sm:$0xff]  }
 0x30a   :  { %2865 = vmatpush1.bf16.msra.mxu0 %v17220_v54  ;;  %2908 = vmatpush1.bf16.msra.mxu1 %v17247_v21  ;;  %v17286_v54 = vld [vmem:[#allocation5 + $0x158] ss:$24 sps:$4 sm:$0xff]   ;;  %v17288_v21 = vld [vmem:[#allocation5 + $0x15c] ss:$24 sps:$4 sm:$0xff]  }
 0x30b   :  { %2866 = vmatprep.subr.bf16.mxu0 %v17225_v43  ;;  %2909 = vmatprep.subr.bf16.mxu1 %v17255_v45  ;;  %v17291_v43 = vld [vmem:[#allocation5 + $0x124] ss:$24 sps:$4 sm:$0xff]   ;;  %v17289_v45 = vld [vmem:[#allocation5 + $0x120] ss:$24 sps:$4 sm:$0xff]  }
 0x30e   :  { %2867 = vmatpush1.bf16.msra.mxu0 %v17223_v44  ;;  %2910 = vmatpush1.bf16.msra.mxu1 %v17253_v56  ;;  %v17294_v44 = vld [vmem:[#allocation5 + $0x12c] ss:$24 sps:$4 sm:$0xff]  }
 0x30f   :  { %2868 = vmatprep.subr.bf16.mxu0 %v17228_v51  ;;  %2911 = vmatprep.subr.bf16.mxu1 %v17261_v46  ;;  %v17297_v56 = vld [vmem:[#allocation5 + $0xf4] ss:$24 sps:$4 sm:$0xff]   ;;  %v17298_v46 = vld [vmem:[#allocation5 + $0xf8] ss:$24 sps:$4 sm:$0xff]  }
 0x310   :  { %v17300_v51 = vld [vmem:[#allocation5 + $0xfc] ss:$24 sps:$4 sm:$0xff]  }
 0x312   :  { %2869 = vmatpush1.bf16.msra.mxu0 %v17226_v50  ;;  %2912 = vmatpush1.bf16.msra.mxu1 %v17259_v13  ;;  %v17303_v50 = vld [vmem:[#allocation5 + $0xc4] ss:$24 sps:$4 sm:$0xff]  }
 0x313   :  { %2870 = vmatprep.subr.bf16.mxu0 %v17234_v12  ;;  %2913 = vmatprep.subr.bf16.mxu1 %v17267_v52  ;;  %v17306_v13 = vld [vmem:[#allocation5 + $0xcc] ss:$24 sps:$4 sm:$0xff]   ;;  %v17301_v12 = vld [vmem:[#allocation5 + $0xc0] ss:$24 sps:$4 sm:$0xff]  }
 0x314   :  { %v17304_v52 = vld [vmem:[#allocation5 + $0xc8] ss:$24 sps:$4 sm:$0xff]  }
 0x316   :  { %2871 = vmatpush1.bf16.msra.mxu0 %v17232_v53  ;;  %2914 = vmatpush1.bf16.msra.mxu1 %v17265_v57  ;;  %v17309_v53 = vld [vmem:[#allocation5 + $0x94] ss:$24 sps:$4 sm:$0xff]  }
 0x317   :  { %2872 = vmatprep.subr.bf16.mxu0 %v17240_v60  ;;  %2915 = vmatprep.subr.bf16.mxu1 %v17273_v29  ;;  %v17312_v57 = vld [vmem:[#allocation5 + $0x9c] ss:$24 sps:$4 sm:$0xff]   ;;  %v17307_v60 = vld [vmem:[#allocation5 + $0x90] ss:$24 sps:$4 sm:$0xff]  }
 0x318   :  { %v17310_v29 = vld [vmem:[#allocation5 + $0x98] ss:$24 sps:$4 sm:$0xff]  }
 0x31a   :  { %2873 = vmatpush1.bf16.msra.mxu0 %v17238_v3  ;;  %2916 = vmatpush1.bf16.msra.mxu1 %v17271_v7  ;;  %v17315_v3 = vld [vmem:[#allocation5 + $0x64] ss:$24 sps:$4 sm:$0xff]  }
 0x31b   :  { %2874 = vmatprep.subr.bf16.mxu0 %v17246_v9  ;;  %3554 = vmatprep.subr.bf16.mxu1 %v17285_v59  ;;  %v17318_v7 = vld [vmem:[#allocation5 + $0x6c] ss:$24 sps:$4 sm:$0xff]   ;;  %v17313_v9 = vld [vmem:[#allocation5 + $0x60] ss:$24 sps:$4 sm:$0xff]  }
 0x31c   :  { %v17340_v59 = vld [vmem:[#allocation5 + $0x2a8] ss:$24 sps:$4 sm:$0xff]  }
 0x31d   :  { %15148 = vmatmul.mubr.msk.bf16.vlgmr.msra.gmra.mxu1 %vm15147_vm1, %v19812_v14 }
 0x31e   :  { %2875 = vmatpush2.bf16.msra.mxu0 %v17244_v10  ;;  %3555 = vmatpush1.bf16.msra.mxu1 %v17283_v42  ;;  %v17316_v10 = vld [vmem:[#allocation5 + $0x68] ss:$24 sps:$4 sm:$0xff]  }
 0x31f   :  { %2876 = vmatprep.subr.bf16.mxu0 %v17252_v11  ;;  %3556 = vmatprep.subr.bf16.mxu1 %v17291_v43  ;;  %v17321_v11 = vld [vmem:[#allocation5 + $0x34] ss:$24 sps:$4 sm:$0xff]   ;;  %v17337_v42 = vld [vmem:[#allocation5 + $0x2a0] ss:$24 sps:$4 sm:$0xff]   ;;  %v17343_v43 = vld [vmem:[#allocation5 + $0x270] ss:$24 sps:$4 sm:$0xff]  }
 0x322   :  { %2877 = vmatpush2.bf16.msra.mxu0 %v17250_v58  ;;  %3557 = vmatpush1.bf16.msra.mxu1 %v17289_v45  ;;  %v17324_v58 = vld [vmem:[#allocation5 + $0x3c] ss:$24 sps:$4 sm:$0xff]   ;;  %v17346_v45 = vld [vmem:[#allocation5 + $0x278] ss:$24 sps:$4 sm:$0xff]  }
 0x323   :  { %2878 = vmatprep.subr.bf16.mxu0 %v17258_v15  ;;  %3558 = vmatprep.subr.bf16.mxu1 %v17297_v56  ;;  %v17319_v15 = vld [vmem:[#allocation5 + $0x30] ss:$24 sps:$4 sm:$0xff]   ;;  %v17349_v56 = vld [vmem:[#allocation5 + $0x240] ss:$24 sps:$4 sm:$0xff]  }
 0x326   :  { %2879 = vmatpush2.bf16.msra.mxu0 %v17256_v16  ;;  %3559 = vmatpush1.bf16.msra.mxu1 %v17295_v6  ;;  %v17322_v16 = vld [vmem:[#allocation5 + $0x38] ss:$24 sps:$4 sm:$0xff]   ;;  %v17352_v6 = vld [vmem:[#allocation5 + $0x248] ss:$24 sps:$4 sm:$0xff]  }
 0x327   :  { %2880 = vmatprep.subr.bf16.mxu0 %v17264_v23  ;;  %3560 = vmatprep.subr.bf16.mxu1 %v17303_v50  ;;  %v17327_v23 = vld [vmem:[#allocation5 + $0x4] ss:$24 sps:$4 sm:$0xff]   ;;  %v17355_v50 = vld [vmem:[#allocation5 + $0x210] ss:$24 sps:$4 sm:$0xff]  }
 0x32a   :  { %2881 = vmatpush2.bf16.msra.mxu0 %v17262_v25  ;;  %3561 = vmatpush1.bf16.msra.mxu1 %v17301_v12  ;;  %v17330_v25 = vld [vmem:[#allocation5 + $0xc] ss:$24 sps:$4 sm:$0xff]  }
 0x32b   :  { %2882 = vmatprep.subr.bf16.mxu0 %v17270_v31  ;;  %3562 = vmatprep.subr.bf16.mxu1 %v17309_v53  ;;  %v17325_v31 = vld [vmem:[#allocation5] ss:$24 sps:$4 sm:$0xff]   ;;  %v17363_v12 = vld [vmem:[#allocation5 + $0x1e4] ss:$24 sps:$4 sm:$0xff]  }
 0x32c   :  { %v17361_v53 = vld [vmem:[#allocation5 + $0x1e0] ss:$24 sps:$4 sm:$0xff]  }
 0x32e   :  { %2883 = vmatpush2.bf16.msra.mxu0 %v17268_v28  ;;  %3563 = vmatpush1.bf16.msra.mxu1 %v17307_v60  ;;  %v17328_v28 = vld [vmem:[#allocation5 + $0x8] ss:$24 sps:$4 sm:$0xff]   ;;  %v17369_v60 = vld [vmem:[#allocation5 + $0x1b4] ss:$24 sps:$4 sm:$0xff]  }
 0x32f   :  { %2884 = vmatprep.subr.bf16.mxu0 %v17276_v37  ;;  %3564 = vmatprep.subr.bf16.mxu1 %v17315_v3  ;;  %v17333_v37 = vld [vmem:[#allocation5 + $0x2d4] ss:$24 sps:$4 sm:$0xff]   ;;  %v17367_v3 = vld [vmem:[#allocation5 + $0x1b0] ss:$24 sps:$4 sm:$0xff]  }
 0x332   :  { %2885 = vmatpush2.bf16.msra.mxu0 %v17274_v63  ;;  %3565 = vmatpush1.bf16.msra.mxu1 %v17313_v9  ;;  %v17336_v63 = vld [vmem:[#allocation5 + $0x2dc] ss:$24 sps:$4 sm:$0xff]  }
 0x333   :  { %2886 = vmatprep.subr.bf16.mxu0 %v17279_v62  ;;  %3566 = vmatprep.subr.bf16.mxu1 %v17321_v11  ;;  %v17331_v62 = vld [vmem:[#allocation5 + $0x2d0] ss:$24 sps:$4 sm:$0xff]   ;;  %v17375_v9 = vld [vmem:[#allocation5 + $0x184] ss:$24 sps:$4 sm:$0xff]   ;;  %v17373_v11 = vld [vmem:[#allocation5 + $0x180] ss:$24 sps:$4 sm:$0xff]  }
 0x336   :  { %2887 = vmatpush2.bf16.msra.mxu0 %v17277_v47  ;;  %3567 = vmatpush1.bf16.msra.mxu1 %v17319_v15  ;;  %v17334_v47 = vld [vmem:[#allocation5 + $0x2d8] ss:$24 sps:$4 sm:$0xff]   ;;  %v17381_v15 = vld [vmem:[#allocation5 + $0x164] ss:$24 sps:$4 sm:$0xff]  }
 0x337   :  { %2888 = vmatprep.subr.bf16.mxu0 %v17282_v38  ;;  %3568 = vmatprep.subr.bf16.mxu1 %v17327_v23  ;;  %v17339_v38 = vld [vmem:[#allocation5 + $0x2a4] ss:$24 sps:$4 sm:$0xff]   ;;  %v2131_v23 = vld [vmem:[%s20949_s8] sm:$0x7] }
 0x33a   :  { %2889 = vmatpush2.bf16.msra.mxu0 %v17280_v40  ;;  %3569 = vmatpush1.bf16.msra.mxu1 %v17325_v31  ;;  %v17342_v40 = vld [vmem:[#allocation5 + $0x2ac] ss:$24 sps:$4 sm:$0xff]  }
 0x33b   :  { %3597 = vmatprep.subr.bf16.mxu0 %v17288_v21  ;;  %3570 = vmatprep.subr.bf16.mxu1 %v17333_v37  ;;  %v17348_v21 = vld [vmem:[#allocation5 + $0x27c] ss:$24 sps:$4 sm:$0xff]   ;;  %v2144_v37 = vrot.slane %v2131_v23, %v20118_v48 }
 0x33d   :  { %15146 = vmatmul.mubr.msk.bf16.vlgmr.msra.gmra.mxu0 %vm15145_vm5, %v19812_v14 }
 0x33e   :  { %3598 = vmatpush1.bf16.msra.mxu0 %v17286_v54  ;;  %3571 = vmatpush2.bf16.msra.mxu1 %v17331_v62  ;;  %v17345_v54 = vld [vmem:[#allocation5 + $0x274] ss:$24 sps:$4 sm:$0xff]  }
 0x33f   :  { %3599 = vmatprep.subr.bf16.mxu0 %v17294_v44  ;;  %3572 = vmatprep.subr.bf16.mxu1 %v17339_v38  ;;  %v17351_v44 = vld [vmem:[#allocation5 + $0x244] ss:$24 sps:$4 sm:$0xff]  }
 0x342   :  { %3600 = vmatpush1.bf16.msra.mxu0 %v17292_v2  ;;  %3573 = vmatpush2.bf16.msra.mxu1 %v17337_v42  ;;  %v17354_v2 = vld [vmem:[#allocation5 + $0x24c] ss:$24 sps:$4 sm:$0xff]  }
 0x343   :  { %3601 = vmatprep.subr.bf16.mxu0 %v17300_v51  ;;  %3574 = vmatprep.subr.bf16.mxu1 %v17345_v54  ;;  %v17357_v51 = vld [vmem:[#allocation5 + $0x214] ss:$24 sps:$4 sm:$0xff]  }
 0x346   :  { %3602 = vmatpush1.bf16.msra.mxu0 %v17298_v46  ;;  %3575 = vmatpush2.bf16.msra.mxu1 %v17343_v43  ;;  %v17360_v46 = vld [vmem:[#allocation5 + $0x21c] ss:$24 sps:$4 sm:$0xff]  }
 0x347   :  { %3603 = vmatprep.subr.bf16.mxu0 %v17306_v13  ;;  %3576 = vmatprep.subr.bf16.mxu1 %v17351_v44  ;;  %v17358_v13 = vld [vmem:[#allocation5 + $0x218] ss:$24 sps:$4 sm:$0xff]  }
 0x34a   :  { %3604 = vmatpush1.bf16.msra.mxu0 %v17304_v52  ;;  %3577 = vmatpush2.bf16.msra.mxu1 %v17349_v56  ;;  %v17366_v52 = vld [vmem:[#allocation5 + $0x1ec] ss:$24 sps:$4 sm:$0xff]  }
 0x34b   :  { %3605 = vmatprep.subr.bf16.mxu0 %v17312_v57  ;;  %3578 = vmatprep.subr.bf16.mxu1 %v17357_v51  ;;  %v17364_v57 = vld [vmem:[#allocation5 + $0x1e8] ss:$24 sps:$4 sm:$0xff]  }
 0x34e   :  { %3606 = vmatpush1.bf16.msra.mxu0 %v17310_v29  ;;  %3579 = vmatpush2.bf16.msra.mxu1 %v17355_v50  ;;  %v17372_v29 = vld [vmem:[#allocation5 + $0x1bc] ss:$24 sps:$4 sm:$0xff]  }
 0x34f   :  { %3607 = vmatprep.subr.bf16.mxu0 %v17318_v7  ;;  %3580 = vmatprep.subr.bf16.mxu1 %v17363_v12  ;;  %v17370_v7 = vld [vmem:[#allocation5 + $0x1b8] ss:$24 sps:$4 sm:$0xff]  }
 0x352   :  { %3608 = vmatpush1.bf16.msra.mxu0 %v17316_v10  ;;  %3581 = vmatpush2.bf16.msra.mxu1 %v17361_v53  ;;  %v17378_v10 = vld [vmem:[#allocation5 + $0x18c] ss:$24 sps:$4 sm:$0xff]  }
 0x353   :  { %3609 = vmatprep.subr.bf16.mxu0 %v17324_v58  ;;  %3582 = vmatprep.subr.bf16.mxu1 %v17369_v60  ;;  %v17376_v58 = vld [vmem:[#allocation5 + $0x188] ss:$24 sps:$4 sm:$0xff]  }
 0x356   :  { %3610 = vmatpush1.bf16.msra.mxu0 %v17322_v16  ;;  %3583 = vmatpush2.bf16.msra.mxu1 %v17367_v3  ;;  %v17384_v16 = vld [vmem:[#allocation7 + $0x154] ss:$24 sps:$4 sm:$0xff]  }
 0x357   :  { %3611 = vmatprep.subr.bf16.mxu0 %v17330_v25  ;;  %3584 = vmatprep.subr.bf16.mxu1 %v17375_v9 }
 0x35a   :  { %3612 = vmatpush1.bf16.msra.mxu0 %v17328_v28  ;;  %3585 = vmatpush2.bf16.msra.mxu1 %v17373_v11  ;;  %v2136_v28 = vrot.slane %v2131_v23, %v20100_v8 }
 0x35b   :  { %3613 = vmatprep.subr.bf16.mxu0 %v17336_v63  ;;  %3640 = vmatprep.subr.bf16.mxu1 %v17381_v15 }
 0x35e   :  { %3614 = vmatpush2.bf16.msra.mxu0 %v17334_v47  ;;  %v2140_v47 = vrot.slane %v2131_v23, %v20090_v30  ;;  %v17382_v23 = vld [vmem:[#allocation7 + $0x150] ss:$24 sps:$4 sm:$0xff]  }
 0x35f   :  { %3615 = vmatprep.subr.bf16.mxu0 %v17342_v40 }
 0x362   :  { %3616 = vmatpush2.bf16.msra.mxu0 %v17340_v59 }
 0x363   :  { %3617 = vmatprep.subr.bf16.mxu0 %v17348_v21 }
 0x366   :  { %3618 = vmatpush2.bf16.msra.mxu0 %v17346_v45 }
 0x367   :  { %3619 = vmatprep.subr.bf16.mxu0 %v17354_v2 }
 0x36a   :  { %3620 = vmatpush2.bf16.msra.mxu0 %v17352_v6 }
 0x36b   :  { %3621 = vmatprep.subr.bf16.mxu0 %v17360_v46 }
 0x36e   :  { %3622 = vmatpush2.bf16.msra.mxu0 %v17358_v13 }
 0x36f   :  { %3623 = vmatprep.subr.bf16.mxu0 %v17366_v52 }
 0x372   :  { %3624 = vmatpush2.bf16.msra.mxu0 %v17364_v57 }
 0x373   :  { %3625 = vmatprep.subr.bf16.mxu0 %v17372_v29 }
 0x376   :  { %3626 = vmatpush2.bf16.msra.mxu0 %v17370_v7 }
 0x377   :  { %3627 = vmatprep.subr.bf16.mxu0 %v17378_v10 }
 0x37a   :  { %3628 = vmatpush2.bf16.msra.mxu0 %v17376_v58 }
 0x37b   :  { %4291 = vmatprep.subr.bf16.mxu0 %v17384_v16  ;;  %v17379_v16 = vld [vmem:[#allocation5 + $0x160] ss:$24 sps:$4 sm:$0xff]  }
 0x3bd   :  { %v2438_v25 = vpop.f32.mrf.mxu1  ;;  %v16653_v31 = vpop.f32.mrf.mxu0 }
 0x3be   :  { %v20215_v59 = vadd.f32 %v2438_v25, %v2136_v28 }
 0x3bf   :  { %v2440_v63 = vpop.f32.mrf.mxu1  ;;  %v16654_v62 = vpop.f32.mrf.mxu0 }
 0x3c0   :  { %v16655_v38 = vadd.f32 %v16654_v62, %v16653_v31  ;;  %v20219_v43 = vadd.f32 %v2440_v63, %v2140_v47  ;;  %v17387_v31 = vld [vmem:[#allocation5 + $0x134] ss:$24 sps:$4 sm:$0xff]   ;;  %v17388_v63 = vld [vmem:[#allocation7 + $0x120] ss:$24 sps:$4 sm:$0xff]   ;;  %v17393_v62 = vld [vmem:[#allocation5 + $0x104] ss:$24 sps:$4 sm:$0xff]  }
 0x3c1   :  { %v2442_v40 = vpop.f32.mrf.mxu1  ;;  %v16656_v42 = vpop.f32.mrf.mxu0 }
 0x3c2   :  { %v20217_v54 = vadd.f32 %v16655_v38, %v2144_v37  ;;  %v20223_v56 = vadd.f32 %v2442_v40, %v2136_v28  ;;  %v17390_v28 = vld [vmem:[#allocation7 + $0x124] ss:$24 sps:$4 sm:$0xff]   ;;  %v17391_v38 = vld [vmem:[#allocation5 + $0x100] ss:$24 sps:$4 sm:$0xff]   ;;  %v17394_v40 = vld [vmem:[#allocation7 + $0xf0] ss:$24 sps:$4 sm:$0xff]  }
 0x3c3   :  { %v16657_v21 = vpop.f32.mrf.mxu0  ;;  %v2444_v2 = vpop.f32.mrf.mxu1 }
 0x3c4   :  { %v16658_v45 = vadd.f32 %v16657_v21, %v16656_v42  ;;  %v2488_v44 = vmax.f32 %v20215_v59, %v20217_v54  ;;  %v20228_v46 = vadd.f32 %v2444_v2, %v2140_v47  ;;  %v17396_v47 = vld [vmem:[#allocation7 + $0xf4] ss:$24 sps:$4 sm:$0xff]   ;;  %v17402_v21 = vld [vmem:[#allocation7 + $0xc4] ss:$24 sps:$4 sm:$0xff]  }
 0x3c5   :  { %v17399_v42 = vld [vmem:[#allocation5 + $0xd4] ss:$24 sps:$4 sm:$0xff]   ;;  %v17405_v2 = vld [vmem:[#allocation5 + $0xa4] ss:$24 sps:$4 sm:$0xff]  }
 0x3c6   :  { %v20225_v6 = vadd.f32 %v16658_v45, %v2144_v37  ;;  %v2489_v51 = vmax.f32 %v2488_v44, %v20219_v43  ;;  %v17385_v37 = vld [vmem:[#allocation5 + $0x130] ss:$24 sps:$4 sm:$0xff]   ;;  %v17400_v44 = vld [vmem:[#allocation7 + $0xc0] ss:$24 sps:$4 sm:$0xff]  }
 0x3c7   :  { %v17397_v45 = vld [vmem:[#allocation5 + $0xd0] ss:$24 sps:$4 sm:$0xff]  }
 0x3c8   :  { %2490 = vmax.xlane.f32.xlu0 %v2489_v51  ;;  %v2492_v50 = vmax.f32 %v20223_v56, %v20225_v6  ;;  %v17408_v51 = vld [vmem:[#allocation7 + $0x94] ss:$24 sps:$4 sm:$0xff]  }
 0x3ca   :  { %v2493_v13 = vmax.f32 %v2492_v50, %v20228_v46  ;;  %v17403_v50 = vld [vmem:[#allocation5 + $0xa0] ss:$24 sps:$4 sm:$0xff]  }
 0x3cc   :  { %2494 = vmax.xlane.f32.xlu1 %v2493_v13  ;;  %v17406_v13 = vld [vmem:[#allocation7 + $0x90] ss:$24 sps:$4 sm:$0xff]  }
 0x3dd   :  { %v2935_v12 = vpop.f32.mrf.mxu1 }
 0x3df   :  { %v2937_v52 = vpop.f32.mrf.mxu1 }
 0x3e1   :  { %v2939_v57 = vpop.f32.mrf.mxu1 }
 0x3e3   :  { %v2941_v3 = vpop.f32.mrf.mxu1 }
 0x3fd   :  { %v2892_v53 = vpop.f32.mrf.mxu0 }
 0x3fe   :  { %v2936_v58 = vadd.f32 %v2935_v12, %v2892_v53  ;;  %v17411_v12 = vld [vmem:[#allocation5 + $0x74] ss:$24 sps:$4 sm:$0xff]   ;;  %v17409_v53 = vld [vmem:[#allocation5 + $0x70] ss:$24 sps:$4 sm:$0xff]  }
 0x3ff   :  { %v2894_v60 = vpop.f32.mrf.mxu0 }
 0x400   :  { %v2938_v10 = vadd.f32 %v2937_v52, %v2894_v60  ;;  %v17414_v52 = vld [vmem:[#allocation7 + $0x64] ss:$24 sps:$4 sm:$0xff]  }
 0x401   :  { %v2896_v29 = vpop.f32.mrf.mxu0  ;;  %v17417_v60 = vld [vmem:[#allocation5 + $0x44] ss:$24 sps:$4 sm:$0xff]  }
 0x402   :  { %v2940_v7 = vadd.f32 %v2939_v57, %v2896_v29  ;;  %v17412_v57 = vld [vmem:[#allocation7 + $0x60] ss:$24 sps:$4 sm:$0xff]   ;;  %v17420_v29 = vld [vmem:[#allocation7 + $0x34] ss:$24 sps:$4 sm:$0xff]  }
 0x403   :  { %v2898_v9 = vpop.f32.mrf.mxu0 }
 0x404   :  { %v2942_v11 = vadd.f32 %v2941_v3, %v2898_v9  ;;  %v20233_v25 = vpack.c.bf16 %v2940_v7, %v2936_v58  ;;  %v17415_v3 = vld [vmem:[#allocation5 + $0x40] ss:$24 sps:$4 sm:$0xff]   ;;  %v17418_v7 = vld [vmem:[#allocation7 + $0x30] ss:$24 sps:$4 sm:$0xff]   ;;  %v17423_v9 = vld [vmem:[#allocation5 + $0x14] ss:$24 sps:$4 sm:$0xff]  }
 0x405   :  { %v17424_v58 = vld [vmem:[#allocation7] ss:$24 sps:$4 sm:$0xff]  }
 0x406   :  { %v2945_v15 = vpack.c.bf16 %v2942_v11, %v2938_v10  ;;  %v17426_v10 = vld [vmem:[#allocation7 + $0x4] ss:$24 sps:$4 sm:$0xff]   ;;  %v17421_v11 = vld [vmem:[#allocation5 + $0x10] ss:$24 sps:$4 sm:$0xff]  }
 0x408   :  { %3586 = vmatprep.mubr.bf16.mxu1 %v2945_v15  ;;  %3629 = vmatprep.mubr.bf16.mxu0 %v2945_v15 }
 0x409   :  { %3587 = vmatmul.mubr.bf16.vlgmr.msra.gmra.mxu1 %v20233_v25  ;;  %3630 = vmatmul.mubr.bf16.vlgmr.msra.gmra.mxu0 %v20233_v25 }
 0x40a   :  { %3641 = vmatpush1.bf16.msra.mxu1 %v17379_v16  ;;  %4292 = vmatpush1.bf16.msra.mxu0 %v17382_v23  ;;  %v17432_v16 = vld [vmem:[#allocation7 + $0x2d4] ss:$24 sps:$4 sm:$0xff]   ;;  %v17427_v23 = vld [vmem:[#allocation5 + $0x2e0] ss:$24 sps:$4 sm:$0xff]  }
 0x40b   :  { %3672 = vmatprep.mubr.bf16.mxu1 %v2945_v15  ;;  %4323 = vmatprep.mubr.bf16.mxu0 %v20185_v33  ;;  %v17429_v15 = vld [vmem:[#allocation5 + $0x2e4] ss:$24 sps:$4 sm:$0xff]  }
 0x40c   :  { %3642 = vmatprep.subr.bf16.mxu1 %v17387_v31  ;;  %4293 = vmatprep.subr.bf16.mxu0 %v17390_v28  ;;  %v17430_v31 = vld [vmem:[#allocation7 + $0x2d0] ss:$24 sps:$4 sm:$0xff]   ;;  %v17435_v28 = vld [vmem:[#allocation5 + $0x2b4] ss:$24 sps:$4 sm:$0xff]  }
 0x40e   :  { %3643 = vmatpush1.bf16.msra.mxu1 %v17385_v37  ;;  %4294 = vmatpush1.bf16.msra.mxu0 %v17388_v63  ;;  %v17438_v37 = vld [vmem:[#allocation7 + $0x2a4] ss:$24 sps:$4 sm:$0xff]   ;;  %v17433_v63 = vld [vmem:[#allocation5 + $0x2b0] ss:$24 sps:$4 sm:$0xff]  }
 0x40f   :  { %3644 = vmatprep.subr.bf16.mxu1 %v17393_v62  ;;  %4295 = vmatprep.subr.bf16.mxu0 %v17396_v47  ;;  %v17436_v62 = vld [vmem:[#allocation7 + $0x2a0] ss:$24 sps:$4 sm:$0xff]   ;;  %v17441_v47 = vld [vmem:[#allocation5 + $0x284] ss:$24 sps:$4 sm:$0xff]  }
 0x412   :  { %3645 = vmatpush1.bf16.msra.mxu1 %v17391_v38  ;;  %4296 = vmatpush1.bf16.msra.mxu0 %v17394_v40  ;;  %v17444_v38 = vld [vmem:[#allocation7 + $0x274] ss:$24 sps:$4 sm:$0xff]   ;;  %v17439_v40 = vld [vmem:[#allocation5 + $0x280] ss:$24 sps:$4 sm:$0xff]  }
 0x413   :  { %3646 = vmatprep.subr.bf16.mxu1 %v17399_v42  ;;  %4297 = vmatprep.subr.bf16.mxu0 %v17402_v21  ;;  %v17442_v42 = vld [vmem:[#allocation7 + $0x270] ss:$24 sps:$4 sm:$0xff]   ;;  %v17447_v21 = vld [vmem:[#allocation5 + $0x254] ss:$24 sps:$4 sm:$0xff]  }
 0x416   :  { %3647 = vmatpush1.bf16.msra.mxu1 %v17397_v45  ;;  %4298 = vmatpush1.bf16.msra.mxu0 %v17400_v44  ;;  %v17450_v45 = vld [vmem:[#allocation7 + $0x244] ss:$24 sps:$4 sm:$0xff]   ;;  %v17445_v44 = vld [vmem:[#allocation5 + $0x250] ss:$24 sps:$4 sm:$0xff]  }
 0x417   :  { %3648 = vmatprep.subr.bf16.mxu1 %v17405_v2  ;;  %4299 = vmatprep.subr.bf16.mxu0 %v17408_v51  ;;  %v17448_v2 = vld [vmem:[#allocation7 + $0x240] ss:$24 sps:$4 sm:$0xff]   ;;  %v17453_v51 = vld [vmem:[#allocation5 + $0x224] ss:$24 sps:$4 sm:$0xff]  }
 0x41a   :  { %3649 = vmatpush1.bf16.msra.mxu1 %v17403_v50  ;;  %4300 = vmatpush1.bf16.msra.mxu0 %v17406_v13  ;;  %v17456_v50 = vld [vmem:[#allocation7 + $0x214] ss:$24 sps:$4 sm:$0xff]   ;;  %v17451_v13 = vld [vmem:[#allocation5 + $0x220] ss:$24 sps:$4 sm:$0xff]  }
 0x41b   :  { %3650 = vmatprep.subr.bf16.mxu1 %v17411_v12  ;;  %4301 = vmatprep.subr.bf16.mxu0 %v17414_v52  ;;  %v17454_v12 = vld [vmem:[#allocation7 + $0x210] ss:$24 sps:$4 sm:$0xff]   ;;  %v17459_v52 = vld [vmem:[#allocation5 + $0x1f4] ss:$24 sps:$4 sm:$0xff]  }
 0x41e   :  { %3651 = vmatpush1.bf16.msra.mxu1 %v17409_v53  ;;  %4302 = vmatpush1.bf16.msra.mxu0 %v17412_v57  ;;  %v17462_v53 = vld [vmem:[#allocation7 + $0x1e4] ss:$24 sps:$4 sm:$0xff]   ;;  %v17457_v57 = vld [vmem:[#allocation5 + $0x1f0] ss:$24 sps:$4 sm:$0xff]  }
 0x41f   :  { %3652 = vmatprep.subr.bf16.mxu1 %v17417_v60  ;;  %4303 = vmatprep.subr.bf16.mxu0 %v17420_v29  ;;  %v17460_v60 = vld [vmem:[#allocation7 + $0x1e0] ss:$24 sps:$4 sm:$0xff]   ;;  %v17465_v29 = vld [vmem:[#allocation5 + $0x1c4] ss:$24 sps:$4 sm:$0xff]  }
 0x422   :  { %3653 = vmatpush1.bf16.msra.mxu1 %v17415_v3  ;;  %4304 = vmatpush1.bf16.msra.mxu0 %v17418_v7  ;;  %v17468_v3 = vld [vmem:[#allocation7 + $0x1b4] ss:$24 sps:$4 sm:$0xff]   ;;  %v17463_v7 = vld [vmem:[#allocation5 + $0x1c0] ss:$24 sps:$4 sm:$0xff]  }
 0x423   :  { %3654 = vmatprep.subr.bf16.mxu1 %v17423_v9  ;;  %4305 = vmatprep.subr.bf16.mxu0 %v17426_v10  ;;  %v17466_v9 = vld [vmem:[#allocation7 + $0x1b0] ss:$24 sps:$4 sm:$0xff]   ;;  %v17471_v10 = vld [vmem:[#allocation5 + $0x194] ss:$24 sps:$4 sm:$0xff]  }
 0x426   :  { %3655 = vmatpush1.bf16.msra.mxu1 %v17421_v11  ;;  %4306 = vmatpush1.bf16.msra.mxu0 %v17424_v58  ;;  %v17474_v11 = vld [vmem:[#allocation7 + $0x184] ss:$24 sps:$4 sm:$0xff]   ;;  %v17469_v58 = vld [vmem:[#allocation5 + $0x190] ss:$24 sps:$4 sm:$0xff]  }
 0x427   :  { %3656 = vmatprep.subr.bf16.mxu1 %v17429_v15  ;;  %4307 = vmatprep.subr.bf16.mxu0 %v17432_v16  ;;  %v17472_v15 = vld [vmem:[#allocation7 + $0x180] ss:$24 sps:$4 sm:$0xff]   ;;  %v17477_v16 = vld [vmem:[#allocation7 + $0x15c] ss:$24 sps:$4 sm:$0xff]  }
 0x42a   :  { %3657 = vmatpush2.bf16.msra.mxu1 %v17427_v23  ;;  %4308 = vmatpush2.bf16.msra.mxu0 %v17430_v31  ;;  %v17480_v23 = vld [vmem:[#allocation7 + $0x164] ss:$24 sps:$4 sm:$0xff]   ;;  %v17475_v31 = vld [vmem:[#allocation7 + $0x158] ss:$24 sps:$4 sm:$0xff]  }
 0x42b   :  { %3658 = vmatprep.subr.bf16.mxu1 %v17435_v28  ;;  %4309 = vmatprep.subr.bf16.mxu0 %v17438_v37  ;;  %v17478_v28 = vld [vmem:[#allocation7 + $0x160] ss:$24 sps:$4 sm:$0xff]   ;;  %v17483_v37 = vld [vmem:[#allocation7 + $0x12c] ss:$24 sps:$4 sm:$0xff]  }
 0x42e   :  { %3659 = vmatpush2.bf16.msra.mxu1 %v17433_v63  ;;  %4310 = vmatpush2.bf16.msra.mxu0 %v17436_v62  ;;  %v17486_v63 = vld [vmem:[#allocation7 + $0x134] ss:$24 sps:$4 sm:$0xff]   ;;  %v17481_v62 = vld [vmem:[#allocation7 + $0x128] ss:$24 sps:$4 sm:$0xff]  }
 0x42f   :  { %3660 = vmatprep.subr.bf16.mxu1 %v17441_v47  ;;  %4311 = vmatprep.subr.bf16.mxu0 %v17444_v38  ;;  %v17484_v47 = vld [vmem:[#allocation7 + $0x130] ss:$24 sps:$4 sm:$0xff]   ;;  %v17489_v38 = vld [vmem:[#allocation7 + $0xfc] ss:$24 sps:$4 sm:$0xff]  }
 0x432   :  { %3661 = vmatpush2.bf16.msra.mxu1 %v17439_v40  ;;  %4312 = vmatpush2.bf16.msra.mxu0 %v17442_v42  ;;  %v17492_v40 = vld [vmem:[#allocation7 + $0x104] ss:$24 sps:$4 sm:$0xff]   ;;  %v20242_v42 = vpop.permute.xlu0 %12304 }
 0x433   :  { %3662 = vmatprep.subr.bf16.mxu1 %v17447_v21  ;;  %4313 = vmatprep.subr.bf16.mxu0 %v17450_v45  ;;  %v17487_v21 = vld [vmem:[#allocation7 + $0xf8] ss:$24 sps:$4 sm:$0xff]   ;;  %v17495_v45 = vld [vmem:[#allocation7 + $0xcc] ss:$24 sps:$4 sm:$0xff]  }
 0x436   :  { %3663 = vmatpush2.bf16.msra.mxu1 %v17445_v44  ;;  %4314 = vmatpush2.bf16.msra.mxu0 %v17448_v2  ;;  %v17498_v44 = vld [vmem:[#allocation7 + $0xd4] ss:$24 sps:$4 sm:$0xff]   ;;  %v20244_v2 = vpop.permute.xlu1 %12307 }
 0x437   :  { %3664 = vmatprep.subr.bf16.mxu1 %v17453_v51  ;;  %4315 = vmatprep.subr.bf16.mxu0 %v17456_v50 }
 0x43a   :  { %3665 = vmatpush2.bf16.msra.mxu1 %v17451_v13  ;;  %4316 = vmatpush2.bf16.msra.mxu0 %v17454_v12  ;;  %v17493_v12 = vld [vmem:[#allocation7 + $0xc8] ss:$24 sps:$4 sm:$0xff]  }
 0x43b   :  { %3666 = vmatprep.subr.bf16.mxu1 %v17459_v52  ;;  %4317 = vmatprep.subr.bf16.mxu0 %v17462_v53  ;;  %v17496_v52 = vld [vmem:[#allocation7 + $0xd0] ss:$24 sps:$4 sm:$0xff]   ;;  %v17501_v53 = vld [vmem:[#allocation7 + $0x9c] ss:$24 sps:$4 sm:$0xff]  }
 0x43e   :  { %3667 = vmatpush2.bf16.msra.mxu1 %v17457_v57  ;;  %4318 = vmatpush2.bf16.msra.mxu0 %v17460_v60 }
 0x43f   :  { %3668 = vmatprep.subr.bf16.mxu1 %v17465_v29  ;;  %4319 = vmatprep.subr.bf16.mxu0 %v17468_v3  ;;  %v17504_v29 = vld [vmem:[#allocation7 + $0xa4] ss:$24 sps:$4 sm:$0xff]  }
 0x442   :  { %3669 = vmatpush2.bf16.msra.mxu1 %v17463_v7  ;;  %4320 = vmatpush2.bf16.msra.mxu0 %v17466_v9 }
 0x443   :  { %3670 = vmatprep.subr.bf16.mxu1 %v17471_v10  ;;  %4321 = vmatprep.subr.bf16.mxu0 %v17474_v11 }
 0x446   :  { %3671 = vmatpush2.bf16.msra.mxu1 %v17469_v58  ;;  %4322 = vmatpush2.bf16.msra.mxu0 %v17472_v15  ;;  %v17499_v58 = vld [vmem:[#allocation7 + $0x98] ss:$24 sps:$4 sm:$0xff]  }
 0x447   :  { %4334 = vmatprep.subr.bf16.mxu1 %v17477_v16  ;;  %4377 = vmatprep.subr.bf16.mxu0 %v17480_v23  ;;  %v17502_v15 = vld [vmem:[#allocation7 + $0xa0] ss:$24 sps:$4 sm:$0xff]   ;;  %v17507_v16 = vld [vmem:[#allocation7 + $0x6c] ss:$24 sps:$4 sm:$0xff]  }
 0x449   :  { %3673 = vmatmul.mubr.bf16.vlgmr.msra.gmra.mxu1 %v20233_v25  ;;  %4324 = vmatmul.mubr.bf16.vlgmr.msra.gmra.mxu0 %v20189_v34  ;;  %v17490_v25 = vld [vmem:[#allocation7 + $0x100] ss:$24 sps:$4 sm:$0xff]  }
 0x44a   :  { %4335 = vmatpush1.bf16.msra.mxu1 %v17475_v31  ;;  %4366 = vmatprep.mubr.bf16.mxu1 %v20185_v33 }
 0x44b   :  { %4378 = vmatpush1.bf16.msra.mxu0 %v17478_v28  ;;  %4409 = vmatprep.mubr.bf16.mxu0 %v20185_v33  ;;  %v17510_v28 = vld [vmem:[#allocation7 + $0x74] ss:$24 sps:$4 sm:$0xff]  }
 0x44c   :  { %4336 = vmatprep.subr.bf16.mxu1 %v17483_v37  ;;  %4379 = vmatprep.subr.bf16.mxu0 %v17486_v63  ;;  %v17505_v63 = vld [vmem:[#allocation7 + $0x68] ss:$24 sps:$4 sm:$0xff]  }
 0x44e   :  { %4337 = vmatpush1.bf16.msra.mxu1 %v17481_v62  ;;  %v17508_v62 = vld [vmem:[#allocation7 + $0x70] ss:$24 sps:$4 sm:$0xff]  }
 0x44f   :  { %4380 = vmatpush1.bf16.msra.mxu0 %v17484_v47  ;;  %4338 = vmatprep.subr.bf16.mxu1 %v17489_v38  ;;  %v17513_v47 = vld [vmem:[#allocation7 + $0x3c] ss:$24 sps:$4 sm:$0xff]  }
 0x450   :  { %4381 = vmatprep.subr.bf16.mxu0 %v17492_v40  ;;  %v17516_v38 = vld [vmem:[#allocation7 + $0x44] ss:$24 sps:$4 sm:$0xff]   ;;  %v17511_v40 = vld [vmem:[#allocation7 + $0x38] ss:$24 sps:$4 sm:$0xff]  }
 0x451   :  { %v20246_v51 = vpop.xlane.xlu0 %2490 }
 0x452   :  { %4339 = vmatpush1.bf16.msra.mxu1 %v17487_v21  ;;  %v2496_v33 = vsub.f32 %v20215_v59, %v20246_v51  ;;  %v2497_v50 = vsub.f32 %v20219_v43, %v20246_v51  ;;  %v2498_v13 = vsub.f32 %v20217_v54, %v20246_v51  ;;  %v17514_v21 = vld [vmem:[#allocation7 + $0x40] ss:$24 sps:$4 sm:$0xff]  }
 0x453   :  { %4382 = vmatpush1.bf16.msra.mxu0 %v17490_v25  ;;  %4340 = vmatprep.subr.bf16.mxu1 %v17495_v45  ;;  %v17519_v25 = vld [vmem:[#allocation7 + $0xc] ss:$24 sps:$4 sm:$0xff]  }
 0x454   :  { %v2502_v57 = vmul.f32 1.442695, %v2496_v33  ;;  %v2504_v60 = vmul.f32 1.442695, %v2497_v50  ;;  %4383 = vmatprep.subr.bf16.mxu0 %v17498_v44  ;;  %v2506_v3 = vmul.f32 1.442695, %v2498_v13 }
 0x455   :  { %v20254_v7 = vpop.xlane.xlu1 %2494  ;;  %v17522_v45 = vld [vmem:[#allocation7 + $0x14] ss:$24 sps:$4 sm:$0xff]   ;;  %v17517_v44 = vld [vmem:[#allocation7 + $0x8] ss:$24 sps:$4 sm:$0xff]  }
 0x456   :  { %19371 = vpow2.f32 %v2502_v57  ;;  %4341 = vmatpush1.bf16.msra.mxu1 %v17493_v12  ;;  %v2499_v9 = vsub.f32 %v20223_v56, %v20254_v7  ;;  %v2500_v10 = vsub.f32 %v20228_v46, %v20254_v7  ;;  %v2501_v11 = vsub.f32 %v20225_v6, %v20254_v7  ;;  %v17520_v50 = vld [vmem:[#allocation7 + $0x10] ss:$24 sps:$4 sm:$0xff]   ;;  %v17525_v13 = vld [vmem:[#allocation7 + $0x2dc] ss:$24 sps:$4 sm:$0xff]  }
 0x457   :  { %19373 = vpow2.f32 %v2504_v60  ;;  %4384 = vmatpush1.bf16.msra.mxu0 %v17496_v52  ;;  %4342 = vmatprep.subr.bf16.mxu1 %v17501_v53  ;;  %v17528_v52 = vld [vmem:[#allocation7 + $0x2e4] ss:$24 sps:$4 sm:$0xff]   ;;  %v17523_v60 = vld [vmem:[#allocation7 + $0x2d8] ss:$24 sps:$4 sm:$0xff]  }
 0x458   :  { %v2508_v23 = vmul.f32 1.442695, %v2499_v9  ;;  %v2510_v31 = vmul.f32 1.442695, %v2500_v10  ;;  %4385 = vmatprep.subr.bf16.mxu0 %v17504_v29  ;;  %19375 = vpow2.f32 %v2506_v3  ;;  %v2512_v37 = vmul.f32 1.442695, %v2501_v11 }
 0x459   :  { %v17526_v3 = vld [vmem:[#allocation7 + $0x2e0] ss:$24 sps:$4 sm:$0xff]   ;;  %v17531_v10 = vld [vmem:[#allocation7 + $0x2ac] ss:$24 sps:$4 sm:$0xff]  }
 0x45a   :  { %19377 = vpow2.f32 %v2508_v23  ;;  %4343 = vmatpush1.bf16.msra.mxu1 %v17499_v58  ;;  %v17534_v58 = vld [vmem:[#allocation7 + $0x2b4] ss:$24 sps:$4 sm:$0xff]   ;;  %v17529_v23 = vld [vmem:[#allocation7 + $0x2a8] ss:$24 sps:$4 sm:$0xff]  }
 0x45b   :  { %19379 = vpow2.f32 %v2510_v31  ;;  %4386 = vmatpush1.bf16.msra.mxu0 %v17502_v15  ;;  %4344 = vmatprep.subr.bf16.mxu1 %v17507_v16  ;;  %v17532_v31 = vld [vmem:[#allocation7 + $0x2b0] ss:$24 sps:$4 sm:$0xff]  }
 0x45c   :  { %4387 = vmatprep.subr.bf16.mxu0 %v17510_v28  ;;  %19381 = vpow2.f32 %v2512_v37  ;;  %v17537_v37 = vld [vmem:[#allocation7 + $0x27c] ss:$24 sps:$4 sm:$0xff]  }
 0x45e   :  { %4345 = vmatpush1.bf16.msra.mxu1 %v17505_v63  ;;  %v17540_v63 = vld [vmem:[#allocation7 + $0x284] ss:$24 sps:$4 sm:$0xff]  }
 0x45f   :  { %4388 = vmatpush1.bf16.msra.mxu0 %v17508_v62  ;;  %4346 = vmatprep.subr.bf16.mxu1 %v17513_v47  ;;  %v17535_v62 = vld [vmem:[#allocation7 + $0x278] ss:$24 sps:$4 sm:$0xff]  }
 0x460   :  { %4389 = vmatprep.subr.bf16.mxu0 %v17516_v38  ;;  %v17538_v47 = vld [vmem:[#allocation7 + $0x280] ss:$24 sps:$4 sm:$0xff]   ;;  %v17543_v38 = vld [vmem:[#allocation7 + $0x24c] ss:$24 sps:$4 sm:$0xff]  }
 0x462   :  { %4347 = vmatpush1.bf16.msra.mxu1 %v17511_v40  ;;  %v17546_v40 = vld [vmem:[#allocation7 + $0x254] ss:$24 sps:$4 sm:$0xff]  }
 0x463   :  { %v19372_v33 = vpop.eup %19371  ;;  %4390 = vmatpush1.bf16.msra.mxu0 %v17514_v21  ;;  %4348 = vmatprep.subr.bf16.mxu1 %v17519_v25  ;;  %v17541_v21 = vld [vmem:[#allocation7 + $0x248] ss:$24 sps:$4 sm:$0xff]  }
 0x464   :  { %v19374_v12 = vpop.eup %19373  ;;  %4391 = vmatprep.subr.bf16.mxu0 %v17522_v45  ;;  %v17544_v25 = vld [vmem:[#allocation7 + $0x250] ss:$24 sps:$4 sm:$0xff]   ;;  %v17549_v45 = vld [vmem:[#allocation7 + $0x21c] ss:$24 sps:$4 sm:$0xff]  }
 0x465   :  { %v2514_v53 = vadd.f32 %v19374_v12, %v19372_v33  ;;  %v19376_v57 = vpop.eup %19375  ;;  %v17547_v33 = vld [vmem:[#allocation7 + $0x218] ss:$24 sps:$4 sm:$0xff]   ;;  %v17558_v12 = vld [vmem:[#allocation7 + $0x1f4] ss:$24 sps:$4 sm:$0xff]  }
 0x466   :  { %4349 = vmatpush1.bf16.msra.mxu1 %v17517_v44  ;;  %v17552_v44 = vld [vmem:[#allocation7 + $0x224] ss:$24 sps:$4 sm:$0xff]  }
 0x467   :  { %v19378_v29 = vpop.eup %19377  ;;  %4392 = vmatpush1.bf16.msra.mxu0 %v17520_v50  ;;  %4350 = vmatprep.subr.bf16.mxu1 %v17525_v13  ;;  %v2515_v9 = vadd.f32 %v19376_v57, %v2514_v53  ;;  %v17550_v50 = vld [vmem:[#allocation7 + $0x220] ss:$24 sps:$4 sm:$0xff]   ;;  %v17555_v13 = vld [vmem:[#allocation7 + $0x1ec] ss:$24 sps:$4 sm:$0xff]   ;;  %v17556_v53 = vld [vmem:[#allocation7 + $0x1f0] ss:$24 sps:$4 sm:$0xff]  }
 0x468   :  { %v19380_v11 = vpop.eup %19379  ;;  %4393 = vmatprep.subr.bf16.mxu0 %v17528_v52  ;;  %v17553_v52 = vld [vmem:[#allocation7 + $0x1e8] ss:$24 sps:$4 sm:$0xff]   ;;  %v17561_v57 = vld [vmem:[#allocation7 + $0x1bc] ss:$24 sps:$4 sm:$0xff]  }
 0x469   :  { %2516 = vadd.xlane.f32.xlu0 %v2515_v9  ;;  %v2518_v15 = vadd.f32 %v19380_v11, %v19378_v29  ;;  %v19382_v16 = vpop.eup %19381  ;;  %v17559_v29 = vld [vmem:[#allocation7 + $0x1b8] ss:$24 sps:$4 sm:$0xff]   ;;  %v17567_v9 = vld [vmem:[#allocation7 + $0x18c] ss:$24 sps:$4 sm:$0xff]   ;;  %v17565_v11 = vld [vmem:[#allocation7 + $0x188] ss:$24 sps:$4 sm:$0xff]  }
 0x46a   :  { %4351 = vmatpush2.bf16.msra.mxu1 %v17523_v60  ;;  %v17564_v60 = vld [vmem:[#allocation7 + $0x1c4] ss:$24 sps:$4 sm:$0xff]  }
 0x46b   :  { %4394 = vmatpush2.bf16.msra.mxu0 %v17526_v3  ;;  %4352 = vmatprep.subr.bf16.mxu1 %v17531_v10  ;;  %v2519_v28 = vadd.f32 %v19382_v16, %v2518_v15  ;;  %v17562_v3 = vld [vmem:[#allocation7 + $0x1c0] ss:$24 sps:$4 sm:$0xff]   ;;  %v17570_v10 = vld [vmem:[#allocation7 + $0x194] ss:$24 sps:$4 sm:$0xff]  }
 0x46c   :  { %4395 = vmatprep.subr.bf16.mxu0 %v17534_v58  ;;  %v17568_v58 = vld [vmem:[#allocation7 + $0x190] ss:$24 sps:$4 sm:$0xff]   ;;  %v17573_v16 = vld [vmem:[#allocation8 + $0xac] ss:$12 sps:$4 sm:$0xff]  }
 0x46d   :  { %2520 = vadd.xlane.f32.xlu0 %v2519_v28  ;;  %v17571_v15 = vld [vmem:[#allocation8 + $0xa8] ss:$12 sps:$4 sm:$0xff]  }
 0x46e   :  { %4353 = vmatpush2.bf16.msra.mxu1 %v17529_v23  ;;  %v17576_v23 = vld [vmem:[#allocation8 + $0x94] ss:$12 sps:$4 sm:$0xff]   ;;  %v17579_v28 = vld [vmem:[#allocation8 + $0x7c] ss:$12 sps:$4 sm:$0xff]  }
 0x46f   :  { %4396 = vmatpush2.bf16.msra.mxu0 %v17532_v31  ;;  %4354 = vmatprep.subr.bf16.mxu1 %v17537_v37  ;;  %v17574_v31 = vld [vmem:[#allocation8 + $0x90] ss:$12 sps:$4 sm:$0xff]   ;;  %v17577_v37 = vld [vmem:[#allocation8 + $0x78] ss:$12 sps:$4 sm:$0xff]  }
 0x470   :  { %4397 = vmatprep.subr.bf16.mxu0 %v17540_v63  ;;  %v17582_v63 = vld [vmem:[#allocation8 + $0x64] ss:$12 sps:$4 sm:$0xff]  }
 0x472   :  { %4355 = vmatpush2.bf16.msra.mxu1 %v17535_v62  ;;  %v17580_v62 = vld [vmem:[#allocation8 + $0x60] ss:$12 sps:$4 sm:$0xff]  }
 0x473   :  { %4398 = vmatpush2.bf16.msra.mxu0 %v17538_v47  ;;  %4356 = vmatprep.subr.bf16.mxu1 %v17543_v38  ;;  %v17585_v47 = vld [vmem:[#allocation8 + $0x4c] ss:$12 sps:$4 sm:$0xff]   ;;  %v17583_v38 = vld [vmem:[#allocation8 + $0x48] ss:$12 sps:$4 sm:$0xff]  }
 0x474   :  { %4399 = vmatprep.subr.bf16.mxu0 %v17546_v40  ;;  %v17586_v40 = vld [vmem:[#allocation8 + $0x30] ss:$12 sps:$4 sm:$0xff]  }
 0x476   :  { %4357 = vmatpush2.bf16.msra.mxu1 %v17541_v21  ;;  %v17591_v21 = vld [vmem:[#allocation8 + $0x1c] ss:$12 sps:$4 sm:$0xff]  }
 0x477   :  { %4400 = vmatpush2.bf16.msra.mxu0 %v17544_v25  ;;  %4358 = vmatprep.subr.bf16.mxu1 %v17549_v45  ;;  %v17589_v25 = vld [vmem:[#allocation8 + $0x18] ss:$12 sps:$4 sm:$0xff]  }
 0x478   :  { %4401 = vmatprep.subr.bf16.mxu0 %v17552_v44  ;;  %v17594_v45 = vld [vmem:[#allocation8 + $0x4] ss:$12 sps:$4 sm:$0xff]   ;;  %v17592_v44 = vld [vmem:[#allocation8] ss:$12 sps:$4 sm:$0xff]  }
 0x47a   :  { %4359 = vmatpush2.bf16.msra.mxu1 %v17547_v33  ;;  %v17597_v33 = vld [vmem:[#allocation8 + $0x16c] ss:$12 sps:$4 sm:$0xff]  }
 0x47b   :  { %4402 = vmatpush2.bf16.msra.mxu0 %v17550_v50  ;;  %4360 = vmatprep.subr.bf16.mxu1 %v17555_v13  ;;  %v17598_v50 = vld [vmem:[#allocation8 + $0x170] ss:$12 sps:$4 sm:$0xff]   ;;  %v17595_v13 = vld [vmem:[#allocation8 + $0x168] ss:$12 sps:$4 sm:$0xff]  }
 0x47c   :  { %4403 = vmatprep.subr.bf16.mxu0 %v17558_v12  ;;  %v17599_v12 = vld [vmem:[#allocation8 + $0xb0] ss:$12 sps:$4 sm:$0xff]  }
 0x47e   :  { %4361 = vmatpush2.bf16.msra.mxu1 %v17553_v52  ;;  %v17602_v52 = vld [vmem:[#allocation8 + $0x154] ss:$12 sps:$4 sm:$0xff]  }
 0x47f   :  { %4404 = vmatpush2.bf16.msra.mxu0 %v17556_v53  ;;  %4362 = vmatprep.subr.bf16.mxu1 %v17561_v57  ;;  %v17603_v53 = vld [vmem:[#allocation8 + $0x158] ss:$12 sps:$4 sm:$0xff]   ;;  %v17600_v57 = vld [vmem:[#allocation8 + $0x150] ss:$12 sps:$4 sm:$0xff]  }
 0x480   :  { %4405 = vmatprep.subr.bf16.mxu0 %v17564_v60  ;;  %v17604_v60 = vld [vmem:[#allocation8 + $0x98] ss:$12 sps:$4 sm:$0xff]  }
 0x482   :  { %4363 = vmatpush2.bf16.msra.mxu1 %v17559_v29  ;;  %v17607_v29 = vld [vmem:[#allocation8 + $0x13c] ss:$12 sps:$4 sm:$0xff]  }
 0x483   :  { %4406 = vmatpush2.bf16.msra.mxu0 %v17562_v3  ;;  %4364 = vmatprep.subr.bf16.mxu1 %v17567_v9  ;;  %v17608_v3 = vld [vmem:[#allocation8 + $0x140] ss:$12 sps:$4 sm:$0xff]   ;;  %v17605_v9 = vld [vmem:[#allocation8 + $0x138] ss:$12 sps:$4 sm:$0xff]  }
 0x484   :  { %4407 = vmatprep.subr.bf16.mxu0 %v17570_v10  ;;  %v17609_v10 = vld [vmem:[#allocation8 + $0x80] ss:$12 sps:$4 sm:$0xff]  }
 0x486   :  { %4365 = vmatpush2.bf16.msra.mxu1 %v17565_v11  ;;  %v17610_v11 = vld [vmem:[#allocation8 + $0x120] ss:$12 sps:$4 sm:$0xff]  }
 0x487   :  { %4408 = vmatpush2.bf16.msra.mxu0 %v17568_v58  ;;  %4843 = vmatprep.subr.bf16.mxu1 %v17573_v16  ;;  %v17612_v58 = vld [vmem:[#allocation8 + $0x124] ss:$12 sps:$4 sm:$0xff]   ;;  %v17614_v16 = vld [vmem:[#allocation8 + $0x68] ss:$12 sps:$4 sm:$0xff]  }
 0x488   :  { %16659 = vmatprep.subr.bf16.mxu0 %v17598_v50 }
 0x489   :  { %4367 = vmatmul.mubr.bf16.vlgmr.msra.gmra.mxu1 %v20189_v34 }
 0x48a   :  { %4410 = vmatmul.mubr.bf16.vlgmr.msra.gmra.mxu0 %v20189_v34  ;;  %4844 = vmatpush1.bf16.msra.mxu1 %v17571_v15  ;;  %v17588_v34 = vld [vmem:[#allocation8 + $0x34] ss:$12 sps:$4 sm:$0xff]  }
 0x48b   :  { %4845 = vmatprep.subr.bf16.mxu1 %v17576_v23  ;;  %16660 = vmatpush3.bf16.msra.mxu0 %v17599_v12  ;;  %v17613_v15 = vld [vmem:[#allocation8 + $0x128] ss:$12 sps:$4 sm:$0xff]   ;;  %v17617_v23 = vld [vmem:[#allocation8 + $0x10c] ss:$12 sps:$4 sm:$0xff]  }
 0x48c   :  { %16661 = vmatprep.subr.bf16.mxu0 %v17603_v53  ;;  %v17634_v12 = vld [vmem:[#allocation8 + $0x8] ss:$12 sps:$4 sm:$0xff]  }
 0x48d   :  { %v17640_v53 = vld [vmem:[#allocation2 + $0x174] ss:$8 sps:$4 sm:$0xff]  }
 0x48e   :  { %4846 = vmatpush1.bf16.msra.mxu1 %v17574_v31  ;;  %v17618_v31 = vld [vmem:[#allocation8 + $0x110] ss:$12 sps:$4 sm:$0xff]  }
 0x48f   :  { %4847 = vmatprep.subr.bf16.mxu1 %v17579_v28  ;;  %16662 = vmatpush3.bf16.msra.mxu0 %v17604_v60  ;;  %v17615_v28 = vld [vmem:[#allocation8 + $0x108] ss:$12 sps:$4 sm:$0xff]  }
 0x490   :  { %16663 = vmatprep.subr.bf16.mxu0 %v17608_v3 }
 0x492   :  { %4848 = vmatpush1.bf16.msra.mxu1 %v17577_v37  ;;  %v17619_v37 = vld [vmem:[#allocation8 + $0x50] ss:$12 sps:$4 sm:$0xff]  }
 0x493   :  { %4849 = vmatprep.subr.bf16.mxu1 %v17582_v63  ;;  %16664 = vmatpush3.bf16.msra.mxu0 %v17609_v10  ;;  %v17622_v63 = vld [vmem:[#allocation8 + $0xf4] ss:$12 sps:$4 sm:$0xff]  }
 0x494   :  { %16665 = vmatprep.subr.bf16.mxu0 %v17613_v15 }
 0x496   :  { %4850 = vmatpush1.bf16.msra.mxu1 %v17580_v62  ;;  %v17623_v62 = vld [vmem:[#allocation8 + $0xf8] ss:$12 sps:$4 sm:$0xff]  }
 0x497   :  { %4851 = vmatprep.subr.bf16.mxu1 %v17585_v47  ;;  %16666 = vmatpush3.bf16.msra.mxu0 %v17614_v16  ;;  %v17620_v47 = vld [vmem:[#allocation8 + $0xf0] ss:$12 sps:$4 sm:$0xff]  }
 0x498   :  { %16667 = vmatprep.subr.bf16.mxu0 %v17618_v31 }
 0x49a   :  { %4852 = vmatpush1.bf16.msra.mxu1 %v17583_v38  ;;  %v17624_v38 = vld [vmem:[#allocation8 + $0x38] ss:$12 sps:$4 sm:$0xff]  }
 0x49b   :  { %4853 = vmatprep.subr.bf16.mxu1 %v17588_v34  ;;  %16668 = vmatpush3.bf16.msra.mxu0 %v17619_v37  ;;  %v17627_v34 = vld [vmem:[#allocation8 + $0xdc] ss:$12 sps:$4 sm:$0xff]  }
 0x49c   :  { %16669 = vmatprep.subr.bf16.mxu0 %v17623_v62 }
 0x49e   :  { %4854 = vmatpush1.bf16.msra.mxu1 %v17586_v40  ;;  %v17628_v40 = vld [vmem:[#allocation8 + $0xe0] ss:$12 sps:$4 sm:$0xff]  }
 0x49f   :  { %4855 = vmatprep.subr.bf16.mxu1 %v17591_v21  ;;  %16670 = vmatpush3.bf16.msra.mxu0 %v17624_v38 }
 0x4a0   :  { %16671 = vmatprep.subr.bf16.mxu0 %v17628_v40 }
 0x4a2   :  { %4856 = vmatpush1.bf16.msra.mxu1 %v17589_v25  ;;  %v17625_v25 = vld [vmem:[#allocation8 + $0xd8] ss:$12 sps:$4 sm:$0xff]  }
 0x4a3   :  { %4857 = vmatprep.subr.bf16.mxu1 %v17594_v45  ;;  %v17629_v45 = vld [vmem:[#allocation8 + $0x20] ss:$12 sps:$4 sm:$0xff]  }
 0x4a4   :  { %16672 = vmatpush3.bf16.msra.mxu0 %v17629_v45 }
 0x4a6   :  { %4858 = vmatpush1.bf16.msra.mxu1 %v17592_v44  ;;  %v17632_v44 = vld [vmem:[#allocation8 + $0xc4] ss:$12 sps:$4 sm:$0xff]  }
 0x4a7   :  { %4859 = vmatprep.subr.bf16.mxu1 %v17597_v33  ;;  %v17633_v33 = vld [vmem:[#allocation8 + $0xc8] ss:$12 sps:$4 sm:$0xff]  }
 0x4a8   :  { %16673 = vmatprep.subr.bf16.mxu0 %v17633_v33 }
 0x4a9   :  { %16674 = vmatpush3.bf16.msra.mxu0 %v17634_v12 }
 0x4aa   :  { %4860 = vmatpush2.bf16.msra.mxu1 %v17595_v13  ;;  %v17630_v13 = vld [vmem:[#allocation8 + $0xc0] ss:$12 sps:$4 sm:$0xff]  }
 0x4ab   :  { %4861 = vmatprep.subr.bf16.mxu1 %v17602_v52  ;;  %v17637_v52 = vld [vmem:[#allocation2 + $0x74] ss:$8 sps:$4 sm:$0xff]  }
 0x4ac   :  { %5298 = vmatprep.subr.bf16.mxu0 %v17637_v52 }
 0x4ae   :  { %4862 = vmatpush2.bf16.msra.mxu1 %v17600_v57 }
 0x4af   :  { %4863 = vmatprep.subr.bf16.mxu1 %v17607_v29 }
 0x4b2   :  { %4864 = vmatpush2.bf16.msra.mxu1 %v17605_v9 }
 0x4b3   :  { %4865 = vmatprep.subr.bf16.mxu1 %v17612_v58 }
 0x4b6   :  { %4866 = vmatpush2.bf16.msra.mxu1 %v17610_v11 }
 0x4b7   :  { %4867 = vmatprep.subr.bf16.mxu1 %v17617_v23 }
 0x4ba   :  { %4868 = vmatpush2.bf16.msra.mxu1 %v17615_v28 }
 0x4bb   :  { %4869 = vmatprep.subr.bf16.mxu1 %v17622_v63 }
 0x4be   :  { %4870 = vmatpush2.bf16.msra.mxu1 %v17620_v47 }
 0x4bf   :  { %4871 = vmatprep.subr.bf16.mxu1 %v17627_v34 }
 0x4c2   :  { %4872 = vmatpush2.bf16.msra.mxu1 %v17625_v25 }
 0x4c3   :  { %4873 = vmatprep.subr.bf16.mxu1 %v17632_v44 }
 0x4c6   :  { %4874 = vmatpush2.bf16.msra.mxu1 %v17630_v13 }
 0x4c7   :  { %5341 = vmatprep.subr.bf16.mxu1 %v17640_v53 }
 0x4c9   :  { %v3588_v37 = vpop.f32.mrf.mxu1 }
 0x4f2   :  { %v2517_v21 = vpop.xlane.xlu0 %2516 }
 0x4f3   :  { %19383 = vlog2.f32 %v2517_v21 }
 0x4f6   :  { %v2521_v50 = vpop.xlane.xlu0 %2520 }
 0x4f7   :  { %19385 = vlog2.f32 %v2521_v50 }
 0x500   :  { %v19384_v57 = vpop.eup %19383 }
 0x501   :  { %v2523_v60 = vmul.f32 0.6931472, %v19384_v57 }
 0x503   :  { %v2526_v29 = vadd.f32 %v2523_v60, %v20246_v51 }
 0x504   :  { %v19386_v3 = vpop.eup %19385 }
 0x505   :  { %v2528_v9 = vsub.f32 %v20215_v59, %v2526_v29  ;;  %v2529_v10 = vsub.f32 %v20219_v43, %v2526_v29  ;;  %v2530_v11 = vsub.f32 %v20217_v54, %v2526_v29  ;;  %v2525_v58 = vmul.f32 0.6931472, %v19386_v3  ;;  %v3631_v59 = vpop.f32.mrf.mxu0 }
 0x507   :  { %2534 = vst [vmem:[#allocation10] sm:$0xff] %v2528_v9  ;;  %2535 = vst [vmem:[#allocation10 + $0x8] sm:$0xff] %v2529_v10  ;;  %v2527_v15 = vadd.f32 %v2525_v58, %v20254_v7  ;;  %v3633_v51 = vpop.f32.mrf.mxu0  ;;  %v20277_v7 = vld [vmem:[%s20947_s6] sm:$0x3f] }
 0x508   :  { %2536 = vst [vmem:[#allocation10 + $0x10] sm:$0xff] %v2530_v11  ;;  %v3784_v62 = vrot.slane %v20277_v7, %v20100_v8 }
 0x509   :  { %v2531_v16 = vsub.f32 %v20223_v56, %v2527_v15  ;;  %v2532_v23 = vsub.f32 %v20228_v46, %v2527_v15  ;;  %v2533_v31 = vsub.f32 %v20225_v6, %v2527_v15  ;;  %v3635_v43 = vpop.f32.mrf.mxu0  ;;  %v3590_v56 = vpop.f32.mrf.mxu1  ;;  %v20282_v6 = vld [vmem:[%s20946_s5] sm:$0x3f]  ;;  %v3788_v46 = vrot.slane %v20277_v7, %v20090_v30 }
 0x50a   :  { %v3051_v38 = vrot.slane %v20282_v6, %v20090_v30  ;;  %v3047_v34 = vrot.slane %v20282_v6, %v20100_v8 }
 0x50b   :  { %2537 = vst [vmem:[#allocation10 + $0x18] sm:$0xff] %v2531_v16  ;;  %2538 = vst [vmem:[#allocation10 + $0x20] sm:$0xff] %v2532_v23  ;;  %v20272_v28 = vpop.f32.mrf.mxu0  ;;  %v3592_v40 = vpop.f32.mrf.mxu1 }
 0x50c   :  { %2539 = vst [vmem:[#allocation10 + $0x28] sm:$0xff] %v2533_v31  ;;  %v3591_v44 = vadd.f32 %v3590_v56, %v3051_v38  ;;  %v3589_v50 = vadd.f32 %v3588_v37, %v3047_v34  ;;  %v3593_v12 = vadd.f32 %v3592_v40, %v3047_v34  ;;  %v3792_v37 = vrot.slane %v20277_v7, %v20118_v48 }
 0x50d   :  { %v4325_v54 = vpop.f32.mrf.mxu0  ;;  %v3594_v13 = vpop.f32.mrf.mxu1 }
 0x50e   :  { %v4326_v25 = vadd.f32 %v4325_v54, %v3784_v62  ;;  %v3595_v60 = vadd.f32 %v3594_v13, %v3051_v38  ;;  %v3055_v54 = vrot.slane %v20282_v6, %v20118_v48 }
 0x50f   :  { %v4327_v63 = vpop.f32.mrf.mxu0  ;;  %v20292_v15 = vpop.f32.mrf.mxu1 }
 0x510   :  { %v4328_v21 = vadd.f32 %v4327_v63, %v3788_v46  ;;  %v4420_v57 = vadd.f32 %v4326_v25, %v3589_v50 }
 0x511   :  { %v4329_v47 = vpop.f32.mrf.mxu0  ;;  %v3676_v16 = vpop.f32.mrf.mxu1 }
 0x512   :  { %v4330_v33 = vadd.f32 %v4329_v47, %v3784_v62  ;;  %v4421_v52 = vadd.f32 %v4328_v21, %v3591_v44  ;;  %v15341_v10 = vmul.f32 -1.442695, %v4420_v57  ;;  %v3059_v62 = vrot.slane %v20282_v6, %v20123_v49 }
 0x513   :  { %v4331_v45 = vpop.f32.mrf.mxu0  ;;  %v20294_v23 = vpop.f32.mrf.mxu1  ;;  %v3796_v47 = vrot.slane %v20277_v7, %v20123_v49  ;;  %v3632_v21 = vadd.f32 %v3631_v59, %v3055_v54 }
 0x514   :  { %v4332_v53 = vadd.f32 %v4331_v45, %v3788_v46  ;;  %v4422_v29 = vadd.f32 %v4330_v33, %v3593_v12  ;;  %v15342_v3 = vmul.f32 -1.442695, %v4421_v52  ;;  %v3634_v50 = vadd.f32 %v3633_v51, %v3059_v62 }
 0x515   :  { %v20300_v56 = vpop.f32.mrf.mxu1  ;;  %v3636_v52 = vadd.f32 %v3635_v43, %v3055_v54 }
 0x516   :  { %v4423_v9 = vadd.f32 %v4332_v53, %v3595_v60  ;;  %v15343_v11 = vmul.f32 -1.442695, %v4422_v29  ;;  %19387 = vpow2.f32 %v15342_v3 }
 0x517   :  { %19389 = vpow2.f32 %v15341_v10  ;;  %v3638_v10 = vadd.f32 %v20272_v28, %v3059_v62  ;;  %v3800_v28 = vrot.slane %v20277_v7, %v20143_v39  ;;  %v3067_v62 = vrot.slane %v20282_v6, %v20138_v22 }
 0x518   :  { %v15344_v58 = vmul.f32 -1.442695, %v4423_v9  ;;  %19391 = vpow2.f32 %v15343_v11 }
 0x51a   :  { %19393 = vpow2.f32 %v15344_v58 }
 0x523   :  { %v19388_v31 = vpop.eup %19387 }
 0x524   :  { %v19390_v63 = vpop.eup %19389  ;;  %v4437_v38 = vadd.f32 1.0, %v19388_v31 }
 0x525   :  { %v19392_v46 = vpop.eup %19391  ;;  %v4436_v25 = vadd.f32 1.0, %v19390_v63  ;;  %v3804_v63 = vrot.slane %v20277_v7, %v20138_v22 }
 0x526   :  { %v4438_v44 = vadd.f32 1.0, %v19392_v46  ;;  %19395 = vrcp.f32 %v4437_v38 }
 0x527   :  { %v19394_v40 = vpop.eup %19393  ;;  %19397 = vrcp.f32 %v4436_v25 }
 0x528   :  { %v4439_v53 = vadd.f32 1.0, %v19394_v40  ;;  %19399 = vrcp.f32 %v4438_v44 }
 0x533   :  { %v19396_v40 = vpop.eup %19395 }
 0x549   :  { %v4368_v34 = vpop.f32.mrf.mxu1 }
 0x54a   :  { %v4369_v45 = vadd.f32 %v4368_v34, %v3792_v37  ;;  %v4411_v57 = vpop.f32.mrf.mxu0 }
 0x54b   :  { %v4370_v33 = vpop.f32.mrf.mxu1  ;;  %v4412_v25 = vadd.f32 %v4411_v57, %v3800_v28 }
 0x54c   :  { %v4448_v13 = vadd.f32 %v4369_v45, %v3632_v21  ;;  %v4371_v12 = vadd.f32 %v4370_v33, %v3796_v47  ;;  %v4413_v51 = vpop.f32.mrf.mxu0  ;;  %v19398_v21 = vpop.eup %19397 }
 0x54d   :  { %v4372_v60 = vpop.f32.mrf.mxu1  ;;  %v19400_v44 = vpop.eup %19399 }
 0x54e   :  { %v15345_v29 = vmul.f32 -1.442695, %v4448_v13  ;;  %v4449_v3 = vadd.f32 %v4371_v12, %v3634_v50  ;;  %v4373_v9 = vadd.f32 %v4372_v60, %v3792_v37  ;;  %v4415_v38 = vpop.f32.mrf.mxu0  ;;  %v4414_v37 = vadd.f32 %v4413_v51, %v3804_v63 }
 0x54f   :  { %v4374_v59 = vpop.f32.mrf.mxu1  ;;  %v3063_v13 = vrot.slane %v20282_v6, %v20143_v39  ;;  %v3677_v12 = vadd.f32 %v3676_v16, %v3067_v62 }
 0x550   :  { %19401 = vpow2.f32 %v15345_v29  ;;  %v15346_v11 = vmul.f32 -1.442695, %v4449_v3  ;;  %v4450_v58 = vadd.f32 %v4373_v9, %v3636_v52  ;;  %v4375_v31 = vadd.f32 %v4374_v59, %v3796_v47  ;;  %v4417_v34 = vpop.f32.mrf.mxu0 }
 0x551   :  { %19403 = vrcp.f32 %v4439_v53  ;;  %v4416_v47 = vadd.f32 %v4415_v38, %v3800_v28  ;;  %v4477_v45 = vmul.f32 %v19396_v40, %v4414_v37  ;;  %v4418_v33 = vadd.f32 %v4417_v34, %v3804_v63 }
 0x552   :  { %19405 = vpow2.f32 %v15346_v11  ;;  %v15347_v43 = vmul.f32 -1.442695, %v4450_v58  ;;  %v4451_v54 = vadd.f32 %v4375_v31, %v3638_v10  ;;  %v3679_v29 = vadd.f32 %v20294_v23, %v3063_v13 }
 0x553   :  { %v4478_v52 = vmul.f32 %v19400_v44, %v4416_v47  ;;  %v4476_v3 = vmul.f32 %v19398_v21, %v4412_v25  ;;  %v4481_v9 = vadd.f32 %v4477_v45, %v3677_v12  ;;  %v3675_v57 = vadd.f32 %v20292_v15, %v3063_v13 }
 0x554   :  { %19407 = vpow2.f32 %v15347_v43  ;;  %v15348_v46 = vmul.f32 -1.442695, %v4451_v54  ;;  %v3681_v31 = vadd.f32 %v20300_v56, %v3067_v62 }
 0x555   :  { %v4482_v58 = vadd.f32 %v4478_v52, %v3679_v29  ;;  %v4480_v51 = vadd.f32 %v4476_v3, %v3675_v57  ;;  %v17638_v3 = vld [vmem:[#allocation2 + $0x170] ss:$8 sps:$4 sm:$0xff]  }
 0x556   :  { %19409 = vpow2.f32 %v15348_v46  ;;  %v17647_v57 = vld [vmem:[#allocation2 + $0x50] ss:$8 sps:$4 sm:$0xff]  }
 0x55d   :  { %v19402_v50 = vpop.eup %19401 }
 0x55e   :  { %v19404_v53 = vpop.eup %19403  ;;  %v4464_v7 = vadd.f32 1.0, %v19402_v50 }
 0x55f   :  { %v19406_v60 = vpop.eup %19405  ;;  %v4479_v59 = vmul.f32 %v19404_v53, %v4418_v33 }
 0x560   :  { %v4465_v10 = vadd.f32 1.0, %v19406_v60  ;;  %19411 = vrcp.f32 %v4464_v7 }
 0x561   :  { %v19408_v11 = vpop.eup %19407  ;;  %v4483_v54 = vadd.f32 %v4479_v59, %v3681_v31  ;;  %v17649_v59 = vld [vmem:[#allocation2 + $0x54] ss:$8 sps:$4 sm:$0xff]   ;;  %v17655_v31 = vld [vmem:[#allocation2 + $0x44] ss:$8 sps:$4 sm:$0xff]  }
 0x562   :  { %19413 = vrcp.f32 %v4465_v10  ;;  %v4466_v6 = vadd.f32 1.0, %v19408_v11  ;;  %v17644_v10 = vld [vmem:[#allocation2 + $0x160] ss:$8 sps:$4 sm:$0xff]   ;;  %v17652_v11 = vld [vmem:[#allocation2 + $0x154] ss:$8 sps:$4 sm:$0xff]  }
 0x563   :  { %v19410_v16 = vpop.eup %19409  ;;  %19415 = vtanh.f32 %v4481_v9  ;;  %v17641_v9 = vld [vmem:[#allocation2 + $0x60] ss:$8 sps:$4 sm:$0xff]  }
 0x564   :  { %19417 = vrcp.f32 %v4466_v6  ;;  %v4467_v43 = vadd.f32 1.0, %v19410_v16  ;;  %v17658_v6 = vld [vmem:[#allocation2 + $0x144] ss:$8 sps:$4 sm:$0xff]   ;;  %v17653_v16 = vld [vmem:[#allocation2 + $0x40] ss:$8 sps:$4 sm:$0xff]  }
 0x565   :  { %19419 = vtanh.f32 %v4482_v58  ;;  %v17650_v58 = vld [vmem:[#allocation2 + $0x150] ss:$8 sps:$4 sm:$0xff]  }
 0x566   :  { %19421 = vrcp.f32 %v4467_v43  ;;  %v17664_v43 = vld [vmem:[#allocation2 + $0x134] ss:$8 sps:$4 sm:$0xff]  }
 0x567   :  { %19423 = vtanh.f32 %v4480_v51  ;;  %v17656_v51 = vld [vmem:[#allocation2 + $0x140] ss:$8 sps:$4 sm:$0xff]  }
 0x568   :  { %19425 = vtanh.f32 %v4483_v54  ;;  %v17659_v54 = vld [vmem:[#allocation2 + $0x30] ss:$8 sps:$4 sm:$0xff]  }
 0x56d   :  { %v19412_v23 = vpop.eup %19411 }
 0x56e   :  { %v4488_v28 = vsub.f32 1.0, %v19412_v23  ;;  %v4496_v12 = vmul.f32 %v19412_v23, %v20181_v26  ;;  %v17646_v26 = vld [vmem:[#allocation2 + $0x164] ss:$8 sps:$4 sm:$0xff]   ;;  %v17662_v23 = vld [vmem:[#allocation2 + $0x130] ss:$8 sps:$4 sm:$0xff]  }
 0x56f   :  { %v19414_v63 = vpop.eup %19413 }
 0x570   :  { %v19416_v46 = vpop.eup %19415  ;;  %v4489_v15 = vsub.f32 1.0, %v19414_v63  ;;  %v4497_v50 = vmul.f32 %v19414_v63, %v20177_v17  ;;  %v17667_v63 = vld [vmem:[#allocation2 + $0x24] ss:$8 sps:$4 sm:$0xff]  }
 0x571   :  { %v19418_v38 = vpop.eup %19417 }
 0x572   :  { %v19420_v37 = vpop.eup %19419  ;;  %v4490_v56 = vsub.f32 1.0, %v19418_v38  ;;  %v4493_v40 = vmul.f32 %v19416_v46, %v4489_v15  ;;  %v4498_v44 = vmul.f32 %v19418_v38, %v20175_v61  ;;  %v17635_v61 = vld [vmem:[#allocation2 + $0x70] ss:$8 sps:$4 sm:$0xff]   ;;  %v17670_v46 = vld [vmem:[#allocation2 + $0x124] ss:$8 sps:$4 sm:$0xff]  }
 0x573   :  { %v19422_v62 = vpop.eup %19421  ;;  %v17665_v15 = vld [vmem:[#allocation2 + $0x20] ss:$8 sps:$4 sm:$0xff]  }
 0x574   :  { %v19424_v47 = vpop.eup %19423  ;;  %v4491_v34 = vsub.f32 1.0, %v19422_v62  ;;  %v4494_v21 = vmul.f32 %v19420_v37, %v4490_v56  ;;  %v4499_v13 = vmul.f32 %v19422_v62, %v20179_v19  ;;  %v20324_v53 = vadd.f32 %v4497_v50, %v4493_v40  ;;  %v17643_v19 = vld [vmem:[#allocation2 + $0x64] ss:$8 sps:$4 sm:$0xff]   ;;  %v17668_v38 = vld [vmem:[#allocation2 + $0x120] ss:$8 sps:$4 sm:$0xff]  }
 0x575   :  { %v19426_v25 = vpop.eup %19425  ;;  %v4492_v45 = vmul.f32 %v19424_v47, %v4488_v28  ;;  %v17673_v28 = vld [vmem:[#allocation2 + $0x14] ss:$8 sps:$4 sm:$0xff]   ;;  %v17671_v56 = vld [vmem:[#allocation2 + $0x10] ss:$8 sps:$4 sm:$0xff]   ;;  %v17679_v47 = vld [vmem:[#allocation2 + $0x4] ss:$8 sps:$4 sm:$0xff]  }
 0x576   :  { %v4495_v33 = vmul.f32 %v19426_v25, %v4491_v34  ;;  %v20322_v52 = vadd.f32 %v4498_v44, %v4494_v21  ;;  %v17676_v37 = vld [vmem:[#allocation2 + $0x114] ss:$8 sps:$4 sm:$0xff]   ;;  %v17674_v62 = vld [vmem:[#allocation2 + $0x110] ss:$8 sps:$4 sm:$0xff]   ;;  %v17682_v34 = vld [vmem:[#allocation2 + $0x104] ss:$8 sps:$4 sm:$0xff]  }
 0x577   :  { %v20328_v60 = vadd.f32 %v4496_v12, %v4492_v45  ;;  %v17677_v40 = vld [vmem:[#allocation2] ss:$8 sps:$4 sm:$0xff]   ;;  %v17685_v25 = vld [vmem:[#allocation2 + $0xf4] ss:$8 sps:$4 sm:$0xff]   ;;  %v17683_v45 = vld [vmem:[#allocation2 + $0xf0] ss:$8 sps:$4 sm:$0xff]  }
 0x578   :  { %v20326_v7 = vadd.f32 %v4499_v13, %v4495_v33  ;;  %v17680_v21 = vld [vmem:[#allocation2 + $0x100] ss:$8 sps:$4 sm:$0xff]   ;;  %v17688_v44 = vld [vmem:[#allocation2 + $0xe4] ss:$8 sps:$4 sm:$0xff]   ;;  %v17691_v50 = vld [vmem:[#allocation2 + $0xd4] ss:$8 sps:$4 sm:$0xff]  }
 0x579   :  { %v20336_v17 = vpack.c.bf16 %v20322_v52, %v20328_v60  ;;  %v17686_v33 = vld [vmem:[#allocation2 + $0xe0] ss:$8 sps:$4 sm:$0xff]   ;;  %v17689_v13 = vld [vmem:[#allocation2 + $0xd0] ss:$8 sps:$4 sm:$0xff]   ;;  %v17694_v12 = vld [vmem:[#allocation2 + $0xc4] ss:$8 sps:$4 sm:$0xff]  }
 0x57a   :  { %v20332_v29 = vpack.c.bf16 %v20326_v7, %v20324_v53 }
 0x57c   :  { %4875 = vmatprep.mubr.bf16.mxu1 %v20332_v29  ;;  %4918 = vmatprep.mubr.bf16.mxu0 %v20332_v29 }
 0x57d   :  { %4876 = vmatmul.mubr.bf16.vlgmr.msra.gmra.mxu1 %v20336_v17  ;;  %4919 = vmatmul.mubr.bf16.vlgmr.msra.gmra.mxu0 %v20336_v17 }
 0x57e   :  { %5299 = vmatpush1.bf16.msra.mxu0 %v17635_v61  ;;  %5342 = vmatpush1.bf16.msra.mxu1 %v17638_v3  ;;  %v17692_v61 = vld [vmem:[#allocation2 + $0xc0] ss:$8 sps:$4 sm:$0xff]   ;;  %v17697_v3 = vld [vmem:[#allocation2 + $0xb4] ss:$8 sps:$4 sm:$0xff]  }
 0x57f   :  { %15454 = vmatprep.mubr.msk.bf16.mxu0 %vm20031_vm10, %v19812_v14  ;;  %5300 = vmatprep.subr.bf16.mxu0 %v17643_v19  ;;  %v17695_v19 = vld [vmem:[#allocation2 + $0xb0] ss:$8 sps:$4 sm:$0xff]   ;;  %vm12312_vm10 = vcmp.eq.s32.totalorder %v19930_v1, %v20244_v2 }
 0x580   :  { %5343 = vmatprep.subr.bf16.mxu1 %v17646_v26  ;;  %5373 = vmatprep.mubr.bf16.mxu1 %v19811_v0  ;;  %v17700_v26 = vld [vmem:[#allocation2 + $0xa4] ss:$8 sps:$4 sm:$0xff]  }
 0x582   :  { %5301 = vmatpush1.bf16.msra.mxu0 %v17641_v9  ;;  %5344 = vmatpush1.bf16.msra.mxu1 %v17644_v10  ;;  %v17698_v9 = vld [vmem:[#allocation2 + $0xa0] ss:$8 sps:$4 sm:$0xff]   ;;  %v17701_v10 = vld [vmem:[#allocation2 + $0x90] ss:$8 sps:$4 sm:$0xff]  }
 0x583   :  { %5302 = vmatprep.subr.bf16.mxu0 %v17649_v59  ;;  %5345 = vmatprep.subr.bf16.mxu1 %v17652_v11  ;;  %v17706_v59 = vld [vmem:[#allocation2 + $0x84] ss:$8 sps:$4 sm:$0xff]   ;;  %v17704_v11 = vld [vmem:[#allocation2 + $0x80] ss:$8 sps:$4 sm:$0xff]  }
 0x586   :  { %5303 = vmatpush1.bf16.msra.mxu0 %v17647_v57  ;;  %5346 = vmatpush1.bf16.msra.mxu1 %v17650_v58  ;;  %v17707_v57 = vld [vmem:[#allocation5 + $0x150] ss:$24 sps:$4 sm:$0xff]   ;;  %v17709_v58 = vld [vmem:[#allocation5 + $0x154] ss:$24 sps:$4 sm:$0xff]  }
 0x587   :  { %5304 = vmatprep.subr.bf16.mxu0 %v17655_v31  ;;  %5347 = vmatprep.subr.bf16.mxu1 %v17658_v6  ;;  %v17710_v31 = vld [vmem:[#allocation5 + $0x158] ss:$24 sps:$4 sm:$0xff]   ;;  %v17712_v6 = vld [vmem:[#allocation5 + $0x15c] ss:$24 sps:$4 sm:$0xff]  }
 0x58a   :  { %5305 = vmatpush1.bf16.msra.mxu0 %v17653_v16  ;;  %5348 = vmatpush1.bf16.msra.mxu1 %v17656_v51  ;;  %v17715_v16 = vld [vmem:[#allocation5 + $0x124] ss:$24 sps:$4 sm:$0xff]   ;;  %v17713_v51 = vld [vmem:[#allocation5 + $0x120] ss:$24 sps:$4 sm:$0xff]  }
 0x58b   :  { %5306 = vmatprep.subr.bf16.mxu0 %v17661_v41  ;;  %5349 = vmatprep.subr.bf16.mxu1 %v17664_v43  ;;  %v17718_v41 = vld [vmem:[#allocation5 + $0x12c] ss:$24 sps:$4 sm:$0xff]   ;;  %v17716_v43 = vld [vmem:[#allocation5 + $0x128] ss:$24 sps:$4 sm:$0xff]  }
 0x58e   :  { %5307 = vmatpush1.bf16.msra.mxu0 %v17659_v54  ;;  %5350 = vmatpush1.bf16.msra.mxu1 %v17662_v23  ;;  %v17721_v54 = vld [vmem:[#allocation5 + $0xf4] ss:$24 sps:$4 sm:$0xff]   ;;  %v17719_v23 = vld [vmem:[#allocation5 + $0xf0] ss:$24 sps:$4 sm:$0xff]  }
 0x58f   :  { %5308 = vmatprep.subr.bf16.mxu0 %v17667_v63  ;;  %5351 = vmatprep.subr.bf16.mxu1 %v17670_v46  ;;  %v17724_v63 = vld [vmem:[#allocation5 + $0xfc] ss:$24 sps:$4 sm:$0xff]  }
 0x590   :  { %v17727_v46 = vld [vmem:[#allocation5 + $0xc4] ss:$24 sps:$4 sm:$0xff]  }
 0x592   :  { %5309 = vmatpush1.bf16.msra.mxu0 %v17665_v15  ;;  %5352 = vmatpush1.bf16.msra.mxu1 %v17668_v38  ;;  %v17730_v15 = vld [vmem:[#allocation5 + $0xcc] ss:$24 sps:$4 sm:$0xff]   ;;  %v17725_v38 = vld [vmem:[#allocation5 + $0xc0] ss:$24 sps:$4 sm:$0xff]  }
 0x593   :  { %5310 = vmatprep.subr.bf16.mxu0 %v17673_v28  ;;  %5353 = vmatprep.subr.bf16.mxu1 %v17676_v37  ;;  %v17728_v28 = vld [vmem:[#allocation5 + $0xc8] ss:$24 sps:$4 sm:$0xff]   ;;  %v17733_v37 = vld [vmem:[#allocation5 + $0x94] ss:$24 sps:$4 sm:$0xff]  }
 0x596   :  { %5311 = vmatpush1.bf16.msra.mxu0 %v17671_v56  ;;  %5354 = vmatpush1.bf16.msra.mxu1 %v17674_v62  ;;  %v17736_v56 = vld [vmem:[#allocation5 + $0x9c] ss:$24 sps:$4 sm:$0xff]   ;;  %v17731_v62 = vld [vmem:[#allocation5 + $0x90] ss:$24 sps:$4 sm:$0xff]  }
 0x597   :  { %5312 = vmatprep.subr.bf16.mxu0 %v17679_v47  ;;  %5355 = vmatprep.subr.bf16.mxu1 %v17682_v34  ;;  %v17734_v47 = vld [vmem:[#allocation5 + $0x98] ss:$24 sps:$4 sm:$0xff]   ;;  %v17739_v34 = vld [vmem:[#allocation5 + $0x64] ss:$24 sps:$4 sm:$0xff]  }
 0x59a   :  { %5313 = vmatpush1.bf16.msra.mxu0 %v17677_v40  ;;  %5356 = vmatpush1.bf16.msra.mxu1 %v17680_v21  ;;  %v17742_v40 = vld [vmem:[#allocation5 + $0x6c] ss:$24 sps:$4 sm:$0xff]   ;;  %v17737_v21 = vld [vmem:[#allocation5 + $0x60] ss:$24 sps:$4 sm:$0xff]  }
 0x59b   :  { %5314 = vmatprep.subr.bf16.mxu0 %v17685_v25  ;;  %5994 = vmatprep.subr.bf16.mxu1 %v17709_v58  ;;  %v17740_v25 = vld [vmem:[#allocation5 + $0x68] ss:$24 sps:$4 sm:$0xff]   ;;  %v17769_v58 = vld [vmem:[#allocation5 + $0x274] ss:$24 sps:$4 sm:$0xff]  }
 0x59d   :  { %15458 = vmatmul.mubr.msk.bf16.vlgmr.msra.gmra.mxu1 %vm19973_vm0, %v19812_v14  ;;  %vm12310_vm0 = vcmp.eq.s32.totalorder %v19935_v4, %v20242_v42 }
 0x59e   :  { %5315 = vmatpush2.bf16.msra.mxu0 %v17683_v45  ;;  %5995 = vmatpush1.bf16.msra.mxu1 %v17707_v57  ;;  %v17743_v45 = vld [vmem:[#allocation5 + $0x30] ss:$24 sps:$4 sm:$0xff]  }
 0x59f   :  { %5316 = vmatprep.subr.bf16.mxu0 %v17688_v44  ;;  %5996 = vmatprep.subr.bf16.mxu1 %v17715_v16  ;;  %v17745_v44 = vld [vmem:[#allocation5 + $0x34] ss:$24 sps:$4 sm:$0xff]   ;;  %v17764_v57 = vld [vmem:[#allocation5 + $0x2a8] ss:$24 sps:$4 sm:$0xff]   ;;  %v17770_v16 = vld [vmem:[#allocation5 + $0x278] ss:$24 sps:$4 sm:$0xff]  }
 0x5a2   :  { %5317 = vmatpush2.bf16.msra.mxu0 %v17686_v33  ;;  %5997 = vmatpush1.bf16.msra.mxu1 %v17713_v51  ;;  %v17746_v33 = vld [vmem:[#allocation5 + $0x38] ss:$24 sps:$4 sm:$0xff]   ;;  %v17775_v51 = vld [vmem:[#allocation5 + $0x244] ss:$24 sps:$4 sm:$0xff]  }
 0x5a3   :  { %5318 = vmatprep.subr.bf16.mxu0 %v17691_v50  ;;  %5998 = vmatprep.subr.bf16.mxu1 %v17721_v54  ;;  %v17748_v50 = vld [vmem:[#allocation5 + $0x3c] ss:$24 sps:$4 sm:$0xff]   ;;  %v17776_v54 = vld [vmem:[#allocation5 + $0x248] ss:$24 sps:$4 sm:$0xff]  }
 0x5a6   :  { %5319 = vmatpush2.bf16.msra.mxu0 %v17689_v13  ;;  %5999 = vmatpush1.bf16.msra.mxu1 %v17719_v23  ;;  %v17749_v13 = vld [vmem:[#allocation5] ss:$24 sps:$4 sm:$0xff]   ;;  %v17781_v23 = vld [vmem:[#allocation5 + $0x214] ss:$24 sps:$4 sm:$0xff]  }
 0x5a7   :  { %5320 = vmatprep.subr.bf16.mxu0 %v17694_v12  ;;  %6000 = vmatprep.subr.bf16.mxu1 %v17727_v46  ;;  %v17751_v12 = vld [vmem:[#allocation5 + $0x4] ss:$24 sps:$4 sm:$0xff]   ;;  %v17782_v46 = vld [vmem:[#allocation5 + $0x218] ss:$24 sps:$4 sm:$0xff]  }
 0x5aa   :  { %5321 = vmatpush2.bf16.msra.mxu0 %v17692_v61  ;;  %6001 = vmatpush1.bf16.msra.mxu1 %v17725_v38  ;;  %v17752_v61 = vld [vmem:[#allocation5 + $0x8] ss:$24 sps:$4 sm:$0xff]   ;;  %v17790_v38 = vld [vmem:[#allocation5 + $0x1ec] ss:$24 sps:$4 sm:$0xff]  }
 0x5ab   :  { %5322 = vmatprep.subr.bf16.mxu0 %v17697_v3  ;;  %6002 = vmatprep.subr.bf16.mxu1 %v17733_v37  ;;  %v17754_v3 = vld [vmem:[#allocation5 + $0xc] ss:$24 sps:$4 sm:$0xff]   ;;  %v17788_v37 = vld [vmem:[#allocation5 + $0x1e8] ss:$24 sps:$4 sm:$0xff]  }
 0x5ae   :  { %5323 = vmatpush2.bf16.msra.mxu0 %v17695_v19  ;;  %6003 = vmatpush1.bf16.msra.mxu1 %v17731_v62  ;;  %v17757_v19 = vld [vmem:[#allocation5 + $0x2d4] ss:$24 sps:$4 sm:$0xff]  }
 0x5af   :  { %5324 = vmatprep.subr.bf16.mxu0 %v17700_v26  ;;  %6004 = vmatprep.subr.bf16.mxu1 %v17739_v34  ;;  %v17760_v26 = vld [vmem:[#allocation5 + $0x2dc] ss:$24 sps:$4 sm:$0xff]  }
 0x5b0   :  { %v17793_v62 = vld [vmem:[#allocation5 + $0x1b4] ss:$24 sps:$4 sm:$0xff]  }
 0x5b1   :  { %v17796_v34 = vld [vmem:[#allocation5 + $0x1bc] ss:$24 sps:$4 sm:$0xff]  }
 0x5b2   :  { %5325 = vmatpush2.bf16.msra.mxu0 %v17698_v9  ;;  %6005 = vmatpush1.bf16.msra.mxu1 %v17737_v21  ;;  %v17755_v9 = vld [vmem:[#allocation5 + $0x2d0] ss:$24 sps:$4 sm:$0xff]   ;;  %v17799_v21 = vld [vmem:[#allocation5 + $0x184] ss:$24 sps:$4 sm:$0xff]  }
 0x5b3   :  { %5326 = vmatprep.subr.bf16.mxu0 %v17703_v20  ;;  %6006 = vmatprep.subr.bf16.mxu1 %v17745_v44  ;;  %v17758_v20 = vld [vmem:[#allocation5 + $0x2d8] ss:$24 sps:$4 sm:$0xff]   ;;  %v17805_v44 = vld [vmem:[#allocation5 + $0x164] ss:$24 sps:$4 sm:$0xff]  }
 0x5b6   :  { %5327 = vmatpush2.bf16.msra.mxu0 %v17701_v10  ;;  %6007 = vmatpush1.bf16.msra.mxu1 %v17743_v45  ;;  %v17763_v10 = vld [vmem:[#allocation5 + $0x2a4] ss:$24 sps:$4 sm:$0xff]  }
 0x5b7   :  { %5328 = vmatprep.subr.bf16.mxu0 %v17706_v59  ;;  %6008 = vmatprep.subr.bf16.mxu1 %v17751_v12  ;;  %v17766_v59 = vld [vmem:[#allocation5 + $0x2ac] ss:$24 sps:$4 sm:$0xff]  }
 0x5b8   :  { %v17802_v45 = vld [vmem:[#allocation5 + $0x18c] ss:$24 sps:$4 sm:$0xff]  }
 0x5ba   :  { %5329 = vmatpush2.bf16.msra.mxu0 %v17704_v11  ;;  %6009 = vmatpush1.bf16.msra.mxu1 %v17749_v13  ;;  %v17761_v11 = vld [vmem:[#allocation5 + $0x2a0] ss:$24 sps:$4 sm:$0xff]  }
 0x5bb   :  { %6037 = vmatprep.subr.bf16.mxu0 %v17712_v6  ;;  %6010 = vmatprep.subr.bf16.mxu1 %v17757_v19  ;;  %v17767_v6 = vld [vmem:[#allocation5 + $0x270] ss:$24 sps:$4 sm:$0xff]  }
 0x5bd   :  { %15456 = vmatmul.mubr.msk.bf16.vlgmr.msra.gmra.mxu0 %vm19969_vm15, %v19812_v14  ;;  %vm12313_vm15 = vcmp.eq.s32.totalorder %v19935_v4, %v20244_v2  ;;  %v18921_v4 = vld [vmem:[#allocation2 + $0x54] ss:$8 sps:$4 sm:$0xff]  }
 0x5be   :  { %6038 = vmatpush1.bf16.msra.mxu0 %v17710_v31  ;;  %6011 = vmatpush2.bf16.msra.mxu1 %v17755_v9  ;;  %v17772_v31 = vld [vmem:[#allocation5 + $0x27c] ss:$24 sps:$4 sm:$0xff]  }
 0x5bf   :  { %6039 = vmatprep.subr.bf16.mxu0 %v17718_v41  ;;  %6012 = vmatprep.subr.bf16.mxu1 %v17763_v10  ;;  %v17778_v41 = vld [vmem:[#allocation5 + $0x24c] ss:$24 sps:$4 sm:$0xff]  }
 0x5c2   :  { %6040 = vmatpush1.bf16.msra.mxu0 %v17716_v43  ;;  %6013 = vmatpush2.bf16.msra.mxu1 %v17761_v11  ;;  %v17773_v43 = vld [vmem:[#allocation5 + $0x240] ss:$24 sps:$4 sm:$0xff]  }
 0x5c3   :  { %6041 = vmatprep.subr.bf16.mxu0 %v17724_v63  ;;  %6014 = vmatprep.subr.bf16.mxu1 %v17769_v58  ;;  %v17784_v63 = vld [vmem:[#allocation5 + $0x21c] ss:$24 sps:$4 sm:$0xff]  }
 0x5c6   :  { %6042 = vmatpush1.bf16.msra.mxu0 %v17722_v18  ;;  %6015 = vmatpush2.bf16.msra.mxu1 %v17767_v6  ;;  %v17779_v18 = vld [vmem:[#allocation5 + $0x210] ss:$24 sps:$4 sm:$0xff]  }
 0x5c7   :  { %6043 = vmatprep.subr.bf16.mxu0 %v17730_v15  ;;  %6016 = vmatprep.subr.bf16.mxu1 %v17775_v51  ;;  %v17787_v15 = vld [vmem:[#allocation5 + $0x1e4] ss:$24 sps:$4 sm:$0xff]  }
 0x5ca   :  { %6044 = vmatpush1.bf16.msra.mxu0 %v17728_v28  ;;  %6017 = vmatpush2.bf16.msra.mxu1 %v17773_v43  ;;  %v17785_v28 = vld [vmem:[#allocation5 + $0x1e0] ss:$24 sps:$4 sm:$0xff]  }
 0x5cb   :  { %6045 = vmatprep.subr.bf16.mxu0 %v17736_v56  ;;  %6018 = vmatprep.subr.bf16.mxu1 %v17781_v23  ;;  %v17791_v56 = vld [vmem:[#allocation5 + $0x1b0] ss:$24 sps:$4 sm:$0xff]  }
 0x5ce   :  { %6046 = vmatpush1.bf16.msra.mxu0 %v17734_v47  ;;  %6019 = vmatpush2.bf16.msra.mxu1 %v17779_v18  ;;  %v17794_v47 = vld [vmem:[#allocation5 + $0x1b8] ss:$24 sps:$4 sm:$0xff]  }
 0x5cf   :  { %6047 = vmatprep.subr.bf16.mxu0 %v17742_v40  ;;  %6020 = vmatprep.subr.bf16.mxu1 %v17787_v15  ;;  %v17797_v40 = vld [vmem:[#allocation5 + $0x180] ss:$24 sps:$4 sm:$0xff]  }
 0x5d2   :  { %6048 = vmatpush1.bf16.msra.mxu0 %v17740_v25  ;;  %6021 = vmatpush2.bf16.msra.mxu1 %v17785_v28  ;;  %v17800_v25 = vld [vmem:[#allocation5 + $0x188] ss:$24 sps:$4 sm:$0xff]  }
 0x5d3   :  { %6049 = vmatprep.subr.bf16.mxu0 %v17748_v50  ;;  %6022 = vmatprep.subr.bf16.mxu1 %v17793_v62  ;;  %v4570_v50 = vld [vmem:[%s20949_s8] sm:$0x7] }
 0x5d4   :  { %v4579_v9 = vrot.slane %v4570_v50, %v20090_v30 }
 0x5d6   :  { %6050 = vmatpush1.bf16.msra.mxu0 %v17746_v33  ;;  %6023 = vmatpush2.bf16.msra.mxu1 %v17791_v56  ;;  %v17808_v33 = vld [vmem:[#allocation7 + $0x154] ss:$24 sps:$4 sm:$0xff]  }
 0x5d7   :  { %6051 = vmatprep.subr.bf16.mxu0 %v17754_v3  ;;  %6024 = vmatprep.subr.bf16.mxu1 %v17799_v21  ;;  %v4583_v3 = vrot.slane %v4570_v50, %v20118_v48 }
 0x5da   :  { %6052 = vmatpush1.bf16.msra.mxu0 %v17752_v61  ;;  %6025 = vmatpush2.bf16.msra.mxu1 %v17797_v40  ;;  %v4575_v61 = vrot.slane %v4570_v50, %v20100_v8 }
 0x5db   :  { %6053 = vmatprep.subr.bf16.mxu0 %v17760_v26  ;;  %6080 = vmatprep.subr.bf16.mxu1 %v17805_v44  ;;  %v17803_v44 = vld [vmem:[#allocation5 + $0x160] ss:$24 sps:$4 sm:$0xff]  }
 0x5de   :  { %6054 = vmatpush2.bf16.msra.mxu0 %v17758_v20 }
 0x5df   :  { %6055 = vmatprep.subr.bf16.mxu0 %v17766_v59 }
 0x5e2   :  { %6056 = vmatpush2.bf16.msra.mxu0 %v17764_v57 }
 0x5e3   :  { %6057 = vmatprep.subr.bf16.mxu0 %v17772_v31 }
 0x5e6   :  { %6058 = vmatpush2.bf16.msra.mxu0 %v17770_v16 }
 0x5e7   :  { %6059 = vmatprep.subr.bf16.mxu0 %v17778_v41 }
 0x5ea   :  { %6060 = vmatpush2.bf16.msra.mxu0 %v17776_v54 }
 0x5eb   :  { %6061 = vmatprep.subr.bf16.mxu0 %v17784_v63 }
 0x5ee   :  { %6062 = vmatpush2.bf16.msra.mxu0 %v17782_v46 }
 0x5ef   :  { %6063 = vmatprep.subr.bf16.mxu0 %v17790_v38 }
 0x5f2   :  { %6064 = vmatpush2.bf16.msra.mxu0 %v17788_v37 }
 0x5f3   :  { %6065 = vmatprep.subr.bf16.mxu0 %v17796_v34 }
 0x5f6   :  { %6066 = vmatpush2.bf16.msra.mxu0 %v17794_v47 }
 0x5f7   :  { %6067 = vmatprep.subr.bf16.mxu0 %v17802_v45 }
 0x5fa   :  { %6068 = vmatpush2.bf16.msra.mxu0 %v17800_v25 }
 0x5fb   :  { %6731 = vmatprep.subr.bf16.mxu0 %v17808_v33  ;;  %v17806_v33 = vld [vmem:[#allocation7 + $0x150] ss:$24 sps:$4 sm:$0xff]  }
 0x63d   :  { %v4877_v13 = vpop.f32.mrf.mxu1  ;;  %v16675_v12 = vpop.f32.mrf.mxu0 }
 0x63e   :  { %v20358_v11 = vadd.f32 %v4877_v13, %v4575_v61  ;;  %v17811_v13 = vld [vmem:[#allocation5 + $0x134] ss:$24 sps:$4 sm:$0xff]  }
 0x63f   :  { %v4879_v19 = vpop.f32.mrf.mxu1  ;;  %v16676_v26 = vpop.f32.mrf.mxu0 }
 0x640   :  { %v16677_v20 = vadd.f32 %v16676_v26, %v16675_v12  ;;  %v20362_v31 = vadd.f32 %v4879_v19, %v4579_v9  ;;  %v17814_v12 = vld [vmem:[#allocation7 + $0x124] ss:$24 sps:$4 sm:$0xff]   ;;  %v17820_v26 = vld [vmem:[#allocation7 + $0xf4] ss:$24 sps:$4 sm:$0xff]  }
 0x641   :  { %v4881_v10 = vpop.f32.mrf.mxu1  ;;  %v16678_v59 = vpop.f32.mrf.mxu0  ;;  %v17817_v19 = vld [vmem:[#allocation5 + $0x104] ss:$24 sps:$4 sm:$0xff]  }
 0x642   :  { %v20360_v57 = vadd.f32 %v16677_v20, %v4583_v3  ;;  %v20366_v41 = vadd.f32 %v4881_v10, %v4575_v61  ;;  %v17809_v61 = vld [vmem:[#allocation5 + $0x130] ss:$24 sps:$4 sm:$0xff]   ;;  %v17823_v10 = vld [vmem:[#allocation5 + $0xd4] ss:$24 sps:$4 sm:$0xff]  }
 0x643   :  { %v16679_v58 = vpop.f32.mrf.mxu0  ;;  %v4883_v51 = vpop.f32.mrf.mxu1  ;;  %v17818_v20 = vld [vmem:[#allocation7 + $0xf0] ss:$24 sps:$4 sm:$0xff]  }
 0x644   :  { %v16680_v6 = vadd.f32 %v16679_v58, %v16678_v59  ;;  %v4927_v16 = vmax.f32 %v20358_v11, %v20360_v57  ;;  %v20371_v23 = vadd.f32 %v4883_v51, %v4579_v9  ;;  %v17815_v9 = vld [vmem:[#allocation5 + $0x100] ss:$24 sps:$4 sm:$0xff]   ;;  %v17826_v59 = vld [vmem:[#allocation7 + $0xc4] ss:$24 sps:$4 sm:$0xff]   ;;  %v17821_v58 = vld [vmem:[#allocation5 + $0xd0] ss:$24 sps:$4 sm:$0xff]  }
 0x645   :  { %v17832_v51 = vld [vmem:[#allocation7 + $0x94] ss:$24 sps:$4 sm:$0xff]  }
 0x646   :  { %v20368_v43 = vadd.f32 %v16680_v6, %v4583_v3  ;;  %v4928_v54 = vmax.f32 %v4927_v16, %v20362_v31  ;;  %v17812_v3 = vld [vmem:[#allocation7 + $0x120] ss:$24 sps:$4 sm:$0xff]   ;;  %v17829_v16 = vld [vmem:[#allocation5 + $0xa4] ss:$24 sps:$4 sm:$0xff]  }
 0x647   :  { %v17824_v6 = vld [vmem:[#allocation7 + $0xc0] ss:$24 sps:$4 sm:$0xff]  }
 0x648   :  { %4929 = vmax.xlane.f32.xlu1 %v4928_v54  ;;  %v4931_v63 = vmax.f32 %v20366_v41, %v20368_v43  ;;  %v17827_v54 = vld [vmem:[#allocation5 + $0xa0] ss:$24 sps:$4 sm:$0xff]  }
 0x64a   :  { %v4932_v18 = vmax.f32 %v4931_v63, %v20371_v23  ;;  %v17830_v63 = vld [vmem:[#allocation7 + $0x90] ss:$24 sps:$4 sm:$0xff]  }
 0x64c   :  { %4933 = vmax.xlane.f32.xlu0 %v4932_v18  ;;  %v17835_v18 = vld [vmem:[#allocation5 + $0x74] ss:$24 sps:$4 sm:$0xff]  }
 0x65d   :  { %v5375_v46 = vpop.f32.mrf.mxu1 }
 0x65f   :  { %v5377_v15 = vpop.f32.mrf.mxu1 }
 0x661   :  { %v5379_v28 = vpop.f32.mrf.mxu1 }
 0x663   :  { %v5381_v62 = vpop.f32.mrf.mxu1 }
 0x67d   :  { %v5332_v38 = vpop.f32.mrf.mxu0 }
 0x67e   :  { %v5376_v25 = vadd.f32 %v5375_v46, %v5332_v38  ;;  %v17838_v46 = vld [vmem:[#allocation7 + $0x64] ss:$24 sps:$4 sm:$0xff]   ;;  %v17836_v38 = vld [vmem:[#allocation7 + $0x60] ss:$24 sps:$4 sm:$0xff]  }
 0x67f   :  { %v5334_v37 = vpop.f32.mrf.mxu0 }
 0x680   :  { %v5378_v40 = vadd.f32 %v5377_v15, %v5334_v37  ;;  %v17833_v15 = vld [vmem:[#allocation5 + $0x70] ss:$24 sps:$4 sm:$0xff]   ;;  %v17844_v37 = vld [vmem:[#allocation7 + $0x34] ss:$24 sps:$4 sm:$0xff]  }
 0x681   :  { %v5336_v56 = vpop.f32.mrf.mxu0 }
 0x682   :  { %v5380_v47 = vadd.f32 %v5379_v28, %v5336_v56  ;;  %v17841_v28 = vld [vmem:[#allocation5 + $0x44] ss:$24 sps:$4 sm:$0xff]   ;;  %v17839_v56 = vld [vmem:[#allocation5 + $0x40] ss:$24 sps:$4 sm:$0xff]  }
 0x683   :  { %v5338_v34 = vpop.f32.mrf.mxu0 }
 0x684   :  { %v5382_v21 = vadd.f32 %v5381_v62, %v5338_v34  ;;  %v20376_v50 = vpack.c.bf16 %v5380_v47, %v5376_v25  ;;  %v17842_v62 = vld [vmem:[#allocation7 + $0x30] ss:$24 sps:$4 sm:$0xff]   ;;  %v17847_v47 = vld [vmem:[#allocation5 + $0x14] ss:$24 sps:$4 sm:$0xff]   ;;  %v17850_v34 = vld [vmem:[#allocation7 + $0x4] ss:$24 sps:$4 sm:$0xff]  }
 0x685   :  { %v17853_v25 = vld [vmem:[#allocation5 + $0x2e4] ss:$24 sps:$4 sm:$0xff]  }
 0x686   :  { %v5385_v45 = vpack.c.bf16 %v5382_v21, %v5378_v40  ;;  %v17845_v40 = vld [vmem:[#allocation5 + $0x10] ss:$24 sps:$4 sm:$0xff]   ;;  %v17848_v21 = vld [vmem:[#allocation7] ss:$24 sps:$4 sm:$0xff]  }
 0x688   :  { %6026 = vmatprep.mubr.bf16.mxu1 %v5385_v45  ;;  %6069 = vmatprep.mubr.bf16.mxu0 %v5385_v45 }
 0x689   :  { %6027 = vmatmul.mubr.bf16.vlgmr.msra.gmra.mxu1 %v20376_v50  ;;  %6070 = vmatmul.mubr.bf16.vlgmr.msra.gmra.mxu0 %v20376_v50 }
 0x68a   :  { %6081 = vmatpush1.bf16.msra.mxu1 %v17803_v44  ;;  %6732 = vmatpush1.bf16.msra.mxu0 %v17806_v33  ;;  %v17851_v44 = vld [vmem:[#allocation5 + $0x2e0] ss:$24 sps:$4 sm:$0xff]   ;;  %v17854_v33 = vld [vmem:[#allocation7 + $0x2d0] ss:$24 sps:$4 sm:$0xff]  }
 0x68b   :  { %6112 = vmatprep.mubr.bf16.mxu1 %v5385_v45  ;;  %6763 = vmatprep.mubr.bf16.mxu0 %v20332_v29  ;;  %v17856_v45 = vld [vmem:[#allocation7 + $0x2d4] ss:$24 sps:$4 sm:$0xff]  }
 0x68c   :  { %6082 = vmatprep.subr.bf16.mxu1 %v17811_v13  ;;  %6733 = vmatprep.subr.bf16.mxu0 %v17814_v12  ;;  %v17859_v13 = vld [vmem:[#allocation5 + $0x2b4] ss:$24 sps:$4 sm:$0xff]   ;;  %v17862_v12 = vld [vmem:[#allocation7 + $0x2a4] ss:$24 sps:$4 sm:$0xff]  }
 0x68e   :  { %6083 = vmatpush1.bf16.msra.mxu1 %v17809_v61  ;;  %6734 = vmatpush1.bf16.msra.mxu0 %v17812_v3  ;;  %v17857_v61 = vld [vmem:[#allocation5 + $0x2b0] ss:$24 sps:$4 sm:$0xff]   ;;  %v17860_v3 = vld [vmem:[#allocation7 + $0x2a0] ss:$24 sps:$4 sm:$0xff]  }
 0x68f   :  { %6084 = vmatprep.subr.bf16.mxu1 %v17817_v19  ;;  %6735 = vmatprep.subr.bf16.mxu0 %v17820_v26  ;;  %v17865_v19 = vld [vmem:[#allocation5 + $0x284] ss:$24 sps:$4 sm:$0xff]   ;;  %v17868_v26 = vld [vmem:[#allocation7 + $0x274] ss:$24 sps:$4 sm:$0xff]  }
 0x692   :  { %6085 = vmatpush1.bf16.msra.mxu1 %v17815_v9  ;;  %6736 = vmatpush1.bf16.msra.mxu0 %v17818_v20  ;;  %v17863_v9 = vld [vmem:[#allocation5 + $0x280] ss:$24 sps:$4 sm:$0xff]   ;;  %v17866_v20 = vld [vmem:[#allocation7 + $0x270] ss:$24 sps:$4 sm:$0xff]  }
 0x693   :  { %6086 = vmatprep.subr.bf16.mxu1 %v17823_v10  ;;  %6737 = vmatprep.subr.bf16.mxu0 %v17826_v59  ;;  %v17871_v10 = vld [vmem:[#allocation5 + $0x254] ss:$24 sps:$4 sm:$0xff]   ;;  %v17874_v59 = vld [vmem:[#allocation7 + $0x244] ss:$24 sps:$4 sm:$0xff]  }
 0x696   :  { %6087 = vmatpush1.bf16.msra.mxu1 %v17821_v58  ;;  %6738 = vmatpush1.bf16.msra.mxu0 %v17824_v6  ;;  %v17869_v58 = vld [vmem:[#allocation5 + $0x250] ss:$24 sps:$4 sm:$0xff]   ;;  %v17872_v6 = vld [vmem:[#allocation7 + $0x240] ss:$24 sps:$4 sm:$0xff]  }
 0x697   :  { %6088 = vmatprep.subr.bf16.mxu1 %v17829_v16  ;;  %6739 = vmatprep.subr.bf16.mxu0 %v17832_v51  ;;  %v17877_v16 = vld [vmem:[#allocation5 + $0x224] ss:$24 sps:$4 sm:$0xff]   ;;  %v17880_v51 = vld [vmem:[#allocation7 + $0x214] ss:$24 sps:$4 sm:$0xff]  }
 0x69a   :  { %6089 = vmatpush1.bf16.msra.mxu1 %v17827_v54  ;;  %6740 = vmatpush1.bf16.msra.mxu0 %v17830_v63  ;;  %v17875_v54 = vld [vmem:[#allocation5 + $0x220] ss:$24 sps:$4 sm:$0xff]   ;;  %v17878_v63 = vld [vmem:[#allocation7 + $0x210] ss:$24 sps:$4 sm:$0xff]  }
 0x69b   :  { %6090 = vmatprep.subr.bf16.mxu1 %v17835_v18  ;;  %6741 = vmatprep.subr.bf16.mxu0 %v17838_v46  ;;  %v17883_v18 = vld [vmem:[#allocation5 + $0x1f4] ss:$24 sps:$4 sm:$0xff]   ;;  %v17886_v46 = vld [vmem:[#allocation7 + $0x1e4] ss:$24 sps:$4 sm:$0xff]  }
 0x69e   :  { %6091 = vmatpush1.bf16.msra.mxu1 %v17833_v15  ;;  %6742 = vmatpush1.bf16.msra.mxu0 %v17836_v38  ;;  %v17881_v15 = vld [vmem:[#allocation5 + $0x1f0] ss:$24 sps:$4 sm:$0xff]   ;;  %v17884_v38 = vld [vmem:[#allocation7 + $0x1e0] ss:$24 sps:$4 sm:$0xff]  }
 0x69f   :  { %6092 = vmatprep.subr.bf16.mxu1 %v17841_v28  ;;  %6743 = vmatprep.subr.bf16.mxu0 %v17844_v37  ;;  %v17889_v28 = vld [vmem:[#allocation5 + $0x1c4] ss:$24 sps:$4 sm:$0xff]   ;;  %v17892_v37 = vld [vmem:[#allocation7 + $0x1b4] ss:$24 sps:$4 sm:$0xff]  }
 0x6a2   :  { %6093 = vmatpush1.bf16.msra.mxu1 %v17839_v56  ;;  %6744 = vmatpush1.bf16.msra.mxu0 %v17842_v62  ;;  %v17887_v56 = vld [vmem:[#allocation5 + $0x1c0] ss:$24 sps:$4 sm:$0xff]   ;;  %v17890_v62 = vld [vmem:[#allocation7 + $0x1b0] ss:$24 sps:$4 sm:$0xff]  }
 0x6a3   :  { %6094 = vmatprep.subr.bf16.mxu1 %v17847_v47  ;;  %6745 = vmatprep.subr.bf16.mxu0 %v17850_v34  ;;  %v17895_v47 = vld [vmem:[#allocation5 + $0x194] ss:$24 sps:$4 sm:$0xff]   ;;  %v17898_v34 = vld [vmem:[#allocation7 + $0x184] ss:$24 sps:$4 sm:$0xff]  }
 0x6a6   :  { %6095 = vmatpush1.bf16.msra.mxu1 %v17845_v40  ;;  %6746 = vmatpush1.bf16.msra.mxu0 %v17848_v21  ;;  %v17893_v40 = vld [vmem:[#allocation5 + $0x190] ss:$24 sps:$4 sm:$0xff]   ;;  %v17896_v21 = vld [vmem:[#allocation7 + $0x180] ss:$24 sps:$4 sm:$0xff]  }
 0x6a7   :  { %6096 = vmatprep.subr.bf16.mxu1 %v17853_v25  ;;  %6747 = vmatprep.subr.bf16.mxu0 %v17856_v45  ;;  %v17901_v25 = vld [vmem:[#allocation7 + $0x15c] ss:$24 sps:$4 sm:$0xff]  }
 0x6a8   :  { %v17904_v45 = vld [vmem:[#allocation7 + $0x164] ss:$24 sps:$4 sm:$0xff]  }
 0x6aa   :  { %6097 = vmatpush2.bf16.msra.mxu1 %v17851_v44  ;;  %6748 = vmatpush2.bf16.msra.mxu0 %v17854_v33  ;;  %v17899_v44 = vld [vmem:[#allocation7 + $0x158] ss:$24 sps:$4 sm:$0xff]  }
 0x6ab   :  { %6098 = vmatprep.subr.bf16.mxu1 %v17859_v13  ;;  %6749 = vmatprep.subr.bf16.mxu0 %v17862_v12  ;;  %v17902_v33 = vld [vmem:[#allocation7 + $0x160] ss:$24 sps:$4 sm:$0xff]   ;;  %v17907_v13 = vld [vmem:[#allocation7 + $0x12c] ss:$24 sps:$4 sm:$0xff]  }
 0x6ac   :  { %v17910_v12 = vld [vmem:[#allocation7 + $0x134] ss:$24 sps:$4 sm:$0xff]  }
 0x6ae   :  { %6099 = vmatpush2.bf16.msra.mxu1 %v17857_v61  ;;  %6750 = vmatpush2.bf16.msra.mxu0 %v17860_v3  ;;  %v17905_v61 = vld [vmem:[#allocation7 + $0x128] ss:$24 sps:$4 sm:$0xff]  }
 0x6af   :  { %6100 = vmatprep.subr.bf16.mxu1 %v17865_v19  ;;  %6751 = vmatprep.subr.bf16.mxu0 %v17868_v26  ;;  %v17908_v3 = vld [vmem:[#allocation7 + $0x130] ss:$24 sps:$4 sm:$0xff]   ;;  %v17913_v19 = vld [vmem:[#allocation7 + $0xfc] ss:$24 sps:$4 sm:$0xff]  }
 0x6b0   :  { %v17916_v26 = vld [vmem:[#allocation7 + $0x104] ss:$24 sps:$4 sm:$0xff]  }
 0x6b2   :  { %6101 = vmatpush2.bf16.msra.mxu1 %v17863_v9  ;;  %6752 = vmatpush2.bf16.msra.mxu0 %v17866_v20  ;;  %v17911_v9 = vld [vmem:[#allocation7 + $0xf8] ss:$24 sps:$4 sm:$0xff]  }
 0x6b3   :  { %6102 = vmatprep.subr.bf16.mxu1 %v17871_v10  ;;  %6753 = vmatprep.subr.bf16.mxu0 %v17874_v59  ;;  %v17914_v20 = vld [vmem:[#allocation7 + $0x100] ss:$24 sps:$4 sm:$0xff]   ;;  %v17922_v10 = vld [vmem:[#allocation7 + $0xd4] ss:$24 sps:$4 sm:$0xff]  }
 0x6b6   :  { %6103 = vmatpush2.bf16.msra.mxu1 %v17869_v58  ;;  %6754 = vmatpush2.bf16.msra.mxu0 %v17872_v6 }
 0x6b7   :  { %6104 = vmatprep.subr.bf16.mxu1 %v17877_v16  ;;  %6755 = vmatprep.subr.bf16.mxu0 %v17880_v51  ;;  %v17917_v16 = vld [vmem:[#allocation7 + $0xc8] ss:$24 sps:$4 sm:$0xff]  }
 0x6b8   :  { %v17920_v51 = vld [vmem:[#allocation7 + $0xd0] ss:$24 sps:$4 sm:$0xff]  }
 0x6ba   :  { %6105 = vmatpush2.bf16.msra.mxu1 %v17875_v54  ;;  %6756 = vmatpush2.bf16.msra.mxu0 %v17878_v63  ;;  %v17925_v54 = vld [vmem:[#allocation7 + $0x9c] ss:$24 sps:$4 sm:$0xff]  }
 0x6bb   :  { %6106 = vmatprep.subr.bf16.mxu1 %v17883_v18  ;;  %6757 = vmatprep.subr.bf16.mxu0 %v17886_v46  ;;  %v17928_v46 = vld [vmem:[#allocation7 + $0xa4] ss:$24 sps:$4 sm:$0xff]  }
 0x6be   :  { %6107 = vmatpush2.bf16.msra.mxu1 %v17881_v15  ;;  %6758 = vmatpush2.bf16.msra.mxu0 %v17884_v38 }
 0x6bf   :  { %6108 = vmatprep.subr.bf16.mxu1 %v17889_v28  ;;  %6759 = vmatprep.subr.bf16.mxu0 %v17892_v37 }
 0x6c2   :  { %6109 = vmatpush2.bf16.msra.mxu1 %v17887_v56  ;;  %6760 = vmatpush2.bf16.msra.mxu0 %v17890_v62  ;;  %v17923_v62 = vld [vmem:[#allocation7 + $0x98] ss:$24 sps:$4 sm:$0xff]  }
 0x6c3   :  { %6110 = vmatprep.subr.bf16.mxu1 %v17895_v47  ;;  %6761 = vmatprep.subr.bf16.mxu0 %v17898_v34  ;;  %v17926_v47 = vld [vmem:[#allocation7 + $0xa0] ss:$24 sps:$4 sm:$0xff]   ;;  %v17931_v34 = vld [vmem:[#allocation7 + $0x6c] ss:$24 sps:$4 sm:$0xff]  }
 0x6c6   :  { %6111 = vmatpush2.bf16.msra.mxu1 %v17893_v40  ;;  %6762 = vmatpush2.bf16.msra.mxu0 %v17896_v21 }
 0x6c7   :  { %6774 = vmatprep.subr.bf16.mxu1 %v17901_v25  ;;  %6817 = vmatprep.subr.bf16.mxu0 %v17904_v45  ;;  %v17934_v25 = vld [vmem:[#allocation7 + $0x74] ss:$24 sps:$4 sm:$0xff]  }
 0x6c9   :  { %6113 = vmatmul.mubr.bf16.vlgmr.msra.gmra.mxu1 %v20376_v50  ;;  %6764 = vmatmul.mubr.bf16.vlgmr.msra.gmra.mxu0 %v20336_v17  ;;  %v17919_v50 = vld [vmem:[#allocation7 + $0xcc] ss:$24 sps:$4 sm:$0xff]  }
 0x6ca   :  { %6775 = vmatpush1.bf16.msra.mxu1 %v17899_v44  ;;  %6806 = vmatprep.mubr.bf16.mxu1 %v20332_v29  ;;  %v17929_v44 = vld [vmem:[#allocation7 + $0x68] ss:$24 sps:$4 sm:$0xff]  }
 0x6cb   :  { %6818 = vmatpush1.bf16.msra.mxu0 %v17902_v33  ;;  %6849 = vmatprep.mubr.bf16.mxu0 %v20332_v29  ;;  %v17932_v33 = vld [vmem:[#allocation7 + $0x70] ss:$24 sps:$4 sm:$0xff]  }
 0x6cc   :  { %6776 = vmatprep.subr.bf16.mxu1 %v17907_v13  ;;  %6819 = vmatprep.subr.bf16.mxu0 %v17910_v12  ;;  %v17937_v13 = vld [vmem:[#allocation7 + $0x3c] ss:$24 sps:$4 sm:$0xff]  }
 0x6cd   :  { %v17940_v12 = vld [vmem:[#allocation7 + $0x44] ss:$24 sps:$4 sm:$0xff]  }
 0x6ce   :  { %6777 = vmatpush1.bf16.msra.mxu1 %v17905_v61  ;;  %v17935_v61 = vld [vmem:[#allocation7 + $0x38] ss:$24 sps:$4 sm:$0xff]  }
 0x6cf   :  { %6820 = vmatpush1.bf16.msra.mxu0 %v17908_v3  ;;  %6778 = vmatprep.subr.bf16.mxu1 %v17913_v19  ;;  %v17938_v3 = vld [vmem:[#allocation7 + $0x40] ss:$24 sps:$4 sm:$0xff]   ;;  %v17943_v19 = vld [vmem:[#allocation7 + $0xc] ss:$24 sps:$4 sm:$0xff]  }
 0x6d0   :  { %6821 = vmatprep.subr.bf16.mxu0 %v17916_v26  ;;  %v17946_v26 = vld [vmem:[#allocation7 + $0x14] ss:$24 sps:$4 sm:$0xff]  }
 0x6d1   :  { %v20385_v59 = vpop.xlane.xlu1 %4929 }
 0x6d2   :  { %6779 = vmatpush1.bf16.msra.mxu1 %v17911_v9  ;;  %v4935_v58 = vsub.f32 %v20358_v11, %v20385_v59  ;;  %v4936_v29 = vsub.f32 %v20362_v31, %v20385_v59  ;;  %v4937_v6 = vsub.f32 %v20360_v57, %v20385_v59  ;;  %v17941_v9 = vld [vmem:[#allocation7 + $0x8] ss:$24 sps:$4 sm:$0xff]  }
 0x6d3   :  { %6822 = vmatpush1.bf16.msra.mxu0 %v17914_v20  ;;  %6780 = vmatprep.subr.bf16.mxu1 %v17919_v50  ;;  %v17944_v50 = vld [vmem:[#allocation7 + $0x10] ss:$24 sps:$4 sm:$0xff]  }
 0x6d4   :  { %v4941_v63 = vmul.f32 1.442695, %v4935_v58  ;;  %v4943_v18 = vmul.f32 1.442695, %v4936_v29  ;;  %6823 = vmatprep.subr.bf16.mxu0 %v17922_v10  ;;  %v4945_v15 = vmul.f32 1.442695, %v4937_v6 }
 0x6d5   :  { %v20393_v38 = vpop.xlane.xlu0 %4933  ;;  %v17949_v10 = vld [vmem:[#allocation7 + $0x2dc] ss:$24 sps:$4 sm:$0xff]  }
 0x6d6   :  { %19427 = vpow2.f32 %v4941_v63  ;;  %6781 = vmatpush1.bf16.msra.mxu1 %v17917_v16  ;;  %v4938_v28 = vsub.f32 %v20366_v41, %v20393_v38  ;;  %v4939_v37 = vsub.f32 %v20371_v23, %v20393_v38  ;;  %v4940_v56 = vsub.f32 %v20368_v43, %v20393_v38  ;;  %v17952_v29 = vld [vmem:[#allocation7 + $0x2e4] ss:$24 sps:$4 sm:$0xff]   ;;  %v17950_v63 = vld [vmem:[#allocation7 + $0x2e0] ss:$24 sps:$4 sm:$0xff]  }
 0x6d7   :  { %19429 = vpow2.f32 %v4943_v18  ;;  %6824 = vmatpush1.bf16.msra.mxu0 %v17920_v51  ;;  %6782 = vmatprep.subr.bf16.mxu1 %v17925_v54  ;;  %v17947_v51 = vld [vmem:[#allocation7 + $0x2d8] ss:$24 sps:$4 sm:$0xff]  }
 0x6d8   :  { %v4947_v40 = vmul.f32 1.442695, %v4938_v28  ;;  %v4949_v21 = vmul.f32 1.442695, %v4939_v37  ;;  %6825 = vmatprep.subr.bf16.mxu0 %v17928_v46  ;;  %19431 = vpow2.f32 %v4945_v15  ;;  %v4951_v45 = vmul.f32 1.442695, %v4940_v56 }
 0x6d9   :  { %v17955_v46 = vld [vmem:[#allocation7 + $0x2ac] ss:$24 sps:$4 sm:$0xff]  }
 0x6da   :  { %19433 = vpow2.f32 %v4947_v40  ;;  %6783 = vmatpush1.bf16.msra.mxu1 %v17923_v62  ;;  %v17958_v28 = vld [vmem:[#allocation7 + $0x2b4] ss:$24 sps:$4 sm:$0xff]   ;;  %v17953_v62 = vld [vmem:[#allocation7 + $0x2a8] ss:$24 sps:$4 sm:$0xff]  }
 0x6db   :  { %19435 = vpow2.f32 %v4949_v21  ;;  %6826 = vmatpush1.bf16.msra.mxu0 %v17926_v47  ;;  %6784 = vmatprep.subr.bf16.mxu1 %v17931_v34  ;;  %v17956_v47 = vld [vmem:[#allocation7 + $0x2b0] ss:$24 sps:$4 sm:$0xff]   ;;  %v17961_v40 = vld [vmem:[#allocation7 + $0x27c] ss:$24 sps:$4 sm:$0xff]  }
 0x6dc   :  { %6827 = vmatprep.subr.bf16.mxu0 %v17934_v25  ;;  %19437 = vpow2.f32 %v4951_v45  ;;  %v17964_v21 = vld [vmem:[#allocation7 + $0x284] ss:$24 sps:$4 sm:$0xff]   ;;  %v17959_v25 = vld [vmem:[#allocation7 + $0x278] ss:$24 sps:$4 sm:$0xff]  }
 0x6dd   :  { %v17962_v45 = vld [vmem:[#allocation7 + $0x280] ss:$24 sps:$4 sm:$0xff]  }
 0x6de   :  { %6785 = vmatpush1.bf16.msra.mxu1 %v17929_v44  ;;  %v17967_v44 = vld [vmem:[#allocation7 + $0x24c] ss:$24 sps:$4 sm:$0xff]  }
 0x6df   :  { %6828 = vmatpush1.bf16.msra.mxu0 %v17932_v33  ;;  %6786 = vmatprep.subr.bf16.mxu1 %v17937_v13  ;;  %v17970_v33 = vld [vmem:[#allocation7 + $0x254] ss:$24 sps:$4 sm:$0xff]   ;;  %v17965_v13 = vld [vmem:[#allocation7 + $0x248] ss:$24 sps:$4 sm:$0xff]  }
 0x6e0   :  { %6829 = vmatprep.subr.bf16.mxu0 %v17940_v12  ;;  %v17968_v12 = vld [vmem:[#allocation7 + $0x250] ss:$24 sps:$4 sm:$0xff]  }
 0x6e2   :  { %6787 = vmatpush1.bf16.msra.mxu1 %v17935_v61  ;;  %v17973_v61 = vld [vmem:[#allocation7 + $0x21c] ss:$24 sps:$4 sm:$0xff]  }
 0x6e3   :  { %v19428_v20 = vpop.eup %19427  ;;  %6830 = vmatpush1.bf16.msra.mxu0 %v17938_v3  ;;  %6788 = vmatprep.subr.bf16.mxu1 %v17943_v19  ;;  %v17976_v3 = vld [vmem:[#allocation7 + $0x224] ss:$24 sps:$4 sm:$0xff]   ;;  %v17971_v19 = vld [vmem:[#allocation7 + $0x218] ss:$24 sps:$4 sm:$0xff]  }
 0x6e4   :  { %v19430_v58 = vpop.eup %19429  ;;  %6831 = vmatprep.subr.bf16.mxu0 %v17946_v26  ;;  %v17974_v26 = vld [vmem:[#allocation7 + $0x220] ss:$24 sps:$4 sm:$0xff]  }
 0x6e5   :  { %v4953_v6 = vadd.f32 %v19430_v58, %v19428_v20  ;;  %v19432_v16 = vpop.eup %19431  ;;  %v17982_v20 = vld [vmem:[#allocation7 + $0x1f4] ss:$24 sps:$4 sm:$0xff]  }
 0x6e6   :  { %6789 = vmatpush1.bf16.msra.mxu1 %v17941_v9  ;;  %v17979_v9 = vld [vmem:[#allocation7 + $0x1ec] ss:$24 sps:$4 sm:$0xff]   ;;  %v17985_v58 = vld [vmem:[#allocation7 + $0x1bc] ss:$24 sps:$4 sm:$0xff]  }
 0x6e7   :  { %v19434_v54 = vpop.eup %19433  ;;  %6832 = vmatpush1.bf16.msra.mxu0 %v17944_v50  ;;  %6790 = vmatprep.subr.bf16.mxu1 %v17949_v10  ;;  %v4954_v18 = vadd.f32 %v19432_v16, %v4953_v6  ;;  %v17977_v50 = vld [vmem:[#allocation7 + $0x1e8] ss:$24 sps:$4 sm:$0xff]   ;;  %v17983_v6 = vld [vmem:[#allocation7 + $0x1b8] ss:$24 sps:$4 sm:$0xff]  }
 0x6e8   :  { %v19436_v15 = vpop.eup %19435  ;;  %6833 = vmatprep.subr.bf16.mxu0 %v17952_v29  ;;  %v17980_v10 = vld [vmem:[#allocation7 + $0x1f0] ss:$24 sps:$4 sm:$0xff]   ;;  %v17988_v29 = vld [vmem:[#allocation7 + $0x1c4] ss:$24 sps:$4 sm:$0xff]   ;;  %v17986_v16 = vld [vmem:[#allocation7 + $0x1c0] ss:$24 sps:$4 sm:$0xff]  }
 0x6e9   :  { %4955 = vadd.xlane.f32.xlu1 %v4954_v18  ;;  %v4957_v37 = vadd.f32 %v19436_v15, %v19434_v54  ;;  %v19438_v56 = vpop.eup %19437  ;;  %v17994_v54 = vld [vmem:[#allocation7 + $0x194] ss:$24 sps:$4 sm:$0xff]   ;;  %v17992_v18 = vld [vmem:[#allocation7 + $0x190] ss:$24 sps:$4 sm:$0xff]  }
 0x6ea   :  { %6791 = vmatpush2.bf16.msra.mxu1 %v17947_v51  ;;  %v17991_v51 = vld [vmem:[#allocation7 + $0x18c] ss:$24 sps:$4 sm:$0xff]  }
 0x6eb   :  { %6834 = vmatpush2.bf16.msra.mxu0 %v17950_v63  ;;  %6792 = vmatprep.subr.bf16.mxu1 %v17955_v46  ;;  %v4958_v34 = vadd.f32 %v19438_v56, %v4957_v37  ;;  %v17989_v63 = vld [vmem:[#allocation7 + $0x188] ss:$24 sps:$4 sm:$0xff]   ;;  %v17997_v15 = vld [vmem:[#allocation8 + $0xac] ss:$12 sps:$4 sm:$0xff]   ;;  %v17998_v37 = vld [vmem:[#allocation8 + $0x90] ss:$12 sps:$4 sm:$0xff]  }
 0x6ec   :  { %6835 = vmatprep.subr.bf16.mxu0 %v17958_v28  ;;  %v17995_v46 = vld [vmem:[#allocation8 + $0xa8] ss:$12 sps:$4 sm:$0xff]  }
 0x6ed   :  { %4959 = vadd.xlane.f32.xlu0 %v4958_v34  ;;  %v18000_v28 = vld [vmem:[#allocation8 + $0x94] ss:$12 sps:$4 sm:$0xff]   ;;  %v18003_v56 = vld [vmem:[#allocation8 + $0x7c] ss:$12 sps:$4 sm:$0xff]  }
 0x6ee   :  { %6793 = vmatpush2.bf16.msra.mxu1 %v17953_v62  ;;  %v18001_v62 = vld [vmem:[#allocation8 + $0x78] ss:$12 sps:$4 sm:$0xff]   ;;  %v18004_v34 = vld [vmem:[#allocation8 + $0x60] ss:$12 sps:$4 sm:$0xff]  }
 0x6ef   :  { %6836 = vmatpush2.bf16.msra.mxu0 %v17956_v47  ;;  %6794 = vmatprep.subr.bf16.mxu1 %v17961_v40  ;;  %v18006_v47 = vld [vmem:[#allocation8 + $0x64] ss:$12 sps:$4 sm:$0xff]   ;;  %v18007_v40 = vld [vmem:[#allocation8 + $0x48] ss:$12 sps:$4 sm:$0xff]  }
 0x6f0   :  { %6837 = vmatprep.subr.bf16.mxu0 %v17964_v21  ;;  %v18009_v21 = vld [vmem:[#allocation8 + $0x4c] ss:$12 sps:$4 sm:$0xff]  }
 0x6f2   :  { %6795 = vmatpush2.bf16.msra.mxu1 %v17959_v25  ;;  %v18012_v25 = vld [vmem:[#allocation8 + $0x34] ss:$12 sps:$4 sm:$0xff]  }
 0x6f3   :  { %6838 = vmatpush2.bf16.msra.mxu0 %v17962_v45  ;;  %6796 = vmatprep.subr.bf16.mxu1 %v17967_v44  ;;  %v18015_v45 = vld [vmem:[#allocation8 + $0x1c] ss:$12 sps:$4 sm:$0xff]  }
 0x6f4   :  { %6839 = vmatprep.subr.bf16.mxu0 %v17970_v33  ;;  %v18022_v44 = vld [vmem:[#allocation8 + $0x170] ss:$12 sps:$4 sm:$0xff]   ;;  %v18013_v33 = vld [vmem:[#allocation8 + $0x18] ss:$12 sps:$4 sm:$0xff]  }
 0x6f6   :  { %6797 = vmatpush2.bf16.msra.mxu1 %v17965_v13  ;;  %v18023_v13 = vld [vmem:[#allocation8 + $0xb0] ss:$12 sps:$4 sm:$0xff]  }
 0x6f7   :  { %6840 = vmatpush2.bf16.msra.mxu0 %v17968_v12  ;;  %6798 = vmatprep.subr.bf16.mxu1 %v17973_v61  ;;  %v18018_v12 = vld [vmem:[#allocation8 + $0x4] ss:$12 sps:$4 sm:$0xff]  }
 0x6f8   :  { %6841 = vmatprep.subr.bf16.mxu0 %v17976_v3  ;;  %v18027_v61 = vld [vmem:[#allocation8 + $0x158] ss:$12 sps:$4 sm:$0xff]  }
 0x6f9   :  { %v18028_v3 = vld [vmem:[#allocation8 + $0x98] ss:$12 sps:$4 sm:$0xff]  }
 0x6fa   :  { %6799 = vmatpush2.bf16.msra.mxu1 %v17971_v19  ;;  %v18032_v19 = vld [vmem:[#allocation8 + $0x140] ss:$12 sps:$4 sm:$0xff]  }
 0x6fb   :  { %6842 = vmatpush2.bf16.msra.mxu0 %v17974_v26  ;;  %6800 = vmatprep.subr.bf16.mxu1 %v17979_v9  ;;  %v18016_v26 = vld [vmem:[#allocation8] ss:$12 sps:$4 sm:$0xff]  }
 0x6fc   :  { %6843 = vmatprep.subr.bf16.mxu0 %v17982_v20  ;;  %v18021_v9 = vld [vmem:[#allocation8 + $0x16c] ss:$12 sps:$4 sm:$0xff]  }
 0x6fd   :  { %v18033_v20 = vld [vmem:[#allocation8 + $0x80] ss:$12 sps:$4 sm:$0xff]  }
 0x6fe   :  { %6801 = vmatpush2.bf16.msra.mxu1 %v17977_v50  ;;  %v18037_v50 = vld [vmem:[#allocation8 + $0x128] ss:$12 sps:$4 sm:$0xff]  }
 0x6ff   :  { %6844 = vmatpush2.bf16.msra.mxu0 %v17980_v10  ;;  %6802 = vmatprep.subr.bf16.mxu1 %v17985_v58  ;;  %v18019_v10 = vld [vmem:[#allocation8 + $0x168] ss:$12 sps:$4 sm:$0xff]  }
 0x700   :  { %6845 = vmatprep.subr.bf16.mxu0 %v17988_v29  ;;  %v18026_v29 = vld [vmem:[#allocation8 + $0x154] ss:$12 sps:$4 sm:$0xff]  }
 0x702   :  { %6803 = vmatpush2.bf16.msra.mxu1 %v17983_v6  ;;  %v18038_v6 = vld [vmem:[#allocation8 + $0x68] ss:$12 sps:$4 sm:$0xff]  }
 0x703   :  { %6846 = vmatpush2.bf16.msra.mxu0 %v17986_v16  ;;  %6804 = vmatprep.subr.bf16.mxu1 %v17991_v51  ;;  %v18042_v16 = vld [vmem:[#allocation8 + $0x110] ss:$12 sps:$4 sm:$0xff]  }
 0x704   :  { %6847 = vmatprep.subr.bf16.mxu0 %v17994_v54  ;;  %v18024_v51 = vld [vmem:[#allocation8 + $0x150] ss:$12 sps:$4 sm:$0xff]  }
 0x706   :  { %6805 = vmatpush2.bf16.msra.mxu1 %v17989_v63  ;;  %v18031_v63 = vld [vmem:[#allocation8 + $0x13c] ss:$12 sps:$4 sm:$0xff]  }
 0x707   :  { %6848 = vmatpush2.bf16.msra.mxu0 %v17992_v18  ;;  %7283 = vmatprep.subr.bf16.mxu1 %v17997_v15  ;;  %v18043_v18 = vld [vmem:[#allocation8 + $0x50] ss:$12 sps:$4 sm:$0xff]   ;;  %v18029_v15 = vld [vmem:[#allocation8 + $0x138] ss:$12 sps:$4 sm:$0xff]  }
 0x708   :  { %16681 = vmatprep.subr.bf16.mxu0 %v18022_v44 }
 0x709   :  { %6807 = vmatmul.mubr.bf16.vlgmr.msra.gmra.mxu1 %v20336_v17 }
 0x70a   :  { %6850 = vmatmul.mubr.bf16.vlgmr.msra.gmra.mxu0 %v20336_v17  ;;  %7284 = vmatpush1.bf16.msra.mxu1 %v17995_v46  ;;  %v18010_v17 = vld [vmem:[#allocation8 + $0x30] ss:$12 sps:$4 sm:$0xff]   ;;  %v18047_v46 = vld [vmem:[#allocation8 + $0xf8] ss:$12 sps:$4 sm:$0xff]  }
 0x70b   :  { %7285 = vmatprep.subr.bf16.mxu1 %v18000_v28  ;;  %16682 = vmatpush3.bf16.msra.mxu0 %v18023_v13  ;;  %v18036_v28 = vld [vmem:[#allocation8 + $0x124] ss:$12 sps:$4 sm:$0xff]  }
 0x70c   :  { %16683 = vmatprep.subr.bf16.mxu0 %v18027_v61 }
 0x70e   :  { %7286 = vmatpush1.bf16.msra.mxu1 %v17998_v37  ;;  %v18048_v37 = vld [vmem:[#allocation8 + $0x38] ss:$12 sps:$4 sm:$0xff]  }
 0x70f   :  { %7287 = vmatprep.subr.bf16.mxu1 %v18003_v56  ;;  %16684 = vmatpush3.bf16.msra.mxu0 %v18028_v3  ;;  %v18052_v56 = vld [vmem:[#allocation8 + $0xe0] ss:$12 sps:$4 sm:$0xff]  }
 0x710   :  { %16685 = vmatprep.subr.bf16.mxu0 %v18032_v19 }
 0x712   :  { %7288 = vmatpush1.bf16.msra.mxu1 %v18001_v62  ;;  %v18034_v62 = vld [vmem:[#allocation8 + $0x120] ss:$12 sps:$4 sm:$0xff]  }
 0x713   :  { %7289 = vmatprep.subr.bf16.mxu1 %v18006_v47  ;;  %16686 = vmatpush3.bf16.msra.mxu0 %v18033_v20  ;;  %v18041_v47 = vld [vmem:[#allocation8 + $0x10c] ss:$12 sps:$4 sm:$0xff]   ;;  %v18051_v20 = vld [vmem:[#allocation8 + $0xdc] ss:$12 sps:$4 sm:$0xff]  }
 0x714   :  { %16687 = vmatprep.subr.bf16.mxu0 %v18037_v50 }
 0x716   :  { %7290 = vmatpush1.bf16.msra.mxu1 %v18004_v34  ;;  %v18053_v34 = vld [vmem:[#allocation8 + $0x20] ss:$12 sps:$4 sm:$0xff]  }
 0x717   :  { %7291 = vmatprep.subr.bf16.mxu1 %v18009_v21  ;;  %16688 = vmatpush3.bf16.msra.mxu0 %v18038_v6  ;;  %v18057_v21 = vld [vmem:[#allocation8 + $0xc8] ss:$12 sps:$4 sm:$0xff]  }
 0x718   :  { %16689 = vmatprep.subr.bf16.mxu0 %v18042_v16 }
 0x71a   :  { %7292 = vmatpush1.bf16.msra.mxu1 %v18007_v40 }
 0x71b   :  { %7293 = vmatprep.subr.bf16.mxu1 %v18012_v25  ;;  %16690 = vmatpush3.bf16.msra.mxu0 %v18043_v18  ;;  %v18039_v25 = vld [vmem:[#allocation8 + $0x108] ss:$12 sps:$4 sm:$0xff]   ;;  %v20421_v18 = vld [vmem:[%s20946_s5] sm:$0x3f] }
 0x71c   :  { %16691 = vmatprep.subr.bf16.mxu0 %v18047_v46 }
 0x71e   :  { %7294 = vmatpush1.bf16.msra.mxu1 %v18010_v17 }
 0x71f   :  { %7295 = vmatprep.subr.bf16.mxu1 %v18015_v45  ;;  %16692 = vmatpush3.bf16.msra.mxu0 %v18048_v37  ;;  %v18046_v45 = vld [vmem:[#allocation8 + $0xf4] ss:$12 sps:$4 sm:$0xff]   ;;  %v5491_v37 = vrot.slane %v20421_v18, %v20090_v30 }
 0x720   :  { %16693 = vmatprep.subr.bf16.mxu0 %v18052_v56  ;;  %v5487_v56 = vrot.slane %v20421_v18, %v20100_v8 }
 0x722   :  { %7296 = vmatpush1.bf16.msra.mxu1 %v18013_v33  ;;  %v18058_v33 = vld [vmem:[#allocation8 + $0x8] ss:$12 sps:$4 sm:$0xff]  }
 0x723   :  { %7297 = vmatprep.subr.bf16.mxu1 %v18018_v12  ;;  %16694 = vmatpush3.bf16.msra.mxu0 %v18053_v34  ;;  %v18061_v12 = vld [vmem:[#allocation2 + $0x74] ss:$8 sps:$4 sm:$0xff]  }
 0x724   :  { %16695 = vmatprep.subr.bf16.mxu0 %v18057_v21 }
 0x726   :  { %7298 = vmatpush1.bf16.msra.mxu1 %v18016_v26 }
 0x727   :  { %7299 = vmatprep.subr.bf16.mxu1 %v18021_v9  ;;  %v18044_v9 = vld [vmem:[#allocation8 + $0xf0] ss:$12 sps:$4 sm:$0xff]   ;;  %16696 = vmatpush3.bf16.msra.mxu0 %v18058_v33 }
 0x728   :  { %7738 = vmatprep.subr.bf16.mxu0 %v18061_v12 }
 0x72a   :  { %7300 = vmatpush2.bf16.msra.mxu1 %v18019_v10  ;;  %v18056_v10 = vld [vmem:[#allocation8 + $0xc4] ss:$12 sps:$4 sm:$0xff]  }
 0x72b   :  { %7301 = vmatprep.subr.bf16.mxu1 %v18026_v29  ;;  %v18064_v29 = vld [vmem:[#allocation2 + $0x174] ss:$8 sps:$4 sm:$0xff]  }
 0x72e   :  { %7302 = vmatpush2.bf16.msra.mxu1 %v18024_v51 }
 0x72f   :  { %7303 = vmatprep.subr.bf16.mxu1 %v18031_v63 }
 0x732   :  { %7304 = vmatpush2.bf16.msra.mxu1 %v18029_v15 }
 0x733   :  { %7305 = vmatprep.subr.bf16.mxu1 %v18036_v28 }
 0x736   :  { %7306 = vmatpush2.bf16.msra.mxu1 %v18034_v62 }
 0x737   :  { %7307 = vmatprep.subr.bf16.mxu1 %v18041_v47 }
 0x73a   :  { %7308 = vmatpush2.bf16.msra.mxu1 %v18039_v25 }
 0x73b   :  { %7309 = vmatprep.subr.bf16.mxu1 %v18046_v45 }
 0x73e   :  { %7310 = vmatpush2.bf16.msra.mxu1 %v18044_v9 }
 0x73f   :  { %7311 = vmatprep.subr.bf16.mxu1 %v18051_v20 }
 0x772   :  { %v4956_v58 = vpop.xlane.xlu1 %4955 }
 0x773   :  { %19439 = vlog2.f32 %v4956_v58  ;;  %v18054_v58 = vld [vmem:[#allocation8 + $0xc0] ss:$12 sps:$4 sm:$0xff]  }
 0x776   :  { %v4960_v54 = vpop.xlane.xlu0 %4959 }
 0x777   :  { %19441 = vlog2.f32 %v4960_v54  ;;  %v20416_v54 = vld [vmem:[%s20947_s6] sm:$0x3f] }
 0x778   :  { %v6228_v46 = vrot.slane %v20416_v54, %v20090_v30  ;;  %v6224_v15 = vrot.slane %v20416_v54, %v20100_v8 }
 0x780   :  { %v19440_v40 = vpop.eup %19439 }
 0x781   :  { %v4962_v17 = vmul.f32 0.6931472, %v19440_v40 }
 0x783   :  { %v4965_v44 = vadd.f32 %v4962_v17, %v20385_v59 }
 0x784   :  { %v19442_v13 = vpop.eup %19441 }
 0x785   :  { %v4967_v61 = vsub.f32 %v20358_v11, %v4965_v44  ;;  %v4968_v3 = vsub.f32 %v20362_v31, %v4965_v44  ;;  %v4969_v19 = vsub.f32 %v20360_v57, %v4965_v44  ;;  %v4964_v26 = vmul.f32 0.6931472, %v19442_v13  ;;  %v18049_v57 = vld [vmem:[#allocation8 + $0xd8] ss:$12 sps:$4 sm:$0xff]  }
 0x786   :  { %7312 = vmatpush2.bf16.msra.mxu1 %v18049_v57 }
 0x787   :  { %4974 = vst [vmem:[#allocation10 + $0x30] sm:$0xff] %v4967_v61  ;;  %4975 = vst [vmem:[#allocation10 + $0x38] sm:$0xff] %v4968_v3  ;;  %v4966_v59 = vadd.f32 %v4964_v26, %v20393_v38  ;;  %7313 = vmatprep.subr.bf16.mxu1 %v18056_v10  ;;  %v6071_v38 = vpop.f32.mrf.mxu0  ;;  %v5495_v10 = vrot.slane %v20421_v18, %v20118_v48 }
 0x788   :  { %4976 = vst [vmem:[#allocation10 + $0x40] sm:$0xff] %v4969_v19 }
 0x789   :  { %v4970_v50 = vsub.f32 %v20366_v41, %v4966_v59  ;;  %v4971_v11 = vsub.f32 %v20371_v23, %v4966_v59  ;;  %v4972_v31 = vsub.f32 %v20368_v43, %v4966_v59  ;;  %v6073_v6 = vpop.f32.mrf.mxu0  ;;  %v6028_v43 = vpop.f32.mrf.mxu1 }
 0x78a   :  { %7314 = vmatpush2.bf16.msra.mxu1 %v18054_v58  ;;  %v6029_v25 = vadd.f32 %v6028_v43, %v5487_v56  ;;  %v6232_v58 = vrot.slane %v20416_v54, %v20118_v48 }
 0x78b   :  { %4977 = vst [vmem:[#allocation10 + $0x48] sm:$0xff] %v4970_v50  ;;  %4978 = vst [vmem:[#allocation10 + $0x50] sm:$0xff] %v4971_v11  ;;  %7781 = vmatprep.subr.bf16.mxu1 %v18064_v29  ;;  %v6075_v41 = vpop.f32.mrf.mxu0  ;;  %v6030_v63 = vpop.f32.mrf.mxu1 }
 0x78c   :  { %4979 = vst [vmem:[#allocation10 + $0x58] sm:$0xff] %v4972_v31  ;;  %v6031_v21 = vadd.f32 %v6030_v63, %v5491_v37  ;;  %v6236_v63 = vrot.slane %v20416_v54, %v20123_v49 }
 0x78d   :  { %v20411_v16 = vpop.f32.mrf.mxu0  ;;  %v6032_v62 = vpop.f32.mrf.mxu1 }
 0x78e   :  { %v6033_v44 = vadd.f32 %v6032_v62, %v5487_v56 }
 0x78f   :  { %v6765_v23 = vpop.f32.mrf.mxu0  ;;  %v6034_v45 = vpop.f32.mrf.mxu1 }
 0x790   :  { %v6766_v34 = vadd.f32 %v6765_v23, %v6224_v15  ;;  %v6035_v61 = vadd.f32 %v6034_v45, %v5491_v37  ;;  %v6072_v37 = vadd.f32 %v6071_v38, %v5495_v10 }
 0x791   :  { %v6767_v51 = vpop.f32.mrf.mxu0  ;;  %v20431_v50 = vpop.f32.mrf.mxu1 }
 0x792   :  { %v6768_v47 = vadd.f32 %v6767_v51, %v6228_v46  ;;  %v6860_v12 = vadd.f32 %v6766_v34, %v6029_v25  ;;  %v5499_v51 = vrot.slane %v20421_v18, %v20123_v49  ;;  %v6076_v25 = vadd.f32 %v6075_v41, %v5495_v10 }
 0x793   :  { %v6769_v28 = vpop.f32.mrf.mxu0  ;;  %v6116_v11 = vpop.f32.mrf.mxu1 }
 0x794   :  { %v6770_v17 = vadd.f32 %v6769_v28, %v6224_v15  ;;  %v6861_v33 = vadd.f32 %v6768_v47, %v6031_v21  ;;  %v15651_v9 = vmul.f32 -1.442695, %v6860_v12 }
 0x795   :  { %v6771_v40 = vpop.f32.mrf.mxu0  ;;  %v20433_v31 = vpop.f32.mrf.mxu1 }
 0x796   :  { %v6772_v13 = vadd.f32 %v6771_v40, %v6228_v46  ;;  %v6862_v3 = vadd.f32 %v6770_v17, %v6033_v44  ;;  %v15652_v19 = vmul.f32 -1.442695, %v6861_v33  ;;  %v6074_v40 = vadd.f32 %v6073_v6, %v5499_v51 }
 0x797   :  { %v20439_v23 = vpop.f32.mrf.mxu1 }
 0x798   :  { %v6863_v26 = vadd.f32 %v6772_v13, %v6035_v61  ;;  %v15653_v20 = vmul.f32 -1.442695, %v6862_v3  ;;  %19443 = vpow2.f32 %v15652_v19  ;;  %v6078_v3 = vadd.f32 %v20411_v16, %v5499_v51 }
 0x799   :  { %19445 = vpow2.f32 %v15651_v9  ;;  %v6240_v16 = vrot.slane %v20416_v54, %v20143_v39 }
 0x79a   :  { %v15654_v59 = vmul.f32 -1.442695, %v6863_v26  ;;  %19447 = vpow2.f32 %v15653_v20 }
 0x79c   :  { %19449 = vpow2.f32 %v15654_v59  ;;  %v6244_v59 = vrot.slane %v20416_v54, %v20138_v22 }
 0x7a5   :  { %v19444_v57 = vpop.eup %19443 }
 0x7a6   :  { %v19446_v29 = vpop.eup %19445  ;;  %v6877_v46 = vadd.f32 1.0, %v19444_v57 }
 0x7a7   :  { %v19448_v43 = vpop.eup %19447  ;;  %v6876_v56 = vadd.f32 1.0, %v19446_v29  ;;  %v5507_v29 = vrot.slane %v20421_v18, %v20138_v22 }
 0x7a8   :  { %v6878_v47 = vadd.f32 1.0, %v19448_v43  ;;  %19451 = vrcp.f32 %v6877_v46 }
 0x7a9   :  { %v19450_v28 = vpop.eup %19449  ;;  %19453 = vrcp.f32 %v6876_v56 }
 0x7aa   :  { %v6879_v45 = vadd.f32 1.0, %v19450_v28  ;;  %19455 = vrcp.f32 %v6878_v47  ;;  %v5503_v47 = vrot.slane %v20421_v18, %v20143_v39 }
 0x7c9   :  { %v6808_v15 = vpop.f32.mrf.mxu1 }
 0x7ca   :  { %v6809_v62 = vadd.f32 %v6808_v15, %v6232_v58  ;;  %v6851_v44 = vpop.f32.mrf.mxu0 }
 0x7cb   :  { %v6810_v34 = vpop.f32.mrf.mxu1  ;;  %v6852_v15 = vadd.f32 %v6851_v44, %v6240_v16  ;;  %v6115_v44 = vadd.f32 %v20431_v50, %v5503_v47 }
 0x7cc   :  { %v6888_v21 = vadd.f32 %v6809_v62, %v6072_v37  ;;  %v6811_v17 = vadd.f32 %v6810_v34, %v6236_v63  ;;  %v6853_v6 = vpop.f32.mrf.mxu0  ;;  %v6117_v34 = vadd.f32 %v6116_v11, %v5507_v29 }
 0x7cd   :  { %v6812_v33 = vpop.f32.mrf.mxu1 }
 0x7ce   :  { %v15655_v13 = vmul.f32 -1.442695, %v6888_v21  ;;  %v6889_v12 = vadd.f32 %v6811_v17, %v6074_v40  ;;  %v6813_v61 = vadd.f32 %v6812_v33, %v6232_v58  ;;  %v6855_v10 = vpop.f32.mrf.mxu0  ;;  %v6854_v58 = vadd.f32 %v6853_v6, %v6244_v59 }
 0x7cf   :  { %v6814_v38 = vpop.f32.mrf.mxu1  ;;  %v6856_v43 = vadd.f32 %v6855_v10, %v6240_v16 }
 0x7d0   :  { %19457 = vpow2.f32 %v15655_v13  ;;  %v15656_v19 = vmul.f32 -1.442695, %v6889_v12  ;;  %v6890_v26 = vadd.f32 %v6813_v61, %v6076_v25  ;;  %v6815_v9 = vadd.f32 %v6814_v38, %v6236_v63  ;;  %v6857_v51 = vpop.f32.mrf.mxu0  ;;  %v19452_v63 = vpop.eup %19451 }
 0x7d1   :  { %19459 = vrcp.f32 %v6879_v45  ;;  %v19454_v46 = vpop.eup %19453  ;;  %v6917_v28 = vmul.f32 %v19452_v63, %v6854_v58  ;;  %v6858_v56 = vadd.f32 %v6857_v51, %v6244_v59  ;;  %v6119_v25 = vadd.f32 %v20433_v31, %v5503_v47 }
 0x7d2   :  { %19461 = vpow2.f32 %v15656_v19  ;;  %v15657_v41 = vmul.f32 -1.442695, %v6890_v26  ;;  %v6891_v20 = vadd.f32 %v6815_v9, %v6078_v3  ;;  %v19456_v37 = vpop.eup %19455  ;;  %v6916_v45 = vmul.f32 %v19454_v46, %v6852_v15 }
 0x7d3   :  { %v6918_v40 = vmul.f32 %v19456_v37, %v6856_v43  ;;  %v6921_v33 = vadd.f32 %v6917_v28, %v6117_v34  ;;  %v6121_v38 = vadd.f32 %v20439_v23, %v5507_v29 }
 0x7d4   :  { %19463 = vpow2.f32 %v15657_v41  ;;  %v15658_v57 = vmul.f32 -1.442695, %v6891_v20  ;;  %v6920_v19 = vadd.f32 %v6916_v45, %v6115_v44  ;;  %v18073_v45 = vld [vmem:[#allocation2 + $0x54] ss:$8 sps:$4 sm:$0xff]   ;;  %v18082_v44 = vld [vmem:[#allocation2 + $0x144] ss:$8 sps:$4 sm:$0xff]  }
 0x7d5   :  { %v6922_v3 = vadd.f32 %v6918_v40, %v6119_v25  ;;  %v18068_v25 = vld [vmem:[#allocation2 + $0x160] ss:$8 sps:$4 sm:$0xff]  }
 0x7d6   :  { %19465 = vpow2.f32 %v15658_v57 }
 0x7dd   :  { %v19458_v62 = vpop.eup %19457 }
 0x7de   :  { %v19460_v21 = vpop.eup %19459  ;;  %v6904_v54 = vadd.f32 1.0, %v19458_v62 }
 0x7df   :  { %v19462_v17 = vpop.eup %19461  ;;  %v6919_v12 = vmul.f32 %v19460_v21, %v6858_v56 }
 0x7e0   :  { %v6905_v13 = vadd.f32 1.0, %v19462_v17  ;;  %19467 = vrcp.f32 %v6904_v54  ;;  %v18062_v54 = vld [vmem:[#allocation2 + $0x170] ss:$8 sps:$4 sm:$0xff]   ;;  %v18065_v17 = vld [vmem:[#allocation2 + $0x60] ss:$8 sps:$4 sm:$0xff]  }
 0x7e1   :  { %v19464_v61 = vpop.eup %19463  ;;  %v6923_v9 = vadd.f32 %v6919_v12, %v6121_v38  ;;  %v18074_v12 = vld [vmem:[#allocation2 + $0x150] ss:$8 sps:$4 sm:$0xff]   ;;  %v18080_v38 = vld [vmem:[#allocation2 + $0x140] ss:$8 sps:$4 sm:$0xff]  }
 0x7e2   :  { %19469 = vrcp.f32 %v6905_v13  ;;  %v6906_v18 = vadd.f32 1.0, %v19464_v61  ;;  %v18071_v13 = vld [vmem:[#allocation2 + $0x50] ss:$8 sps:$4 sm:$0xff]   ;;  %v18079_v61 = vld [vmem:[#allocation2 + $0x44] ss:$8 sps:$4 sm:$0xff]  }
 0x7e3   :  { %v19466_v11 = vpop.eup %19465  ;;  %19471 = vtanh.f32 %v6921_v33  ;;  %v18076_v33 = vld [vmem:[#allocation2 + $0x154] ss:$8 sps:$4 sm:$0xff]  }
 0x7e4   :  { %19473 = vrcp.f32 %v6906_v18  ;;  %v6907_v26 = vadd.f32 1.0, %v19466_v11  ;;  %v18088_v18 = vld [vmem:[#allocation2 + $0x134] ss:$8 sps:$4 sm:$0xff]   ;;  %v18083_v11 = vld [vmem:[#allocation2 + $0x30] ss:$8 sps:$4 sm:$0xff]  }
 0x7e5   :  { %19475 = vtanh.f32 %v6922_v3  ;;  %v18077_v3 = vld [vmem:[#allocation2 + $0x40] ss:$8 sps:$4 sm:$0xff]  }
 0x7e6   :  { %19477 = vrcp.f32 %v6907_v26  ;;  %v18091_v26 = vld [vmem:[#allocation2 + $0x24] ss:$8 sps:$4 sm:$0xff]  }
 0x7e7   :  { %19479 = vtanh.f32 %v6920_v19  ;;  %v18086_v19 = vld [vmem:[#allocation2 + $0x130] ss:$8 sps:$4 sm:$0xff]  }
 0x7e8   :  { %19481 = vtanh.f32 %v6923_v9  ;;  %v18094_v9 = vld [vmem:[#allocation2 + $0x124] ss:$8 sps:$4 sm:$0xff]  }
 0x7ed   :  { %v19468_v31 = vpop.eup %19467 }
 0x7ee   :  { %v6928_v59 = vsub.f32 1.0, %v19468_v31  ;;  %v6936_v56 = vmul.f32 %v19468_v31, %v20328_v60  ;;  %v18070_v60 = vld [vmem:[#allocation2 + $0x164] ss:$8 sps:$4 sm:$0xff]   ;;  %v18089_v31 = vld [vmem:[#allocation2 + $0x20] ss:$8 sps:$4 sm:$0xff]  }
 0x7ef   :  { %v19470_v6 = vpop.eup %19469 }
 0x7f0   :  { %v19472_v41 = vpop.eup %19471  ;;  %v6929_v50 = vsub.f32 1.0, %v19470_v6  ;;  %v6937_v28 = vmul.f32 %v19470_v6, %v20324_v53  ;;  %v18092_v6 = vld [vmem:[#allocation2 + $0x120] ss:$8 sps:$4 sm:$0xff]  }
 0x7f1   :  { %v19474_v20 = vpop.eup %19473 }
 0x7f2   :  { %v19476_v57 = vpop.eup %19475  ;;  %v6930_v23 = vsub.f32 1.0, %v19474_v20  ;;  %v6933_v29 = vmul.f32 %v19472_v41, %v6929_v50  ;;  %v6938_v46 = vmul.f32 %v19474_v20, %v20322_v52  ;;  %v18059_v52 = vld [vmem:[#allocation2 + $0x70] ss:$8 sps:$4 sm:$0xff]   ;;  %v18097_v41 = vld [vmem:[#allocation2 + $0x14] ss:$8 sps:$4 sm:$0xff]  }
 0x7f3   :  { %v19478_v10 = vpop.eup %19477  ;;  %v18100_v50 = vld [vmem:[#allocation2 + $0x114] ss:$8 sps:$4 sm:$0xff]   ;;  %v18095_v20 = vld [vmem:[#allocation2 + $0x10] ss:$8 sps:$4 sm:$0xff]  }
 0x7f4   :  { %v19480_v16 = vpop.eup %19479  ;;  %v6931_v58 = vsub.f32 1.0, %v19478_v10  ;;  %v6934_v43 = vmul.f32 %v19476_v57, %v6930_v23  ;;  %v6939_v37 = vmul.f32 %v19478_v10, %v20326_v7  ;;  %v20463_v47 = vadd.f32 %v6937_v28, %v6933_v29  ;;  %v18067_v7 = vld [vmem:[#allocation2 + $0x64] ss:$8 sps:$4 sm:$0xff]   ;;  %v18101_v10 = vld [vmem:[#allocation2] ss:$8 sps:$4 sm:$0xff]  }
 0x7f5   :  { %v19482_v51 = vpop.eup %19481  ;;  %v6932_v63 = vmul.f32 %v19480_v16, %v6928_v59  ;;  %v18098_v59 = vld [vmem:[#allocation2 + $0x110] ss:$8 sps:$4 sm:$0xff]   ;;  %v18103_v57 = vld [vmem:[#allocation2 + $0x4] ss:$8 sps:$4 sm:$0xff]   ;;  %v18104_v16 = vld [vmem:[#allocation2 + $0x100] ss:$8 sps:$4 sm:$0xff]  }
 0x7f6   :  { %v6935_v15 = vmul.f32 %v19482_v51, %v6931_v58  ;;  %v20461_v62 = vadd.f32 %v6938_v46, %v6934_v43  ;;  %v18106_v23 = vld [vmem:[#allocation2 + $0x104] ss:$8 sps:$4 sm:$0xff]   ;;  %v18109_v58 = vld [vmem:[#allocation2 + $0xf4] ss:$8 sps:$4 sm:$0xff]   ;;  %v18107_v29 = vld [vmem:[#allocation2 + $0xf0] ss:$8 sps:$4 sm:$0xff]  }
 0x7f7   :  { %v20467_v40 = vadd.f32 %v6936_v56, %v6932_v63  ;;  %v18112_v43 = vld [vmem:[#allocation2 + $0xe4] ss:$8 sps:$4 sm:$0xff]   ;;  %v18110_v51 = vld [vmem:[#allocation2 + $0xe0] ss:$8 sps:$4 sm:$0xff]   ;;  %v18115_v63 = vld [vmem:[#allocation2 + $0xd4] ss:$8 sps:$4 sm:$0xff]  }
 0x7f8   :  { %v20465_v34 = vadd.f32 %v6939_v37, %v6935_v15  ;;  %v18113_v46 = vld [vmem:[#allocation2 + $0xd0] ss:$8 sps:$4 sm:$0xff]   ;;  %v18118_v15 = vld [vmem:[#allocation2 + $0xc4] ss:$8 sps:$4 sm:$0xff]   ;;  %v18116_v28 = vld [vmem:[#allocation2 + $0xc0] ss:$8 sps:$4 sm:$0xff]  }
 0x7f9   :  { %v20475_v53 = vpack.c.bf16 %v20461_v62, %v20467_v40  ;;  %v18121_v37 = vld [vmem:[#allocation2 + $0xb4] ss:$8 sps:$4 sm:$0xff]   ;;  %v18119_v56 = vld [vmem:[#allocation2 + $0xb0] ss:$8 sps:$4 sm:$0xff]  }
 0x7fa   :  { %v20471_v21 = vpack.c.bf16 %v20465_v34, %v20463_v47 }
 0x7fc   :  { %7315 = vmatprep.mubr.bf16.mxu1 %v20471_v21  ;;  %7358 = vmatprep.mubr.bf16.mxu0 %v20471_v21 }
 0x7fd   :  { %7316 = vmatmul.mubr.bf16.vlgmr.msra.gmra.mxu1 %v20475_v53  ;;  %7359 = vmatmul.mubr.bf16.vlgmr.msra.gmra.mxu0 %v20475_v53 }
 0x7fe   :  { %7739 = vmatpush1.bf16.msra.mxu0 %v18059_v52  ;;  %7782 = vmatpush1.bf16.msra.mxu1 %v18062_v54  ;;  %v18124_v52 = vld [vmem:[#allocation2 + $0xa4] ss:$8 sps:$4 sm:$0xff]   ;;  %v18122_v54 = vld [vmem:[#allocation2 + $0xa0] ss:$8 sps:$4 sm:$0xff]  }
 0x7ff   :  { %15764 = vmatprep.mubr.msk.bf16.mxu0 %vm20060_vm9, %v19812_v14  ;;  %7740 = vmatprep.subr.bf16.mxu0 %v18067_v7  ;;  %v18125_v7 = vld [vmem:[#allocation2 + $0x90] ss:$8 sps:$4 sm:$0xff]   ;;  %vm12309_vm9 = vcmp.eq.s32.totalorder %v19930_v1, %v20242_v42 }
 0x800   :  { %7783 = vmatprep.subr.bf16.mxu1 %v18070_v60  ;;  %7813 = vmatprep.mubr.bf16.mxu1 %v19811_v0  ;;  %v18130_v60 = vld [vmem:[#allocation2 + $0x84] ss:$8 sps:$4 sm:$0xff]   ;;  %v18991_v1 = vld [vmem:[#allocation5 + $0xf0] ss:$24 sps:$4 sm:$0xff]  }
 0x802   :  { %7741 = vmatpush1.bf16.msra.mxu0 %v18065_v17  ;;  %7784 = vmatpush1.bf16.msra.mxu1 %v18068_v25  ;;  %v18128_v17 = vld [vmem:[#allocation2 + $0x80] ss:$8 sps:$4 sm:$0xff]  }
 0x803   :  { %7742 = vmatprep.subr.bf16.mxu0 %v18073_v45  ;;  %7785 = vmatprep.subr.bf16.mxu1 %v18076_v33  ;;  %v18131_v25 = vld [vmem:[#allocation5 + $0x150] ss:$24 sps:$4 sm:$0xff]   ;;  %v18133_v45 = vld [vmem:[#allocation5 + $0x154] ss:$24 sps:$4 sm:$0xff]  }
 0x804   :  { %v18134_v33 = vld [vmem:[#allocation5 + $0x158] ss:$24 sps:$4 sm:$0xff]  }
 0x806   :  { %7743 = vmatpush1.bf16.msra.mxu0 %v18071_v13  ;;  %7786 = vmatpush1.bf16.msra.mxu1 %v18074_v12  ;;  %v18136_v13 = vld [vmem:[#allocation5 + $0x15c] ss:$24 sps:$4 sm:$0xff]  }
 0x807   :  { %7744 = vmatprep.subr.bf16.mxu0 %v18079_v61  ;;  %7787 = vmatprep.subr.bf16.mxu1 %v18082_v44  ;;  %v18139_v12 = vld [vmem:[#allocation5 + $0x124] ss:$24 sps:$4 sm:$0xff]   ;;  %v18137_v61 = vld [vmem:[#allocation5 + $0x120] ss:$24 sps:$4 sm:$0xff]  }
 0x808   :  { %v18142_v44 = vld [vmem:[#allocation5 + $0x12c] ss:$24 sps:$4 sm:$0xff]  }
 0x80a   :  { %7745 = vmatpush1.bf16.msra.mxu0 %v18077_v3  ;;  %7788 = vmatpush1.bf16.msra.mxu1 %v18080_v38  ;;  %v18140_v3 = vld [vmem:[#allocation5 + $0x128] ss:$24 sps:$4 sm:$0xff]   ;;  %v18145_v38 = vld [vmem:[#allocation5 + $0xf4] ss:$24 sps:$4 sm:$0xff]  }
 0x80b   :  { %7746 = vmatprep.subr.bf16.mxu0 %v18085_v36  ;;  %7789 = vmatprep.subr.bf16.mxu1 %v18088_v18  ;;  %v18143_v36 = vld [vmem:[#allocation5 + $0xf0] ss:$24 sps:$4 sm:$0xff]   ;;  %v18148_v18 = vld [vmem:[#allocation5 + $0xfc] ss:$24 sps:$4 sm:$0xff]  }
 0x80e   :  { %7747 = vmatpush1.bf16.msra.mxu0 %v18083_v11  ;;  %7790 = vmatpush1.bf16.msra.mxu1 %v18086_v19  ;;  %v18151_v11 = vld [vmem:[#allocation5 + $0xc4] ss:$24 sps:$4 sm:$0xff]  }
 0x80f   :  { %7748 = vmatprep.subr.bf16.mxu0 %v18091_v26  ;;  %7791 = vmatprep.subr.bf16.mxu1 %v18094_v9  ;;  %v18154_v19 = vld [vmem:[#allocation5 + $0xcc] ss:$24 sps:$4 sm:$0xff]   ;;  %v18149_v26 = vld [vmem:[#allocation5 + $0xc0] ss:$24 sps:$4 sm:$0xff]  }
 0x810   :  { %v18152_v9 = vld [vmem:[#allocation5 + $0xc8] ss:$24 sps:$4 sm:$0xff]  }
 0x812   :  { %7749 = vmatpush1.bf16.msra.mxu0 %v18089_v31  ;;  %7792 = vmatpush1.bf16.msra.mxu1 %v18092_v6  ;;  %v18157_v31 = vld [vmem:[#allocation5 + $0x94] ss:$24 sps:$4 sm:$0xff]  }
 0x813   :  { %7750 = vmatprep.subr.bf16.mxu0 %v18097_v41  ;;  %7793 = vmatprep.subr.bf16.mxu1 %v18100_v50  ;;  %v18160_v6 = vld [vmem:[#allocation5 + $0x9c] ss:$24 sps:$4 sm:$0xff]   ;;  %v18155_v41 = vld [vmem:[#allocation5 + $0x90] ss:$24 sps:$4 sm:$0xff]  }
 0x814   :  { %v18158_v50 = vld [vmem:[#allocation5 + $0x98] ss:$24 sps:$4 sm:$0xff]  }
 0x816   :  { %7751 = vmatpush1.bf16.msra.mxu0 %v18095_v20  ;;  %7794 = vmatpush1.bf16.msra.mxu1 %v18098_v59  ;;  %v18163_v20 = vld [vmem:[#allocation5 + $0x64] ss:$24 sps:$4 sm:$0xff]  }
 0x817   :  { %7752 = vmatprep.subr.bf16.mxu0 %v18103_v57  ;;  %7795 = vmatprep.subr.bf16.mxu1 %v18106_v23  ;;  %v18166_v59 = vld [vmem:[#allocation5 + $0x6c] ss:$24 sps:$4 sm:$0xff]   ;;  %v18161_v57 = vld [vmem:[#allocation5 + $0x60] ss:$24 sps:$4 sm:$0xff]  }
 0x818   :  { %v18164_v23 = vld [vmem:[#allocation5 + $0x68] ss:$24 sps:$4 sm:$0xff]  }
 0x81a   :  { %7753 = vmatpush1.bf16.msra.mxu0 %v18101_v10  ;;  %7796 = vmatpush1.bf16.msra.mxu1 %v18104_v16  ;;  %v18167_v10 = vld [vmem:[#allocation5 + $0x30] ss:$24 sps:$4 sm:$0xff]   ;;  %v18169_v16 = vld [vmem:[#allocation5 + $0x34] ss:$24 sps:$4 sm:$0xff]  }
 0x81b   :  { %7754 = vmatprep.subr.bf16.mxu0 %v18109_v58  ;;  %8434 = vmatprep.subr.bf16.mxu1 %v18133_v45  ;;  %v18170_v58 = vld [vmem:[#allocation5 + $0x38] ss:$24 sps:$4 sm:$0xff]  }
 0x81c   :  { %v18194_v45 = vld [vmem:[#allocation5 + $0x278] ss:$24 sps:$4 sm:$0xff]  }
 0x81d   :  { %15768 = vmatmul.mubr.msk.bf16.vlgmr.msra.gmra.mxu1 %vm19997_vm8, %v19812_v14  ;;  %vm12314_vm8 = vcmp.eq.s32.totalorder %v19938_v5, %v20244_v2  ;;  %v18988_v2 = vld [vmem:[#allocation5 + $0x128] ss:$24 sps:$4 sm:$0xff]  }
 0x81e   :  { %7755 = vmatpush2.bf16.msra.mxu0 %v18107_v29  ;;  %8435 = vmatpush1.bf16.msra.mxu1 %v18131_v25  ;;  %v18172_v29 = vld [vmem:[#allocation5 + $0x3c] ss:$24 sps:$4 sm:$0xff]   ;;  %v18191_v25 = vld [vmem:[#allocation5 + $0x270] ss:$24 sps:$4 sm:$0xff]  }
 0x81f   :  { %7756 = vmatprep.subr.bf16.mxu0 %v18112_v43  ;;  %8436 = vmatprep.subr.bf16.mxu1 %v18139_v12  ;;  %v18173_v43 = vld [vmem:[#allocation5] ss:$24 sps:$4 sm:$0xff]  }
 0x820   :  { %v18197_v12 = vld [vmem:[#allocation5 + $0x240] ss:$24 sps:$4 sm:$0xff]  }
 0x822   :  { %7757 = vmatpush2.bf16.msra.mxu0 %v18110_v51  ;;  %8437 = vmatpush1.bf16.msra.mxu1 %v18137_v61  ;;  %v18175_v51 = vld [vmem:[#allocation5 + $0x4] ss:$24 sps:$4 sm:$0xff]   ;;  %v18200_v61 = vld [vmem:[#allocation5 + $0x248] ss:$24 sps:$4 sm:$0xff]  }
 0x823   :  { %7758 = vmatprep.subr.bf16.mxu0 %v18115_v63  ;;  %8438 = vmatprep.subr.bf16.mxu1 %v18145_v38  ;;  %v18176_v63 = vld [vmem:[#allocation5 + $0x8] ss:$24 sps:$4 sm:$0xff]  }
 0x824   :  { %v18203_v38 = vld [vmem:[#allocation5 + $0x210] ss:$24 sps:$4 sm:$0xff]  }
 0x826   :  { %7759 = vmatpush2.bf16.msra.mxu0 %v18113_v46  ;;  %8439 = vmatpush1.bf16.msra.mxu1 %v18143_v36  ;;  %v18178_v46 = vld [vmem:[#allocation5 + $0xc] ss:$24 sps:$4 sm:$0xff]   ;;  %v18206_v36 = vld [vmem:[#allocation5 + $0x218] ss:$24 sps:$4 sm:$0xff]  }
 0x827   :  { %7760 = vmatprep.subr.bf16.mxu0 %v18118_v15  ;;  %8440 = vmatprep.subr.bf16.mxu1 %v18151_v11  ;;  %v18181_v15 = vld [vmem:[#allocation5 + $0x2d4] ss:$24 sps:$4 sm:$0xff]   ;;  %v18209_v11 = vld [vmem:[#allocation5 + $0x1e0] ss:$24 sps:$4 sm:$0xff]  }
 0x82a   :  { %7761 = vmatpush2.bf16.msra.mxu0 %v18116_v28  ;;  %8441 = vmatpush1.bf16.msra.mxu1 %v18149_v26  ;;  %v18184_v28 = vld [vmem:[#allocation5 + $0x2dc] ss:$24 sps:$4 sm:$0xff]   ;;  %v18215_v26 = vld [vmem:[#allocation5 + $0x1b0] ss:$24 sps:$4 sm:$0xff]  }
 0x82b   :  { %7762 = vmatprep.subr.bf16.mxu0 %v18121_v37  ;;  %8442 = vmatprep.subr.bf16.mxu1 %v18157_v31  ;;  %v18179_v37 = vld [vmem:[#allocation5 + $0x2d0] ss:$24 sps:$4 sm:$0xff]  }
 0x82c   :  { %v18218_v31 = vld [vmem:[#allocation5 + $0x1b8] ss:$24 sps:$4 sm:$0xff]  }
 0x82e   :  { %7763 = vmatpush2.bf16.msra.mxu0 %v18119_v56  ;;  %8443 = vmatpush1.bf16.msra.mxu1 %v18155_v41  ;;  %v18182_v56 = vld [vmem:[#allocation5 + $0x2d8] ss:$24 sps:$4 sm:$0xff]  }
 0x82f   :  { %7764 = vmatprep.subr.bf16.mxu0 %v18124_v52  ;;  %8444 = vmatprep.subr.bf16.mxu1 %v18163_v20  ;;  %v18187_v52 = vld [vmem:[#allocation5 + $0x2a4] ss:$24 sps:$4 sm:$0xff]   ;;  %v18221_v41 = vld [vmem:[#allocation5 + $0x180] ss:$24 sps:$4 sm:$0xff]  }
 0x830   :  { %v18224_v20 = vld [vmem:[#allocation5 + $0x188] ss:$24 sps:$4 sm:$0xff]  }
 0x832   :  { %7765 = vmatpush2.bf16.msra.mxu0 %v18122_v54  ;;  %8445 = vmatpush1.bf16.msra.mxu1 %v18161_v57  ;;  %v18190_v54 = vld [vmem:[#allocation5 + $0x2ac] ss:$24 sps:$4 sm:$0xff]  }
 0x833   :  { %7766 = vmatprep.subr.bf16.mxu0 %v18127_v27  ;;  %8446 = vmatprep.subr.bf16.mxu1 %v18169_v16  ;;  %v18185_v27 = vld [vmem:[#allocation5 + $0x2a0] ss:$24 sps:$4 sm:$0xff]   ;;  %v18229_v57 = vld [vmem:[#allocation5 + $0x164] ss:$24 sps:$4 sm:$0xff]  }
 0x836   :  { %7767 = vmatpush2.bf16.msra.mxu0 %v18125_v7  ;;  %8447 = vmatpush1.bf16.msra.mxu1 %v18167_v10  ;;  %v18188_v7 = vld [vmem:[#allocation5 + $0x2a8] ss:$24 sps:$4 sm:$0xff]  }
 0x837   :  { %7768 = vmatprep.subr.bf16.mxu0 %v18130_v60  ;;  %8448 = vmatprep.subr.bf16.mxu1 %v18175_v51  ;;  %v18193_v60 = vld [vmem:[#allocation5 + $0x274] ss:$24 sps:$4 sm:$0xff]   ;;  %v7010_v10 = vld [vmem:[%s20949_s8] sm:$0x7] }
 0x83a   :  { %7769 = vmatpush2.bf16.msra.mxu0 %v18128_v17  ;;  %8449 = vmatpush1.bf16.msra.mxu1 %v18173_v43  ;;  %v18196_v17 = vld [vmem:[#allocation5 + $0x27c] ss:$24 sps:$4 sm:$0xff]   ;;  %v7023_v43 = vrot.slane %v7010_v10, %v20118_v48 }
 0x83b   :  { %8477 = vmatprep.subr.bf16.mxu0 %v18136_v13  ;;  %8450 = vmatprep.subr.bf16.mxu1 %v18181_v15  ;;  %v18202_v13 = vld [vmem:[#allocation5 + $0x24c] ss:$24 sps:$4 sm:$0xff]  }
 0x83d   :  { %15766 = vmatmul.mubr.msk.bf16.vlgmr.msra.gmra.mxu0 %vm19993_vm7, %v19812_v14  ;;  %vm16383_vm7 = vmpackc.low %vm12313_vm15, %vm12310_vm0 }
 0x83e   :  { %8478 = vmatpush1.bf16.msra.mxu0 %v18134_v33  ;;  %8451 = vmatpush2.bf16.msra.mxu1 %v18179_v37  ;;  %v18199_v33 = vld [vmem:[#allocation5 + $0x244] ss:$24 sps:$4 sm:$0xff]  }
 0x83f   :  { %8479 = vmatprep.subr.bf16.mxu0 %v18142_v44  ;;  %8452 = vmatprep.subr.bf16.mxu1 %v18187_v52  ;;  %v18205_v44 = vld [vmem:[#allocation5 + $0x214] ss:$24 sps:$4 sm:$0xff]  }
 0x842   :  { %8480 = vmatpush1.bf16.msra.mxu0 %v18140_v3  ;;  %8453 = vmatpush2.bf16.msra.mxu1 %v18185_v27  ;;  %v18208_v3 = vld [vmem:[#allocation5 + $0x21c] ss:$24 sps:$4 sm:$0xff]  }
 0x843   :  { %8481 = vmatprep.subr.bf16.mxu0 %v18148_v18  ;;  %8454 = vmatprep.subr.bf16.mxu1 %v18193_v60  ;;  %v18211_v18 = vld [vmem:[#allocation5 + $0x1e4] ss:$24 sps:$4 sm:$0xff]  }
 0x846   :  { %8482 = vmatpush1.bf16.msra.mxu0 %v18146_v24  ;;  %8455 = vmatpush2.bf16.msra.mxu1 %v18191_v25  ;;  %v18214_v24 = vld [vmem:[#allocation5 + $0x1ec] ss:$24 sps:$4 sm:$0xff]  }
 0x847   :  { %8483 = vmatprep.subr.bf16.mxu0 %v18154_v19  ;;  %8456 = vmatprep.subr.bf16.mxu1 %v18199_v33  ;;  %v18212_v19 = vld [vmem:[#allocation5 + $0x1e8] ss:$24 sps:$4 sm:$0xff]  }
 0x84a   :  { %8484 = vmatpush1.bf16.msra.mxu0 %v18152_v9  ;;  %8457 = vmatpush2.bf16.msra.mxu1 %v18197_v12  ;;  %v18217_v9 = vld [vmem:[#allocation5 + $0x1b4] ss:$24 sps:$4 sm:$0xff]  }
 0x84b   :  { %8485 = vmatprep.subr.bf16.mxu0 %v18160_v6  ;;  %8458 = vmatprep.subr.bf16.mxu1 %v18205_v44  ;;  %v18220_v6 = vld [vmem:[#allocation5 + $0x1bc] ss:$24 sps:$4 sm:$0xff]  }
 0x84e   :  { %8486 = vmatpush1.bf16.msra.mxu0 %v18158_v50  ;;  %8459 = vmatpush2.bf16.msra.mxu1 %v18203_v38  ;;  %v18223_v50 = vld [vmem:[#allocation5 + $0x184] ss:$24 sps:$4 sm:$0xff]  }
 0x84f   :  { %8487 = vmatprep.subr.bf16.mxu0 %v18166_v59  ;;  %8460 = vmatprep.subr.bf16.mxu1 %v18211_v18  ;;  %v18226_v59 = vld [vmem:[#allocation5 + $0x18c] ss:$24 sps:$4 sm:$0xff]  }
 0x852   :  { %8488 = vmatpush1.bf16.msra.mxu0 %v18164_v23  ;;  %8461 = vmatpush2.bf16.msra.mxu1 %v18209_v11  ;;  %v18232_v23 = vld [vmem:[#allocation7 + $0x154] ss:$24 sps:$4 sm:$0xff]  }
 0x853   :  { %8489 = vmatprep.subr.bf16.mxu0 %v18172_v29  ;;  %8462 = vmatprep.subr.bf16.mxu1 %v18217_v9  ;;  %v7015_v29 = vrot.slane %v7010_v10, %v20100_v8 }
 0x856   :  { %8490 = vmatpush1.bf16.msra.mxu0 %v18170_v58  ;;  %8463 = vmatpush2.bf16.msra.mxu1 %v18215_v26 }
 0x857   :  { %8491 = vmatprep.subr.bf16.mxu0 %v18178_v46  ;;  %8464 = vmatprep.subr.bf16.mxu1 %v18223_v50  ;;  %v7019_v46 = vrot.slane %v7010_v10, %v20090_v30  ;;  %v18227_v50 = vld [vmem:[#allocation5 + $0x160] ss:$24 sps:$4 sm:$0xff]   ;;  %v18233_v10 = vld [vmem:[#allocation5 + $0x130] ss:$24 sps:$4 sm:$0xff]  }
 0x85a   :  { %8492 = vmatpush1.bf16.msra.mxu0 %v18176_v63  ;;  %8465 = vmatpush2.bf16.msra.mxu1 %v18221_v41 }
 0x85b   :  { %8493 = vmatprep.subr.bf16.mxu0 %v18184_v28  ;;  %8520 = vmatprep.subr.bf16.mxu1 %v18229_v57  ;;  %v18235_v57 = vld [vmem:[#allocation5 + $0x134] ss:$24 sps:$4 sm:$0xff]  }
 0x85e   :  { %8494 = vmatpush2.bf16.msra.mxu0 %v18182_v56 }
 0x85f   :  { %8495 = vmatprep.subr.bf16.mxu0 %v18190_v54 }
 0x862   :  { %8496 = vmatpush2.bf16.msra.mxu0 %v18188_v7 }
 0x863   :  { %8497 = vmatprep.subr.bf16.mxu0 %v18196_v17 }
 0x866   :  { %8498 = vmatpush2.bf16.msra.mxu0 %v18194_v45 }
 0x867   :  { %8499 = vmatprep.subr.bf16.mxu0 %v18202_v13 }
 0x86a   :  { %8500 = vmatpush2.bf16.msra.mxu0 %v18200_v61 }
 0x86b   :  { %8501 = vmatprep.subr.bf16.mxu0 %v18208_v3 }
 0x86e   :  { %8502 = vmatpush2.bf16.msra.mxu0 %v18206_v36 }
 0x86f   :  { %8503 = vmatprep.subr.bf16.mxu0 %v18214_v24 }
 0x872   :  { %8504 = vmatpush2.bf16.msra.mxu0 %v18212_v19 }
 0x873   :  { %8505 = vmatprep.subr.bf16.mxu0 %v18220_v6 }
 0x876   :  { %8506 = vmatpush2.bf16.msra.mxu0 %v18218_v31 }
 0x877   :  { %8507 = vmatprep.subr.bf16.mxu0 %v18226_v59 }
 0x87a   :  { %8508 = vmatpush2.bf16.msra.mxu0 %v18224_v20  ;;  %v18230_v20 = vld [vmem:[#allocation7 + $0x150] ss:$24 sps:$4 sm:$0xff]  }
 0x87b   :  { %9171 = vmatprep.subr.bf16.mxu0 %v18232_v23  ;;  %v18238_v23 = vld [vmem:[#allocation7 + $0x124] ss:$24 sps:$4 sm:$0xff]  }
 0x8bd   :  { %v7317_v16 = vpop.f32.mrf.mxu1  ;;  %v16697_v58 = vpop.f32.mrf.mxu0 }
 0x8be   :  { %v20497_v56 = vadd.f32 %v7317_v16, %v7015_v29  ;;  %v18236_v16 = vld [vmem:[#allocation7 + $0x120] ss:$24 sps:$4 sm:$0xff]  }
 0x8bf   :  { %v7319_v51 = vpop.f32.mrf.mxu1  ;;  %v16698_v63 = vpop.f32.mrf.mxu0 }
 0x8c0   :  { %v16699_v15 = vadd.f32 %v16698_v63, %v16697_v58  ;;  %v20501_v27 = vadd.f32 %v7319_v51, %v7019_v46  ;;  %v18241_v58 = vld [vmem:[#allocation5 + $0x104] ss:$24 sps:$4 sm:$0xff]   ;;  %v18242_v51 = vld [vmem:[#allocation7 + $0xf0] ss:$24 sps:$4 sm:$0xff]   ;;  %v18247_v63 = vld [vmem:[#allocation5 + $0xd4] ss:$24 sps:$4 sm:$0xff]  }
 0x8c1   :  { %v7321_v28 = vpop.f32.mrf.mxu1  ;;  %v16700_v37 = vpop.f32.mrf.mxu0 }
 0x8c2   :  { %v20499_v52 = vadd.f32 %v16699_v15, %v7023_v43  ;;  %v20505_v25 = vadd.f32 %v7321_v28, %v7015_v29  ;;  %v18244_v29 = vld [vmem:[#allocation7 + $0xf4] ss:$24 sps:$4 sm:$0xff]   ;;  %v18245_v15 = vld [vmem:[#allocation5 + $0xd0] ss:$24 sps:$4 sm:$0xff]   ;;  %v18248_v28 = vld [vmem:[#allocation7 + $0xc0] ss:$24 sps:$4 sm:$0xff]  }
 0x8c3   :  { %v16701_v54 = vpop.f32.mrf.mxu0  ;;  %v7323_v17 = vpop.f32.mrf.mxu1 }
 0x8c4   :  { %v16702_v7 = vadd.f32 %v16701_v54, %v16700_v37  ;;  %v7367_v60 = vmax.f32 %v20497_v56, %v20499_v52  ;;  %v20510_v13 = vadd.f32 %v7323_v17, %v7019_v46  ;;  %v18250_v46 = vld [vmem:[#allocation7 + $0xc4] ss:$24 sps:$4 sm:$0xff]   ;;  %v18256_v54 = vld [vmem:[#allocation7 + $0x94] ss:$24 sps:$4 sm:$0xff]  }
 0x8c5   :  { %v18253_v37 = vld [vmem:[#allocation5 + $0xa4] ss:$24 sps:$4 sm:$0xff]   ;;  %v18259_v17 = vld [vmem:[#allocation5 + $0x74] ss:$24 sps:$4 sm:$0xff]  }
 0x8c6   :  { %v20507_v45 = vadd.f32 %v16702_v7, %v7023_v43  ;;  %v7368_v33 = vmax.f32 %v7367_v60, %v20501_v27  ;;  %v18239_v43 = vld [vmem:[#allocation5 + $0x100] ss:$24 sps:$4 sm:$0xff]   ;;  %v18254_v60 = vld [vmem:[#allocation7 + $0x90] ss:$24 sps:$4 sm:$0xff]  }
 0x8c7   :  { %v18251_v7 = vld [vmem:[#allocation5 + $0xa0] ss:$24 sps:$4 sm:$0xff]  }
 0x8c8   :  { %7369 = vmax.xlane.f32.xlu1 %v7368_v33  ;;  %v7371_v12 = vmax.f32 %v20505_v25, %v20507_v45  ;;  %v18262_v33 = vld [vmem:[#allocation7 + $0x64] ss:$24 sps:$4 sm:$0xff]  }
 0x8ca   :  { %v7372_v61 = vmax.f32 %v7371_v12, %v20510_v13  ;;  %v18257_v12 = vld [vmem:[#allocation5 + $0x70] ss:$24 sps:$4 sm:$0xff]  }
 0x8cc   :  { %7373 = vmax.xlane.f32.xlu0 %v7372_v61  ;;  %v18260_v61 = vld [vmem:[#allocation7 + $0x60] ss:$24 sps:$4 sm:$0xff]  }
 0x8dd   :  { %v7815_v44 = vpop.f32.mrf.mxu1 }
 0x8df   :  { %v7817_v3 = vpop.f32.mrf.mxu1 }
 0x8e1   :  { %v7819_v36 = vpop.f32.mrf.mxu1 }
 0x8e3   :  { %v7821_v11 = vpop.f32.mrf.mxu1 }
 0x8fd   :  { %v7772_v38 = vpop.f32.mrf.mxu0 }
 0x8fe   :  { %v7816_v6 = vadd.f32 %v7815_v44, %v7772_v38  ;;  %v18265_v44 = vld [vmem:[#allocation5 + $0x44] ss:$24 sps:$4 sm:$0xff]   ;;  %v18263_v38 = vld [vmem:[#allocation5 + $0x40] ss:$24 sps:$4 sm:$0xff]  }
 0x8ff   :  { %v7774_v18 = vpop.f32.mrf.mxu0 }
 0x900   :  { %v7818_v9 = vadd.f32 %v7817_v3, %v7774_v18  ;;  %v18268_v3 = vld [vmem:[#allocation7 + $0x34] ss:$24 sps:$4 sm:$0xff]  }
 0x901   :  { %v7776_v24 = vpop.f32.mrf.mxu0  ;;  %v18271_v18 = vld [vmem:[#allocation5 + $0x14] ss:$24 sps:$4 sm:$0xff]  }
 0x902   :  { %v7820_v19 = vadd.f32 %v7819_v36, %v7776_v24  ;;  %v18266_v36 = vld [vmem:[#allocation7 + $0x30] ss:$24 sps:$4 sm:$0xff]   ;;  %v18274_v24 = vld [vmem:[#allocation7 + $0x4] ss:$24 sps:$4 sm:$0xff]  }
 0x903   :  { %v7778_v26 = vpop.f32.mrf.mxu0 }
 0x904   :  { %v7822_v31 = vadd.f32 %v7821_v11, %v7778_v26  ;;  %v20515_v59 = vpack.c.bf16 %v7820_v19, %v7816_v6  ;;  %v18269_v11 = vld [vmem:[#allocation5 + $0x10] ss:$24 sps:$4 sm:$0xff]   ;;  %v18272_v19 = vld [vmem:[#allocation7] ss:$24 sps:$4 sm:$0xff]   ;;  %v18277_v26 = vld [vmem:[#allocation5 + $0x2e4] ss:$24 sps:$4 sm:$0xff]  }
 0x905   :  { %v18278_v6 = vld [vmem:[#allocation7 + $0x2d0] ss:$24 sps:$4 sm:$0xff]  }
 0x906   :  { %v7825_v41 = vpack.c.bf16 %v7822_v31, %v7818_v9  ;;  %v18280_v9 = vld [vmem:[#allocation7 + $0x2d4] ss:$24 sps:$4 sm:$0xff]   ;;  %v18275_v31 = vld [vmem:[#allocation5 + $0x2e0] ss:$24 sps:$4 sm:$0xff]  }
 0x908   :  { %8466 = vmatprep.mubr.bf16.mxu1 %v7825_v41  ;;  %8509 = vmatprep.mubr.bf16.mxu0 %v7825_v41 }
 0x909   :  { %8467 = vmatmul.mubr.bf16.vlgmr.msra.gmra.mxu1 %v20515_v59  ;;  %8510 = vmatmul.mubr.bf16.vlgmr.msra.gmra.mxu0 %v20515_v59 }
 0x90a   :  { %8521 = vmatpush1.bf16.msra.mxu1 %v18227_v50  ;;  %9172 = vmatpush1.bf16.msra.mxu0 %v18230_v20  ;;  %v18286_v50 = vld [vmem:[#allocation7 + $0x2a4] ss:$24 sps:$4 sm:$0xff]   ;;  %v18281_v20 = vld [vmem:[#allocation5 + $0x2b0] ss:$24 sps:$4 sm:$0xff]  }
 0x90b   :  { %8552 = vmatprep.mubr.bf16.mxu1 %v7825_v41  ;;  %9203 = vmatprep.mubr.bf16.mxu0 %v20471_v21  ;;  %v18283_v41 = vld [vmem:[#allocation5 + $0x2b4] ss:$24 sps:$4 sm:$0xff]  }
 0x90c   :  { %8522 = vmatprep.subr.bf16.mxu1 %v18235_v57  ;;  %9173 = vmatprep.subr.bf16.mxu0 %v18238_v23  ;;  %v18284_v57 = vld [vmem:[#allocation7 + $0x2a0] ss:$24 sps:$4 sm:$0xff]   ;;  %v18289_v23 = vld [vmem:[#allocation5 + $0x284] ss:$24 sps:$4 sm:$0xff]  }
 0x90e   :  { %8523 = vmatpush1.bf16.msra.mxu1 %v18233_v10  ;;  %9174 = vmatpush1.bf16.msra.mxu0 %v18236_v16  ;;  %v18292_v10 = vld [vmem:[#allocation7 + $0x274] ss:$24 sps:$4 sm:$0xff]   ;;  %v18287_v16 = vld [vmem:[#allocation5 + $0x280] ss:$24 sps:$4 sm:$0xff]  }
 0x90f   :  { %8524 = vmatprep.subr.bf16.mxu1 %v18241_v58  ;;  %9175 = vmatprep.subr.bf16.mxu0 %v18244_v29  ;;  %v18290_v58 = vld [vmem:[#allocation7 + $0x270] ss:$24 sps:$4 sm:$0xff]   ;;  %v18295_v29 = vld [vmem:[#allocation5 + $0x254] ss:$24 sps:$4 sm:$0xff]  }
 0x912   :  { %8525 = vmatpush1.bf16.msra.mxu1 %v18239_v43  ;;  %9176 = vmatpush1.bf16.msra.mxu0 %v18242_v51  ;;  %v18298_v43 = vld [vmem:[#allocation7 + $0x244] ss:$24 sps:$4 sm:$0xff]   ;;  %v18293_v51 = vld [vmem:[#allocation5 + $0x250] ss:$24 sps:$4 sm:$0xff]  }
 0x913   :  { %8526 = vmatprep.subr.bf16.mxu1 %v18247_v63  ;;  %9177 = vmatprep.subr.bf16.mxu0 %v18250_v46  ;;  %v18296_v63 = vld [vmem:[#allocation7 + $0x240] ss:$24 sps:$4 sm:$0xff]   ;;  %v18301_v46 = vld [vmem:[#allocation5 + $0x224] ss:$24 sps:$4 sm:$0xff]  }
 0x916   :  { %8527 = vmatpush1.bf16.msra.mxu1 %v18245_v15  ;;  %9178 = vmatpush1.bf16.msra.mxu0 %v18248_v28  ;;  %v18304_v15 = vld [vmem:[#allocation7 + $0x214] ss:$24 sps:$4 sm:$0xff]   ;;  %v18299_v28 = vld [vmem:[#allocation5 + $0x220] ss:$24 sps:$4 sm:$0xff]  }
 0x917   :  { %8528 = vmatprep.subr.bf16.mxu1 %v18253_v37  ;;  %9179 = vmatprep.subr.bf16.mxu0 %v18256_v54  ;;  %v18302_v37 = vld [vmem:[#allocation7 + $0x210] ss:$24 sps:$4 sm:$0xff]   ;;  %v18307_v54 = vld [vmem:[#allocation5 + $0x1f4] ss:$24 sps:$4 sm:$0xff]  }
 0x91a   :  { %8529 = vmatpush1.bf16.msra.mxu1 %v18251_v7  ;;  %9180 = vmatpush1.bf16.msra.mxu0 %v18254_v60  ;;  %v18310_v7 = vld [vmem:[#allocation7 + $0x1e4] ss:$24 sps:$4 sm:$0xff]   ;;  %v18305_v60 = vld [vmem:[#allocation5 + $0x1f0] ss:$24 sps:$4 sm:$0xff]  }
 0x91b   :  { %8530 = vmatprep.subr.bf16.mxu1 %v18259_v17  ;;  %9181 = vmatprep.subr.bf16.mxu0 %v18262_v33  ;;  %v18308_v17 = vld [vmem:[#allocation7 + $0x1e0] ss:$24 sps:$4 sm:$0xff]   ;;  %v18313_v33 = vld [vmem:[#allocation5 + $0x1c4] ss:$24 sps:$4 sm:$0xff]  }
 0x91e   :  { %8531 = vmatpush1.bf16.msra.mxu1 %v18257_v12  ;;  %9182 = vmatpush1.bf16.msra.mxu0 %v18260_v61  ;;  %v18316_v12 = vld [vmem:[#allocation7 + $0x1b4] ss:$24 sps:$4 sm:$0xff]   ;;  %v18311_v61 = vld [vmem:[#allocation5 + $0x1c0] ss:$24 sps:$4 sm:$0xff]  }
 0x91f   :  { %8532 = vmatprep.subr.bf16.mxu1 %v18265_v44  ;;  %9183 = vmatprep.subr.bf16.mxu0 %v18268_v3  ;;  %v18314_v44 = vld [vmem:[#allocation7 + $0x1b0] ss:$24 sps:$4 sm:$0xff]   ;;  %v18319_v3 = vld [vmem:[#allocation5 + $0x194] ss:$24 sps:$4 sm:$0xff]  }
 0x922   :  { %8533 = vmatpush1.bf16.msra.mxu1 %v18263_v38  ;;  %9184 = vmatpush1.bf16.msra.mxu0 %v18266_v36  ;;  %v18322_v38 = vld [vmem:[#allocation7 + $0x184] ss:$24 sps:$4 sm:$0xff]   ;;  %v18317_v36 = vld [vmem:[#allocation5 + $0x190] ss:$24 sps:$4 sm:$0xff]  }
 0x923   :  { %8534 = vmatprep.subr.bf16.mxu1 %v18271_v18  ;;  %9185 = vmatprep.subr.bf16.mxu0 %v18274_v24  ;;  %v18320_v18 = vld [vmem:[#allocation7 + $0x180] ss:$24 sps:$4 sm:$0xff]   ;;  %v18325_v24 = vld [vmem:[#allocation7 + $0x15c] ss:$24 sps:$4 sm:$0xff]  }
 0x926   :  { %8535 = vmatpush1.bf16.msra.mxu1 %v18269_v11  ;;  %9186 = vmatpush1.bf16.msra.mxu0 %v18272_v19  ;;  %v18328_v11 = vld [vmem:[#allocation7 + $0x164] ss:$24 sps:$4 sm:$0xff]   ;;  %v18323_v19 = vld [vmem:[#allocation7 + $0x158] ss:$24 sps:$4 sm:$0xff]  }
 0x927   :  { %8536 = vmatprep.subr.bf16.mxu1 %v18277_v26  ;;  %9187 = vmatprep.subr.bf16.mxu0 %v18280_v9  ;;  %v18326_v26 = vld [vmem:[#allocation7 + $0x160] ss:$24 sps:$4 sm:$0xff]   ;;  %v18331_v9 = vld [vmem:[#allocation7 + $0x12c] ss:$24 sps:$4 sm:$0xff]  }
 0x92a   :  { %8537 = vmatpush2.bf16.msra.mxu1 %v18275_v31  ;;  %9188 = vmatpush2.bf16.msra.mxu0 %v18278_v6  ;;  %v18334_v31 = vld [vmem:[#allocation7 + $0x134] ss:$24 sps:$4 sm:$0xff]   ;;  %v18329_v6 = vld [vmem:[#allocation7 + $0x128] ss:$24 sps:$4 sm:$0xff]  }
 0x92b   :  { %8538 = vmatprep.subr.bf16.mxu1 %v18283_v41  ;;  %9189 = vmatprep.subr.bf16.mxu0 %v18286_v50  ;;  %v18332_v41 = vld [vmem:[#allocation7 + $0x130] ss:$24 sps:$4 sm:$0xff]   ;;  %v18337_v50 = vld [vmem:[#allocation7 + $0xfc] ss:$24 sps:$4 sm:$0xff]  }
 0x92e   :  { %8539 = vmatpush2.bf16.msra.mxu1 %v18281_v20  ;;  %9190 = vmatpush2.bf16.msra.mxu0 %v18284_v57  ;;  %v18340_v20 = vld [vmem:[#allocation7 + $0x104] ss:$24 sps:$4 sm:$0xff]   ;;  %v18335_v57 = vld [vmem:[#allocation7 + $0xf8] ss:$24 sps:$4 sm:$0xff]  }
 0x92f   :  { %8540 = vmatprep.subr.bf16.mxu1 %v18289_v23  ;;  %9191 = vmatprep.subr.bf16.mxu0 %v18292_v10  ;;  %v18338_v23 = vld [vmem:[#allocation7 + $0x100] ss:$24 sps:$4 sm:$0xff]   ;;  %v18346_v10 = vld [vmem:[#allocation7 + $0xd4] ss:$24 sps:$4 sm:$0xff]  }
 0x932   :  { %8541 = vmatpush2.bf16.msra.mxu1 %v18287_v16  ;;  %9192 = vmatpush2.bf16.msra.mxu0 %v18290_v58 }
 0x933   :  { %8542 = vmatprep.subr.bf16.mxu1 %v18295_v29  ;;  %9193 = vmatprep.subr.bf16.mxu0 %v18298_v43  ;;  %v18341_v43 = vld [vmem:[#allocation7 + $0xc8] ss:$24 sps:$4 sm:$0xff]  }
 0x936   :  { %8543 = vmatpush2.bf16.msra.mxu1 %v18293_v51  ;;  %9194 = vmatpush2.bf16.msra.mxu0 %v18296_v63  ;;  %v18344_v51 = vld [vmem:[#allocation7 + $0xd0] ss:$24 sps:$4 sm:$0xff]   ;;  %v18349_v63 = vld [vmem:[#allocation7 + $0x9c] ss:$24 sps:$4 sm:$0xff]  }
 0x937   :  { %8544 = vmatprep.subr.bf16.mxu1 %v18301_v46  ;;  %9195 = vmatprep.subr.bf16.mxu0 %v18304_v15 }
 0x93a   :  { %8545 = vmatpush2.bf16.msra.mxu1 %v18299_v28  ;;  %9196 = vmatpush2.bf16.msra.mxu0 %v18302_v37  ;;  %v18352_v28 = vld [vmem:[#allocation7 + $0xa4] ss:$24 sps:$4 sm:$0xff]  }
 0x93b   :  { %8546 = vmatprep.subr.bf16.mxu1 %v18307_v54  ;;  %9197 = vmatprep.subr.bf16.mxu0 %v18310_v7 }
 0x93e   :  { %8547 = vmatpush2.bf16.msra.mxu1 %v18305_v60  ;;  %9198 = vmatpush2.bf16.msra.mxu0 %v18308_v17 }
 0x93f   :  { %8548 = vmatprep.subr.bf16.mxu1 %v18313_v33  ;;  %9199 = vmatprep.subr.bf16.mxu0 %v18316_v12  ;;  %v18347_v33 = vld [vmem:[#allocation7 + $0x98] ss:$24 sps:$4 sm:$0xff]  }
 0x940   :  { %v18350_v12 = vld [vmem:[#allocation7 + $0xa0] ss:$24 sps:$4 sm:$0xff]  }
 0x942   :  { %8549 = vmatpush2.bf16.msra.mxu1 %v18311_v61  ;;  %9200 = vmatpush2.bf16.msra.mxu0 %v18314_v44  ;;  %v18355_v61 = vld [vmem:[#allocation7 + $0x6c] ss:$24 sps:$4 sm:$0xff]  }
 0x943   :  { %8550 = vmatprep.subr.bf16.mxu1 %v18319_v3  ;;  %9201 = vmatprep.subr.bf16.mxu0 %v18322_v38  ;;  %v18358_v38 = vld [vmem:[#allocation7 + $0x74] ss:$24 sps:$4 sm:$0xff]  }
 0x946   :  { %8551 = vmatpush2.bf16.msra.mxu1 %v18317_v36  ;;  %9202 = vmatpush2.bf16.msra.mxu0 %v18320_v18  ;;  %v18353_v18 = vld [vmem:[#allocation7 + $0x68] ss:$24 sps:$4 sm:$0xff]  }
 0x947   :  { %9214 = vmatprep.subr.bf16.mxu1 %v18325_v24  ;;  %9257 = vmatprep.subr.bf16.mxu0 %v18328_v11  ;;  %v18356_v24 = vld [vmem:[#allocation7 + $0x70] ss:$24 sps:$4 sm:$0xff]   ;;  %v18361_v11 = vld [vmem:[#allocation7 + $0x3c] ss:$24 sps:$4 sm:$0xff]  }
 0x949   :  { %8553 = vmatmul.mubr.bf16.vlgmr.msra.gmra.mxu1 %v20515_v59  ;;  %9204 = vmatmul.mubr.bf16.vlgmr.msra.gmra.mxu0 %v20475_v53  ;;  %v18343_v59 = vld [vmem:[#allocation7 + $0xcc] ss:$24 sps:$4 sm:$0xff]  }
 0x94a   :  { %9215 = vmatpush1.bf16.msra.mxu1 %v18323_v19  ;;  %9246 = vmatprep.mubr.bf16.mxu1 %v20471_v21  ;;  %v18364_v19 = vld [vmem:[#allocation7 + $0x44] ss:$24 sps:$4 sm:$0xff]  }
 0x94b   :  { %9258 = vmatpush1.bf16.msra.mxu0 %v18326_v26  ;;  %9289 = vmatprep.mubr.bf16.mxu0 %v20471_v21  ;;  %v18359_v26 = vld [vmem:[#allocation7 + $0x38] ss:$24 sps:$4 sm:$0xff]  }
 0x94c   :  { %9216 = vmatprep.subr.bf16.mxu1 %v18331_v9  ;;  %9259 = vmatprep.subr.bf16.mxu0 %v18334_v31  ;;  %v18362_v9 = vld [vmem:[#allocation7 + $0x40] ss:$24 sps:$4 sm:$0xff]   ;;  %v18367_v31 = vld [vmem:[#allocation7 + $0xc] ss:$24 sps:$4 sm:$0xff]  }
 0x94e   :  { %9217 = vmatpush1.bf16.msra.mxu1 %v18329_v6  ;;  %v18370_v6 = vld [vmem:[#allocation7 + $0x14] ss:$24 sps:$4 sm:$0xff]  }
 0x94f   :  { %9260 = vmatpush1.bf16.msra.mxu0 %v18332_v41  ;;  %9218 = vmatprep.subr.bf16.mxu1 %v18337_v50  ;;  %v18365_v41 = vld [vmem:[#allocation7 + $0x8] ss:$24 sps:$4 sm:$0xff]  }
 0x950   :  { %9261 = vmatprep.subr.bf16.mxu0 %v18340_v20  ;;  %v18368_v20 = vld [vmem:[#allocation7 + $0x10] ss:$24 sps:$4 sm:$0xff]  }
 0x951   :  { %v20524_v16 = vpop.xlane.xlu1 %7369 }
 0x952   :  { %9219 = vmatpush1.bf16.msra.mxu1 %v18335_v57  ;;  %v7375_v58 = vsub.f32 %v20497_v56, %v20524_v16  ;;  %v7376_v21 = vsub.f32 %v20501_v27, %v20524_v16  ;;  %v7377_v29 = vsub.f32 %v20499_v52, %v20524_v16  ;;  %v18373_v57 = vld [vmem:[#allocation7 + $0x2dc] ss:$24 sps:$4 sm:$0xff]  }
 0x953   :  { %9262 = vmatpush1.bf16.msra.mxu0 %v18338_v23  ;;  %9220 = vmatprep.subr.bf16.mxu1 %v18343_v59  ;;  %v18376_v59 = vld [vmem:[#allocation7 + $0x2e4] ss:$24 sps:$4 sm:$0xff]  }
 0x954   :  { %v7381_v46 = vmul.f32 1.442695, %v7375_v58  ;;  %v7383_v15 = vmul.f32 1.442695, %v7376_v21  ;;  %9263 = vmatprep.subr.bf16.mxu0 %v18346_v10  ;;  %v7385_v37 = vmul.f32 1.442695, %v7377_v29 }
 0x955   :  { %v20532_v54 = vpop.xlane.xlu0 %7373  ;;  %v18371_v21 = vld [vmem:[#allocation7 + $0x2d8] ss:$24 sps:$4 sm:$0xff]  }
 0x956   :  { %19483 = vpow2.f32 %v7381_v46  ;;  %9221 = vmatpush1.bf16.msra.mxu1 %v18341_v43  ;;  %v7378_v7 = vsub.f32 %v20505_v25, %v20532_v54  ;;  %v7379_v60 = vsub.f32 %v20510_v13, %v20532_v54  ;;  %v7380_v17 = vsub.f32 %v20507_v45, %v20532_v54  ;;  %v18374_v43 = vld [vmem:[#allocation7 + $0x2e0] ss:$24 sps:$4 sm:$0xff]  }
 0x957   :  { %19485 = vpow2.f32 %v7383_v15  ;;  %9264 = vmatpush1.bf16.msra.mxu0 %v18344_v51  ;;  %9222 = vmatprep.subr.bf16.mxu1 %v18349_v63  ;;  %v18379_v63 = vld [vmem:[#allocation7 + $0x2ac] ss:$24 sps:$4 sm:$0xff]  }
 0x958   :  { %v7387_v44 = vmul.f32 1.442695, %v7378_v7  ;;  %v7389_v3 = vmul.f32 1.442695, %v7379_v60  ;;  %9265 = vmatprep.subr.bf16.mxu0 %v18352_v28  ;;  %19487 = vpow2.f32 %v7385_v37  ;;  %v7391_v36 = vmul.f32 1.442695, %v7380_v17 }
 0x959   :  { %v18382_v15 = vld [vmem:[#allocation7 + $0x2b4] ss:$24 sps:$4 sm:$0xff]   ;;  %v18377_v7 = vld [vmem:[#allocation7 + $0x2a8] ss:$24 sps:$4 sm:$0xff]  }
 0x95a   :  { %19489 = vpow2.f32 %v7387_v44  ;;  %9223 = vmatpush1.bf16.msra.mxu1 %v18347_v33  ;;  %v18380_v60 = vld [vmem:[#allocation7 + $0x2b0] ss:$24 sps:$4 sm:$0xff]   ;;  %v18385_v33 = vld [vmem:[#allocation7 + $0x27c] ss:$24 sps:$4 sm:$0xff]   ;;  %v18386_v44 = vld [vmem:[#allocation7 + $0x280] ss:$24 sps:$4 sm:$0xff]  }
 0x95b   :  { %19491 = vpow2.f32 %v7389_v3  ;;  %9266 = vmatpush1.bf16.msra.mxu0 %v18350_v12  ;;  %9224 = vmatprep.subr.bf16.mxu1 %v18355_v61  ;;  %v18388_v12 = vld [vmem:[#allocation7 + $0x284] ss:$24 sps:$4 sm:$0xff]   ;;  %v18383_v61 = vld [vmem:[#allocation7 + $0x278] ss:$24 sps:$4 sm:$0xff]  }
 0x95c   :  { %9267 = vmatprep.subr.bf16.mxu0 %v18358_v38  ;;  %19493 = vpow2.f32 %v7391_v36  ;;  %v18391_v3 = vld [vmem:[#allocation7 + $0x24c] ss:$24 sps:$4 sm:$0xff]   ;;  %v18389_v36 = vld [vmem:[#allocation7 + $0x248] ss:$24 sps:$4 sm:$0xff]  }
 0x95d   :  { %v18394_v38 = vld [vmem:[#allocation7 + $0x254] ss:$24 sps:$4 sm:$0xff]  }
 0x95e   :  { %9225 = vmatpush1.bf16.msra.mxu1 %v18353_v18  ;;  %v18392_v18 = vld [vmem:[#allocation7 + $0x250] ss:$24 sps:$4 sm:$0xff]  }
 0x95f   :  { %9268 = vmatpush1.bf16.msra.mxu0 %v18356_v24  ;;  %9226 = vmatprep.subr.bf16.mxu1 %v18361_v11  ;;  %v18397_v24 = vld [vmem:[#allocation7 + $0x21c] ss:$24 sps:$4 sm:$0xff]  }
 0x960   :  { %9269 = vmatprep.subr.bf16.mxu0 %v18364_v19  ;;  %v18400_v11 = vld [vmem:[#allocation7 + $0x224] ss:$24 sps:$4 sm:$0xff]   ;;  %v18395_v19 = vld [vmem:[#allocation7 + $0x218] ss:$24 sps:$4 sm:$0xff]  }
 0x962   :  { %9227 = vmatpush1.bf16.msra.mxu1 %v18359_v26  ;;  %v18398_v26 = vld [vmem:[#allocation7 + $0x220] ss:$24 sps:$4 sm:$0xff]  }
 0x963   :  { %v19484_v50 = vpop.eup %19483  ;;  %9270 = vmatpush1.bf16.msra.mxu0 %v18362_v9  ;;  %9228 = vmatprep.subr.bf16.mxu1 %v18367_v31  ;;  %v18403_v9 = vld [vmem:[#allocation7 + $0x1ec] ss:$24 sps:$4 sm:$0xff]  }
 0x964   :  { %v19486_v23 = vpop.eup %19485  ;;  %9271 = vmatprep.subr.bf16.mxu0 %v18370_v6  ;;  %v18406_v31 = vld [vmem:[#allocation7 + $0x1f4] ss:$24 sps:$4 sm:$0xff]   ;;  %v18401_v6 = vld [vmem:[#allocation7 + $0x1e8] ss:$24 sps:$4 sm:$0xff]  }
 0x965   :  { %v7393_v10 = vadd.f32 %v19486_v23, %v19484_v50  ;;  %v19488_v58 = vpop.eup %19487  ;;  %v18409_v50 = vld [vmem:[#allocation7 + $0x1bc] ss:$24 sps:$4 sm:$0xff]   ;;  %v18410_v23 = vld [vmem:[#allocation7 + $0x1c0] ss:$24 sps:$4 sm:$0xff]  }
 0x966   :  { %9229 = vmatpush1.bf16.msra.mxu1 %v18365_v41  ;;  %v18404_v41 = vld [vmem:[#allocation7 + $0x1f0] ss:$24 sps:$4 sm:$0xff]  }
 0x967   :  { %v19490_v29 = vpop.eup %19489  ;;  %9272 = vmatpush1.bf16.msra.mxu0 %v18368_v20  ;;  %9230 = vmatprep.subr.bf16.mxu1 %v18373_v57  ;;  %v7394_v51 = vadd.f32 %v19488_v58, %v7393_v10  ;;  %v18412_v20 = vld [vmem:[#allocation7 + $0x1c4] ss:$24 sps:$4 sm:$0xff]   ;;  %v18407_v57 = vld [vmem:[#allocation7 + $0x1b8] ss:$24 sps:$4 sm:$0xff]   ;;  %v18418_v10 = vld [vmem:[#allocation7 + $0x194] ss:$24 sps:$4 sm:$0xff]  }
 0x968   :  { %v19492_v46 = vpop.eup %19491  ;;  %9273 = vmatprep.subr.bf16.mxu0 %v18376_v59  ;;  %v18415_v59 = vld [vmem:[#allocation7 + $0x18c] ss:$24 sps:$4 sm:$0xff]   ;;  %v18413_v58 = vld [vmem:[#allocation7 + $0x188] ss:$24 sps:$4 sm:$0xff]  }
 0x969   :  { %7395 = vadd.xlane.f32.xlu1 %v7394_v51  ;;  %v7397_v28 = vadd.f32 %v19492_v46, %v19490_v29  ;;  %v19494_v37 = vpop.eup %19493  ;;  %v18419_v29 = vld [vmem:[#allocation8 + $0xa8] ss:$12 sps:$4 sm:$0xff]  }
 0x96a   :  { %9231 = vmatpush2.bf16.msra.mxu1 %v18371_v21  ;;  %v18416_v21 = vld [vmem:[#allocation7 + $0x190] ss:$24 sps:$4 sm:$0xff]   ;;  %v18424_v51 = vld [vmem:[#allocation8 + $0x94] ss:$12 sps:$4 sm:$0xff]  }
 0x96b   :  { %9274 = vmatpush2.bf16.msra.mxu0 %v18374_v43  ;;  %9232 = vmatprep.subr.bf16.mxu1 %v18379_v63  ;;  %v7398_v17 = vadd.f32 %v19494_v37, %v7397_v28  ;;  %v18421_v43 = vld [vmem:[#allocation8 + $0xac] ss:$12 sps:$4 sm:$0xff]   ;;  %v18422_v63 = vld [vmem:[#allocation8 + $0x90] ss:$12 sps:$4 sm:$0xff]  }
 0x96c   :  { %9275 = vmatprep.subr.bf16.mxu0 %v18382_v15  ;;  %v18427_v46 = vld [vmem:[#allocation8 + $0x7c] ss:$12 sps:$4 sm:$0xff]   ;;  %v18425_v15 = vld [vmem:[#allocation8 + $0x78] ss:$12 sps:$4 sm:$0xff]   ;;  %v18428_v37 = vld [vmem:[#allocation8 + $0x60] ss:$12 sps:$4 sm:$0xff]  }
 0x96d   :  { %7399 = vadd.xlane.f32.xlu0 %v7398_v17  ;;  %v18430_v28 = vld [vmem:[#allocation8 + $0x64] ss:$12 sps:$4 sm:$0xff]   ;;  %v18436_v17 = vld [vmem:[#allocation8 + $0x34] ss:$12 sps:$4 sm:$0xff]  }
 0x96e   :  { %9233 = vmatpush2.bf16.msra.mxu1 %v18377_v7  ;;  %v18431_v7 = vld [vmem:[#allocation8 + $0x48] ss:$12 sps:$4 sm:$0xff]  }
 0x96f   :  { %9276 = vmatpush2.bf16.msra.mxu0 %v18380_v60  ;;  %9234 = vmatprep.subr.bf16.mxu1 %v18385_v33  ;;  %v18433_v60 = vld [vmem:[#allocation8 + $0x4c] ss:$12 sps:$4 sm:$0xff]   ;;  %v18439_v33 = vld [vmem:[#allocation8 + $0x1c] ss:$12 sps:$4 sm:$0xff]  }
 0x970   :  { %9277 = vmatprep.subr.bf16.mxu0 %v18388_v12  ;;  %v18446_v12 = vld [vmem:[#allocation8 + $0x170] ss:$12 sps:$4 sm:$0xff]  }
 0x972   :  { %9235 = vmatpush2.bf16.msra.mxu1 %v18383_v61  ;;  %v18437_v61 = vld [vmem:[#allocation8 + $0x18] ss:$12 sps:$4 sm:$0xff]  }
 0x973   :  { %9278 = vmatpush2.bf16.msra.mxu0 %v18386_v44  ;;  %9236 = vmatprep.subr.bf16.mxu1 %v18391_v3  ;;  %v18447_v44 = vld [vmem:[#allocation8 + $0xb0] ss:$12 sps:$4 sm:$0xff]  }
 0x974   :  { %9279 = vmatprep.subr.bf16.mxu0 %v18394_v38  ;;  %v18442_v3 = vld [vmem:[#allocation8 + $0x4] ss:$12 sps:$4 sm:$0xff]  }
 0x975   :  { %v18451_v38 = vld [vmem:[#allocation8 + $0x158] ss:$12 sps:$4 sm:$0xff]  }
 0x976   :  { %9237 = vmatpush2.bf16.msra.mxu1 %v18389_v36  ;;  %v18452_v36 = vld [vmem:[#allocation8 + $0x98] ss:$12 sps:$4 sm:$0xff]  }
 0x977   :  { %9280 = vmatpush2.bf16.msra.mxu0 %v18392_v18  ;;  %9238 = vmatprep.subr.bf16.mxu1 %v18397_v24  ;;  %v18456_v18 = vld [vmem:[#allocation8 + $0x140] ss:$12 sps:$4 sm:$0xff]  }
 0x978   :  { %9281 = vmatprep.subr.bf16.mxu0 %v18400_v11  ;;  %v18440_v24 = vld [vmem:[#allocation8] ss:$12 sps:$4 sm:$0xff]  }
 0x979   :  { %v18445_v11 = vld [vmem:[#allocation8 + $0x16c] ss:$12 sps:$4 sm:$0xff]  }
 0x97a   :  { %9239 = vmatpush2.bf16.msra.mxu1 %v18395_v19  ;;  %v18457_v19 = vld [vmem:[#allocation8 + $0x80] ss:$12 sps:$4 sm:$0xff]  }
 0x97b   :  { %9282 = vmatpush2.bf16.msra.mxu0 %v18398_v26  ;;  %9240 = vmatprep.subr.bf16.mxu1 %v18403_v9  ;;  %v18461_v26 = vld [vmem:[#allocation8 + $0x128] ss:$12 sps:$4 sm:$0xff]  }
 0x97c   :  { %9283 = vmatprep.subr.bf16.mxu0 %v18406_v31  ;;  %v18443_v9 = vld [vmem:[#allocation8 + $0x168] ss:$12 sps:$4 sm:$0xff]  }
 0x97e   :  { %9241 = vmatpush2.bf16.msra.mxu1 %v18401_v6  ;;  %v18450_v6 = vld [vmem:[#allocation8 + $0x154] ss:$12 sps:$4 sm:$0xff]  }
 0x97f   :  { %9284 = vmatpush2.bf16.msra.mxu0 %v18404_v41  ;;  %9242 = vmatprep.subr.bf16.mxu1 %v18409_v50  ;;  %v18462_v41 = vld [vmem:[#allocation8 + $0x68] ss:$12 sps:$4 sm:$0xff]   ;;  %v18466_v50 = vld [vmem:[#allocation8 + $0x110] ss:$12 sps:$4 sm:$0xff]  }
 0x980   :  { %9285 = vmatprep.subr.bf16.mxu0 %v18412_v20  ;;  %v18448_v20 = vld [vmem:[#allocation8 + $0x150] ss:$12 sps:$4 sm:$0xff]  }
 0x982   :  { %9243 = vmatpush2.bf16.msra.mxu1 %v18407_v57 }
 0x983   :  { %9286 = vmatpush2.bf16.msra.mxu0 %v18410_v23  ;;  %9244 = vmatprep.subr.bf16.mxu1 %v18415_v59  ;;  %v18455_v23 = vld [vmem:[#allocation8 + $0x13c] ss:$12 sps:$4 sm:$0xff]  }
 0x984   :  { %9287 = vmatprep.subr.bf16.mxu0 %v18418_v10  ;;  %v18467_v59 = vld [vmem:[#allocation8 + $0x50] ss:$12 sps:$4 sm:$0xff]   ;;  %v18471_v10 = vld [vmem:[#allocation8 + $0xf8] ss:$12 sps:$4 sm:$0xff]  }
 0x986   :  { %9245 = vmatpush2.bf16.msra.mxu1 %v18413_v58  ;;  %v18453_v58 = vld [vmem:[#allocation8 + $0x138] ss:$12 sps:$4 sm:$0xff]  }
 0x987   :  { %9288 = vmatpush2.bf16.msra.mxu0 %v18416_v21  ;;  %9723 = vmatprep.subr.bf16.mxu1 %v18421_v43  ;;  %v18460_v21 = vld [vmem:[#allocation8 + $0x124] ss:$12 sps:$4 sm:$0xff]   ;;  %v18476_v43 = vld [vmem:[#allocation8 + $0xe0] ss:$12 sps:$4 sm:$0xff]  }
 0x988   :  { %16703 = vmatprep.subr.bf16.mxu0 %v18446_v12  ;;  %v18485_v12 = vld [vmem:[#allocation2 + $0x74] ss:$8 sps:$4 sm:$0xff]  }
 0x989   :  { %9247 = vmatmul.mubr.bf16.vlgmr.msra.gmra.mxu1 %v20475_v53 }
 0x98a   :  { %9290 = vmatmul.mubr.bf16.vlgmr.msra.gmra.mxu0 %v20475_v53  ;;  %9724 = vmatpush1.bf16.msra.mxu1 %v18419_v29  ;;  %v18434_v53 = vld [vmem:[#allocation8 + $0x30] ss:$12 sps:$4 sm:$0xff]   ;;  %v18472_v29 = vld [vmem:[#allocation8 + $0x38] ss:$12 sps:$4 sm:$0xff]  }
 0x98b   :  { %9725 = vmatprep.subr.bf16.mxu1 %v18424_v51  ;;  %16704 = vmatpush3.bf16.msra.mxu0 %v18447_v44  ;;  %v18458_v51 = vld [vmem:[#allocation8 + $0x120] ss:$12 sps:$4 sm:$0xff]  }
 0x98c   :  { %16705 = vmatprep.subr.bf16.mxu0 %v18451_v38 }
 0x98e   :  { %9726 = vmatpush1.bf16.msra.mxu1 %v18422_v63  ;;  %v18465_v63 = vld [vmem:[#allocation8 + $0x10c] ss:$12 sps:$4 sm:$0xff]  }
 0x98f   :  { %9727 = vmatprep.subr.bf16.mxu1 %v18427_v46  ;;  %16706 = vmatpush3.bf16.msra.mxu0 %v18452_v36  ;;  %v18477_v46 = vld [vmem:[#allocation8 + $0x20] ss:$12 sps:$4 sm:$0xff]   ;;  %v18468_v36 = vld [vmem:[#allocation8 + $0xf0] ss:$12 sps:$4 sm:$0xff]  }
 0x990   :  { %16707 = vmatprep.subr.bf16.mxu0 %v18456_v18  ;;  %v18475_v18 = vld [vmem:[#allocation8 + $0xdc] ss:$12 sps:$4 sm:$0xff]  }
 0x992   :  { %9728 = vmatpush1.bf16.msra.mxu1 %v18425_v15 }
 0x993   :  { %9729 = vmatprep.subr.bf16.mxu1 %v18430_v28  ;;  %16708 = vmatpush3.bf16.msra.mxu0 %v18457_v19  ;;  %v18481_v28 = vld [vmem:[#allocation8 + $0xc8] ss:$12 sps:$4 sm:$0xff]   ;;  %v18478_v19 = vld [vmem:[#allocation8 + $0xc0] ss:$12 sps:$4 sm:$0xff]  }
 0x994   :  { %16709 = vmatprep.subr.bf16.mxu0 %v18461_v26  ;;  %v18488_v26 = vld [vmem:[#allocation2 + $0x174] ss:$8 sps:$4 sm:$0xff]  }
 0x996   :  { %9730 = vmatpush1.bf16.msra.mxu1 %v18428_v37 }
 0x997   :  { %9731 = vmatprep.subr.bf16.mxu1 %v18433_v60  ;;  %16710 = vmatpush3.bf16.msra.mxu0 %v18462_v41  ;;  %v18470_v60 = vld [vmem:[#allocation8 + $0xf4] ss:$12 sps:$4 sm:$0xff]  }
 0x998   :  { %16711 = vmatprep.subr.bf16.mxu0 %v18466_v50  ;;  %v20555_v41 = vld [vmem:[%s20947_s6] sm:$0x3f] }
 0x99a   :  { %9732 = vmatpush1.bf16.msra.mxu1 %v18431_v7  ;;  %v18463_v7 = vld [vmem:[#allocation8 + $0x108] ss:$12 sps:$4 sm:$0xff]  }
 0x99b   :  { %9733 = vmatprep.subr.bf16.mxu1 %v18436_v17  ;;  %16712 = vmatpush3.bf16.msra.mxu0 %v18467_v59  ;;  %v18482_v17 = vld [vmem:[#allocation8 + $0x8] ss:$12 sps:$4 sm:$0xff]  }
 0x99c   :  { %16713 = vmatprep.subr.bf16.mxu0 %v18471_v10 }
 0x99e   :  { %9734 = vmatpush1.bf16.msra.mxu1 %v18434_v53 }
 0x99f   :  { %9735 = vmatprep.subr.bf16.mxu1 %v18439_v33  ;;  %16714 = vmatpush3.bf16.msra.mxu0 %v18472_v29 }
 0x9a0   :  { %16715 = vmatprep.subr.bf16.mxu0 %v18476_v43 }
 0x9a2   :  { %9736 = vmatpush1.bf16.msra.mxu1 %v18437_v61 }
 0x9a3   :  { %9737 = vmatprep.subr.bf16.mxu1 %v18442_v3  ;;  %16716 = vmatpush3.bf16.msra.mxu0 %v18477_v46 }
 0x9a4   :  { %16717 = vmatprep.subr.bf16.mxu0 %v18481_v28 }
 0x9a6   :  { %9738 = vmatpush1.bf16.msra.mxu1 %v18440_v24 }
 0x9a7   :  { %9739 = vmatprep.subr.bf16.mxu1 %v18445_v11  ;;  %16718 = vmatpush3.bf16.msra.mxu0 %v18482_v17  ;;  %v18480_v11 = vld [vmem:[#allocation8 + $0xc4] ss:$12 sps:$4 sm:$0xff]  }
 0x9a8   :  { %10178 = vmatprep.subr.bf16.mxu0 %v18485_v12 }
 0x9aa   :  { %9740 = vmatpush2.bf16.msra.mxu1 %v18443_v9 }
 0x9ab   :  { %9741 = vmatprep.subr.bf16.mxu1 %v18450_v6 }
 0x9ae   :  { %9742 = vmatpush2.bf16.msra.mxu1 %v18448_v20  ;;  %v20560_v20 = vld [vmem:[%s20946_s5] sm:$0x3f] }
 0x9af   :  { %9743 = vmatprep.subr.bf16.mxu1 %v18455_v23  ;;  %v8664_v23 = vrot.slane %v20555_v41, %v20100_v8  ;;  %v7931_v10 = vrot.slane %v20560_v20, %v20090_v30 }
 0x9b2   :  { %9744 = vmatpush2.bf16.msra.mxu1 %v18453_v58  ;;  %v7927_v58 = vrot.slane %v20560_v20, %v20100_v8 }
 0x9b3   :  { %9745 = vmatprep.subr.bf16.mxu1 %v18460_v21 }
 0x9b6   :  { %9746 = vmatpush2.bf16.msra.mxu1 %v18458_v51 }
 0x9b7   :  { %9747 = vmatprep.subr.bf16.mxu1 %v18465_v63 }
 0x9ba   :  { %9748 = vmatpush2.bf16.msra.mxu1 %v18463_v7 }
 0x9bb   :  { %9749 = vmatprep.subr.bf16.mxu1 %v18470_v60 }
 0x9be   :  { %9750 = vmatpush2.bf16.msra.mxu1 %v18468_v36 }
 0x9bf   :  { %9751 = vmatprep.subr.bf16.mxu1 %v18475_v18 }
 0x9f2   :  { %v7396_v31 = vpop.xlane.xlu1 %7395 }
 0x9f3   :  { %19495 = vlog2.f32 %v7396_v31 }
 0x9f6   :  { %v7400_v57 = vpop.xlane.xlu0 %7399 }
 0x9f7   :  { %19497 = vlog2.f32 %v7400_v57  ;;  %v8668_v57 = vrot.slane %v20555_v41, %v20090_v30 }
 0xa00   :  { %v19496_v15 = vpop.eup %19495 }
 0xa01   :  { %v7402_v37 = vmul.f32 0.6931472, %v19496_v15 }
 0xa03   :  { %v7405_v53 = vadd.f32 %v7402_v37, %v20524_v16 }
 0xa04   :  { %v19498_v33 = vpop.eup %19497 }
 0xa05   :  { %v7407_v61 = vsub.f32 %v20497_v56, %v7405_v53  ;;  %v7408_v44 = vsub.f32 %v20501_v27, %v7405_v53  ;;  %v7409_v3 = vsub.f32 %v20499_v52, %v7405_v53  ;;  %v7404_v38 = vmul.f32 0.6931472, %v19498_v33  ;;  %v18473_v52 = vld [vmem:[#allocation8 + $0xd8] ss:$12 sps:$4 sm:$0xff]  }
 0xa06   :  { %9752 = vmatpush2.bf16.msra.mxu1 %v18473_v52 }
 0xa07   :  { %7414 = vst [vmem:[#allocation10 + $0x60] sm:$0xff] %v7407_v61  ;;  %7415 = vst [vmem:[#allocation10 + $0x68] sm:$0xff] %v7408_v44  ;;  %v7406_v16 = vadd.f32 %v7404_v38, %v20532_v54  ;;  %9753 = vmatprep.subr.bf16.mxu1 %v18480_v11  ;;  %v8511_v54 = vpop.f32.mrf.mxu0 }
 0xa08   :  { %7416 = vst [vmem:[#allocation10 + $0x70] sm:$0xff] %v7409_v3 }
 0xa09   :  { %v7410_v24 = vsub.f32 %v20505_v25, %v7406_v16  ;;  %v7411_v56 = vsub.f32 %v20510_v13, %v7406_v16  ;;  %v7412_v27 = vsub.f32 %v20507_v45, %v7406_v16  ;;  %v8513_v9 = vpop.f32.mrf.mxu0  ;;  %v8468_v45 = vpop.f32.mrf.mxu1 }
 0xa0a   :  { %9754 = vmatpush2.bf16.msra.mxu1 %v18478_v19  ;;  %v8469_v15 = vadd.f32 %v8468_v45, %v7927_v58 }
 0xa0b   :  { %7417 = vst [vmem:[#allocation10 + $0x78] sm:$0xff] %v7410_v24  ;;  %7418 = vst [vmem:[#allocation10 + $0x80] sm:$0xff] %v7411_v56  ;;  %10221 = vmatprep.subr.bf16.mxu1 %v18488_v26  ;;  %v8515_v25 = vpop.f32.mrf.mxu0  ;;  %v8470_v50 = vpop.f32.mrf.mxu1  ;;  %v7935_v56 = vrot.slane %v20560_v20, %v20118_v48  ;;  %v7939_v26 = vrot.slane %v20560_v20, %v20123_v49 }
 0xa0c   :  { %7419 = vst [vmem:[#allocation10 + $0x88] sm:$0xff] %v7412_v27  ;;  %v8471_v63 = vadd.f32 %v8470_v50, %v7931_v10  ;;  %v8672_v27 = vrot.slane %v20555_v41, %v20118_v48 }
 0xa0d   :  { %v20550_v31 = vpop.f32.mrf.mxu0  ;;  %v8472_v21 = vpop.f32.mrf.mxu1 }
 0xa0e   :  { %v8473_v37 = vadd.f32 %v8472_v21, %v7927_v58  ;;  %v8514_v21 = vadd.f32 %v8513_v9, %v7939_v26 }
 0xa0f   :  { %v9205_v13 = vpop.f32.mrf.mxu0  ;;  %v8474_v28 = vpop.f32.mrf.mxu1 }
 0xa10   :  { %v9206_v43 = vadd.f32 %v9205_v13, %v8664_v23  ;;  %v8475_v17 = vadd.f32 %v8474_v28, %v7931_v10  ;;  %v8676_v13 = vrot.slane %v20555_v41, %v20123_v49 }
 0xa11   :  { %v9207_v6 = vpop.f32.mrf.mxu0  ;;  %v20570_v36 = vpop.f32.mrf.mxu1 }
 0xa12   :  { %v9208_v29 = vadd.f32 %v9207_v6, %v8668_v57  ;;  %v9300_v53 = vadd.f32 %v9206_v43, %v8469_v15 }
 0xa13   :  { %v9209_v59 = vpop.f32.mrf.mxu0  ;;  %v8556_v18 = vpop.f32.mrf.mxu1 }
 0xa14   :  { %v9210_v46 = vadd.f32 %v9209_v59, %v8664_v23  ;;  %v9301_v7 = vadd.f32 %v9208_v29, %v8471_v63  ;;  %v15961_v44 = vmul.f32 -1.442695, %v9300_v53 }
 0xa15   :  { %v9211_v51 = vpop.f32.mrf.mxu0  ;;  %v20572_v16 = vpop.f32.mrf.mxu1 }
 0xa16   :  { %v9212_v60 = vadd.f32 %v9211_v51, %v8668_v57  ;;  %v9302_v33 = vadd.f32 %v9210_v46, %v8473_v37  ;;  %v15962_v12 = vmul.f32 -1.442695, %v9301_v7  ;;  %v8512_v57 = vadd.f32 %v8511_v54, %v7935_v56 }
 0xa17   :  { %v20578_v11 = vpop.f32.mrf.mxu1  ;;  %v8516_v51 = vadd.f32 %v8515_v25, %v7935_v56 }
 0xa18   :  { %v9303_v61 = vadd.f32 %v9212_v60, %v8475_v17  ;;  %v15963_v3 = vmul.f32 -1.442695, %v9302_v33  ;;  %19499 = vpow2.f32 %v15962_v12  ;;  %v8518_v60 = vadd.f32 %v20550_v31, %v7939_v26 }
 0xa19   :  { %19501 = vpow2.f32 %v15961_v44  ;;  %v8680_v31 = vrot.slane %v20555_v41, %v20143_v39 }
 0xa1a   :  { %v15964_v38 = vmul.f32 -1.442695, %v9303_v61  ;;  %19503 = vpow2.f32 %v15963_v3  ;;  %v8684_v61 = vrot.slane %v20555_v41, %v20138_v22 }
 0xa1c   :  { %19505 = vpow2.f32 %v15964_v38 }
 0xa25   :  { %v19500_v24 = vpop.eup %19499 }
 0xa26   :  { %v19502_v52 = vpop.eup %19501  ;;  %v9317_v45 = vadd.f32 1.0, %v19500_v24  ;;  %v7947_v24 = vrot.slane %v20560_v20, %v20138_v22 }
 0xa27   :  { %v19504_v19 = vpop.eup %19503  ;;  %v9316_v23 = vadd.f32 1.0, %v19502_v52 }
 0xa28   :  { %v9318_v10 = vadd.f32 1.0, %v19504_v19  ;;  %19507 = vrcp.f32 %v9317_v45 }
 0xa29   :  { %v19506_v50 = vpop.eup %19505  ;;  %19509 = vrcp.f32 %v9316_v23  ;;  %v8557_v23 = vadd.f32 %v8556_v18, %v7947_v24 }
 0xa2a   :  { %v9319_v63 = vadd.f32 1.0, %v19506_v50  ;;  %19511 = vrcp.f32 %v9318_v10 }
 0xa35   :  { %v19508_v52 = vpop.eup %19507 }
 0xa36   :  { %v19510_v19 = vpop.eup %19509 }
 0xa37   :  { %v19512_v45 = vpop.eup %19511 }
 0xa49   :  { %v9248_v6 = vpop.f32.mrf.mxu1 }
 0xa4a   :  { %v9249_v59 = vadd.f32 %v9248_v6, %v8672_v27  ;;  %v9291_v46 = vpop.f32.mrf.mxu0 }
 0xa4b   :  { %v9250_v58 = vpop.f32.mrf.mxu1  ;;  %v9292_v26 = vadd.f32 %v9291_v46, %v8680_v31 }
 0xa4c   :  { %v9328_v29 = vadd.f32 %v9249_v59, %v8512_v57  ;;  %v9251_v43 = vadd.f32 %v9250_v58, %v8676_v13  ;;  %v9293_v9 = vpop.f32.mrf.mxu0  ;;  %v7943_v57 = vrot.slane %v20560_v20, %v20143_v39 }
 0xa4d   :  { %v9252_v15 = vpop.f32.mrf.mxu1  ;;  %v9294_v38 = vadd.f32 %v9293_v9, %v8684_v61 }
 0xa4e   :  { %v15965_v28 = vmul.f32 -1.442695, %v9328_v29  ;;  %v9329_v37 = vadd.f32 %v9251_v43, %v8514_v21  ;;  %v9253_v7 = vadd.f32 %v9252_v15, %v8672_v27  ;;  %v9295_v3 = vpop.f32.mrf.mxu0  ;;  %v8559_v21 = vadd.f32 %v20572_v16, %v7943_v57 }
 0xa4f   :  { %v9254_v54 = vpop.f32.mrf.mxu1  ;;  %v9296_v56 = vadd.f32 %v9295_v3, %v8680_v31  ;;  %v9356_v29 = vmul.f32 %v19510_v19, %v9292_v26  ;;  %v8555_v46 = vadd.f32 %v20570_v36, %v7943_v57 }
 0xa50   :  { %19513 = vpow2.f32 %v15965_v28  ;;  %v15966_v53 = vmul.f32 -1.442695, %v9329_v37  ;;  %v9330_v17 = vadd.f32 %v9253_v7, %v8516_v51  ;;  %v9255_v33 = vadd.f32 %v9254_v54, %v8676_v13  ;;  %v9297_v27 = vpop.f32.mrf.mxu0 }
 0xa51   :  { %19515 = vrcp.f32 %v9319_v63  ;;  %v9357_v13 = vmul.f32 %v19508_v52, %v9294_v38  ;;  %v9298_v6 = vadd.f32 %v9297_v27, %v8684_v61  ;;  %v9358_v59 = vmul.f32 %v19512_v45, %v9296_v56 }
 0xa52   :  { %19517 = vpow2.f32 %v15966_v53  ;;  %v15967_v25 = vmul.f32 -1.442695, %v9330_v17  ;;  %v9331_v12 = vadd.f32 %v9255_v33, %v8518_v60  ;;  %v8561_v37 = vadd.f32 %v20578_v11, %v7947_v24 }
 0xa53   :  { %v9361_v43 = vadd.f32 %v9357_v13, %v8557_v23  ;;  %v9362_v28 = vadd.f32 %v9358_v59, %v8559_v21  ;;  %v9360_v7 = vadd.f32 %v9356_v29, %v8555_v46  ;;  %v18486_v23 = vld [vmem:[#allocation2 + $0x170] ss:$8 sps:$4 sm:$0xff]   ;;  %v18489_v59 = vld [vmem:[#allocation2 + $0x60] ss:$8 sps:$4 sm:$0xff]   ;;  %v18512_v46 = vld [vmem:[#allocation2 + $0x134] ss:$8 sps:$4 sm:$0xff]  }
 0xa54   :  { %19519 = vpow2.f32 %v15967_v25  ;;  %v15968_v44 = vmul.f32 -1.442695, %v9331_v12  ;;  %v18495_v21 = vld [vmem:[#allocation2 + $0x50] ss:$8 sps:$4 sm:$0xff]  }
 0xa55   :  { %v18498_v29 = vld [vmem:[#allocation2 + $0x150] ss:$8 sps:$4 sm:$0xff]  }
 0xa56   :  { %19521 = vpow2.f32 %v15968_v44 }
 0xa5d   :  { %v19514_v50 = vpop.eup %19513 }
 0xa5e   :  { %v19516_v10 = vpop.eup %19515  ;;  %v9344_v41 = vadd.f32 1.0, %v19514_v50 }
 0xa5f   :  { %v19518_v58 = vpop.eup %19517  ;;  %v9359_v63 = vmul.f32 %v19516_v10, %v9298_v6  ;;  %v18492_v10 = vld [vmem:[#allocation2 + $0x160] ss:$8 sps:$4 sm:$0xff]  }
 0xa60   :  { %v9345_v51 = vadd.f32 1.0, %v19518_v58  ;;  %19523 = vrcp.f32 %v9344_v41  ;;  %v18497_v41 = vld [vmem:[#allocation2 + $0x54] ss:$8 sps:$4 sm:$0xff]  }
 0xa61   :  { %v19520_v15 = vpop.eup %19519  ;;  %v9363_v54 = vadd.f32 %v9359_v63, %v8561_v37  ;;  %v18500_v58 = vld [vmem:[#allocation2 + $0x154] ss:$8 sps:$4 sm:$0xff]   ;;  %v18501_v63 = vld [vmem:[#allocation2 + $0x40] ss:$8 sps:$4 sm:$0xff]   ;;  %v18510_v37 = vld [vmem:[#allocation2 + $0x130] ss:$8 sps:$4 sm:$0xff]  }
 0xa62   :  { %19525 = vrcp.f32 %v9345_v51  ;;  %v9346_v20 = vadd.f32 1.0, %v19520_v15  ;;  %v18506_v51 = vld [vmem:[#allocation2 + $0x144] ss:$8 sps:$4 sm:$0xff]   ;;  %v18504_v15 = vld [vmem:[#allocation2 + $0x140] ss:$8 sps:$4 sm:$0xff]  }
 0xa63   :  { %v19522_v18 = vpop.eup %19521  ;;  %19527 = vtanh.f32 %v9361_v43  ;;  %v18503_v43 = vld [vmem:[#allocation2 + $0x44] ss:$8 sps:$4 sm:$0xff]  }
 0xa64   :  { %19529 = vrcp.f32 %v9346_v20  ;;  %v9347_v60 = vadd.f32 1.0, %v19522_v18  ;;  %v18515_v20 = vld [vmem:[#allocation2 + $0x24] ss:$8 sps:$4 sm:$0xff]  }
 0xa65   :  { %19531 = vtanh.f32 %v9362_v28  ;;  %v18507_v28 = vld [vmem:[#allocation2 + $0x30] ss:$8 sps:$4 sm:$0xff]   ;;  %v18518_v18 = vld [vmem:[#allocation2 + $0x124] ss:$8 sps:$4 sm:$0xff]  }
 0xa66   :  { %19533 = vrcp.f32 %v9347_v60  ;;  %v18516_v60 = vld [vmem:[#allocation2 + $0x120] ss:$8 sps:$4 sm:$0xff]  }
 0xa67   :  { %19535 = vtanh.f32 %v9360_v7  ;;  %v18513_v7 = vld [vmem:[#allocation2 + $0x20] ss:$8 sps:$4 sm:$0xff]  }
 0xa68   :  { %19537 = vtanh.f32 %v9363_v54  ;;  %v18521_v54 = vld [vmem:[#allocation2 + $0x14] ss:$8 sps:$4 sm:$0xff]  }
 0xa6d   :  { %v19524_v16 = vpop.eup %19523 }
 0xa6e   :  { %v9368_v9 = vsub.f32 1.0, %v19524_v16  ;;  %v9376_v26 = vmul.f32 %v19524_v16, %v20467_v40  ;;  %v18494_v40 = vld [vmem:[#allocation2 + $0x164] ss:$8 sps:$4 sm:$0xff]   ;;  %v18524_v16 = vld [vmem:[#allocation2 + $0x114] ss:$8 sps:$4 sm:$0xff]  }
 0xa6f   :  { %v19526_v53 = vpop.eup %19525 }
 0xa70   :  { %v19528_v17 = vpop.eup %19527  ;;  %v9369_v36 = vsub.f32 1.0, %v19526_v53  ;;  %v9377_v52 = vmul.f32 %v19526_v53, %v20463_v47  ;;  %v18519_v53 = vld [vmem:[#allocation2 + $0x10] ss:$8 sps:$4 sm:$0xff]  }
 0xa71   :  { %v19530_v33 = vpop.eup %19529 }
 0xa72   :  { %v19532_v25 = vpop.eup %19531  ;;  %v9370_v11 = vsub.f32 1.0, %v19530_v33  ;;  %v9373_v3 = vmul.f32 %v19528_v17, %v9369_v36  ;;  %v9378_v56 = vmul.f32 %v19530_v33, %v20461_v62  ;;  %v18483_v62 = vld [vmem:[#allocation2 + $0x70] ss:$8 sps:$4 sm:$0xff]   ;;  %v18527_v36 = vld [vmem:[#allocation2 + $0x4] ss:$8 sps:$4 sm:$0xff]  }
 0xa73   :  { %v19534_v12 = vpop.eup %19533  ;;  %v18522_v17 = vld [vmem:[#allocation2 + $0x110] ss:$8 sps:$4 sm:$0xff]   ;;  %v18530_v33 = vld [vmem:[#allocation2 + $0x104] ss:$8 sps:$4 sm:$0xff]  }
 0xa74   :  { %v19536_v61 = vpop.eup %19535  ;;  %v9371_v44 = vsub.f32 1.0, %v19534_v12  ;;  %v9374_v31 = vmul.f32 %v19532_v25, %v9370_v11  ;;  %v9379_v19 = vmul.f32 %v19534_v12, %v20465_v34  ;;  %v20602_v45 = vadd.f32 %v9377_v52, %v9373_v3  ;;  %v18491_v34 = vld [vmem:[#allocation2 + $0x64] ss:$8 sps:$4 sm:$0xff]   ;;  %v18528_v25 = vld [vmem:[#allocation2 + $0x100] ss:$8 sps:$4 sm:$0xff]  }
 0xa75   :  { %v19538_v38 = vpop.eup %19537  ;;  %v9372_v24 = vmul.f32 %v19536_v61, %v9368_v9  ;;  %v18525_v9 = vld [vmem:[#allocation2] ss:$8 sps:$4 sm:$0xff]   ;;  %v18533_v11 = vld [vmem:[#allocation2 + $0xf4] ss:$8 sps:$4 sm:$0xff]   ;;  %v18531_v12 = vld [vmem:[#allocation2 + $0xf0] ss:$8 sps:$4 sm:$0xff]  }
 0xa76   :  { %v9375_v27 = vmul.f32 %v19538_v38, %v9371_v44  ;;  %v20600_v13 = vadd.f32 %v9378_v56, %v9374_v31  ;;  %v18536_v61 = vld [vmem:[#allocation2 + $0xe4] ss:$8 sps:$4 sm:$0xff]   ;;  %v18534_v44 = vld [vmem:[#allocation2 + $0xe0] ss:$8 sps:$4 sm:$0xff]   ;;  %v18539_v3 = vld [vmem:[#allocation2 + $0xd4] ss:$8 sps:$4 sm:$0xff]  }
 0xa77   :  { %v20606_v50 = vadd.f32 %v9376_v26, %v9372_v24  ;;  %v18537_v31 = vld [vmem:[#allocation2 + $0xd0] ss:$8 sps:$4 sm:$0xff]   ;;  %v18542_v38 = vld [vmem:[#allocation2 + $0xc4] ss:$8 sps:$4 sm:$0xff]   ;;  %v18540_v24 = vld [vmem:[#allocation2 + $0xc0] ss:$8 sps:$4 sm:$0xff]  }
 0xa78   :  { %v20604_v6 = vadd.f32 %v9379_v19, %v9375_v27  ;;  %v18545_v56 = vld [vmem:[#allocation2 + $0xb4] ss:$8 sps:$4 sm:$0xff]   ;;  %v18543_v27 = vld [vmem:[#allocation2 + $0xb0] ss:$8 sps:$4 sm:$0xff]   ;;  %v18548_v52 = vld [vmem:[#allocation2 + $0xa4] ss:$8 sps:$4 sm:$0xff]  }
 0xa79   :  { %v20614_v47 = vpack.c.bf16 %v20600_v13, %v20606_v50  ;;  %v18546_v19 = vld [vmem:[#allocation2 + $0xa0] ss:$8 sps:$4 sm:$0xff]   ;;  %v18549_v26 = vld [vmem:[#allocation2 + $0x90] ss:$8 sps:$4 sm:$0xff]  }
 0xa7a   :  { %v20610_v57 = vpack.c.bf16 %v20604_v6, %v20602_v45 }
 0xa7c   :  { %9755 = vmatprep.mubr.bf16.mxu1 %v20610_v57  ;;  %9798 = vmatprep.mubr.bf16.mxu0 %v20610_v57 }
 0xa7d   :  { %9756 = vmatmul.mubr.bf16.vlgmr.msra.gmra.mxu1 %v20614_v47  ;;  %9799 = vmatmul.mubr.bf16.vlgmr.msra.gmra.mxu0 %v20614_v47 }
 0xa7e   :  { %10179 = vmatpush1.bf16.msra.mxu0 %v18483_v62  ;;  %10222 = vmatpush1.bf16.msra.mxu1 %v18486_v23  ;;  %v18554_v62 = vld [vmem:[#allocation2 + $0x84] ss:$8 sps:$4 sm:$0xff]   ;;  %v18552_v23 = vld [vmem:[#allocation2 + $0x80] ss:$8 sps:$4 sm:$0xff]  }
 0xa7f   :  { %16074 = vmatprep.mubr.msk.bf16.mxu0 %vm20078_vm13, %v19812_v14  ;;  %10180 = vmatprep.subr.bf16.mxu0 %v18491_v34  ;;  %v18555_v34 = vld [vmem:[#allocation5 + $0x150] ss:$24 sps:$4 sm:$0xff]   ;;  %vm16385_vm13 = vmpackc.low %vm12312_vm10, %vm12309_vm9 }
 0xa80   :  { %10223 = vmatprep.subr.bf16.mxu1 %v18494_v40  ;;  %10253 = vmatprep.mubr.bf16.mxu1 %v19811_v0  ;;  %v18557_v40 = vld [vmem:[#allocation5 + $0x154] ss:$24 sps:$4 sm:$0xff]  }
 0xa82   :  { %10181 = vmatpush1.bf16.msra.mxu0 %v18489_v59  ;;  %10224 = vmatpush1.bf16.msra.mxu1 %v18492_v10  ;;  %v18558_v59 = vld [vmem:[#allocation5 + $0x158] ss:$24 sps:$4 sm:$0xff]   ;;  %v18560_v10 = vld [vmem:[#allocation5 + $0x15c] ss:$24 sps:$4 sm:$0xff]  }
 0xa83   :  { %10182 = vmatprep.subr.bf16.mxu0 %v18497_v41  ;;  %10225 = vmatprep.subr.bf16.mxu1 %v18500_v58  ;;  %v18563_v41 = vld [vmem:[#allocation5 + $0x124] ss:$24 sps:$4 sm:$0xff]   ;;  %v18561_v58 = vld [vmem:[#allocation5 + $0x120] ss:$24 sps:$4 sm:$0xff]  }
 0xa86   :  { %10183 = vmatpush1.bf16.msra.mxu0 %v18495_v21  ;;  %10226 = vmatpush1.bf16.msra.mxu1 %v18498_v29  ;;  %v18566_v21 = vld [vmem:[#allocation5 + $0x12c] ss:$24 sps:$4 sm:$0xff]   ;;  %v18564_v29 = vld [vmem:[#allocation5 + $0x128] ss:$24 sps:$4 sm:$0xff]  }
 0xa87   :  { %10184 = vmatprep.subr.bf16.mxu0 %v18503_v43  ;;  %10227 = vmatprep.subr.bf16.mxu1 %v18506_v51  ;;  %v18569_v43 = vld [vmem:[#allocation5 + $0xf4] ss:$24 sps:$4 sm:$0xff]   ;;  %v18567_v51 = vld [vmem:[#allocation5 + $0xf0] ss:$24 sps:$4 sm:$0xff]  }
 0xa8a   :  { %10185 = vmatpush1.bf16.msra.mxu0 %v18501_v63  ;;  %10228 = vmatpush1.bf16.msra.mxu1 %v18504_v15  ;;  %v18572_v63 = vld [vmem:[#allocation5 + $0xfc] ss:$24 sps:$4 sm:$0xff]  }
 0xa8b   :  { %10186 = vmatprep.subr.bf16.mxu0 %v18509_v55  ;;  %10229 = vmatprep.subr.bf16.mxu1 %v18512_v46  ;;  %v18575_v15 = vld [vmem:[#allocation5 + $0xc4] ss:$24 sps:$4 sm:$0xff]   ;;  %v18573_v46 = vld [vmem:[#allocation5 + $0xc0] ss:$24 sps:$4 sm:$0xff]  }
 0xa8c   :  { %v18578_v55 = vld [vmem:[#allocation5 + $0xcc] ss:$24 sps:$4 sm:$0xff]  }
 0xa8e   :  { %10187 = vmatpush1.bf16.msra.mxu0 %v18507_v28  ;;  %10230 = vmatpush1.bf16.msra.mxu1 %v18510_v37  ;;  %v18576_v28 = vld [vmem:[#allocation5 + $0xc8] ss:$24 sps:$4 sm:$0xff]   ;;  %v18581_v37 = vld [vmem:[#allocation5 + $0x94] ss:$24 sps:$4 sm:$0xff]  }
 0xa8f   :  { %10188 = vmatprep.subr.bf16.mxu0 %v18515_v20  ;;  %10231 = vmatprep.subr.bf16.mxu1 %v18518_v18  ;;  %v18584_v20 = vld [vmem:[#allocation5 + $0x9c] ss:$24 sps:$4 sm:$0xff]   ;;  %v18579_v18 = vld [vmem:[#allocation5 + $0x90] ss:$24 sps:$4 sm:$0xff]  }
 0xa92   :  { %10189 = vmatpush1.bf16.msra.mxu0 %v18513_v7  ;;  %10232 = vmatpush1.bf16.msra.mxu1 %v18516_v60  ;;  %v18582_v7 = vld [vmem:[#allocation5 + $0x98] ss:$24 sps:$4 sm:$0xff]   ;;  %v18587_v60 = vld [vmem:[#allocation5 + $0x64] ss:$24 sps:$4 sm:$0xff]  }
 0xa93   :  { %10190 = vmatprep.subr.bf16.mxu0 %v18521_v54  ;;  %10233 = vmatprep.subr.bf16.mxu1 %v18524_v16  ;;  %v18590_v54 = vld [vmem:[#allocation5 + $0x6c] ss:$24 sps:$4 sm:$0xff]   ;;  %v18585_v16 = vld [vmem:[#allocation5 + $0x60] ss:$24 sps:$4 sm:$0xff]  }
 0xa96   :  { %10191 = vmatpush1.bf16.msra.mxu0 %v18519_v53  ;;  %10234 = vmatpush1.bf16.msra.mxu1 %v18522_v17  ;;  %v18588_v53 = vld [vmem:[#allocation5 + $0x68] ss:$24 sps:$4 sm:$0xff]  }
 0xa97   :  { %10192 = vmatprep.subr.bf16.mxu0 %v18527_v36  ;;  %10235 = vmatprep.subr.bf16.mxu1 %v18530_v33  ;;  %v18591_v17 = vld [vmem:[#allocation5 + $0x30] ss:$24 sps:$4 sm:$0xff]   ;;  %v18593_v36 = vld [vmem:[#allocation5 + $0x34] ss:$24 sps:$4 sm:$0xff]  }
 0xa98   :  { %v18594_v33 = vld [vmem:[#allocation5 + $0x38] ss:$24 sps:$4 sm:$0xff]  }
 0xa9a   :  { %10193 = vmatpush1.bf16.msra.mxu0 %v18525_v9  ;;  %10236 = vmatpush1.bf16.msra.mxu1 %v18528_v25  ;;  %v18596_v9 = vld [vmem:[#allocation5 + $0x3c] ss:$24 sps:$4 sm:$0xff]   ;;  %v18597_v25 = vld [vmem:[#allocation5] ss:$24 sps:$4 sm:$0xff]  }
 0xa9b   :  { %10194 = vmatprep.subr.bf16.mxu0 %v18533_v11  ;;  %10874 = vmatprep.subr.bf16.mxu1 %v18557_v40  ;;  %v18599_v11 = vld [vmem:[#allocation5 + $0x4] ss:$24 sps:$4 sm:$0xff]   ;;  %v18621_v40 = vld [vmem:[#allocation5 + $0x240] ss:$24 sps:$4 sm:$0xff]  }
 0xa9d   :  { %16078 = vmatmul.mubr.msk.bf16.vlgmr.msra.gmra.mxu1 %vm20021_vm6, %v19812_v14 }
 0xa9e   :  { %10195 = vmatpush2.bf16.msra.mxu0 %v18531_v12  ;;  %10875 = vmatpush1.bf16.msra.mxu1 %v18555_v34  ;;  %v18600_v12 = vld [vmem:[#allocation5 + $0x8] ss:$24 sps:$4 sm:$0xff]   ;;  %v18626_v34 = vld [vmem:[#allocation5 + $0x24c] ss:$24 sps:$4 sm:$0xff]  }
 0xa9f   :  { %10196 = vmatprep.subr.bf16.mxu0 %v18536_v61  ;;  %10876 = vmatprep.subr.bf16.mxu1 %v18563_v41  ;;  %v18602_v61 = vld [vmem:[#allocation5 + $0xc] ss:$24 sps:$4 sm:$0xff]   ;;  %v18632_v41 = vld [vmem:[#allocation5 + $0x21c] ss:$24 sps:$4 sm:$0xff]  }
 0xaa2   :  { %10197 = vmatpush2.bf16.msra.mxu0 %v18534_v44  ;;  %10877 = vmatpush1.bf16.msra.mxu1 %v18561_v58  ;;  %v18605_v44 = vld [vmem:[#allocation5 + $0x2d4] ss:$24 sps:$4 sm:$0xff]   ;;  %v18627_v58 = vld [vmem:[#allocation5 + $0x210] ss:$24 sps:$4 sm:$0xff]  }
 0xaa3   :  { %10198 = vmatprep.subr.bf16.mxu0 %v18539_v3  ;;  %10878 = vmatprep.subr.bf16.mxu1 %v18569_v43  ;;  %v18608_v3 = vld [vmem:[#allocation5 + $0x2dc] ss:$24 sps:$4 sm:$0xff]   ;;  %v18638_v43 = vld [vmem:[#allocation5 + $0x1ec] ss:$24 sps:$4 sm:$0xff]  }
 0xaa6   :  { %10199 = vmatpush2.bf16.msra.mxu0 %v18537_v31  ;;  %10879 = vmatpush1.bf16.msra.mxu1 %v18567_v51  ;;  %v18603_v31 = vld [vmem:[#allocation5 + $0x2d0] ss:$24 sps:$4 sm:$0xff]   ;;  %v18633_v51 = vld [vmem:[#allocation5 + $0x1e0] ss:$24 sps:$4 sm:$0xff]  }
 0xaa7   :  { %10200 = vmatprep.subr.bf16.mxu0 %v18542_v38  ;;  %10880 = vmatprep.subr.bf16.mxu1 %v18575_v15  ;;  %v18606_v38 = vld [vmem:[#allocation5 + $0x2d8] ss:$24 sps:$4 sm:$0xff]   ;;  %v18641_v15 = vld [vmem:[#allocation5 + $0x1b4] ss:$24 sps:$4 sm:$0xff]  }
 0xaaa   :  { %10201 = vmatpush2.bf16.msra.mxu0 %v18540_v24  ;;  %10881 = vmatpush1.bf16.msra.mxu1 %v18573_v46  ;;  %v18611_v24 = vld [vmem:[#allocation5 + $0x2a4] ss:$24 sps:$4 sm:$0xff]  }
 0xaab   :  { %10202 = vmatprep.subr.bf16.mxu0 %v18545_v56  ;;  %10882 = vmatprep.subr.bf16.mxu1 %v18581_v37  ;;  %v18614_v56 = vld [vmem:[#allocation5 + $0x2ac] ss:$24 sps:$4 sm:$0xff]   ;;  %v18644_v46 = vld [vmem:[#allocation5 + $0x1bc] ss:$24 sps:$4 sm:$0xff]  }
 0xaac   :  { %v18647_v37 = vld [vmem:[#allocation5 + $0x184] ss:$24 sps:$4 sm:$0xff]  }
 0xaae   :  { %10203 = vmatpush2.bf16.msra.mxu0 %v18543_v27  ;;  %10883 = vmatpush1.bf16.msra.mxu1 %v18579_v18  ;;  %v18609_v27 = vld [vmem:[#allocation5 + $0x2a0] ss:$24 sps:$4 sm:$0xff]   ;;  %v18650_v18 = vld [vmem:[#allocation5 + $0x18c] ss:$24 sps:$4 sm:$0xff]  }
 0xaaf   :  { %10204 = vmatprep.subr.bf16.mxu0 %v18548_v52  ;;  %10884 = vmatprep.subr.bf16.mxu1 %v18587_v60  ;;  %v18612_v52 = vld [vmem:[#allocation5 + $0x2a8] ss:$24 sps:$4 sm:$0xff]   ;;  %v18656_v60 = vld [vmem:[#allocation7 + $0x154] ss:$24 sps:$4 sm:$0xff]  }
 0xab2   :  { %10205 = vmatpush2.bf16.msra.mxu0 %v18546_v19  ;;  %10885 = vmatpush1.bf16.msra.mxu1 %v18585_v16  ;;  %v18617_v19 = vld [vmem:[#allocation5 + $0x274] ss:$24 sps:$4 sm:$0xff]  }
 0xab3   :  { %10206 = vmatprep.subr.bf16.mxu0 %v18551_v35  ;;  %10886 = vmatprep.subr.bf16.mxu1 %v18593_v36  ;;  %v18620_v35 = vld [vmem:[#allocation5 + $0x27c] ss:$24 sps:$4 sm:$0xff]  }
 0xab6   :  { %10207 = vmatpush2.bf16.msra.mxu0 %v18549_v26  ;;  %10887 = vmatpush1.bf16.msra.mxu1 %v18591_v17  ;;  %v18615_v26 = vld [vmem:[#allocation5 + $0x270] ss:$24 sps:$4 sm:$0xff]  }
 0xab7   :  { %10208 = vmatprep.subr.bf16.mxu0 %v18554_v62  ;;  %10888 = vmatprep.subr.bf16.mxu1 %v18599_v11  ;;  %v18618_v62 = vld [vmem:[#allocation5 + $0x278] ss:$24 sps:$4 sm:$0xff]  }
 0xaba   :  { %10209 = vmatpush2.bf16.msra.mxu0 %v18552_v23  ;;  %10889 = vmatpush1.bf16.msra.mxu1 %v18597_v25  ;;  %v18623_v23 = vld [vmem:[#allocation5 + $0x244] ss:$24 sps:$4 sm:$0xff]  }
 0xabb   :  { %10917 = vmatprep.subr.bf16.mxu0 %v18560_v10  ;;  %10890 = vmatprep.subr.bf16.mxu1 %v18605_v44  ;;  %v18629_v10 = vld [vmem:[#allocation5 + $0x214] ss:$24 sps:$4 sm:$0xff]  }
 0xabd   :  { %16076 = vmatmul.mubr.msk.bf16.vlgmr.msra.gmra.mxu0 %vm20017_vm4, %v19812_v14  ;;  %vm12311_vm4 = vcmp.eq.s32.totalorder %v19938_v5, %v20242_v42  ;;  %v18969_v5 = vld [vmem:[#allocation2 + $0xb4] ss:$8 sps:$4 sm:$0xff]  }
 0xabe   :  { %10918 = vmatpush1.bf16.msra.mxu0 %v18558_v59  ;;  %10891 = vmatpush2.bf16.msra.mxu1 %v18603_v31  ;;  %v18624_v59 = vld [vmem:[#allocation5 + $0x248] ss:$24 sps:$4 sm:$0xff]   ;;  %vm16387_vm6 = vmpackc.low %vm12314_vm8, %vm12311_vm4  ;;  %v18996_v42 = vld [vmem:[#allocation5 + $0xfc] ss:$24 sps:$4 sm:$0xff]  }
 0xabf   :  { %10919 = vmatprep.subr.bf16.mxu0 %v18566_v21  ;;  %10892 = vmatprep.subr.bf16.mxu1 %v18611_v24  ;;  %v18630_v21 = vld [vmem:[#allocation5 + $0x218] ss:$24 sps:$4 sm:$0xff]  }
 0xac2   :  { %10920 = vmatpush1.bf16.msra.mxu0 %v18564_v29  ;;  %10893 = vmatpush2.bf16.msra.mxu1 %v18609_v27  ;;  %v18635_v29 = vld [vmem:[#allocation5 + $0x1e4] ss:$24 sps:$4 sm:$0xff]  }
 0xac3   :  { %10921 = vmatprep.subr.bf16.mxu0 %v18572_v63  ;;  %10894 = vmatprep.subr.bf16.mxu1 %v18617_v19  ;;  %v18636_v63 = vld [vmem:[#allocation5 + $0x1e8] ss:$24 sps:$4 sm:$0xff]  }
 0xac6   :  { %10922 = vmatpush1.bf16.msra.mxu0 %v18570_v32  ;;  %10895 = vmatpush2.bf16.msra.mxu1 %v18615_v26  ;;  %v18639_v32 = vld [vmem:[#allocation5 + $0x1b0] ss:$24 sps:$4 sm:$0xff]  }
 0xac7   :  { %10923 = vmatprep.subr.bf16.mxu0 %v18578_v55  ;;  %10896 = vmatprep.subr.bf16.mxu1 %v18623_v23  ;;  %v18642_v55 = vld [vmem:[#allocation5 + $0x1b8] ss:$24 sps:$4 sm:$0xff]  }
 0xaca   :  { %10924 = vmatpush1.bf16.msra.mxu0 %v18576_v28  ;;  %10897 = vmatpush2.bf16.msra.mxu1 %v18621_v40  ;;  %v18645_v28 = vld [vmem:[#allocation5 + $0x180] ss:$24 sps:$4 sm:$0xff]  }
 0xacb   :  { %10925 = vmatprep.subr.bf16.mxu0 %v18584_v20  ;;  %10898 = vmatprep.subr.bf16.mxu1 %v18629_v10  ;;  %v18648_v20 = vld [vmem:[#allocation5 + $0x188] ss:$24 sps:$4 sm:$0xff]  }
 0xace   :  { %10926 = vmatpush1.bf16.msra.mxu0 %v18582_v7  ;;  %10899 = vmatpush2.bf16.msra.mxu1 %v18627_v58  ;;  %v18653_v7 = vld [vmem:[#allocation5 + $0x164] ss:$24 sps:$4 sm:$0xff]  }
 0xacf   :  { %10927 = vmatprep.subr.bf16.mxu0 %v18590_v54  ;;  %10900 = vmatprep.subr.bf16.mxu1 %v18635_v29  ;;  %v9450_v54 = vld [vmem:[%s20949_s8] sm:$0x7] }
 0xad0   :  { %v9455_v17 = vrot.slane %v9450_v54, %v20100_v8  ;;  %v9463_v36 = vrot.slane %v9450_v54, %v20118_v48  ;;  %v9459_v25 = vrot.slane %v9450_v54, %v20090_v30  ;;  %v18668_v54 = vld [vmem:[#allocation7 + $0xf4] ss:$24 sps:$4 sm:$0xff]  }
 0xad2   :  { %10928 = vmatpush1.bf16.msra.mxu0 %v18588_v53  ;;  %10901 = vmatpush2.bf16.msra.mxu1 %v18633_v51 }
 0xad3   :  { %10929 = vmatprep.subr.bf16.mxu0 %v18596_v9  ;;  %10902 = vmatprep.subr.bf16.mxu1 %v18641_v15 }
 0xad6   :  { %10930 = vmatpush1.bf16.msra.mxu0 %v18594_v33  ;;  %10903 = vmatpush2.bf16.msra.mxu1 %v18639_v32 }
 0xad7   :  { %10931 = vmatprep.subr.bf16.mxu0 %v18602_v61  ;;  %10904 = vmatprep.subr.bf16.mxu1 %v18647_v37  ;;  %v18659_v37 = vld [vmem:[#allocation5 + $0x134] ss:$24 sps:$4 sm:$0xff]  }
 0xada   :  { %10932 = vmatpush1.bf16.msra.mxu0 %v18600_v12  ;;  %10905 = vmatpush2.bf16.msra.mxu1 %v18645_v28 }
 0xadb   :  { %10933 = vmatprep.subr.bf16.mxu0 %v18608_v3  ;;  %10960 = vmatprep.subr.bf16.mxu1 %v18653_v7  ;;  %v18660_v7 = vld [vmem:[#allocation7 + $0x120] ss:$24 sps:$4 sm:$0xff]  }
 0xade   :  { %10934 = vmatpush2.bf16.msra.mxu0 %v18606_v38 }
 0xadf   :  { %10935 = vmatprep.subr.bf16.mxu0 %v18614_v56 }
 0xae2   :  { %10936 = vmatpush2.bf16.msra.mxu0 %v18612_v52 }
 0xae3   :  { %10937 = vmatprep.subr.bf16.mxu0 %v18620_v35 }
 0xae6   :  { %10938 = vmatpush2.bf16.msra.mxu0 %v18618_v62 }
 0xae7   :  { %10939 = vmatprep.subr.bf16.mxu0 %v18626_v34 }
 0xaea   :  { %10940 = vmatpush2.bf16.msra.mxu0 %v18624_v59 }
 0xaeb   :  { %10941 = vmatprep.subr.bf16.mxu0 %v18632_v41 }
 0xaee   :  { %10942 = vmatpush2.bf16.msra.mxu0 %v18630_v21 }
 0xaef   :  { %10943 = vmatprep.subr.bf16.mxu0 %v18638_v43 }
 0xaf2   :  { %10944 = vmatpush2.bf16.msra.mxu0 %v18636_v63 }
 0xaf3   :  { %10945 = vmatprep.subr.bf16.mxu0 %v18644_v46  ;;  %v18654_v46 = vld [vmem:[#allocation7 + $0x150] ss:$24 sps:$4 sm:$0xff]  }
 0xaf6   :  { %10946 = vmatpush2.bf16.msra.mxu0 %v18642_v55  ;;  %v18651_v55 = vld [vmem:[#allocation5 + $0x160] ss:$24 sps:$4 sm:$0xff]  }
 0xaf7   :  { %10947 = vmatprep.subr.bf16.mxu0 %v18650_v18  ;;  %v18657_v18 = vld [vmem:[#allocation5 + $0x130] ss:$24 sps:$4 sm:$0xff]  }
 0xafa   :  { %10948 = vmatpush2.bf16.msra.mxu0 %v18648_v20  ;;  %v18662_v20 = vld [vmem:[#allocation7 + $0x124] ss:$24 sps:$4 sm:$0xff]  }
 0xafb   :  { %11611 = vmatprep.subr.bf16.mxu0 %v18656_v60  ;;  %v18665_v60 = vld [vmem:[#allocation5 + $0x104] ss:$24 sps:$4 sm:$0xff]  }
 0xb3d   :  { %v9757_v16 = vpop.f32.mrf.mxu1  ;;  %v16719_v53 = vpop.f32.mrf.mxu0 }
 0xb3e   :  { %v20636_v44 = vadd.f32 %v9757_v16, %v9455_v17  ;;  %v18663_v16 = vld [vmem:[#allocation5 + $0x100] ss:$24 sps:$4 sm:$0xff]  }
 0xb3f   :  { %v9759_v33 = vpop.f32.mrf.mxu1  ;;  %v16720_v9 = vpop.f32.mrf.mxu0 }
 0xb40   :  { %v16721_v11 = vadd.f32 %v16720_v9, %v16719_v53  ;;  %v20640_v38 = vadd.f32 %v9759_v33, %v9459_v25  ;;  %v18666_v53 = vld [vmem:[#allocation7 + $0xf0] ss:$24 sps:$4 sm:$0xff]   ;;  %v18672_v9 = vld [vmem:[#allocation7 + $0xc0] ss:$24 sps:$4 sm:$0xff]  }
 0xb41   :  { %v9761_v12 = vpop.f32.mrf.mxu1  ;;  %v16722_v61 = vpop.f32.mrf.mxu0  ;;  %v18669_v33 = vld [vmem:[#allocation5 + $0xd0] ss:$24 sps:$4 sm:$0xff]  }
 0xb42   :  { %v20638_v3 = vadd.f32 %v16721_v11, %v9463_v36  ;;  %v20644_v52 = vadd.f32 %v9761_v12, %v9455_v17  ;;  %v18671_v17 = vld [vmem:[#allocation5 + $0xd4] ss:$24 sps:$4 sm:$0xff]   ;;  %v18675_v12 = vld [vmem:[#allocation5 + $0xa0] ss:$24 sps:$4 sm:$0xff]  }
 0xb43   :  { %v16723_v31 = vpop.f32.mrf.mxu0  ;;  %v9763_v27 = vpop.f32.mrf.mxu1  ;;  %v18680_v11 = vld [vmem:[#allocation7 + $0x94] ss:$24 sps:$4 sm:$0xff]  }
 0xb44   :  { %v16724_v24 = vadd.f32 %v16723_v31, %v16722_v61  ;;  %v9807_v56 = vmax.f32 %v20636_v44, %v20638_v3  ;;  %v20649_v26 = vadd.f32 %v9763_v27, %v9459_v25  ;;  %v18677_v25 = vld [vmem:[#allocation5 + $0xa4] ss:$24 sps:$4 sm:$0xff]   ;;  %v18678_v61 = vld [vmem:[#allocation7 + $0x90] ss:$24 sps:$4 sm:$0xff]   ;;  %v18683_v31 = vld [vmem:[#allocation5 + $0x74] ss:$24 sps:$4 sm:$0xff]  }
 0xb45   :  { %v18684_v27 = vld [vmem:[#allocation7 + $0x60] ss:$24 sps:$4 sm:$0xff]  }
 0xb46   :  { %v20646_v19 = vadd.f32 %v16724_v24, %v9463_v36  ;;  %v9808_v35 = vmax.f32 %v9807_v56, %v20640_v38  ;;  %v18674_v36 = vld [vmem:[#allocation7 + $0xc4] ss:$24 sps:$4 sm:$0xff]   ;;  %v18681_v56 = vld [vmem:[#allocation5 + $0x70] ss:$24 sps:$4 sm:$0xff]  }
 0xb47   :  { %v18686_v24 = vld [vmem:[#allocation7 + $0x64] ss:$24 sps:$4 sm:$0xff]  }
 0xb48   :  { %9809 = vmax.xlane.f32.xlu1 %v9808_v35  ;;  %v9811_v62 = vmax.f32 %v20644_v52, %v20646_v19  ;;  %v18689_v35 = vld [vmem:[#allocation5 + $0x44] ss:$24 sps:$4 sm:$0xff]  }
 0xb4a   :  { %v9812_v23 = vmax.f32 %v9811_v62, %v20649_v26  ;;  %v18692_v62 = vld [vmem:[#allocation7 + $0x34] ss:$24 sps:$4 sm:$0xff]  }
 0xb4c   :  { %9813 = vmax.xlane.f32.xlu0 %v9812_v23  ;;  %v18687_v23 = vld [vmem:[#allocation5 + $0x40] ss:$24 sps:$4 sm:$0xff]  }
 0xb5d   :  { %v10255_v34 = vpop.f32.mrf.mxu1 }
 0xb5f   :  { %v10257_v40 = vpop.f32.mrf.mxu1 }
 0xb61   :  { %v10259_v10 = vpop.f32.mrf.mxu1 }
 0xb63   :  { %v10261_v21 = vpop.f32.mrf.mxu1 }
 0xb7d   :  { %v10212_v59 = vpop.f32.mrf.mxu0 }
 0xb7e   :  { %v10256_v32 = vadd.f32 %v10255_v34, %v10212_v59  ;;  %v18690_v34 = vld [vmem:[#allocation7 + $0x30] ss:$24 sps:$4 sm:$0xff]   ;;  %v18698_v59 = vld [vmem:[#allocation7 + $0x4] ss:$24 sps:$4 sm:$0xff]  }
 0xb7f   :  { %v10214_v41 = vpop.f32.mrf.mxu0 }
 0xb80   :  { %v10258_v51 = vadd.f32 %v10257_v40, %v10214_v41  ;;  %v18695_v40 = vld [vmem:[#allocation5 + $0x14] ss:$24 sps:$4 sm:$0xff]   ;;  %v18696_v41 = vld [vmem:[#allocation7] ss:$24 sps:$4 sm:$0xff]  }
 0xb81   :  { %v10216_v58 = vpop.f32.mrf.mxu0 }
 0xb82   :  { %v10260_v29 = vadd.f32 %v10259_v10, %v10216_v58  ;;  %v18693_v10 = vld [vmem:[#allocation5 + $0x10] ss:$24 sps:$4 sm:$0xff]   ;;  %v18701_v58 = vld [vmem:[#allocation5 + $0x2e4] ss:$24 sps:$4 sm:$0xff]  }
 0xb83   :  { %v10218_v43 = vpop.f32.mrf.mxu0 }
 0xb84   :  { %v10262_v63 = vadd.f32 %v10261_v21, %v10218_v43  ;;  %v20654_v28 = vpack.c.bf16 %v10260_v29, %v10256_v32  ;;  %v18704_v21 = vld [vmem:[#allocation7 + $0x2d4] ss:$24 sps:$4 sm:$0xff]   ;;  %v18699_v29 = vld [vmem:[#allocation5 + $0x2e0] ss:$24 sps:$4 sm:$0xff]   ;;  %v18702_v43 = vld [vmem:[#allocation7 + $0x2d0] ss:$24 sps:$4 sm:$0xff]  }
 0xb85   :  { %v18705_v32 = vld [vmem:[#allocation5 + $0x2b0] ss:$24 sps:$4 sm:$0xff]  }
 0xb86   :  { %v10265_v15 = vpack.c.bf16 %v10262_v63, %v10258_v51  ;;  %v18707_v51 = vld [vmem:[#allocation5 + $0x2b4] ss:$24 sps:$4 sm:$0xff]   ;;  %v18710_v63 = vld [vmem:[#allocation7 + $0x2a4] ss:$24 sps:$4 sm:$0xff]  }
 0xb88   :  { %10906 = vmatprep.mubr.bf16.mxu1 %v10265_v15  ;;  %10949 = vmatprep.mubr.bf16.mxu0 %v10265_v15 }
 0xb89   :  { %10907 = vmatmul.mubr.bf16.vlgmr.msra.gmra.mxu1 %v20654_v28  ;;  %10950 = vmatmul.mubr.bf16.vlgmr.msra.gmra.mxu0 %v20654_v28 }
 0xb8a   :  { %10961 = vmatpush1.bf16.msra.mxu1 %v18651_v55  ;;  %11612 = vmatpush1.bf16.msra.mxu0 %v18654_v46  ;;  %v18713_v55 = vld [vmem:[#allocation5 + $0x284] ss:$24 sps:$4 sm:$0xff]   ;;  %v18716_v46 = vld [vmem:[#allocation7 + $0x274] ss:$24 sps:$4 sm:$0xff]  }
 0xb8b   :  { %10992 = vmatprep.mubr.bf16.mxu1 %v10265_v15  ;;  %11643 = vmatprep.mubr.bf16.mxu0 %v20610_v57  ;;  %v18708_v15 = vld [vmem:[#allocation7 + $0x2a0] ss:$24 sps:$4 sm:$0xff]  }
 0xb8c   :  { %10962 = vmatprep.subr.bf16.mxu1 %v18659_v37  ;;  %11613 = vmatprep.subr.bf16.mxu0 %v18662_v20  ;;  %v18711_v37 = vld [vmem:[#allocation5 + $0x280] ss:$24 sps:$4 sm:$0xff]   ;;  %v18714_v20 = vld [vmem:[#allocation7 + $0x270] ss:$24 sps:$4 sm:$0xff]  }
 0xb8e   :  { %10963 = vmatpush1.bf16.msra.mxu1 %v18657_v18  ;;  %11614 = vmatpush1.bf16.msra.mxu0 %v18660_v7  ;;  %v18719_v18 = vld [vmem:[#allocation5 + $0x254] ss:$24 sps:$4 sm:$0xff]   ;;  %v18722_v7 = vld [vmem:[#allocation7 + $0x244] ss:$24 sps:$4 sm:$0xff]  }
 0xb8f   :  { %10964 = vmatprep.subr.bf16.mxu1 %v18665_v60  ;;  %11615 = vmatprep.subr.bf16.mxu0 %v18668_v54  ;;  %v18717_v60 = vld [vmem:[#allocation5 + $0x250] ss:$24 sps:$4 sm:$0xff]   ;;  %v18720_v54 = vld [vmem:[#allocation7 + $0x240] ss:$24 sps:$4 sm:$0xff]  }
 0xb92   :  { %10965 = vmatpush1.bf16.msra.mxu1 %v18663_v16  ;;  %11616 = vmatpush1.bf16.msra.mxu0 %v18666_v53  ;;  %v18725_v16 = vld [vmem:[#allocation5 + $0x224] ss:$24 sps:$4 sm:$0xff]   ;;  %v18728_v53 = vld [vmem:[#allocation7 + $0x214] ss:$24 sps:$4 sm:$0xff]  }
 0xb93   :  { %10966 = vmatprep.subr.bf16.mxu1 %v18671_v17  ;;  %11617 = vmatprep.subr.bf16.mxu0 %v18674_v36  ;;  %v18723_v17 = vld [vmem:[#allocation5 + $0x220] ss:$24 sps:$4 sm:$0xff]   ;;  %v18726_v36 = vld [vmem:[#allocation7 + $0x210] ss:$24 sps:$4 sm:$0xff]  }
 0xb96   :  { %10967 = vmatpush1.bf16.msra.mxu1 %v18669_v33  ;;  %11618 = vmatpush1.bf16.msra.mxu0 %v18672_v9  ;;  %v18731_v33 = vld [vmem:[#allocation5 + $0x1f4] ss:$24 sps:$4 sm:$0xff]   ;;  %v18734_v9 = vld [vmem:[#allocation7 + $0x1e4] ss:$24 sps:$4 sm:$0xff]  }
 0xb97   :  { %10968 = vmatprep.subr.bf16.mxu1 %v18677_v25  ;;  %11619 = vmatprep.subr.bf16.mxu0 %v18680_v11  ;;  %v18729_v25 = vld [vmem:[#allocation5 + $0x1f0] ss:$24 sps:$4 sm:$0xff]   ;;  %v18732_v11 = vld [vmem:[#allocation7 + $0x1e0] ss:$24 sps:$4 sm:$0xff]  }
 0xb9a   :  { %10969 = vmatpush1.bf16.msra.mxu1 %v18675_v12  ;;  %11620 = vmatpush1.bf16.msra.mxu0 %v18678_v61  ;;  %v18737_v12 = vld [vmem:[#allocation5 + $0x1c4] ss:$24 sps:$4 sm:$0xff]   ;;  %v18740_v61 = vld [vmem:[#allocation7 + $0x1b4] ss:$24 sps:$4 sm:$0xff]  }
 0xb9b   :  { %10970 = vmatprep.subr.bf16.mxu1 %v18683_v31  ;;  %11621 = vmatprep.subr.bf16.mxu0 %v18686_v24  ;;  %v18735_v31 = vld [vmem:[#allocation5 + $0x1c0] ss:$24 sps:$4 sm:$0xff]   ;;  %v18738_v24 = vld [vmem:[#allocation7 + $0x1b0] ss:$24 sps:$4 sm:$0xff]  }
 0xb9e   :  { %10971 = vmatpush1.bf16.msra.mxu1 %v18681_v56  ;;  %11622 = vmatpush1.bf16.msra.mxu0 %v18684_v27  ;;  %v18743_v56 = vld [vmem:[#allocation5 + $0x194] ss:$24 sps:$4 sm:$0xff]   ;;  %v18746_v27 = vld [vmem:[#allocation7 + $0x184] ss:$24 sps:$4 sm:$0xff]  }
 0xb9f   :  { %10972 = vmatprep.subr.bf16.mxu1 %v18689_v35  ;;  %11623 = vmatprep.subr.bf16.mxu0 %v18692_v62  ;;  %v18741_v35 = vld [vmem:[#allocation5 + $0x190] ss:$24 sps:$4 sm:$0xff]   ;;  %v18744_v62 = vld [vmem:[#allocation7 + $0x180] ss:$24 sps:$4 sm:$0xff]  }
 0xba2   :  { %10973 = vmatpush1.bf16.msra.mxu1 %v18687_v23  ;;  %11624 = vmatpush1.bf16.msra.mxu0 %v18690_v34  ;;  %v18749_v23 = vld [vmem:[#allocation7 + $0x15c] ss:$24 sps:$4 sm:$0xff]  }
 0xba3   :  { %10974 = vmatprep.subr.bf16.mxu1 %v18695_v40  ;;  %11625 = vmatprep.subr.bf16.mxu0 %v18698_v59  ;;  %v18752_v34 = vld [vmem:[#allocation7 + $0x164] ss:$24 sps:$4 sm:$0xff]   ;;  %v18747_v40 = vld [vmem:[#allocation7 + $0x158] ss:$24 sps:$4 sm:$0xff]  }
 0xba4   :  { %v18750_v59 = vld [vmem:[#allocation7 + $0x160] ss:$24 sps:$4 sm:$0xff]  }
 0xba6   :  { %10975 = vmatpush1.bf16.msra.mxu1 %v18693_v10  ;;  %11626 = vmatpush1.bf16.msra.mxu0 %v18696_v41  ;;  %v18755_v10 = vld [vmem:[#allocation7 + $0x12c] ss:$24 sps:$4 sm:$0xff]  }
 0xba7   :  { %10976 = vmatprep.subr.bf16.mxu1 %v18701_v58  ;;  %11627 = vmatprep.subr.bf16.mxu0 %v18704_v21  ;;  %v18758_v41 = vld [vmem:[#allocation7 + $0x134] ss:$24 sps:$4 sm:$0xff]   ;;  %v18753_v58 = vld [vmem:[#allocation7 + $0x128] ss:$24 sps:$4 sm:$0xff]  }
 0xba8   :  { %v18756_v21 = vld [vmem:[#allocation7 + $0x130] ss:$24 sps:$4 sm:$0xff]  }
 0xbaa   :  { %10977 = vmatpush2.bf16.msra.mxu1 %v18699_v29  ;;  %11628 = vmatpush2.bf16.msra.mxu0 %v18702_v43  ;;  %v18761_v29 = vld [vmem:[#allocation7 + $0xfc] ss:$24 sps:$4 sm:$0xff]  }
 0xbab   :  { %10978 = vmatprep.subr.bf16.mxu1 %v18707_v51  ;;  %11629 = vmatprep.subr.bf16.mxu0 %v18710_v63  ;;  %v18764_v43 = vld [vmem:[#allocation7 + $0x104] ss:$24 sps:$4 sm:$0xff]   ;;  %v18759_v51 = vld [vmem:[#allocation7 + $0xf8] ss:$24 sps:$4 sm:$0xff]  }
 0xbac   :  { %v18762_v63 = vld [vmem:[#allocation7 + $0x100] ss:$24 sps:$4 sm:$0xff]  }
 0xbae   :  { %10979 = vmatpush2.bf16.msra.mxu1 %v18705_v32  ;;  %11630 = vmatpush2.bf16.msra.mxu0 %v18708_v15  ;;  %v18770_v32 = vld [vmem:[#allocation7 + $0xd4] ss:$24 sps:$4 sm:$0xff]   ;;  %v18765_v15 = vld [vmem:[#allocation7 + $0xc8] ss:$24 sps:$4 sm:$0xff]  }
 0xbaf   :  { %10980 = vmatprep.subr.bf16.mxu1 %v18713_v55  ;;  %11631 = vmatprep.subr.bf16.mxu0 %v18716_v46  ;;  %v18768_v55 = vld [vmem:[#allocation7 + $0xd0] ss:$24 sps:$4 sm:$0xff]   ;;  %v18773_v46 = vld [vmem:[#allocation7 + $0x9c] ss:$24 sps:$4 sm:$0xff]  }
 0xbb2   :  { %10981 = vmatpush2.bf16.msra.mxu1 %v18711_v37  ;;  %11632 = vmatpush2.bf16.msra.mxu0 %v18714_v20  ;;  %v18771_v37 = vld [vmem:[#allocation7 + $0x98] ss:$24 sps:$4 sm:$0xff]  }
 0xbb3   :  { %10982 = vmatprep.subr.bf16.mxu1 %v18719_v18  ;;  %11633 = vmatprep.subr.bf16.mxu0 %v18722_v7  ;;  %v18774_v20 = vld [vmem:[#allocation7 + $0xa0] ss:$24 sps:$4 sm:$0xff]   ;;  %v18779_v18 = vld [vmem:[#allocation7 + $0x6c] ss:$24 sps:$4 sm:$0xff]  }
 0xbb4   :  { %v18782_v7 = vld [vmem:[#allocation7 + $0x74] ss:$24 sps:$4 sm:$0xff]  }
 0xbb6   :  { %10983 = vmatpush2.bf16.msra.mxu1 %v18717_v60  ;;  %11634 = vmatpush2.bf16.msra.mxu0 %v18720_v54  ;;  %v18777_v60 = vld [vmem:[#allocation7 + $0x68] ss:$24 sps:$4 sm:$0xff]  }
 0xbb7   :  { %10984 = vmatprep.subr.bf16.mxu1 %v18725_v16  ;;  %11635 = vmatprep.subr.bf16.mxu0 %v18728_v53  ;;  %v18780_v54 = vld [vmem:[#allocation7 + $0x70] ss:$24 sps:$4 sm:$0xff]   ;;  %v18785_v16 = vld [vmem:[#allocation7 + $0x3c] ss:$24 sps:$4 sm:$0xff]  }
 0xbb8   :  { %v18788_v53 = vld [vmem:[#allocation7 + $0x44] ss:$24 sps:$4 sm:$0xff]  }
 0xbba   :  { %10985 = vmatpush2.bf16.msra.mxu1 %v18723_v17  ;;  %11636 = vmatpush2.bf16.msra.mxu0 %v18726_v36  ;;  %v18783_v17 = vld [vmem:[#allocation7 + $0x38] ss:$24 sps:$4 sm:$0xff]  }
 0xbbb   :  { %10986 = vmatprep.subr.bf16.mxu1 %v18731_v33  ;;  %11637 = vmatprep.subr.bf16.mxu0 %v18734_v9  ;;  %v18786_v36 = vld [vmem:[#allocation7 + $0x40] ss:$24 sps:$4 sm:$0xff]   ;;  %v18791_v33 = vld [vmem:[#allocation7 + $0xc] ss:$24 sps:$4 sm:$0xff]  }
 0xbbc   :  { %v18794_v9 = vld [vmem:[#allocation7 + $0x14] ss:$24 sps:$4 sm:$0xff]  }
 0xbbe   :  { %10987 = vmatpush2.bf16.msra.mxu1 %v18729_v25  ;;  %11638 = vmatpush2.bf16.msra.mxu0 %v18732_v11  ;;  %v18789_v25 = vld [vmem:[#allocation7 + $0x8] ss:$24 sps:$4 sm:$0xff]  }
 0xbbf   :  { %10988 = vmatprep.subr.bf16.mxu1 %v18737_v12  ;;  %11639 = vmatprep.subr.bf16.mxu0 %v18740_v61  ;;  %v18792_v11 = vld [vmem:[#allocation7 + $0x10] ss:$24 sps:$4 sm:$0xff]   ;;  %v18797_v12 = vld [vmem:[#allocation7 + $0x2dc] ss:$24 sps:$4 sm:$0xff]  }
 0xbc0   :  { %v18800_v61 = vld [vmem:[#allocation7 + $0x2e4] ss:$24 sps:$4 sm:$0xff]  }
 0xbc2   :  { %10989 = vmatpush2.bf16.msra.mxu1 %v18735_v31  ;;  %11640 = vmatpush2.bf16.msra.mxu0 %v18738_v24  ;;  %v18795_v31 = vld [vmem:[#allocation7 + $0x2d8] ss:$24 sps:$4 sm:$0xff]  }
 0xbc3   :  { %10990 = vmatprep.subr.bf16.mxu1 %v18743_v56  ;;  %11641 = vmatprep.subr.bf16.mxu0 %v18746_v27  ;;  %v18798_v24 = vld [vmem:[#allocation7 + $0x2e0] ss:$24 sps:$4 sm:$0xff]   ;;  %v18803_v56 = vld [vmem:[#allocation7 + $0x2ac] ss:$24 sps:$4 sm:$0xff]  }
 0xbc4   :  { %v18806_v27 = vld [vmem:[#allocation7 + $0x2b4] ss:$24 sps:$4 sm:$0xff]  }
 0xbc6   :  { %10991 = vmatpush2.bf16.msra.mxu1 %v18741_v35  ;;  %11642 = vmatpush2.bf16.msra.mxu0 %v18744_v62  ;;  %v18801_v35 = vld [vmem:[#allocation7 + $0x2a8] ss:$24 sps:$4 sm:$0xff]  }
 0xbc7   :  { %11654 = vmatprep.subr.bf16.mxu1 %v18749_v23  ;;  %11697 = vmatprep.subr.bf16.mxu0 %v18752_v34  ;;  %v18804_v62 = vld [vmem:[#allocation7 + $0x2b0] ss:$24 sps:$4 sm:$0xff]   ;;  %v18809_v23 = vld [vmem:[#allocation7 + $0x27c] ss:$24 sps:$4 sm:$0xff]  }
 0xbc8   :  { %v18812_v34 = vld [vmem:[#allocation7 + $0x284] ss:$24 sps:$4 sm:$0xff]  }
 0xbc9   :  { %10993 = vmatmul.mubr.bf16.vlgmr.msra.gmra.mxu1 %v20654_v28  ;;  %11644 = vmatmul.mubr.bf16.vlgmr.msra.gmra.mxu0 %v20614_v47  ;;  %v18767_v28 = vld [vmem:[#allocation7 + $0xcc] ss:$24 sps:$4 sm:$0xff]  }
 0xbca   :  { %11655 = vmatpush1.bf16.msra.mxu1 %v18747_v40  ;;  %11686 = vmatprep.mubr.bf16.mxu1 %v20610_v57  ;;  %v18807_v40 = vld [vmem:[#allocation7 + $0x278] ss:$24 sps:$4 sm:$0xff]  }
 0xbcb   :  { %11698 = vmatpush1.bf16.msra.mxu0 %v18750_v59  ;;  %11729 = vmatprep.mubr.bf16.mxu0 %v20610_v57  ;;  %v18776_v57 = vld [vmem:[#allocation7 + $0xa4] ss:$24 sps:$4 sm:$0xff]   ;;  %v18810_v59 = vld [vmem:[#allocation7 + $0x280] ss:$24 sps:$4 sm:$0xff]  }
 0xbcc   :  { %11656 = vmatprep.subr.bf16.mxu1 %v18755_v10  ;;  %11699 = vmatprep.subr.bf16.mxu0 %v18758_v41  ;;  %v18815_v10 = vld [vmem:[#allocation7 + $0x24c] ss:$24 sps:$4 sm:$0xff]  }
 0xbcd   :  { %v18818_v41 = vld [vmem:[#allocation7 + $0x254] ss:$24 sps:$4 sm:$0xff]  }
 0xbce   :  { %11657 = vmatpush1.bf16.msra.mxu1 %v18753_v58  ;;  %v18813_v58 = vld [vmem:[#allocation7 + $0x248] ss:$24 sps:$4 sm:$0xff]  }
 0xbcf   :  { %11700 = vmatpush1.bf16.msra.mxu0 %v18756_v21  ;;  %11658 = vmatprep.subr.bf16.mxu1 %v18761_v29  ;;  %v18816_v21 = vld [vmem:[#allocation7 + $0x250] ss:$24 sps:$4 sm:$0xff]   ;;  %v18821_v29 = vld [vmem:[#allocation7 + $0x21c] ss:$24 sps:$4 sm:$0xff]  }
 0xbd0   :  { %11701 = vmatprep.subr.bf16.mxu0 %v18764_v43  ;;  %v18824_v43 = vld [vmem:[#allocation7 + $0x224] ss:$24 sps:$4 sm:$0xff]  }
 0xbd2   :  { %11659 = vmatpush1.bf16.msra.mxu1 %v18759_v51  ;;  %v18819_v51 = vld [vmem:[#allocation7 + $0x218] ss:$24 sps:$4 sm:$0xff]  }
 0xbd3   :  { %11702 = vmatpush1.bf16.msra.mxu0 %v18762_v63  ;;  %11660 = vmatprep.subr.bf16.mxu1 %v18767_v28  ;;  %v18822_v63 = vld [vmem:[#allocation7 + $0x220] ss:$24 sps:$4 sm:$0xff]   ;;  %v18827_v28 = vld [vmem:[#allocation7 + $0x1ec] ss:$24 sps:$4 sm:$0xff]  }
 0xbd4   :  { %11703 = vmatprep.subr.bf16.mxu0 %v18770_v32  ;;  %v18830_v32 = vld [vmem:[#allocation7 + $0x1f4] ss:$24 sps:$4 sm:$0xff]  }
 0xbd6   :  { %11661 = vmatpush1.bf16.msra.mxu1 %v18765_v15  ;;  %v18825_v15 = vld [vmem:[#allocation7 + $0x1e8] ss:$24 sps:$4 sm:$0xff]  }
 0xbd7   :  { %11704 = vmatpush1.bf16.msra.mxu0 %v18768_v55  ;;  %11662 = vmatprep.subr.bf16.mxu1 %v18773_v46  ;;  %v18828_v55 = vld [vmem:[#allocation7 + $0x1f0] ss:$24 sps:$4 sm:$0xff]   ;;  %v18833_v46 = vld [vmem:[#allocation7 + $0x1bc] ss:$24 sps:$4 sm:$0xff]  }
 0xbd8   :  { %11705 = vmatprep.subr.bf16.mxu0 %v18776_v57  ;;  %v18836_v57 = vld [vmem:[#allocation7 + $0x1c4] ss:$24 sps:$4 sm:$0xff]  }
 0xbda   :  { %11663 = vmatpush1.bf16.msra.mxu1 %v18771_v37  ;;  %v18831_v37 = vld [vmem:[#allocation7 + $0x1b8] ss:$24 sps:$4 sm:$0xff]  }
 0xbdb   :  { %11706 = vmatpush1.bf16.msra.mxu0 %v18774_v20  ;;  %11664 = vmatprep.subr.bf16.mxu1 %v18779_v18  ;;  %v18834_v20 = vld [vmem:[#allocation7 + $0x1c0] ss:$24 sps:$4 sm:$0xff]   ;;  %v18839_v18 = vld [vmem:[#allocation7 + $0x18c] ss:$24 sps:$4 sm:$0xff]  }
 0xbdc   :  { %11707 = vmatprep.subr.bf16.mxu0 %v18782_v7  ;;  %v18842_v7 = vld [vmem:[#allocation7 + $0x194] ss:$24 sps:$4 sm:$0xff]  }
 0xbde   :  { %11665 = vmatpush1.bf16.msra.mxu1 %v18777_v60  ;;  %v18837_v60 = vld [vmem:[#allocation7 + $0x188] ss:$24 sps:$4 sm:$0xff]  }
 0xbdf   :  { %11708 = vmatpush1.bf16.msra.mxu0 %v18780_v54  ;;  %11666 = vmatprep.subr.bf16.mxu1 %v18785_v16  ;;  %v18840_v54 = vld [vmem:[#allocation7 + $0x190] ss:$24 sps:$4 sm:$0xff]  }
 0xbe0   :  { %11709 = vmatprep.subr.bf16.mxu0 %v18788_v53  ;;  %v18843_v16 = vld [vmem:[#allocation8 + $0xa8] ss:$12 sps:$4 sm:$0xff]   ;;  %v18845_v53 = vld [vmem:[#allocation8 + $0xac] ss:$12 sps:$4 sm:$0xff]  }
 0xbe2   :  { %11667 = vmatpush1.bf16.msra.mxu1 %v18783_v17  ;;  %v18848_v17 = vld [vmem:[#allocation8 + $0x94] ss:$12 sps:$4 sm:$0xff]  }
 0xbe3   :  { %11710 = vmatpush1.bf16.msra.mxu0 %v18786_v36  ;;  %11668 = vmatprep.subr.bf16.mxu1 %v18791_v33  ;;  %v18846_v36 = vld [vmem:[#allocation8 + $0x90] ss:$12 sps:$4 sm:$0xff]  }
 0xbe4   :  { %11711 = vmatprep.subr.bf16.mxu0 %v18794_v9  ;;  %v18851_v33 = vld [vmem:[#allocation8 + $0x7c] ss:$12 sps:$4 sm:$0xff]   ;;  %v18849_v9 = vld [vmem:[#allocation8 + $0x78] ss:$12 sps:$4 sm:$0xff]  }
 0xbe6   :  { %11669 = vmatpush1.bf16.msra.mxu1 %v18789_v25  ;;  %v18854_v25 = vld [vmem:[#allocation8 + $0x64] ss:$12 sps:$4 sm:$0xff]  }
 0xbe7   :  { %11712 = vmatpush1.bf16.msra.mxu0 %v18792_v11  ;;  %11670 = vmatprep.subr.bf16.mxu1 %v18797_v12  ;;  %v18852_v11 = vld [vmem:[#allocation8 + $0x60] ss:$12 sps:$4 sm:$0xff]   ;;  %v18855_v12 = vld [vmem:[#allocation8 + $0x48] ss:$12 sps:$4 sm:$0xff]  }
 0xbe8   :  { %11713 = vmatprep.subr.bf16.mxu0 %v18800_v61  ;;  %v18857_v61 = vld [vmem:[#allocation8 + $0x4c] ss:$12 sps:$4 sm:$0xff]  }
 0xbea   :  { %11671 = vmatpush2.bf16.msra.mxu1 %v18795_v31  ;;  %v18860_v31 = vld [vmem:[#allocation8 + $0x34] ss:$12 sps:$4 sm:$0xff]  }
 0xbeb   :  { %11714 = vmatpush2.bf16.msra.mxu0 %v18798_v24  ;;  %11672 = vmatprep.subr.bf16.mxu1 %v18803_v56  ;;  %v18863_v24 = vld [vmem:[#allocation8 + $0x1c] ss:$12 sps:$4 sm:$0xff]  }
 0xbec   :  { %11715 = vmatprep.subr.bf16.mxu0 %v18806_v27  ;;  %v18870_v56 = vld [vmem:[#allocation8 + $0x170] ss:$12 sps:$4 sm:$0xff]   ;;  %v18861_v27 = vld [vmem:[#allocation8 + $0x18] ss:$12 sps:$4 sm:$0xff]  }
 0xbee   :  { %11673 = vmatpush2.bf16.msra.mxu1 %v18801_v35  ;;  %v18871_v35 = vld [vmem:[#allocation8 + $0xb0] ss:$12 sps:$4 sm:$0xff]  }
 0xbef   :  { %11716 = vmatpush2.bf16.msra.mxu0 %v18804_v62  ;;  %11674 = vmatprep.subr.bf16.mxu1 %v18809_v23  ;;  %v18866_v62 = vld [vmem:[#allocation8 + $0x4] ss:$12 sps:$4 sm:$0xff]  }
 0xbf0   :  { %11717 = vmatprep.subr.bf16.mxu0 %v18812_v34  ;;  %v18875_v23 = vld [vmem:[#allocation8 + $0x158] ss:$12 sps:$4 sm:$0xff]  }
 0xbf1   :  { %v18876_v34 = vld [vmem:[#allocation8 + $0x98] ss:$12 sps:$4 sm:$0xff]  }
 0xbf2   :  { %11675 = vmatpush2.bf16.msra.mxu1 %v18807_v40  ;;  %v18880_v40 = vld [vmem:[#allocation8 + $0x140] ss:$12 sps:$4 sm:$0xff]  }
 0xbf3   :  { %11718 = vmatpush2.bf16.msra.mxu0 %v18810_v59  ;;  %11676 = vmatprep.subr.bf16.mxu1 %v18815_v10  ;;  %v18864_v59 = vld [vmem:[#allocation8] ss:$12 sps:$4 sm:$0xff]  }
 0xbf4   :  { %11719 = vmatprep.subr.bf16.mxu0 %v18818_v41  ;;  %v18869_v10 = vld [vmem:[#allocation8 + $0x16c] ss:$12 sps:$4 sm:$0xff]  }
 0xbf5   :  { %v18881_v41 = vld [vmem:[#allocation8 + $0x80] ss:$12 sps:$4 sm:$0xff]  }
 0xbf6   :  { %11677 = vmatpush2.bf16.msra.mxu1 %v18813_v58  ;;  %v18885_v58 = vld [vmem:[#allocation8 + $0x128] ss:$12 sps:$4 sm:$0xff]  }
 0xbf7   :  { %11720 = vmatpush2.bf16.msra.mxu0 %v18816_v21  ;;  %11678 = vmatprep.subr.bf16.mxu1 %v18821_v29  ;;  %v18867_v21 = vld [vmem:[#allocation8 + $0x168] ss:$12 sps:$4 sm:$0xff]  }
 0xbf8   :  { %11721 = vmatprep.subr.bf16.mxu0 %v18824_v43  ;;  %v18874_v29 = vld [vmem:[#allocation8 + $0x154] ss:$12 sps:$4 sm:$0xff]  }
 0xbf9   :  { %v18886_v43 = vld [vmem:[#allocation8 + $0x68] ss:$12 sps:$4 sm:$0xff]  }
 0xbfa   :  { %11679 = vmatpush2.bf16.msra.mxu1 %v18819_v51  ;;  %v18890_v51 = vld [vmem:[#allocation8 + $0x110] ss:$12 sps:$4 sm:$0xff]  }
 0xbfb   :  { %11722 = vmatpush2.bf16.msra.mxu0 %v18822_v63  ;;  %11680 = vmatprep.subr.bf16.mxu1 %v18827_v28  ;;  %v18872_v63 = vld [vmem:[#allocation8 + $0x150] ss:$12 sps:$4 sm:$0xff]  }
 0xbfc   :  { %11723 = vmatprep.subr.bf16.mxu0 %v18830_v32  ;;  %v18879_v28 = vld [vmem:[#allocation8 + $0x13c] ss:$12 sps:$4 sm:$0xff]  }
 0xbfd   :  { %v18891_v32 = vld [vmem:[#allocation8 + $0x50] ss:$12 sps:$4 sm:$0xff]  }
 0xbfe   :  { %11681 = vmatpush2.bf16.msra.mxu1 %v18825_v15  ;;  %v18895_v15 = vld [vmem:[#allocation8 + $0xf8] ss:$12 sps:$4 sm:$0xff]  }
 0xbff   :  { %11724 = vmatpush2.bf16.msra.mxu0 %v18828_v55  ;;  %11682 = vmatprep.subr.bf16.mxu1 %v18833_v46  ;;  %v18877_v55 = vld [vmem:[#allocation8 + $0x138] ss:$12 sps:$4 sm:$0xff]  }
 0xc00   :  { %11725 = vmatprep.subr.bf16.mxu0 %v18836_v57  ;;  %v18884_v46 = vld [vmem:[#allocation8 + $0x124] ss:$12 sps:$4 sm:$0xff]  }
 0xc01   :  { %v18896_v57 = vld [vmem:[#allocation8 + $0x38] ss:$12 sps:$4 sm:$0xff]  }
 0xc02   :  { %11683 = vmatpush2.bf16.msra.mxu1 %v18831_v37  ;;  %v18900_v37 = vld [vmem:[#allocation8 + $0xe0] ss:$12 sps:$4 sm:$0xff]  }
 0xc03   :  { %11726 = vmatpush2.bf16.msra.mxu0 %v18834_v20  ;;  %11684 = vmatprep.subr.bf16.mxu1 %v18839_v18  ;;  %v18882_v20 = vld [vmem:[#allocation8 + $0x120] ss:$12 sps:$4 sm:$0xff]  }
 0xc04   :  { %11727 = vmatprep.subr.bf16.mxu0 %v18842_v7  ;;  %v18889_v18 = vld [vmem:[#allocation8 + $0x10c] ss:$12 sps:$4 sm:$0xff]  }
 0xc05   :  { %v18901_v7 = vld [vmem:[#allocation8 + $0x20] ss:$12 sps:$4 sm:$0xff]  }
 0xc06   :  { %11685 = vmatpush2.bf16.msra.mxu1 %v18837_v60  ;;  %v18905_v60 = vld [vmem:[#allocation8 + $0xc8] ss:$12 sps:$4 sm:$0xff]  }
 0xc07   :  { %11728 = vmatpush2.bf16.msra.mxu0 %v18840_v54  ;;  %12163 = vmatprep.subr.bf16.mxu1 %v18845_v53  ;;  %v18887_v54 = vld [vmem:[#allocation8 + $0x108] ss:$12 sps:$4 sm:$0xff]  }
 0xc08   :  { %16725 = vmatprep.subr.bf16.mxu0 %v18870_v56  ;;  %v18906_v53 = vld [vmem:[#allocation8 + $0x8] ss:$12 sps:$4 sm:$0xff]  }
 0xc09   :  { %11687 = vmatmul.mubr.bf16.vlgmr.msra.gmra.mxu1 %v20614_v47 }
 0xc0a   :  { %11730 = vmatmul.mubr.bf16.vlgmr.msra.gmra.mxu0 %v20614_v47  ;;  %12164 = vmatpush1.bf16.msra.mxu1 %v18843_v16  ;;  %v18858_v47 = vld [vmem:[#allocation8 + $0x30] ss:$12 sps:$4 sm:$0xff]   ;;  %v18894_v16 = vld [vmem:[#allocation8 + $0xf4] ss:$12 sps:$4 sm:$0xff]  }
 0xc0b   :  { %12165 = vmatprep.subr.bf16.mxu1 %v18848_v17  ;;  %16726 = vmatpush3.bf16.msra.mxu0 %v18871_v35  ;;  %v18909_v17 = vld [vmem:[#allocation2 + $0x74] ss:$8 sps:$4 sm:$0xff]  }
 0xc0c   :  { %16727 = vmatprep.subr.bf16.mxu0 %v18875_v23 }
 0xc0e   :  { %12166 = vmatpush1.bf16.msra.mxu1 %v18846_v36  ;;  %v18892_v36 = vld [vmem:[#allocation8 + $0xf0] ss:$12 sps:$4 sm:$0xff]  }
 0xc0f   :  { %12167 = vmatprep.subr.bf16.mxu1 %v18851_v33  ;;  %16728 = vmatpush3.bf16.msra.mxu0 %v18876_v34  ;;  %v18899_v33 = vld [vmem:[#allocation8 + $0xdc] ss:$12 sps:$4 sm:$0xff]   ;;  %v20675_v34 = vld [vmem:[%s20946_s5] sm:$0x3f] }
 0xc10   :  { %16729 = vmatprep.subr.bf16.mxu0 %v18880_v40 }
 0xc12   :  { %12168 = vmatpush1.bf16.msra.mxu1 %v18849_v9  ;;  %v18897_v9 = vld [vmem:[#allocation8 + $0xd8] ss:$12 sps:$4 sm:$0xff]  }
 0xc13   :  { %12169 = vmatprep.subr.bf16.mxu1 %v18854_v25  ;;  %16730 = vmatpush3.bf16.msra.mxu0 %v18881_v41  ;;  %v18904_v25 = vld [vmem:[#allocation8 + $0xc4] ss:$12 sps:$4 sm:$0xff]   ;;  %v10371_v41 = vrot.slane %v20675_v34, %v20090_v30 }
 0xc14   :  { %16731 = vmatprep.subr.bf16.mxu0 %v18885_v58  ;;  %v10367_v58 = vrot.slane %v20675_v34, %v20100_v8 }
 0xc16   :  { %12170 = vmatpush1.bf16.msra.mxu1 %v18852_v11  ;;  %v18902_v11 = vld [vmem:[#allocation8 + $0xc0] ss:$12 sps:$4 sm:$0xff]  }
 0xc17   :  { %12171 = vmatprep.subr.bf16.mxu1 %v18857_v61  ;;  %16732 = vmatpush3.bf16.msra.mxu0 %v18886_v43 }
 0xc18   :  { %16733 = vmatprep.subr.bf16.mxu0 %v18890_v51 }
 0xc1a   :  { %12172 = vmatpush1.bf16.msra.mxu1 %v18855_v12  ;;  %v18912_v12 = vld [vmem:[#allocation2 + $0x174] ss:$8 sps:$4 sm:$0xff]  }
 0xc1b   :  { %12173 = vmatprep.subr.bf16.mxu1 %v18860_v31  ;;  %16734 = vmatpush3.bf16.msra.mxu0 %v18891_v32 }
 0xc1c   :  { %16735 = vmatprep.subr.bf16.mxu0 %v18895_v15 }
 0xc1e   :  { %12174 = vmatpush1.bf16.msra.mxu1 %v18858_v47 }
 0xc1f   :  { %12175 = vmatprep.subr.bf16.mxu1 %v18863_v24  ;;  %16736 = vmatpush3.bf16.msra.mxu0 %v18896_v57 }
 0xc20   :  { %16737 = vmatprep.subr.bf16.mxu0 %v18900_v37 }
 0xc22   :  { %12176 = vmatpush1.bf16.msra.mxu1 %v18861_v27 }
 0xc23   :  { %12177 = vmatprep.subr.bf16.mxu1 %v18866_v62  ;;  %16738 = vmatpush3.bf16.msra.mxu0 %v18901_v7  ;;  %v20670_v62 = vld [vmem:[%s20947_s6] sm:$0x3f] }
 0xc24   :  { %16739 = vmatprep.subr.bf16.mxu0 %v18905_v60  ;;  %v11108_v40 = vrot.slane %v20670_v62, %v20090_v30 }
 0xc26   :  { %12178 = vmatpush1.bf16.msra.mxu1 %v18864_v59  ;;  %v11104_v59 = vrot.slane %v20670_v62, %v20100_v8 }
 0xc27   :  { %12179 = vmatprep.subr.bf16.mxu1 %v18869_v10  ;;  %16740 = vmatpush3.bf16.msra.mxu0 %v18906_v53 }
 0xc28   :  { %12618 = vmatprep.subr.bf16.mxu0 %v18909_v17 }
 0xc2a   :  { %12180 = vmatpush2.bf16.msra.mxu1 %v18867_v21 }
 0xc2b   :  { %12181 = vmatprep.subr.bf16.mxu1 %v18874_v29 }
 0xc2e   :  { %12182 = vmatpush2.bf16.msra.mxu1 %v18872_v63 }
 0xc2f   :  { %12183 = vmatprep.subr.bf16.mxu1 %v18879_v28 }
 0xc32   :  { %12184 = vmatpush2.bf16.msra.mxu1 %v18877_v55 }
 0xc33   :  { %12185 = vmatprep.subr.bf16.mxu1 %v18884_v46 }
 0xc36   :  { %12186 = vmatpush2.bf16.msra.mxu1 %v18882_v20 }
 0xc37   :  { %12187 = vmatprep.subr.bf16.mxu1 %v18889_v18 }
 0xc3a   :  { %12188 = vmatpush2.bf16.msra.mxu1 %v18887_v54 }
 0xc3b   :  { %12189 = vmatprep.subr.bf16.mxu1 %v18894_v16 }
 0xc3e   :  { %12190 = vmatpush2.bf16.msra.mxu1 %v18892_v36 }
 0xc3f   :  { %12191 = vmatprep.subr.bf16.mxu1 %v18899_v33 }
 0xc42   :  { %12192 = vmatpush2.bf16.msra.mxu1 %v18897_v9 }
 0xc43   :  { %12193 = vmatprep.subr.bf16.mxu1 %v18904_v25  ;;  %v10375_v25 = vrot.slane %v20675_v34, %v20118_v48 }
 0xc46   :  { %12194 = vmatpush2.bf16.msra.mxu1 %v18902_v11  ;;  %v11112_v11 = vrot.slane %v20670_v62, %v20118_v48 }
 0xc47   :  { %12661 = vmatprep.subr.bf16.mxu1 %v18912_v12 }
 0xc49   :  { %v10951_v61 = vpop.f32.mrf.mxu0  ;;  %v10908_v27 = vpop.f32.mrf.mxu1 }
 0xc4a   :  { %v10909_v32 = vadd.f32 %v10908_v27, %v10367_v58 }
 0xc4b   :  { %v10953_v47 = vpop.f32.mrf.mxu0  ;;  %v10910_v23 = vpop.f32.mrf.mxu1 }
 0xc4c   :  { %v10911_v63 = vadd.f32 %v10910_v23, %v10371_v41  ;;  %v11116_v23 = vrot.slane %v20670_v62, %v20123_v49 }
 0xc4d   :  { %v10955_v31 = vpop.f32.mrf.mxu0  ;;  %v10912_v21 = vpop.f32.mrf.mxu1 }
 0xc4e   :  { %v10913_v55 = vadd.f32 %v10912_v21, %v10367_v58 }
 0xc4f   :  { %v20665_v24 = vpop.f32.mrf.mxu0  ;;  %v10914_v15 = vpop.f32.mrf.mxu1 }
 0xc50   :  { %v10915_v20 = vadd.f32 %v10914_v15, %v10371_v41  ;;  %v10952_v41 = vadd.f32 %v10951_v61, %v10375_v25 }
 0xc89   :  { %v11645_v56 = vpop.f32.mrf.mxu0  ;;  %v20685_v17 = vpop.f32.mrf.mxu1 }
 0xc8a   :  { %v11646_v43 = vadd.f32 %v11645_v56, %v11104_v59 }
 0xc8b   :  { %v11647_v35 = vpop.f32.mrf.mxu0  ;;  %v10996_v36 = vpop.f32.mrf.mxu1 }
 0xc8c   :  { %v11648_v29 = vadd.f32 %v11647_v35, %v11108_v40  ;;  %v11740_v37 = vadd.f32 %v11646_v43, %v10909_v32  ;;  %v10379_v35 = vrot.slane %v20675_v34, %v20123_v49  ;;  %v10956_v32 = vadd.f32 %v10955_v31, %v10375_v25 }
 0xc8d   :  { %v11649_v10 = vpop.f32.mrf.mxu0  ;;  %v20687_v33 = vpop.f32.mrf.mxu1 }
 0xc8e   :  { %v11650_v28 = vadd.f32 %v11649_v10, %v11104_v59  ;;  %v11741_v46 = vadd.f32 %v11648_v29, %v10911_v63  ;;  %v16271_v54 = vmul.f32 -1.442695, %v11740_v37 }
 0xc8f   :  { %v11651_v51 = vpop.f32.mrf.mxu0  ;;  %v20693_v56 = vpop.f32.mrf.mxu1 }
 0xc90   :  { %v11652_v57 = vadd.f32 %v11651_v51, %v11108_v40  ;;  %v11742_v18 = vadd.f32 %v11650_v28, %v10913_v55  ;;  %v16272_v7 = vmul.f32 -1.442695, %v11741_v46  ;;  %v10954_v51 = vadd.f32 %v10953_v47, %v10379_v35 }
 0xc92   :  { %v11743_v60 = vadd.f32 %v11652_v57, %v10915_v20  ;;  %v16273_v16 = vmul.f32 -1.442695, %v11742_v18  ;;  %19539 = vpow2.f32 %v16272_v7  ;;  %v10958_v18 = vadd.f32 %v20665_v24, %v10379_v35 }
 0xc93   :  { %19541 = vpow2.f32 %v16271_v54  ;;  %v11120_v24 = vrot.slane %v20670_v62, %v20143_v39 }
 0xc94   :  { %v16274_v53 = vmul.f32 -1.442695, %v11743_v60  ;;  %19543 = vpow2.f32 %v16273_v16 }
 0xc96   :  { %19545 = vpow2.f32 %v16274_v53  ;;  %v11124_v53 = vrot.slane %v20670_v62, %v20138_v22 }
 0xc9f   :  { %v19540_v9 = vpop.eup %19539 }
 0xca0   :  { %v19542_v12 = vpop.eup %19541  ;;  %v11757_v40 = vadd.f32 1.0, %v19540_v9 }
 0xca1   :  { %v19544_v27 = vpop.eup %19543  ;;  %v11756_v58 = vadd.f32 1.0, %v19542_v12  ;;  %v10387_v12 = vrot.slane %v20675_v34, %v20138_v22 }
 0xca2   :  { %v11758_v29 = vadd.f32 1.0, %v19544_v27  ;;  %19547 = vrcp.f32 %v11757_v40 }
 0xca3   :  { %v19546_v10 = vpop.eup %19545  ;;  %19549 = vrcp.f32 %v11756_v58 }
 0xca4   :  { %v11759_v15 = vadd.f32 1.0, %v19546_v10  ;;  %19551 = vrcp.f32 %v11758_v29  ;;  %v10383_v29 = vrot.slane %v20675_v34, %v20143_v39 }
 0xcc9   :  { %v11688_v59 = vpop.f32.mrf.mxu1 }
 0xcca   :  { %v11689_v21 = vadd.f32 %v11688_v59, %v11112_v11  ;;  %v11731_v55 = vpop.f32.mrf.mxu0 }
 0xccb   :  { %v11690_v43 = vpop.f32.mrf.mxu1  ;;  %v11732_v59 = vadd.f32 %v11731_v55, %v11120_v24  ;;  %v10995_v55 = vadd.f32 %v20685_v17, %v10383_v29 }
 0xccc   :  { %v11768_v63 = vadd.f32 %v11689_v21, %v10952_v41  ;;  %v11691_v28 = vadd.f32 %v11690_v43, %v11116_v23  ;;  %v11733_v47 = vpop.f32.mrf.mxu0  ;;  %v10997_v43 = vadd.f32 %v10996_v36, %v10387_v12 }
 0xccd   :  { %v11692_v46 = vpop.f32.mrf.mxu1 }
 0xcce   :  { %v16275_v57 = vmul.f32 -1.442695, %v11768_v63  ;;  %v11769_v37 = vadd.f32 %v11691_v28, %v10954_v51  ;;  %v11693_v20 = vadd.f32 %v11692_v46, %v11112_v11  ;;  %v11735_v25 = vpop.f32.mrf.mxu0  ;;  %v11734_v11 = vadd.f32 %v11733_v47, %v11124_v53 }
 0xccf   :  { %v11694_v61 = vpop.f32.mrf.mxu1  ;;  %v11736_v27 = vadd.f32 %v11735_v25, %v11120_v24 }
 0xcd0   :  { %19553 = vpow2.f32 %v16275_v57  ;;  %v16276_v7 = vmul.f32 -1.442695, %v11769_v37  ;;  %v11770_v60 = vadd.f32 %v11693_v20, %v10956_v32  ;;  %v11695_v54 = vadd.f32 %v11694_v61, %v11116_v23  ;;  %v11737_v35 = vpop.f32.mrf.mxu0  ;;  %v19548_v23 = vpop.eup %19547 }
 0xcd1   :  { %19555 = vrcp.f32 %v11759_v15  ;;  %v19550_v40 = vpop.eup %19549  ;;  %v11797_v10 = vmul.f32 %v19548_v23, %v11734_v11  ;;  %v11738_v58 = vadd.f32 %v11737_v35, %v11124_v53  ;;  %v10999_v32 = vadd.f32 %v20687_v33, %v10383_v29 }
 0xcd2   :  { %19557 = vpow2.f32 %v16276_v7  ;;  %v16277_v31 = vmul.f32 -1.442695, %v11770_v60  ;;  %v11771_v16 = vadd.f32 %v11695_v54, %v10958_v18  ;;  %v19552_v41 = vpop.eup %19551  ;;  %v11796_v15 = vmul.f32 %v19550_v40, %v11732_v59 }
 0xcd3   :  { %v11798_v51 = vmul.f32 %v19552_v41, %v11736_v27  ;;  %v11801_v46 = vadd.f32 %v11797_v10, %v10997_v43  ;;  %v11001_v61 = vadd.f32 %v20693_v56, %v10387_v12 }
 0xcd4   :  { %19559 = vpow2.f32 %v16277_v31  ;;  %v16278_v9 = vmul.f32 -1.442695, %v11771_v16  ;;  %v11800_v7 = vadd.f32 %v11796_v15, %v10995_v55  ;;  %v18924_v15 = vld [vmem:[#allocation2 + $0x154] ss:$8 sps:$4 sm:$0xff]   ;;  %v18925_v55 = vld [vmem:[#allocation2 + $0x40] ss:$8 sps:$4 sm:$0xff]  }
 0xcd5   :  { %v11802_v18 = vadd.f32 %v11798_v51, %v10999_v32  ;;  %v18916_v32 = vld [vmem:[#allocation2 + $0x160] ss:$8 sps:$4 sm:$0xff]  }
 0xcd6   :  { %19561 = vpow2.f32 %v16278_v9 }
 0xcdd   :  { %v19554_v21 = vpop.eup %19553 }
 0xcde   :  { %v19556_v63 = vpop.eup %19555  ;;  %v11784_v62 = vadd.f32 1.0, %v19554_v21 }
 0xcdf   :  { %v19558_v28 = vpop.eup %19557  ;;  %v11799_v37 = vmul.f32 %v19556_v63, %v11738_v58 }
 0xce0   :  { %v11785_v57 = vadd.f32 1.0, %v19558_v28  ;;  %19563 = vrcp.f32 %v11784_v62  ;;  %v18910_v62 = vld [vmem:[#allocation2 + $0x170] ss:$8 sps:$4 sm:$0xff]   ;;  %v18913_v28 = vld [vmem:[#allocation2 + $0x60] ss:$8 sps:$4 sm:$0xff]  }
 0xce1   :  { %v19560_v20 = vpop.eup %19559  ;;  %v11803_v54 = vadd.f32 %v11799_v37, %v11001_v61  ;;  %v18927_v37 = vld [vmem:[#allocation2 + $0x44] ss:$8 sps:$4 sm:$0xff]   ;;  %v18933_v61 = vld [vmem:[#allocation2 + $0x34] ss:$8 sps:$4 sm:$0xff]  }
 0xce2   :  { %19565 = vrcp.f32 %v11785_v57  ;;  %v11786_v34 = vadd.f32 1.0, %v19560_v20  ;;  %v18922_v57 = vld [vmem:[#allocation2 + $0x150] ss:$8 sps:$4 sm:$0xff]   ;;  %v18930_v20 = vld [vmem:[#allocation2 + $0x144] ss:$8 sps:$4 sm:$0xff]  }
 0xce3   :  { %v19562_v36 = vpop.eup %19561  ;;  %19567 = vtanh.f32 %v11801_v46  ;;  %v18919_v46 = vld [vmem:[#allocation2 + $0x50] ss:$8 sps:$4 sm:$0xff]  }
 0xce4   :  { %19569 = vrcp.f32 %v11786_v34  ;;  %v11787_v60 = vadd.f32 1.0, %v19562_v36  ;;  %v18936_v34 = vld [vmem:[#allocation2 + $0x134] ss:$8 sps:$4 sm:$0xff]   ;;  %v18931_v36 = vld [vmem:[#allocation2 + $0x30] ss:$8 sps:$4 sm:$0xff]  }
 0xce5   :  { %19571 = vtanh.f32 %v11802_v18  ;;  %v18928_v18 = vld [vmem:[#allocation2 + $0x140] ss:$8 sps:$4 sm:$0xff]  }
 0xce6   :  { %19573 = vrcp.f32 %v11787_v60  ;;  %v18942_v60 = vld [vmem:[#allocation2 + $0x124] ss:$8 sps:$4 sm:$0xff]  }
 0xce7   :  { %19575 = vtanh.f32 %v11800_v7  ;;  %v18939_v7 = vld [vmem:[#allocation2 + $0x24] ss:$8 sps:$4 sm:$0xff]  }
 0xce8   :  { %19577 = vtanh.f32 %v11803_v54  ;;  %v18937_v54 = vld [vmem:[#allocation2 + $0x20] ss:$8 sps:$4 sm:$0xff]  }
 0xced   :  { %v19564_v33 = vpop.eup %19563 }
 0xcee   :  { %v11808_v53 = vsub.f32 1.0, %v19564_v33  ;;  %v11816_v58 = vmul.f32 %v19564_v33, %v20606_v50  ;;  %v18918_v50 = vld [vmem:[#allocation2 + $0x164] ss:$8 sps:$4 sm:$0xff]   ;;  %v18940_v33 = vld [vmem:[#allocation2 + $0x120] ss:$8 sps:$4 sm:$0xff]  }
 0xcef   :  { %v19566_v47 = vpop.eup %19565 }
 0xcf0   :  { %v19568_v31 = vpop.eup %19567  ;;  %v11809_v17 = vsub.f32 1.0, %v19566_v47  ;;  %v11817_v10 = vmul.f32 %v19566_v47, %v20602_v45  ;;  %v18945_v47 = vld [vmem:[#allocation2 + $0x14] ss:$8 sps:$4 sm:$0xff]  }
 0xcf1   :  { %v19570_v16 = vpop.eup %19569 }
 0xcf2   :  { %v19572_v9 = vpop.eup %19571  ;;  %v11810_v56 = vsub.f32 1.0, %v19570_v16  ;;  %v11813_v12 = vmul.f32 %v19568_v31, %v11809_v17  ;;  %v11818_v40 = vmul.f32 %v19570_v16, %v20600_v13  ;;  %v18907_v13 = vld [vmem:[#allocation2 + $0x70] ss:$8 sps:$4 sm:$0xff]   ;;  %v18948_v31 = vld [vmem:[#allocation2 + $0x114] ss:$8 sps:$4 sm:$0xff]  }
 0xcf3   :  { %v19574_v25 = vpop.eup %19573  ;;  %v18943_v17 = vld [vmem:[#allocation2 + $0x10] ss:$8 sps:$4 sm:$0xff]  }
 0xcf4   :  { %v19576_v24 = vpop.eup %19575  ;;  %v11811_v11 = vsub.f32 1.0, %v19574_v25  ;;  %v11814_v27 = vmul.f32 %v19572_v9, %v11810_v56  ;;  %v11819_v41 = vmul.f32 %v19574_v25, %v20604_v6  ;;  %v20717_v29 = vadd.f32 %v11817_v10, %v11813_v12  ;;  %v18915_v6 = vld [vmem:[#allocation2 + $0x64] ss:$8 sps:$4 sm:$0xff]   ;;  %v18946_v16 = vld [vmem:[#allocation2 + $0x110] ss:$8 sps:$4 sm:$0xff]  }
 0xcf5   :  { %v19578_v35 = vpop.eup %19577  ;;  %v11812_v23 = vmul.f32 %v19576_v24, %v11808_v53  ;;  %v18951_v53 = vld [vmem:[#allocation2 + $0x4] ss:$8 sps:$4 sm:$0xff]   ;;  %v18949_v56 = vld [vmem:[#allocation2] ss:$8 sps:$4 sm:$0xff]   ;;  %v18957_v24 = vld [vmem:[#allocation2 + $0xf4] ss:$8 sps:$4 sm:$0xff]  }
 0xcf6   :  { %v11815_v59 = vmul.f32 %v19578_v35, %v11811_v11  ;;  %v20715_v21 = vadd.f32 %v11818_v40, %v11814_v27  ;;  %v18954_v9 = vld [vmem:[#allocation2 + $0x104] ss:$8 sps:$4 sm:$0xff]   ;;  %v18952_v25 = vld [vmem:[#allocation2 + $0x100] ss:$8 sps:$4 sm:$0xff]   ;;  %v18955_v11 = vld [vmem:[#allocation2 + $0xf0] ss:$8 sps:$4 sm:$0xff]  }
 0xcf7   :  { %v20721_v51 = vadd.f32 %v11816_v58, %v11812_v23  ;;  %v18960_v12 = vld [vmem:[#allocation2 + $0xe4] ss:$8 sps:$4 sm:$0xff]   ;;  %v18958_v27 = vld [vmem:[#allocation2 + $0xe0] ss:$8 sps:$4 sm:$0xff]   ;;  %v18963_v35 = vld [vmem:[#allocation2 + $0xd4] ss:$8 sps:$4 sm:$0xff]  }
 0xcf8   :  { %v20719_v43 = vadd.f32 %v11819_v41, %v11815_v59  ;;  %v18961_v23 = vld [vmem:[#allocation2 + $0xd0] ss:$8 sps:$4 sm:$0xff]   ;;  %v18966_v40 = vld [vmem:[#allocation2 + $0xc4] ss:$8 sps:$4 sm:$0xff]   ;;  %v18964_v59 = vld [vmem:[#allocation2 + $0xc0] ss:$8 sps:$4 sm:$0xff]  }
 0xcf9   :  { %v20733_v45 = vpack.c.bf16 %v20715_v21, %v20721_v51  ;;  %v18967_v10 = vld [vmem:[#allocation2 + $0xb0] ss:$8 sps:$4 sm:$0xff]   ;;  %v18972_v41 = vld [vmem:[#allocation2 + $0xa4] ss:$8 sps:$4 sm:$0xff]   ;;  %v18970_v58 = vld [vmem:[#allocation2 + $0xa0] ss:$8 sps:$4 sm:$0xff]  }
 0xcfa   :  { %v20725_v63 = vpack.c.bf16 %v20719_v43, %v20717_v29 }
 0xcfc   :  { %12195 = vmatprep.mubr.bf16.mxu1 %v20725_v63  ;;  %12238 = vmatprep.mubr.bf16.mxu0 %v20725_v63 }
 0xcfd   :  { %12196 = vmatmul.mubr.bf16.vlgmr.msra.gmra.mxu1 %v20733_v45  ;;  %12239 = vmatmul.mubr.bf16.vlgmr.msra.gmra.mxu0 %v20733_v45 }
 0xcfe   :  { %12619 = vmatpush1.bf16.msra.mxu0 %v18907_v13  ;;  %12662 = vmatpush1.bf16.msra.mxu1 %v18910_v62  ;;  %v18975_v13 = vld [vmem:[#allocation2 + $0x94] ss:$8 sps:$4 sm:$0xff]   ;;  %v18973_v62 = vld [vmem:[#allocation2 + $0x90] ss:$8 sps:$4 sm:$0xff]  }
 0xcff   :  { %16384 = vmatprep.mubr.msk.bf16.mxu0 %vm16383_vm7, %v19812_v14  ;;  %12620 = vmatprep.subr.bf16.mxu0 %v18915_v6  ;;  %v18978_v6 = vld [vmem:[#allocation2 + $0x84] ss:$8 sps:$4 sm:$0xff]  }
 0xd00   :  { %12663 = vmatprep.subr.bf16.mxu1 %v18918_v50  ;;  %12693 = vmatprep.mubr.bf16.mxu1 %v19811_v0  ;;  %v18934_v0 = vld [vmem:[#allocation2 + $0x130] ss:$8 sps:$4 sm:$0xff]   ;;  %v18976_v50 = vld [vmem:[#allocation2 + $0x80] ss:$8 sps:$4 sm:$0xff]  }
 0xd02   :  { %12621 = vmatpush1.bf16.msra.mxu0 %v18913_v28  ;;  %12664 = vmatpush1.bf16.msra.mxu1 %v18916_v32  ;;  %v18979_v28 = vld [vmem:[#allocation5 + $0x150] ss:$24 sps:$4 sm:$0xff]   ;;  %v18981_v32 = vld [vmem:[#allocation5 + $0x154] ss:$24 sps:$4 sm:$0xff]  }
 0xd03   :  { %12622 = vmatprep.subr.bf16.mxu0 %v18921_v4  ;;  %12665 = vmatprep.subr.bf16.mxu1 %v18924_v15  ;;  %v18982_v4 = vld [vmem:[#allocation5 + $0x158] ss:$24 sps:$4 sm:$0xff]   ;;  %v18984_v15 = vld [vmem:[#allocation5 + $0x15c] ss:$24 sps:$4 sm:$0xff]  }
 0xd06   :  { %12623 = vmatpush1.bf16.msra.mxu0 %v18919_v46  ;;  %12666 = vmatpush1.bf16.msra.mxu1 %v18922_v57  ;;  %v18987_v46 = vld [vmem:[#allocation5 + $0x124] ss:$24 sps:$4 sm:$0xff]   ;;  %v18985_v57 = vld [vmem:[#allocation5 + $0x120] ss:$24 sps:$4 sm:$0xff]  }
 0xd07   :  { %12624 = vmatprep.subr.bf16.mxu0 %v18927_v37  ;;  %12667 = vmatprep.subr.bf16.mxu1 %v18930_v20  ;;  %v18990_v37 = vld [vmem:[#allocation5 + $0x12c] ss:$24 sps:$4 sm:$0xff]  }
 0xd08   :  { %v18993_v20 = vld [vmem:[#allocation5 + $0xf4] ss:$24 sps:$4 sm:$0xff]  }
 0xd0a   :  { %12625 = vmatpush1.bf16.msra.mxu0 %v18925_v55  ;;  %12668 = vmatpush1.bf16.msra.mxu1 %v18928_v18  ;;  %v18999_v55 = vld [vmem:[#allocation5 + $0xc4] ss:$24 sps:$4 sm:$0xff]  }
 0xd0b   :  { %12626 = vmatprep.subr.bf16.mxu0 %v18933_v61  ;;  %12669 = vmatprep.subr.bf16.mxu1 %v18936_v34  ;;  %v19002_v18 = vld [vmem:[#allocation5 + $0xcc] ss:$24 sps:$4 sm:$0xff]   ;;  %v18997_v61 = vld [vmem:[#allocation5 + $0xc0] ss:$24 sps:$4 sm:$0xff]  }
 0xd0c   :  { %v19000_v34 = vld [vmem:[#allocation5 + $0xc8] ss:$24 sps:$4 sm:$0xff]  }
 0xd0e   :  { %12627 = vmatpush1.bf16.msra.mxu0 %v18931_v36  ;;  %12670 = vmatpush1.bf16.msra.mxu1 %v18934_v0  ;;  %v19005_v36 = vld [vmem:[#allocation5 + $0x94] ss:$24 sps:$4 sm:$0xff]  }
 0xd0f   :  { %12628 = vmatprep.subr.bf16.mxu0 %v18939_v7  ;;  %12671 = vmatprep.subr.bf16.mxu1 %v18942_v60  ;;  %v19008_v0 = vld [vmem:[#allocation5 + $0x9c] ss:$24 sps:$4 sm:$0xff]   ;;  %v19003_v7 = vld [vmem:[#allocation5 + $0x90] ss:$24 sps:$4 sm:$0xff]  }
 0xd10   :  { %v19006_v60 = vld [vmem:[#allocation5 + $0x98] ss:$24 sps:$4 sm:$0xff]  }
 0xd12   :  { %12629 = vmatpush1.bf16.msra.mxu0 %v18937_v54  ;;  %12672 = vmatpush1.bf16.msra.mxu1 %v18940_v33  ;;  %v19011_v54 = vld [vmem:[#allocation5 + $0x64] ss:$24 sps:$4 sm:$0xff]  }
 0xd13   :  { %12630 = vmatprep.subr.bf16.mxu0 %v18945_v47  ;;  %12673 = vmatprep.subr.bf16.mxu1 %v18948_v31  ;;  %v19014_v33 = vld [vmem:[#allocation5 + $0x6c] ss:$24 sps:$4 sm:$0xff]   ;;  %v19009_v47 = vld [vmem:[#allocation5 + $0x60] ss:$24 sps:$4 sm:$0xff]  }
 0xd14   :  { %v19012_v31 = vld [vmem:[#allocation5 + $0x68] ss:$24 sps:$4 sm:$0xff]  }
 0xd16   :  { %12631 = vmatpush1.bf16.msra.mxu0 %v18943_v17  ;;  %12674 = vmatpush1.bf16.msra.mxu1 %v18946_v16  ;;  %v19015_v17 = vld [vmem:[#allocation5 + $0x30] ss:$24 sps:$4 sm:$0xff]   ;;  %v19017_v16 = vld [vmem:[#allocation5 + $0x34] ss:$24 sps:$4 sm:$0xff]  }
 0xd17   :  { %12632 = vmatprep.subr.bf16.mxu0 %v18951_v53  ;;  %12675 = vmatprep.subr.bf16.mxu1 %v18954_v9  ;;  %v19018_v53 = vld [vmem:[#allocation5 + $0x38] ss:$24 sps:$4 sm:$0xff]   ;;  %v19020_v9 = vld [vmem:[#allocation5 + $0x3c] ss:$24 sps:$4 sm:$0xff]  }
 0xd1a   :  { %12633 = vmatpush1.bf16.msra.mxu0 %v18949_v56  ;;  %12676 = vmatpush1.bf16.msra.mxu1 %v18952_v25  ;;  %v19021_v56 = vld [vmem:[#allocation5] ss:$24 sps:$4 sm:$0xff]   ;;  %v19023_v25 = vld [vmem:[#allocation5 + $0x4] ss:$24 sps:$4 sm:$0xff]  }
 0xd1b   :  { %12634 = vmatprep.subr.bf16.mxu0 %v18957_v24  ;;  %13314 = vmatprep.subr.bf16.mxu1 %v18981_v32  ;;  %v19024_v24 = vld [vmem:[#allocation5 + $0x8] ss:$24 sps:$4 sm:$0xff]  }
 0xd1c   :  { %v19048_v32 = vld [vmem:[#allocation5 + $0x248] ss:$24 sps:$4 sm:$0xff]  }
 0xd1d   :  { %16388 = vmatmul.mubr.msk.bf16.vlgmr.msra.gmra.mxu1 %vm16387_vm6, %v19812_v14 }
 0xd1e   :  { %12635 = vmatpush2.bf16.msra.mxu0 %v18955_v11  ;;  %13315 = vmatpush1.bf16.msra.mxu1 %v18979_v28  ;;  %v19026_v11 = vld [vmem:[#allocation5 + $0xc] ss:$24 sps:$4 sm:$0xff]   ;;  %v19045_v28 = vld [vmem:[#allocation5 + $0x240] ss:$24 sps:$4 sm:$0xff]  }
 0xd1f   :  { %12636 = vmatprep.subr.bf16.mxu0 %v18960_v12  ;;  %13316 = vmatprep.subr.bf16.mxu1 %v18987_v46  ;;  %v19029_v12 = vld [vmem:[#allocation5 + $0x2d4] ss:$24 sps:$4 sm:$0xff]   ;;  %v19051_v46 = vld [vmem:[#allocation5 + $0x210] ss:$24 sps:$4 sm:$0xff]  }
 0xd22   :  { %12637 = vmatpush2.bf16.msra.mxu0 %v18958_v27  ;;  %13317 = vmatpush1.bf16.msra.mxu1 %v18985_v57  ;;  %v19032_v27 = vld [vmem:[#allocation5 + $0x2dc] ss:$24 sps:$4 sm:$0xff]   ;;  %v19054_v57 = vld [vmem:[#allocation5 + $0x218] ss:$24 sps:$4 sm:$0xff]  }
 0xd23   :  { %12638 = vmatprep.subr.bf16.mxu0 %v18963_v35  ;;  %13318 = vmatprep.subr.bf16.mxu1 %v18993_v20  ;;  %v19027_v35 = vld [vmem:[#allocation5 + $0x2d0] ss:$24 sps:$4 sm:$0xff]   ;;  %v19057_v20 = vld [vmem:[#allocation5 + $0x1e0] ss:$24 sps:$4 sm:$0xff]  }
 0xd26   :  { %12639 = vmatpush2.bf16.msra.mxu0 %v18961_v23  ;;  %13319 = vmatpush1.bf16.msra.mxu1 %v18991_v1  ;;  %v19030_v23 = vld [vmem:[#allocation5 + $0x2d8] ss:$24 sps:$4 sm:$0xff]   ;;  %v19060_v1 = vld [vmem:[#allocation5 + $0x1e8] ss:$24 sps:$4 sm:$0xff]  }
 0xd27   :  { %12640 = vmatprep.subr.bf16.mxu0 %v18966_v40  ;;  %13320 = vmatprep.subr.bf16.mxu1 %v18999_v55  ;;  %v19035_v40 = vld [vmem:[#allocation5 + $0x2a4] ss:$24 sps:$4 sm:$0xff]   ;;  %v19066_v55 = vld [vmem:[#allocation5 + $0x1b8] ss:$24 sps:$4 sm:$0xff]  }
 0xd2a   :  { %12641 = vmatpush2.bf16.msra.mxu0 %v18964_v59  ;;  %13321 = vmatpush1.bf16.msra.mxu1 %v18997_v61  ;;  %v19038_v59 = vld [vmem:[#allocation5 + $0x2ac] ss:$24 sps:$4 sm:$0xff]   ;;  %v19069_v61 = vld [vmem:[#allocation5 + $0x180] ss:$24 sps:$4 sm:$0xff]  }
 0xd2b   :  { %12642 = vmatprep.subr.bf16.mxu0 %v18969_v5  ;;  %13322 = vmatprep.subr.bf16.mxu1 %v19005_v36  ;;  %v19033_v5 = vld [vmem:[#allocation5 + $0x2a0] ss:$24 sps:$4 sm:$0xff]  }
 0xd2c   :  { %v19072_v36 = vld [vmem:[#allocation5 + $0x188] ss:$24 sps:$4 sm:$0xff]  }
 0xd2e   :  { %12643 = vmatpush2.bf16.msra.mxu0 %v18967_v10  ;;  %13323 = vmatpush1.bf16.msra.mxu1 %v19003_v7  ;;  %v19036_v10 = vld [vmem:[#allocation5 + $0x2a8] ss:$24 sps:$4 sm:$0xff]   ;;  %v19077_v7 = vld [vmem:[#allocation5 + $0x164] ss:$24 sps:$4 sm:$0xff]  }
 0xd2f   :  { %12644 = vmatprep.subr.bf16.mxu0 %v18972_v41  ;;  %13324 = vmatprep.subr.bf16.mxu1 %v19011_v54  ;;  %v19041_v41 = vld [vmem:[#allocation5 + $0x274] ss:$24 sps:$4 sm:$0xff]   ;;  %v11890_v54 = vld [vmem:[%s20949_s8] sm:$0x7] }
 0xd32   :  { %12645 = vmatpush2.bf16.msra.mxu0 %v18970_v58  ;;  %13325 = vmatpush1.bf16.msra.mxu1 %v19009_v47  ;;  %v19044_v58 = vld [vmem:[#allocation5 + $0x27c] ss:$24 sps:$4 sm:$0xff]  }
 0xd33   :  { %12646 = vmatprep.subr.bf16.mxu0 %v18975_v13  ;;  %13326 = vmatprep.subr.bf16.mxu1 %v19017_v16  ;;  %v19039_v13 = vld [vmem:[#allocation5 + $0x270] ss:$24 sps:$4 sm:$0xff]  }
 0xd36   :  { %12647 = vmatpush2.bf16.msra.mxu0 %v18973_v62  ;;  %13327 = vmatpush1.bf16.msra.mxu1 %v19015_v17  ;;  %v19042_v62 = vld [vmem:[#allocation5 + $0x278] ss:$24 sps:$4 sm:$0xff]   ;;  %v11903_v17 = vrot.slane %v11890_v54, %v20118_v48 }
 0xd37   :  { %12648 = vmatprep.subr.bf16.mxu0 %v18978_v6  ;;  %13328 = vmatprep.subr.bf16.mxu1 %v19023_v25  ;;  %v19047_v6 = vld [vmem:[#allocation5 + $0x244] ss:$24 sps:$4 sm:$0xff]  }
 0xd3a   :  { %12649 = vmatpush2.bf16.msra.mxu0 %v18976_v50  ;;  %13329 = vmatpush1.bf16.msra.mxu1 %v19021_v56  ;;  %v19050_v50 = vld [vmem:[#allocation5 + $0x24c] ss:$24 sps:$4 sm:$0xff]  }
 0xd3b   :  { %13357 = vmatprep.subr.bf16.mxu0 %v18984_v15  ;;  %13330 = vmatprep.subr.bf16.mxu1 %v19029_v12  ;;  %v19056_v15 = vld [vmem:[#allocation5 + $0x21c] ss:$24 sps:$4 sm:$0xff]  }
 0xd3d   :  { %16386 = vmatmul.mubr.msk.bf16.vlgmr.msra.gmra.mxu0 %vm16385_vm13, %v19812_v14  ;;  %v18994_v14 = vld [vmem:[#allocation5 + $0xf8] ss:$24 sps:$4 sm:$0xff]  }
 0xd3e   :  { %13358 = vmatpush1.bf16.msra.mxu0 %v18982_v4  ;;  %13331 = vmatpush2.bf16.msra.mxu1 %v19027_v35  ;;  %v19053_v4 = vld [vmem:[#allocation5 + $0x214] ss:$24 sps:$4 sm:$0xff]  }
 0xd3f   :  { %13359 = vmatprep.subr.bf16.mxu0 %v18990_v37  ;;  %13332 = vmatprep.subr.bf16.mxu1 %v19035_v40  ;;  %v19059_v37 = vld [vmem:[#allocation5 + $0x1e4] ss:$24 sps:$4 sm:$0xff]  }
 0xd42   :  { %13360 = vmatpush1.bf16.msra.mxu0 %v18988_v2  ;;  %13333 = vmatpush2.bf16.msra.mxu1 %v19033_v5  ;;  %v19062_v2 = vld [vmem:[#allocation5 + $0x1ec] ss:$24 sps:$4 sm:$0xff]  }
 0xd43   :  { %13361 = vmatprep.subr.bf16.mxu0 %v18996_v42  ;;  %13334 = vmatprep.subr.bf16.mxu1 %v19041_v41  ;;  %v19063_v42 = vld [vmem:[#allocation5 + $0x1b0] ss:$24 sps:$4 sm:$0xff]  }
 0xd46   :  { %13362 = vmatpush1.bf16.msra.mxu0 %v18994_v14  ;;  %13335 = vmatpush2.bf16.msra.mxu1 %v19039_v13  ;;  %v19065_v14 = vld [vmem:[#allocation5 + $0x1b4] ss:$24 sps:$4 sm:$0xff]  }
 0xd47   :  { %13363 = vmatprep.subr.bf16.mxu0 %v19002_v18  ;;  %13336 = vmatprep.subr.bf16.mxu1 %v19047_v6  ;;  %v19068_v18 = vld [vmem:[#allocation5 + $0x1bc] ss:$24 sps:$4 sm:$0xff]  }
 0xd4a   :  { %13364 = vmatpush1.bf16.msra.mxu0 %v19000_v34  ;;  %13337 = vmatpush2.bf16.msra.mxu1 %v19045_v28  ;;  %v19071_v34 = vld [vmem:[#allocation5 + $0x184] ss:$24 sps:$4 sm:$0xff]  }
 0xd4b   :  { %13365 = vmatprep.subr.bf16.mxu0 %v19008_v0  ;;  %13338 = vmatprep.subr.bf16.mxu1 %v19053_v4  ;;  %v19074_v0 = vld [vmem:[#allocation5 + $0x18c] ss:$24 sps:$4 sm:$0xff]  }
 0xd4e   :  { %13366 = vmatpush1.bf16.msra.mxu0 %v19006_v60  ;;  %13339 = vmatpush2.bf16.msra.mxu1 %v19051_v46  ;;  %v19080_v60 = vld [vmem:[#allocation7 + $0x154] ss:$24 sps:$4 sm:$0xff]  }
 0xd4f   :  { %13367 = vmatprep.subr.bf16.mxu0 %v19014_v33  ;;  %13340 = vmatprep.subr.bf16.mxu1 %v19059_v37 }
 0xd52   :  { %13368 = vmatpush1.bf16.msra.mxu0 %v19012_v31  ;;  %13341 = vmatpush2.bf16.msra.mxu1 %v19057_v20  ;;  %v11895_v31 = vrot.slane %v11890_v54, %v20100_v8 }
 0xd53   :  { %13369 = vmatprep.subr.bf16.mxu0 %v19020_v9  ;;  %13342 = vmatprep.subr.bf16.mxu1 %v19065_v14  ;;  %v11899_v9 = vrot.slane %v11890_v54, %v20090_v30  ;;  %v19075_v14 = vld [vmem:[#allocation5 + $0x160] ss:$24 sps:$4 sm:$0xff]  }
 0xd54   :  { %v19087_v54 = vld [vmem:[#allocation5 + $0x100] ss:$24 sps:$4 sm:$0xff]  }
 0xd56   :  { %13370 = vmatpush1.bf16.msra.mxu0 %v19018_v53  ;;  %13343 = vmatpush2.bf16.msra.mxu1 %v19063_v42 }
 0xd57   :  { %13371 = vmatprep.subr.bf16.mxu0 %v19026_v11  ;;  %13344 = vmatprep.subr.bf16.mxu1 %v19071_v34  ;;  %v19086_v34 = vld [vmem:[#allocation7 + $0x124] ss:$24 sps:$4 sm:$0xff]  }
 0xd5a   :  { %13372 = vmatpush1.bf16.msra.mxu0 %v19024_v24  ;;  %13345 = vmatpush2.bf16.msra.mxu1 %v19069_v61  ;;  %v19083_v61 = vld [vmem:[#allocation5 + $0x134] ss:$24 sps:$4 sm:$0xff]  }
 0xd5b   :  { %13373 = vmatprep.subr.bf16.mxu0 %v19032_v27  ;;  %13400 = vmatprep.subr.bf16.mxu1 %v19077_v7  ;;  %v19089_v7 = vld [vmem:[#allocation5 + $0x104] ss:$24 sps:$4 sm:$0xff]  }
 0xd5e   :  { %13374 = vmatpush2.bf16.msra.mxu0 %v19030_v23 }
 0xd5f   :  { %13375 = vmatprep.subr.bf16.mxu0 %v19038_v59 }
 0xd62   :  { %13376 = vmatpush2.bf16.msra.mxu0 %v19036_v10 }
 0xd63   :  { %13377 = vmatprep.subr.bf16.mxu0 %v19044_v58 }
 0xd66   :  { %13378 = vmatpush2.bf16.msra.mxu0 %v19042_v62 }
 0xd67   :  { %13379 = vmatprep.subr.bf16.mxu0 %v19050_v50 }
 0xd6a   :  { %13380 = vmatpush2.bf16.msra.mxu0 %v19048_v32 }
 0xd6b   :  { %13381 = vmatprep.subr.bf16.mxu0 %v19056_v15 }
 0xd6e   :  { %13382 = vmatpush2.bf16.msra.mxu0 %v19054_v57 }
 0xd6f   :  { %13383 = vmatprep.subr.bf16.mxu0 %v19062_v2 }
 0xd72   :  { %13384 = vmatpush2.bf16.msra.mxu0 %v19060_v1 }
 0xd73   :  { %13385 = vmatprep.subr.bf16.mxu0 %v19068_v18 }
 0xd76   :  { %13386 = vmatpush2.bf16.msra.mxu0 %v19066_v55  ;;  %v19078_v55 = vld [vmem:[#allocation7 + $0x150] ss:$24 sps:$4 sm:$0xff]  }
 0xd77   :  { %13387 = vmatprep.subr.bf16.mxu0 %v19074_v0  ;;  %v19084_v0 = vld [vmem:[#allocation7 + $0x120] ss:$24 sps:$4 sm:$0xff]  }
 0xd7a   :  { %13388 = vmatpush2.bf16.msra.mxu0 %v19072_v36  ;;  %v19081_v36 = vld [vmem:[#allocation5 + $0x130] ss:$24 sps:$4 sm:$0xff]  }
 0xd7b   :  { %14051 = vmatprep.subr.bf16.mxu0 %v19080_v60  ;;  %v19092_v60 = vld [vmem:[#allocation7 + $0xf4] ss:$24 sps:$4 sm:$0xff]  }
 0xdbd   :  { %v12197_v33 = vpop.f32.mrf.mxu1  ;;  %v16741_v47 = vpop.f32.mrf.mxu0 }
 0xdbe   :  { %v20757_v11 = vadd.f32 %v12197_v33, %v11895_v31  ;;  %v19090_v33 = vld [vmem:[#allocation7 + $0xf0] ss:$24 sps:$4 sm:$0xff]  }
 0xdbf   :  { %v12199_v16 = vpop.f32.mrf.mxu1  ;;  %v16742_v53 = vpop.f32.mrf.mxu0 }
 0xdc0   :  { %v16743_v56 = vadd.f32 %v16742_v53, %v16741_v47  ;;  %v20761_v35 = vadd.f32 %v12199_v16, %v11899_v9  ;;  %v19095_v47 = vld [vmem:[#allocation5 + $0xd4] ss:$24 sps:$4 sm:$0xff]   ;;  %v19096_v16 = vld [vmem:[#allocation7 + $0xc0] ss:$24 sps:$4 sm:$0xff]   ;;  %v19101_v53 = vld [vmem:[#allocation5 + $0xa4] ss:$24 sps:$4 sm:$0xff]  }
 0xdc1   :  { %v12201_v25 = vpop.f32.mrf.mxu1  ;;  %v16744_v24 = vpop.f32.mrf.mxu0 }
 0xdc2   :  { %v20759_v12 = vadd.f32 %v16743_v56, %v11903_v17  ;;  %v20765_v5 = vadd.f32 %v12201_v25, %v11895_v31  ;;  %v19098_v31 = vld [vmem:[#allocation7 + $0xc4] ss:$24 sps:$4 sm:$0xff]   ;;  %v19099_v56 = vld [vmem:[#allocation5 + $0xa0] ss:$24 sps:$4 sm:$0xff]   ;;  %v19102_v25 = vld [vmem:[#allocation7 + $0x90] ss:$24 sps:$4 sm:$0xff]  }
 0xdc3   :  { %v16745_v27 = vpop.f32.mrf.mxu0  ;;  %v12203_v59 = vpop.f32.mrf.mxu1 }
 0xdc4   :  { %v16746_v23 = vadd.f32 %v16745_v27, %v16744_v24  ;;  %v12247_v40 = vmax.f32 %v20757_v11, %v20759_v12  ;;  %v20770_v58 = vadd.f32 %v12203_v59, %v11899_v9  ;;  %v19104_v9 = vld [vmem:[#allocation7 + $0x94] ss:$24 sps:$4 sm:$0xff]   ;;  %v19110_v27 = vld [vmem:[#allocation7 + $0x64] ss:$24 sps:$4 sm:$0xff]  }
 0xdc5   :  { %v19107_v24 = vld [vmem:[#allocation5 + $0x74] ss:$24 sps:$4 sm:$0xff]   ;;  %v19113_v59 = vld [vmem:[#allocation5 + $0x44] ss:$24 sps:$4 sm:$0xff]  }
 0xdc6   :  { %v20767_v10 = vadd.f32 %v16746_v23, %v11903_v17  ;;  %v12248_v41 = vmax.f32 %v12247_v40, %v20761_v35  ;;  %v19093_v17 = vld [vmem:[#allocation5 + $0xd0] ss:$24 sps:$4 sm:$0xff]   ;;  %v19108_v40 = vld [vmem:[#allocation7 + $0x60] ss:$24 sps:$4 sm:$0xff]  }
 0xdc7   :  { %v19105_v23 = vld [vmem:[#allocation5 + $0x70] ss:$24 sps:$4 sm:$0xff]  }
 0xdc8   :  { %12249 = vmax.xlane.f32.xlu1 %v12248_v41  ;;  %v12251_v13 = vmax.f32 %v20765_v5, %v20767_v10  ;;  %v19116_v41 = vld [vmem:[#allocation7 + $0x34] ss:$24 sps:$4 sm:$0xff]  }
 0xdca   :  { %v12252_v62 = vmax.f32 %v12251_v13, %v20770_v58  ;;  %v19111_v13 = vld [vmem:[#allocation5 + $0x40] ss:$24 sps:$4 sm:$0xff]  }
 0xdcc   :  { %12253 = vmax.xlane.f32.xlu0 %v12252_v62  ;;  %v19114_v62 = vld [vmem:[#allocation7 + $0x30] ss:$24 sps:$4 sm:$0xff]  }
 0xddd   :  { %v12695_v6 = vpop.f32.mrf.mxu1 }
 0xddf   :  { %v12697_v50 = vpop.f32.mrf.mxu1 }
 0xde1   :  { %v12699_v32 = vpop.f32.mrf.mxu1 }
 0xde3   :  { %v12701_v46 = vpop.f32.mrf.mxu1 }
 0xdfd   :  { %v12652_v28 = vpop.f32.mrf.mxu0 }
 0xdfe   :  { %v12696_v1 = vadd.f32 %v12695_v6, %v12652_v28  ;;  %v19119_v6 = vld [vmem:[#allocation5 + $0x14] ss:$24 sps:$4 sm:$0xff]   ;;  %v19117_v28 = vld [vmem:[#allocation5 + $0x10] ss:$24 sps:$4 sm:$0xff]  }
 0xdff   :  { %v12654_v4 = vpop.f32.mrf.mxu0 }
 0xe00   :  { %v12698_v2 = vadd.f32 %v12697_v50, %v12654_v4  ;;  %v19122_v50 = vld [vmem:[#allocation7 + $0x4] ss:$24 sps:$4 sm:$0xff]  }
 0xe01   :  { %v12656_v15 = vpop.f32.mrf.mxu0  ;;  %v19125_v4 = vld [vmem:[#allocation5 + $0x2e4] ss:$24 sps:$4 sm:$0xff]  }
 0xe02   :  { %v12700_v57 = vadd.f32 %v12699_v32, %v12656_v15  ;;  %v19120_v32 = vld [vmem:[#allocation7] ss:$24 sps:$4 sm:$0xff]   ;;  %v19128_v15 = vld [vmem:[#allocation7 + $0x2d4] ss:$24 sps:$4 sm:$0xff]  }
 0xe03   :  { %v12658_v37 = vpop.f32.mrf.mxu0 }
 0xe04   :  { %v12702_v20 = vadd.f32 %v12701_v46, %v12658_v37  ;;  %v20775_v18 = vpack.c.bf16 %v12700_v57, %v12696_v1  ;;  %v19123_v46 = vld [vmem:[#allocation5 + $0x2e0] ss:$24 sps:$4 sm:$0xff]   ;;  %v19126_v57 = vld [vmem:[#allocation7 + $0x2d0] ss:$24 sps:$4 sm:$0xff]   ;;  %v19131_v37 = vld [vmem:[#allocation5 + $0x2b4] ss:$24 sps:$4 sm:$0xff]  }
 0xe05   :  { %v19132_v1 = vld [vmem:[#allocation7 + $0x2a0] ss:$24 sps:$4 sm:$0xff]  }
 0xe06   :  { %v12705_v42 = vpack.c.bf16 %v12702_v20, %v12698_v2  ;;  %v19134_v2 = vld [vmem:[#allocation7 + $0x2a4] ss:$24 sps:$4 sm:$0xff]   ;;  %v19129_v20 = vld [vmem:[#allocation5 + $0x2b0] ss:$24 sps:$4 sm:$0xff]  }
 0xe08   :  { %13346 = vmatprep.mubr.bf16.mxu1 %v12705_v42  ;;  %13389 = vmatprep.mubr.bf16.mxu0 %v12705_v42 }
 0xe09   :  { %13347 = vmatmul.mubr.bf16.vlgmr.msra.gmra.mxu1 %v20775_v18  ;;  %13390 = vmatmul.mubr.bf16.vlgmr.msra.gmra.mxu0 %v20775_v18 }
 0xe0a   :  { %13401 = vmatpush1.bf16.msra.mxu1 %v19075_v14  ;;  %14052 = vmatpush1.bf16.msra.mxu0 %v19078_v55  ;;  %v19140_v14 = vld [vmem:[#allocation7 + $0x274] ss:$24 sps:$4 sm:$0xff]   ;;  %v19135_v55 = vld [vmem:[#allocation5 + $0x280] ss:$24 sps:$4 sm:$0xff]  }
 0xe0b   :  { %13432 = vmatprep.mubr.bf16.mxu1 %v12705_v42  ;;  %14083 = vmatprep.mubr.bf16.mxu0 %v20725_v63  ;;  %v19137_v42 = vld [vmem:[#allocation5 + $0x284] ss:$24 sps:$4 sm:$0xff]  }
 0xe0c   :  { %13402 = vmatprep.subr.bf16.mxu1 %v19083_v61  ;;  %14053 = vmatprep.subr.bf16.mxu0 %v19086_v34  ;;  %v19138_v61 = vld [vmem:[#allocation7 + $0x270] ss:$24 sps:$4 sm:$0xff]   ;;  %v19143_v34 = vld [vmem:[#allocation5 + $0x254] ss:$24 sps:$4 sm:$0xff]  }
 0xe0e   :  { %13403 = vmatpush1.bf16.msra.mxu1 %v19081_v36  ;;  %14054 = vmatpush1.bf16.msra.mxu0 %v19084_v0  ;;  %v19146_v36 = vld [vmem:[#allocation7 + $0x244] ss:$24 sps:$4 sm:$0xff]   ;;  %v19141_v0 = vld [vmem:[#allocation5 + $0x250] ss:$24 sps:$4 sm:$0xff]  }
 0xe0f   :  { %13404 = vmatprep.subr.bf16.mxu1 %v19089_v7  ;;  %14055 = vmatprep.subr.bf16.mxu0 %v19092_v60  ;;  %v19144_v7 = vld [vmem:[#allocation7 + $0x240] ss:$24 sps:$4 sm:$0xff]   ;;  %v19149_v60 = vld [vmem:[#allocation5 + $0x224] ss:$24 sps:$4 sm:$0xff]  }
 0xe12   :  { %13405 = vmatpush1.bf16.msra.mxu1 %v19087_v54  ;;  %14056 = vmatpush1.bf16.msra.mxu0 %v19090_v33  ;;  %v19152_v54 = vld [vmem:[#allocation7 + $0x214] ss:$24 sps:$4 sm:$0xff]   ;;  %v19147_v33 = vld [vmem:[#allocation5 + $0x220] ss:$24 sps:$4 sm:$0xff]  }
 0xe13   :  { %13406 = vmatprep.subr.bf16.mxu1 %v19095_v47  ;;  %14057 = vmatprep.subr.bf16.mxu0 %v19098_v31  ;;  %v19150_v47 = vld [vmem:[#allocation7 + $0x210] ss:$24 sps:$4 sm:$0xff]   ;;  %v19155_v31 = vld [vmem:[#allocation5 + $0x1f4] ss:$24 sps:$4 sm:$0xff]  }
 0xe16   :  { %13407 = vmatpush1.bf16.msra.mxu1 %v19093_v17  ;;  %14058 = vmatpush1.bf16.msra.mxu0 %v19096_v16  ;;  %v19158_v17 = vld [vmem:[#allocation7 + $0x1e4] ss:$24 sps:$4 sm:$0xff]   ;;  %v19153_v16 = vld [vmem:[#allocation5 + $0x1f0] ss:$24 sps:$4 sm:$0xff]  }
 0xe17   :  { %13408 = vmatprep.subr.bf16.mxu1 %v19101_v53  ;;  %14059 = vmatprep.subr.bf16.mxu0 %v19104_v9  ;;  %v19156_v53 = vld [vmem:[#allocation7 + $0x1e0] ss:$24 sps:$4 sm:$0xff]   ;;  %v19161_v9 = vld [vmem:[#allocation5 + $0x1c4] ss:$24 sps:$4 sm:$0xff]  }
 0xe1a   :  { %13409 = vmatpush1.bf16.msra.mxu1 %v19099_v56  ;;  %14060 = vmatpush1.bf16.msra.mxu0 %v19102_v25  ;;  %v19164_v56 = vld [vmem:[#allocation7 + $0x1b4] ss:$24 sps:$4 sm:$0xff]   ;;  %v19159_v25 = vld [vmem:[#allocation5 + $0x1c0] ss:$24 sps:$4 sm:$0xff]  }
 0xe1b   :  { %13410 = vmatprep.subr.bf16.mxu1 %v19107_v24  ;;  %14061 = vmatprep.subr.bf16.mxu0 %v19110_v27  ;;  %v19162_v24 = vld [vmem:[#allocation7 + $0x1b0] ss:$24 sps:$4 sm:$0xff]   ;;  %v19167_v27 = vld [vmem:[#allocation5 + $0x194] ss:$24 sps:$4 sm:$0xff]  }
 0xe1e   :  { %13411 = vmatpush1.bf16.msra.mxu1 %v19105_v23  ;;  %14062 = vmatpush1.bf16.msra.mxu0 %v19108_v40  ;;  %v19170_v23 = vld [vmem:[#allocation7 + $0x184] ss:$24 sps:$4 sm:$0xff]   ;;  %v19165_v40 = vld [vmem:[#allocation5 + $0x190] ss:$24 sps:$4 sm:$0xff]  }
 0xe1f   :  { %13412 = vmatprep.subr.bf16.mxu1 %v19113_v59  ;;  %14063 = vmatprep.subr.bf16.mxu0 %v19116_v41  ;;  %v19168_v59 = vld [vmem:[#allocation7 + $0x180] ss:$24 sps:$4 sm:$0xff]   ;;  %v19173_v41 = vld [vmem:[#allocation7 + $0x15c] ss:$24 sps:$4 sm:$0xff]  }
 0xe22   :  { %13413 = vmatpush1.bf16.msra.mxu1 %v19111_v13  ;;  %14064 = vmatpush1.bf16.msra.mxu0 %v19114_v62  ;;  %v19176_v13 = vld [vmem:[#allocation7 + $0x164] ss:$24 sps:$4 sm:$0xff]   ;;  %v19171_v62 = vld [vmem:[#allocation7 + $0x158] ss:$24 sps:$4 sm:$0xff]  }
 0xe23   :  { %13414 = vmatprep.subr.bf16.mxu1 %v19119_v6  ;;  %14065 = vmatprep.subr.bf16.mxu0 %v19122_v50  ;;  %v19174_v6 = vld [vmem:[#allocation7 + $0x160] ss:$24 sps:$4 sm:$0xff]   ;;  %v19179_v50 = vld [vmem:[#allocation7 + $0x12c] ss:$24 sps:$4 sm:$0xff]  }
 0xe26   :  { %13415 = vmatpush1.bf16.msra.mxu1 %v19117_v28  ;;  %14066 = vmatpush1.bf16.msra.mxu0 %v19120_v32  ;;  %v19182_v28 = vld [vmem:[#allocation7 + $0x134] ss:$24 sps:$4 sm:$0xff]   ;;  %v19177_v32 = vld [vmem:[#allocation7 + $0x128] ss:$24 sps:$4 sm:$0xff]  }
 0xe27   :  { %13416 = vmatprep.subr.bf16.mxu1 %v19125_v4  ;;  %14067 = vmatprep.subr.bf16.mxu0 %v19128_v15  ;;  %v19180_v4 = vld [vmem:[#allocation7 + $0x130] ss:$24 sps:$4 sm:$0xff]   ;;  %v19185_v15 = vld [vmem:[#allocation7 + $0xfc] ss:$24 sps:$4 sm:$0xff]  }
 0xe2a   :  { %13417 = vmatpush2.bf16.msra.mxu1 %v19123_v46  ;;  %14068 = vmatpush2.bf16.msra.mxu0 %v19126_v57  ;;  %v19188_v46 = vld [vmem:[#allocation7 + $0x104] ss:$24 sps:$4 sm:$0xff]   ;;  %v19183_v57 = vld [vmem:[#allocation7 + $0xf8] ss:$24 sps:$4 sm:$0xff]  }
 0xe2b   :  { %13418 = vmatprep.subr.bf16.mxu1 %v19131_v37  ;;  %14069 = vmatprep.subr.bf16.mxu0 %v19134_v2  ;;  %v19186_v37 = vld [vmem:[#allocation7 + $0x100] ss:$24 sps:$4 sm:$0xff]   ;;  %v19194_v2 = vld [vmem:[#allocation7 + $0xd4] ss:$24 sps:$4 sm:$0xff]  }
 0xe2e   :  { %13419 = vmatpush2.bf16.msra.mxu1 %v19129_v20  ;;  %14070 = vmatpush2.bf16.msra.mxu0 %v19132_v1  ;;  %v19189_v20 = vld [vmem:[#allocation7 + $0xc8] ss:$24 sps:$4 sm:$0xff]  }
 0xe2f   :  { %13420 = vmatprep.subr.bf16.mxu1 %v19137_v42  ;;  %14071 = vmatprep.subr.bf16.mxu0 %v19140_v14  ;;  %v19192_v1 = vld [vmem:[#allocation7 + $0xd0] ss:$24 sps:$4 sm:$0xff]   ;;  %v19197_v42 = vld [vmem:[#allocation7 + $0x9c] ss:$24 sps:$4 sm:$0xff]  }
 0xe30   :  { %v19195_v14 = vld [vmem:[#allocation7 + $0x98] ss:$24 sps:$4 sm:$0xff]  }
 0xe32   :  { %13421 = vmatpush2.bf16.msra.mxu1 %v19135_v55  ;;  %14072 = vmatpush2.bf16.msra.mxu0 %v19138_v61  ;;  %v19198_v55 = vld [vmem:[#allocation7 + $0xa0] ss:$24 sps:$4 sm:$0xff]   ;;  %v19203_v61 = vld [vmem:[#allocation7 + $0x6c] ss:$24 sps:$4 sm:$0xff]  }
 0xe33   :  { %13422 = vmatprep.subr.bf16.mxu1 %v19143_v34  ;;  %14073 = vmatprep.subr.bf16.mxu0 %v19146_v36  ;;  %v19206_v34 = vld [vmem:[#allocation7 + $0x74] ss:$24 sps:$4 sm:$0xff]   ;;  %v19201_v36 = vld [vmem:[#allocation7 + $0x68] ss:$24 sps:$4 sm:$0xff]  }
 0xe36   :  { %13423 = vmatpush2.bf16.msra.mxu1 %v19141_v0  ;;  %14074 = vmatpush2.bf16.msra.mxu0 %v19144_v7  ;;  %v19204_v0 = vld [vmem:[#allocation7 + $0x70] ss:$24 sps:$4 sm:$0xff]   ;;  %v19209_v7 = vld [vmem:[#allocation7 + $0x3c] ss:$24 sps:$4 sm:$0xff]  }
 0xe37   :  { %13424 = vmatprep.subr.bf16.mxu1 %v19149_v60  ;;  %14075 = vmatprep.subr.bf16.mxu0 %v19152_v54  ;;  %v19212_v60 = vld [vmem:[#allocation7 + $0x44] ss:$24 sps:$4 sm:$0xff]   ;;  %v19207_v54 = vld [vmem:[#allocation7 + $0x38] ss:$24 sps:$4 sm:$0xff]  }
 0xe3a   :  { %13425 = vmatpush2.bf16.msra.mxu1 %v19147_v33  ;;  %14076 = vmatpush2.bf16.msra.mxu0 %v19150_v47  ;;  %v19210_v33 = vld [vmem:[#allocation7 + $0x40] ss:$24 sps:$4 sm:$0xff]   ;;  %v19215_v47 = vld [vmem:[#allocation7 + $0xc] ss:$24 sps:$4 sm:$0xff]  }
 0xe3b   :  { %13426 = vmatprep.subr.bf16.mxu1 %v19155_v31  ;;  %14077 = vmatprep.subr.bf16.mxu0 %v19158_v17  ;;  %v19218_v31 = vld [vmem:[#allocation7 + $0x14] ss:$24 sps:$4 sm:$0xff]   ;;  %v19213_v17 = vld [vmem:[#allocation7 + $0x8] ss:$24 sps:$4 sm:$0xff]  }
 0xe3e   :  { %13427 = vmatpush2.bf16.msra.mxu1 %v19153_v16  ;;  %14078 = vmatpush2.bf16.msra.mxu0 %v19156_v53  ;;  %v19216_v16 = vld [vmem:[#allocation7 + $0x10] ss:$24 sps:$4 sm:$0xff]   ;;  %v19221_v53 = vld [vmem:[#allocation7 + $0x2dc] ss:$24 sps:$4 sm:$0xff]  }
 0xe3f   :  { %13428 = vmatprep.subr.bf16.mxu1 %v19161_v9  ;;  %14079 = vmatprep.subr.bf16.mxu0 %v19164_v56  ;;  %v19224_v9 = vld [vmem:[#allocation7 + $0x2e4] ss:$24 sps:$4 sm:$0xff]   ;;  %v19219_v56 = vld [vmem:[#allocation7 + $0x2d8] ss:$24 sps:$4 sm:$0xff]  }
 0xe42   :  { %13429 = vmatpush2.bf16.msra.mxu1 %v19159_v25  ;;  %14080 = vmatpush2.bf16.msra.mxu0 %v19162_v24  ;;  %v19222_v25 = vld [vmem:[#allocation7 + $0x2e0] ss:$24 sps:$4 sm:$0xff]   ;;  %v19227_v24 = vld [vmem:[#allocation7 + $0x2ac] ss:$24 sps:$4 sm:$0xff]  }
 0xe43   :  { %13430 = vmatprep.subr.bf16.mxu1 %v19167_v27  ;;  %14081 = vmatprep.subr.bf16.mxu0 %v19170_v23  ;;  %v19230_v27 = vld [vmem:[#allocation7 + $0x2b4] ss:$24 sps:$4 sm:$0xff]   ;;  %v19225_v23 = vld [vmem:[#allocation7 + $0x2a8] ss:$24 sps:$4 sm:$0xff]  }
 0xe46   :  { %13431 = vmatpush2.bf16.msra.mxu1 %v19165_v40  ;;  %14082 = vmatpush2.bf16.msra.mxu0 %v19168_v59  ;;  %v19228_v40 = vld [vmem:[#allocation7 + $0x2b0] ss:$24 sps:$4 sm:$0xff]   ;;  %v19233_v59 = vld [vmem:[#allocation7 + $0x27c] ss:$24 sps:$4 sm:$0xff]  }
 0xe47   :  { %14094 = vmatprep.subr.bf16.mxu1 %v19173_v41  ;;  %14137 = vmatprep.subr.bf16.mxu0 %v19176_v13  ;;  %v19236_v41 = vld [vmem:[#allocation7 + $0x284] ss:$24 sps:$4 sm:$0xff]   ;;  %v19231_v13 = vld [vmem:[#allocation7 + $0x278] ss:$24 sps:$4 sm:$0xff]  }
 0xe49   :  { %13433 = vmatmul.mubr.bf16.vlgmr.msra.gmra.mxu1 %v20775_v18  ;;  %14084 = vmatmul.mubr.bf16.vlgmr.msra.gmra.mxu0 %v20733_v45  ;;  %v19191_v18 = vld [vmem:[#allocation7 + $0xcc] ss:$24 sps:$4 sm:$0xff]  }
 0xe4a   :  { %14095 = vmatpush1.bf16.msra.mxu1 %v19171_v62  ;;  %14126 = vmatprep.mubr.bf16.mxu1 %v20725_v63  ;;  %v19234_v62 = vld [vmem:[#allocation7 + $0x280] ss:$24 sps:$4 sm:$0xff]  }
 0xe4b   :  { %14138 = vmatpush1.bf16.msra.mxu0 %v19174_v6  ;;  %14169 = vmatprep.mubr.bf16.mxu0 %v20725_v63  ;;  %v19200_v63 = vld [vmem:[#allocation7 + $0xa4] ss:$24 sps:$4 sm:$0xff]  }
 0xe4c   :  { %14096 = vmatprep.subr.bf16.mxu1 %v19179_v50  ;;  %14139 = vmatprep.subr.bf16.mxu0 %v19182_v28  ;;  %v19239_v6 = vld [vmem:[#allocation7 + $0x24c] ss:$24 sps:$4 sm:$0xff]   ;;  %v19237_v28 = vld [vmem:[#allocation7 + $0x248] ss:$24 sps:$4 sm:$0xff]  }
 0xe4d   :  { %v19242_v50 = vld [vmem:[#allocation7 + $0x254] ss:$24 sps:$4 sm:$0xff]  }
 0xe4e   :  { %14097 = vmatpush1.bf16.msra.mxu1 %v19177_v32  ;;  %v19240_v32 = vld [vmem:[#allocation7 + $0x250] ss:$24 sps:$4 sm:$0xff]  }
 0xe4f   :  { %14140 = vmatpush1.bf16.msra.mxu0 %v19180_v4  ;;  %14098 = vmatprep.subr.bf16.mxu1 %v19185_v15  ;;  %v19245_v4 = vld [vmem:[#allocation7 + $0x21c] ss:$24 sps:$4 sm:$0xff]  }
 0xe50   :  { %14141 = vmatprep.subr.bf16.mxu0 %v19188_v46  ;;  %v19248_v15 = vld [vmem:[#allocation7 + $0x224] ss:$24 sps:$4 sm:$0xff]   ;;  %v19243_v46 = vld [vmem:[#allocation7 + $0x218] ss:$24 sps:$4 sm:$0xff]  }
 0xe52   :  { %14099 = vmatpush1.bf16.msra.mxu1 %v19183_v57  ;;  %v19246_v57 = vld [vmem:[#allocation7 + $0x220] ss:$24 sps:$4 sm:$0xff]  }
 0xe53   :  { %14142 = vmatpush1.bf16.msra.mxu0 %v19186_v37  ;;  %14100 = vmatprep.subr.bf16.mxu1 %v19191_v18  ;;  %v19251_v37 = vld [vmem:[#allocation7 + $0x1ec] ss:$24 sps:$4 sm:$0xff]  }
 0xe54   :  { %14143 = vmatprep.subr.bf16.mxu0 %v19194_v2  ;;  %v19254_v18 = vld [vmem:[#allocation7 + $0x1f4] ss:$24 sps:$4 sm:$0xff]   ;;  %v19249_v2 = vld [vmem:[#allocation7 + $0x1e8] ss:$24 sps:$4 sm:$0xff]  }
 0xe56   :  { %14101 = vmatpush1.bf16.msra.mxu1 %v19189_v20  ;;  %v19252_v20 = vld [vmem:[#allocation7 + $0x1f0] ss:$24 sps:$4 sm:$0xff]  }
 0xe57   :  { %14144 = vmatpush1.bf16.msra.mxu0 %v19192_v1  ;;  %14102 = vmatprep.subr.bf16.mxu1 %v19197_v42  ;;  %v19257_v1 = vld [vmem:[#allocation7 + $0x1bc] ss:$24 sps:$4 sm:$0xff]  }
 0xe58   :  { %14145 = vmatprep.subr.bf16.mxu0 %v19200_v63  ;;  %v19260_v42 = vld [vmem:[#allocation7 + $0x1c4] ss:$24 sps:$4 sm:$0xff]   ;;  %v19255_v63 = vld [vmem:[#allocation7 + $0x1b8] ss:$24 sps:$4 sm:$0xff]  }
 0xe5a   :  { %14103 = vmatpush1.bf16.msra.mxu1 %v19195_v14  ;;  %v19258_v14 = vld [vmem:[#allocation7 + $0x1c0] ss:$24 sps:$4 sm:$0xff]  }
 0xe5b   :  { %14146 = vmatpush1.bf16.msra.mxu0 %v19198_v55  ;;  %14104 = vmatprep.subr.bf16.mxu1 %v19203_v61  ;;  %v19263_v55 = vld [vmem:[#allocation7 + $0x18c] ss:$24 sps:$4 sm:$0xff]  }
 0xe5c   :  { %14147 = vmatprep.subr.bf16.mxu0 %v19206_v34  ;;  %v19266_v61 = vld [vmem:[#allocation7 + $0x194] ss:$24 sps:$4 sm:$0xff]   ;;  %v19261_v34 = vld [vmem:[#allocation7 + $0x188] ss:$24 sps:$4 sm:$0xff]  }
 0xe5e   :  { %14105 = vmatpush1.bf16.msra.mxu1 %v19201_v36  ;;  %v19264_v36 = vld [vmem:[#allocation7 + $0x190] ss:$24 sps:$4 sm:$0xff]  }
 0xe5f   :  { %14148 = vmatpush1.bf16.msra.mxu0 %v19204_v0  ;;  %14106 = vmatprep.subr.bf16.mxu1 %v19209_v7  ;;  %v19267_v0 = vld [vmem:[#allocation8 + $0xa8] ss:$12 sps:$4 sm:$0xff]   ;;  %v19269_v7 = vld [vmem:[#allocation8 + $0xac] ss:$12 sps:$4 sm:$0xff]  }
 0xe60   :  { %14149 = vmatprep.subr.bf16.mxu0 %v19212_v60  ;;  %v19272_v60 = vld [vmem:[#allocation8 + $0x94] ss:$12 sps:$4 sm:$0xff]  }
 0xe62   :  { %14107 = vmatpush1.bf16.msra.mxu1 %v19207_v54  ;;  %v19270_v54 = vld [vmem:[#allocation8 + $0x90] ss:$12 sps:$4 sm:$0xff]  }
 0xe63   :  { %14150 = vmatpush1.bf16.msra.mxu0 %v19210_v33  ;;  %14108 = vmatprep.subr.bf16.mxu1 %v19215_v47  ;;  %v19275_v33 = vld [vmem:[#allocation8 + $0x7c] ss:$12 sps:$4 sm:$0xff]   ;;  %v19273_v47 = vld [vmem:[#allocation8 + $0x78] ss:$12 sps:$4 sm:$0xff]  }
 0xe64   :  { %14151 = vmatprep.subr.bf16.mxu0 %v19218_v31  ;;  %v19276_v31 = vld [vmem:[#allocation8 + $0x60] ss:$12 sps:$4 sm:$0xff]  }
 0xe66   :  { %14109 = vmatpush1.bf16.msra.mxu1 %v19213_v17  ;;  %v19278_v17 = vld [vmem:[#allocation8 + $0x64] ss:$12 sps:$4 sm:$0xff]  }
 0xe67   :  { %14152 = vmatpush1.bf16.msra.mxu0 %v19216_v16  ;;  %14110 = vmatprep.subr.bf16.mxu1 %v19221_v53  ;;  %v19279_v16 = vld [vmem:[#allocation8 + $0x48] ss:$12 sps:$4 sm:$0xff]   ;;  %v19281_v53 = vld [vmem:[#allocation8 + $0x4c] ss:$12 sps:$4 sm:$0xff]  }
 0xe68   :  { %14153 = vmatprep.subr.bf16.mxu0 %v19224_v9  ;;  %v19282_v9 = vld [vmem:[#allocation8 + $0x30] ss:$12 sps:$4 sm:$0xff]  }
 0xe6a   :  { %14111 = vmatpush2.bf16.msra.mxu1 %v19219_v56  ;;  %v19287_v56 = vld [vmem:[#allocation8 + $0x1c] ss:$12 sps:$4 sm:$0xff]  }
 0xe6b   :  { %14154 = vmatpush2.bf16.msra.mxu0 %v19222_v25  ;;  %14112 = vmatprep.subr.bf16.mxu1 %v19227_v24  ;;  %v19294_v25 = vld [vmem:[#allocation8 + $0x170] ss:$12 sps:$4 sm:$0xff]  }
 0xe6c   :  { %14155 = vmatprep.subr.bf16.mxu0 %v19230_v27  ;;  %v19295_v24 = vld [vmem:[#allocation8 + $0xb0] ss:$12 sps:$4 sm:$0xff]   ;;  %v19299_v27 = vld [vmem:[#allocation8 + $0x158] ss:$12 sps:$4 sm:$0xff]  }
 0xe6e   :  { %14113 = vmatpush2.bf16.msra.mxu1 %v19225_v23  ;;  %v19285_v23 = vld [vmem:[#allocation8 + $0x18] ss:$12 sps:$4 sm:$0xff]  }
 0xe6f   :  { %14156 = vmatpush2.bf16.msra.mxu0 %v19228_v40  ;;  %14114 = vmatprep.subr.bf16.mxu1 %v19233_v59  ;;  %v19300_v40 = vld [vmem:[#allocation8 + $0x98] ss:$12 sps:$4 sm:$0xff]  }
 0xe70   :  { %14157 = vmatprep.subr.bf16.mxu0 %v19236_v41  ;;  %v19290_v59 = vld [vmem:[#allocation8 + $0x4] ss:$12 sps:$4 sm:$0xff]   ;;  %v19304_v41 = vld [vmem:[#allocation8 + $0x140] ss:$12 sps:$4 sm:$0xff]  }
 0xe72   :  { %14115 = vmatpush2.bf16.msra.mxu1 %v19231_v13  ;;  %v19288_v13 = vld [vmem:[#allocation8] ss:$12 sps:$4 sm:$0xff]  }
 0xe73   :  { %14158 = vmatpush2.bf16.msra.mxu0 %v19234_v62  ;;  %14116 = vmatprep.subr.bf16.mxu1 %v19239_v6  ;;  %v19305_v62 = vld [vmem:[#allocation8 + $0x80] ss:$12 sps:$4 sm:$0xff]  }
 0xe74   :  { %14159 = vmatprep.subr.bf16.mxu0 %v19242_v50  ;;  %v19293_v6 = vld [vmem:[#allocation8 + $0x16c] ss:$12 sps:$4 sm:$0xff]   ;;  %v19309_v50 = vld [vmem:[#allocation8 + $0x128] ss:$12 sps:$4 sm:$0xff]  }
 0xe76   :  { %14117 = vmatpush2.bf16.msra.mxu1 %v19237_v28  ;;  %v19291_v28 = vld [vmem:[#allocation8 + $0x168] ss:$12 sps:$4 sm:$0xff]  }
 0xe77   :  { %14160 = vmatpush2.bf16.msra.mxu0 %v19240_v32  ;;  %14118 = vmatprep.subr.bf16.mxu1 %v19245_v4  ;;  %v19310_v32 = vld [vmem:[#allocation8 + $0x68] ss:$12 sps:$4 sm:$0xff]  }
 0xe78   :  { %14161 = vmatprep.subr.bf16.mxu0 %v19248_v15  ;;  %v19298_v4 = vld [vmem:[#allocation8 + $0x154] ss:$12 sps:$4 sm:$0xff]   ;;  %v19314_v15 = vld [vmem:[#allocation8 + $0x110] ss:$12 sps:$4 sm:$0xff]  }
 0xe7a   :  { %14119 = vmatpush2.bf16.msra.mxu1 %v19243_v46  ;;  %v19296_v46 = vld [vmem:[#allocation8 + $0x150] ss:$12 sps:$4 sm:$0xff]  }
 0xe7b   :  { %14162 = vmatpush2.bf16.msra.mxu0 %v19246_v57  ;;  %14120 = vmatprep.subr.bf16.mxu1 %v19251_v37  ;;  %v19315_v57 = vld [vmem:[#allocation8 + $0x50] ss:$12 sps:$4 sm:$0xff]  }
 0xe7c   :  { %14163 = vmatprep.subr.bf16.mxu0 %v19254_v18  ;;  %v19303_v37 = vld [vmem:[#allocation8 + $0x13c] ss:$12 sps:$4 sm:$0xff]   ;;  %v19319_v18 = vld [vmem:[#allocation8 + $0xf8] ss:$12 sps:$4 sm:$0xff]  }
 0xe7e   :  { %14121 = vmatpush2.bf16.msra.mxu1 %v19249_v2  ;;  %v19301_v2 = vld [vmem:[#allocation8 + $0x138] ss:$12 sps:$4 sm:$0xff]  }
 0xe7f   :  { %14164 = vmatpush2.bf16.msra.mxu0 %v19252_v20  ;;  %14122 = vmatprep.subr.bf16.mxu1 %v19257_v1  ;;  %v19320_v20 = vld [vmem:[#allocation8 + $0x38] ss:$12 sps:$4 sm:$0xff]  }
 0xe80   :  { %14165 = vmatprep.subr.bf16.mxu0 %v19260_v42  ;;  %v19308_v1 = vld [vmem:[#allocation8 + $0x124] ss:$12 sps:$4 sm:$0xff]   ;;  %v19324_v42 = vld [vmem:[#allocation8 + $0xe0] ss:$12 sps:$4 sm:$0xff]  }
 0xe82   :  { %14123 = vmatpush2.bf16.msra.mxu1 %v19255_v63  ;;  %v19306_v63 = vld [vmem:[#allocation8 + $0x120] ss:$12 sps:$4 sm:$0xff]  }
 0xe83   :  { %14166 = vmatpush2.bf16.msra.mxu0 %v19258_v14  ;;  %14124 = vmatprep.subr.bf16.mxu1 %v19263_v55  ;;  %v19325_v14 = vld [vmem:[#allocation8 + $0x20] ss:$12 sps:$4 sm:$0xff]  }
 0xe84   :  { %14167 = vmatprep.subr.bf16.mxu0 %v19266_v61  ;;  %v19313_v55 = vld [vmem:[#allocation8 + $0x10c] ss:$12 sps:$4 sm:$0xff]   ;;  %v19329_v61 = vld [vmem:[#allocation8 + $0xc8] ss:$12 sps:$4 sm:$0xff]  }
 0xe86   :  { %14125 = vmatpush2.bf16.msra.mxu1 %v19261_v34  ;;  %v19311_v34 = vld [vmem:[#allocation8 + $0x108] ss:$12 sps:$4 sm:$0xff]  }
 0xe87   :  { %14168 = vmatpush2.bf16.msra.mxu0 %v19264_v36  ;;  %14603 = vmatprep.subr.bf16.mxu1 %v19269_v7  ;;  %v19330_v36 = vld [vmem:[#allocation8 + $0x8] ss:$12 sps:$4 sm:$0xff]   ;;  %v19316_v7 = vld [vmem:[#allocation8 + $0xf0] ss:$12 sps:$4 sm:$0xff]  }
 0xe88   :  { %16747 = vmatprep.subr.bf16.mxu0 %v19294_v25  ;;  %v20798_v25 = vld [vmem:[%s20946_s5] sm:$0x3f] }
 0xe89   :  { %14127 = vmatmul.mubr.bf16.vlgmr.msra.gmra.mxu1 %v20733_v45 }
 0xe8a   :  { %14170 = vmatmul.mubr.bf16.vlgmr.msra.gmra.mxu0 %v20733_v45  ;;  %14604 = vmatpush1.bf16.msra.mxu1 %v19267_v0  ;;  %v19284_v45 = vld [vmem:[#allocation8 + $0x34] ss:$12 sps:$4 sm:$0xff]  }
 0xe8b   :  { %14605 = vmatprep.subr.bf16.mxu1 %v19272_v60  ;;  %16748 = vmatpush3.bf16.msra.mxu0 %v19295_v24  ;;  %v19318_v0 = vld [vmem:[#allocation8 + $0xf4] ss:$12 sps:$4 sm:$0xff]   ;;  %v19323_v60 = vld [vmem:[#allocation8 + $0xdc] ss:$12 sps:$4 sm:$0xff]  }
 0xe8c   :  { %16749 = vmatprep.subr.bf16.mxu0 %v19299_v27 }
 0xe8e   :  { %14606 = vmatpush1.bf16.msra.mxu1 %v19270_v54  ;;  %v19321_v54 = vld [vmem:[#allocation8 + $0xd8] ss:$12 sps:$4 sm:$0xff]  }
 0xe8f   :  { %14607 = vmatprep.subr.bf16.mxu1 %v19275_v33  ;;  %16750 = vmatpush3.bf16.msra.mxu0 %v19300_v40  ;;  %v19328_v33 = vld [vmem:[#allocation8 + $0xc4] ss:$12 sps:$4 sm:$0xff]   ;;  %v12807_v40 = vrot.slane %v20798_v25, %v20100_v8 }
 0xe90   :  { %16751 = vmatprep.subr.bf16.mxu0 %v19304_v41 }
 0xe92   :  { %14608 = vmatpush1.bf16.msra.mxu1 %v19273_v47  ;;  %v19326_v47 = vld [vmem:[#allocation8 + $0xc0] ss:$12 sps:$4 sm:$0xff]  }
 0xe93   :  { %14609 = vmatprep.subr.bf16.mxu1 %v19278_v17  ;;  %16752 = vmatpush3.bf16.msra.mxu0 %v19305_v62 }
 0xe94   :  { %16753 = vmatprep.subr.bf16.mxu0 %v19309_v50 }
 0xe96   :  { %14610 = vmatpush1.bf16.msra.mxu1 %v19276_v31 }
 0xe97   :  { %14611 = vmatprep.subr.bf16.mxu1 %v19281_v53  ;;  %16754 = vmatpush3.bf16.msra.mxu0 %v19310_v32 }
 0xe98   :  { %16755 = vmatprep.subr.bf16.mxu0 %v19314_v15 }
 0xe9a   :  { %14612 = vmatpush1.bf16.msra.mxu1 %v19279_v16 }
 0xe9b   :  { %14613 = vmatprep.subr.bf16.mxu1 %v19284_v45  ;;  %16756 = vmatpush3.bf16.msra.mxu0 %v19315_v57 }
 0xe9c   :  { %16757 = vmatprep.subr.bf16.mxu0 %v19319_v18 }
 0xe9e   :  { %14614 = vmatpush1.bf16.msra.mxu1 %v19282_v9 }
 0xe9f   :  { %14615 = vmatprep.subr.bf16.mxu1 %v19287_v56  ;;  %16758 = vmatpush3.bf16.msra.mxu0 %v19320_v20  ;;  %v20793_v56 = vld [vmem:[%s20947_s6] sm:$0x3f] }
 0xea0   :  { %16759 = vmatprep.subr.bf16.mxu0 %v19324_v42  ;;  %v13544_v27 = vrot.slane %v20793_v56, %v20100_v8 }
 0xea2   :  { %14616 = vmatpush1.bf16.msra.mxu1 %v19285_v23 }
 0xea3   :  { %14617 = vmatprep.subr.bf16.mxu1 %v19290_v59  ;;  %16760 = vmatpush3.bf16.msra.mxu0 %v19325_v14  ;;  %v13548_v59 = vrot.slane %v20793_v56, %v20090_v30 }
 0xea4   :  { %16761 = vmatprep.subr.bf16.mxu0 %v19329_v61 }
 0xea6   :  { %14618 = vmatpush1.bf16.msra.mxu1 %v19288_v13  ;;  %v12811_v13 = vrot.slane %v20798_v25, %v20090_v30 }
 0xea7   :  { %14619 = vmatprep.subr.bf16.mxu1 %v19293_v6  ;;  %16762 = vmatpush3.bf16.msra.mxu0 %v19330_v36 }
 0xeaa   :  { %14620 = vmatpush2.bf16.msra.mxu1 %v19291_v28 }
 0xeab   :  { %14621 = vmatprep.subr.bf16.mxu1 %v19298_v4 }
 0xeae   :  { %14622 = vmatpush2.bf16.msra.mxu1 %v19296_v46 }
 0xeaf   :  { %14623 = vmatprep.subr.bf16.mxu1 %v19303_v37 }
 0xeb2   :  { %14624 = vmatpush2.bf16.msra.mxu1 %v19301_v2 }
 0xeb3   :  { %14625 = vmatprep.subr.bf16.mxu1 %v19308_v1 }
 0xeb6   :  { %14626 = vmatpush2.bf16.msra.mxu1 %v19306_v63 }
 0xeb7   :  { %14627 = vmatprep.subr.bf16.mxu1 %v19313_v55 }
 0xeba   :  { %14628 = vmatpush2.bf16.msra.mxu1 %v19311_v34 }
 0xebb   :  { %14629 = vmatprep.subr.bf16.mxu1 %v19318_v0 }
 0xebe   :  { %14630 = vmatpush2.bf16.msra.mxu1 %v19316_v7 }
 0xebf   :  { %14631 = vmatprep.subr.bf16.mxu1 %v19323_v60 }
 0xec2   :  { %14632 = vmatpush2.bf16.msra.mxu1 %v19321_v54  ;;  %v12815_v54 = vrot.slane %v20798_v25, %v20118_v48 }
 0xec3   :  { %14633 = vmatprep.subr.bf16.mxu1 %v19328_v33  ;;  %v13552_v33 = vrot.slane %v20793_v56, %v20118_v48 }
 0xec6   :  { %14634 = vmatpush2.bf16.msra.mxu1 %v19326_v47 }
 0xec9   :  { %v13391_v31 = vpop.f32.mrf.mxu0  ;;  %v13348_v9 = vpop.f32.mrf.mxu1 }
 0xeca   :  { %v13349_v50 = vadd.f32 %v13348_v9, %v12807_v40 }
 0xecb   :  { %v13393_v17 = vpop.f32.mrf.mxu0  ;;  %v13350_v23 = vpop.f32.mrf.mxu1 }
 0xecc   :  { %v13351_v4 = vadd.f32 %v13350_v23, %v12811_v13 }
 0xecd   :  { %v20786_v16 = vpop.f32.mrf.mxu0  ;;  %v13352_v6 = vpop.f32.mrf.mxu1 }
 0xece   :  { %v13353_v37 = vadd.f32 %v13352_v6, %v12807_v40 }
 0xecf   :  { %v20788_v53 = vpop.f32.mrf.mxu0  ;;  %v13354_v57 = vpop.f32.mrf.mxu1 }
 0xed0   :  { %v13355_v20 = vadd.f32 %v13354_v57, %v12811_v13  ;;  %v13396_v57 = vadd.f32 %v20786_v16, %v12815_v54  ;;  %v13564_v16 = vrot.slane %v20793_v56, %v20138_v22 }
 0xf09   :  { %v14085_v45 = vpop.f32.mrf.mxu0  ;;  %v13434_v34 = vpop.f32.mrf.mxu1 }
 0xf0a   :  { %v14086_v62 = vadd.f32 %v14085_v45, %v13544_v27 }
 0xf0b   :  { %v14087_v24 = vpop.f32.mrf.mxu0  ;;  %v13436_v36 = vpop.f32.mrf.mxu1 }
 0xf0c   :  { %v14088_v28 = vadd.f32 %v14087_v24, %v13548_v59  ;;  %v14180_v15 = vadd.f32 %v14086_v62, %v13349_v50  ;;  %v12819_v24 = vrot.slane %v20798_v25, %v20123_v49 }
 0xf0d   :  { %v14089_v41 = vpop.f32.mrf.mxu0  ;;  %v20808_v0 = vpop.f32.mrf.mxu1 }
 0xf0e   :  { %v14090_v46 = vadd.f32 %v14089_v41, %v13544_v27  ;;  %v14181_v18 = vadd.f32 %v14088_v28, %v13351_v4  ;;  %v16581_v1 = vmul.f32 -1.442695, %v14180_v15  ;;  %v13556_v27 = vrot.slane %v20793_v56, %v20123_v49 }
 0xf0f   :  { %v14091_v32 = vpop.f32.mrf.mxu0  ;;  %v20814_v45 = vpop.f32.mrf.mxu1  ;;  %v13392_v41 = vadd.f32 %v13391_v31, %v12815_v54  ;;  %v13394_v50 = vadd.f32 %v13393_v17, %v12819_v24  ;;  %v13560_v17 = vrot.slane %v20793_v56, %v20143_v39 }
 0xf10   :  { %v14092_v2 = vadd.f32 %v14091_v32, %v13548_v59  ;;  %v14182_v42 = vadd.f32 %v14090_v46, %v13353_v37  ;;  %v16582_v63 = vmul.f32 -1.442695, %v14181_v18  ;;  %19579 = vpow2.f32 %v16581_v1 }
 0xf12   :  { %v14183_v14 = vadd.f32 %v14092_v2, %v13355_v20  ;;  %v16583_v55 = vmul.f32 -1.442695, %v14182_v42  ;;  %19581 = vpow2.f32 %v16582_v63  ;;  %v13398_v2 = vadd.f32 %v20788_v53, %v12819_v24 }
 0xf14   :  { %v16584_v61 = vmul.f32 -1.442695, %v14183_v14  ;;  %19583 = vpow2.f32 %v16583_v55 }
 0xf16   :  { %19585 = vpow2.f32 %v16584_v61 }
 0xf1d   :  { %v19580_v7 = vpop.eup %19579 }
 0xf1e   :  { %v14196_v47 = vadd.f32 1.0, %v19580_v7 }
 0xf1f   :  { %v19582_v60 = vpop.eup %19581 }
 0xf20   :  { %v14197_v23 = vadd.f32 1.0, %v19582_v60  ;;  %19587 = vrcp.f32 %v14196_v47  ;;  %v12823_v60 = vrot.slane %v20798_v25, %v20143_v39  ;;  %v12827_v47 = vrot.slane %v20798_v25, %v20138_v22 }
 0xf21   :  { %v19584_v9 = vpop.eup %19583 }
 0xf22   :  { %v14198_v62 = vadd.f32 1.0, %v19584_v9  ;;  %19589 = vrcp.f32 %v14197_v23 }
 0xf23   :  { %v19586_v59 = vpop.eup %19585 }
 0xf24   :  { %v14199_v4 = vadd.f32 1.0, %v19586_v59  ;;  %19591 = vrcp.f32 %v14198_v62  ;;  %v13437_v62 = vadd.f32 %v13436_v36, %v12827_v47 }
 0xf49   :  { %v14128_v40 = vpop.f32.mrf.mxu1 }
 0xf4a   :  { %v14129_v13 = vadd.f32 %v14128_v40, %v13552_v33  ;;  %v14171_v15 = vpop.f32.mrf.mxu0  ;;  %v13435_v40 = vadd.f32 %v13434_v34, %v12823_v60  ;;  %v13441_v34 = vadd.f32 %v20814_v45, %v12827_v47 }
 0xf4b   :  { %v14130_v6 = vpop.f32.mrf.mxu1  ;;  %v14172_v53 = vadd.f32 %v14171_v15, %v13560_v17 }
 0xf4c   :  { %v14208_v28 = vadd.f32 %v14129_v13, %v13392_v41  ;;  %v14131_v32 = vadd.f32 %v14130_v6, %v13556_v27  ;;  %v14173_v63 = vpop.f32.mrf.mxu0 }
 0xf4d   :  { %v14132_v46 = vpop.f32.mrf.mxu1  ;;  %v14174_v54 = vadd.f32 %v14173_v63, %v13564_v16 }
 0xf4e   :  { %v16585_v37 = vmul.f32 -1.442695, %v14208_v28  ;;  %v14209_v18 = vadd.f32 %v14131_v32, %v13394_v50  ;;  %v14133_v49 = vadd.f32 %v14132_v46, %v13552_v33  ;;  %v14175_v7 = vpop.f32.mrf.mxu0  ;;  %v19588_v33 = vpop.eup %19587 }
 0xf4f   :  { %v14134_v31 = vpop.f32.mrf.mxu1  ;;  %v14236_v9 = vmul.f32 %v19588_v33, %v14172_v53  ;;  %v14176_v24 = vadd.f32 %v14175_v7, %v13560_v17  ;;  %v19590_v23 = vpop.eup %19589 }
 0xf50   :  { %19593 = vpow2.f32 %v16585_v37  ;;  %v16586_v20 = vmul.f32 -1.442695, %v14209_v18  ;;  %v14210_v1 = vadd.f32 %v14133_v49, %v13396_v57  ;;  %v14135_v42 = vadd.f32 %v14134_v31, %v13556_v27  ;;  %v14177_v27 = vpop.f32.mrf.mxu0  ;;  %v19592_v56 = vpop.eup %19591 }
 0xf51   :  { %19595 = vrcp.f32 %v14199_v4  ;;  %v14237_v59 = vmul.f32 %v19590_v23, %v14174_v54  ;;  %v14178_v41 = vadd.f32 %v14177_v27, %v13564_v16  ;;  %v14240_v6 = vadd.f32 %v14236_v9, %v13435_v40 }
 0xf52   :  { %19597 = vpow2.f32 %v16586_v20  ;;  %v16587_v14 = vmul.f32 -1.442695, %v14210_v1  ;;  %v14211_v55 = vadd.f32 %v14135_v42, %v13398_v2  ;;  %v14238_v50 = vmul.f32 %v19592_v56, %v14176_v24  ;;  %v20838_v56 = vpop.xlane.xlu0 %9813 }
 0xf53   :  { %v13439_v4 = vadd.f32 %v20808_v0, %v12823_v60  ;;  %v14241_v15 = vadd.f32 %v14237_v59, %v13437_v62  ;;  %v20836_v59 = vpop.xlane.xlu1 %9809  ;;  %v9819_v62 = vsub.f32 %v20649_v26, %v20838_v56 }
 0xf54   :  { %19599 = vpow2.f32 %v16587_v14  ;;  %v16588_v61 = vmul.f32 -1.442695, %v14211_v55 }
 0xf55   :  { %v14242_v57 = vadd.f32 %v14238_v50, %v13439_v4 }
 0xf56   :  { %19601 = vpow2.f32 %v16588_v61 }
 0xf5d   :  { %v19594_v13 = vpop.eup %19593 }
 0xf5e   :  { %v19596_v28 = vpop.eup %19595  ;;  %v14224_v32 = vadd.f32 1.0, %v19594_v13  ;;  %v9818_v13 = vsub.f32 %v20644_v52, %v20838_v56 }
 0xf5f   :  { %v19598_v39 = vpop.eup %19597  ;;  %v14239_v25 = vmul.f32 %v19596_v28, %v14178_v41  ;;  %v20844_v41 = vpop.xlane.xlu1 %12249 }
 0xf60   :  { %19603 = vrcp.f32 %v14224_v32  ;;  %v14225_v22 = vadd.f32 1.0, %v19598_v39  ;;  %v12255_v50 = vsub.f32 %v20757_v11, %v20844_v41  ;;  %v12256_v32 = vsub.f32 %v20761_v35, %v20844_v41  ;;  %v20854_v39 = vpop.xlane.xlu0 %12253 }
 0xf61   :  { %v19600_v46 = vpop.eup %19599  ;;  %19605 = vtanh.f32 %v14240_v6  ;;  %v14243_v49 = vadd.f32 %v14239_v25, %v13441_v34  ;;  %v9827_v4 = vmul.f32 1.442695, %v9818_v13  ;;  %v12259_v34 = vsub.f32 %v20770_v58, %v20854_v39 }
 0xf62   :  { %19607 = vrcp.f32 %v14225_v22  ;;  %v14226_v37 = vadd.f32 1.0, %v19600_v46  ;;  %v9829_v22 = vmul.f32 1.442695, %v9819_v62  ;;  %v12261_v25 = vmul.f32 1.442695, %v12255_v50 }
 0xf63   :  { %v19602_v18 = vpop.eup %19601  ;;  %19609 = vtanh.f32 %v14241_v15  ;;  %v9817_v15 = vsub.f32 %v20638_v3, %v20836_v59  ;;  %v12258_v46 = vsub.f32 %v20765_v5, %v20854_v39 }
 0xf64   :  { %19611 = vrcp.f32 %v14226_v37  ;;  %v14227_v36 = vadd.f32 1.0, %v19602_v18  ;;  %v9820_v37 = vsub.f32 %v20646_v19, %v20838_v56 }
 0xf65   :  { %19613 = vtanh.f32 %v14242_v57  ;;  %v12263_v57 = vmul.f32 1.442695, %v12256_v32  ;;  %v9825_v18 = vmul.f32 1.442695, %v9817_v15 }
 0xf66   :  { %19615 = vrcp.f32 %v14227_v36  ;;  %v12257_v36 = vsub.f32 %v20759_v12, %v20844_v41 }
 0xf67   :  { %19617 = vtanh.f32 %v14243_v49  ;;  %v12267_v49 = vmul.f32 1.442695, %v12258_v46 }
 0xf6d   :  { %v19604_v0 = vpop.eup %19603 }
 0xf6e   :  { %v19606_v2 = vpop.eup %19605  ;;  %v14248_v31 = vsub.f32 1.0, %v19604_v0  ;;  %v14256_v63 = vmul.f32 %v19604_v0, %v20721_v51  ;;  %v12269_v0 = vmul.f32 1.442695, %v12259_v34 }
 0xf6f   :  { %v19608_v20 = vpop.eup %19607 }
 0xf70   :  { %v19610_v1 = vpop.eup %19609  ;;  %v14249_v42 = vsub.f32 1.0, %v19608_v20  ;;  %v14252_v17 = vmul.f32 %v19606_v2, %v14248_v31  ;;  %v14257_v16 = vmul.f32 %v19608_v20, %v20717_v29  ;;  %v9831_v2 = vmul.f32 1.442695, %v9820_v37  ;;  %v14330_v31 = vld [vmem:[%s20949_s8] sm:$0x7]  ;;  %s19813_s8 = smov [#allocation11]  }
 0xf71   :  { %v19612_v45 = vpop.eup %19611  ;;  %v12265_v20 = vmul.f32 1.442695, %v12257_v36  ;;  %s14761_s21 = sshll.u32 %s19813_s8, 4  ;;  %s14762_s21 = int_to_ptr.vmem [resolvable:$true] %s14761_s21 }
 0xf72   :  { %v19614_v14 = vpop.eup %19613  ;;  %v14253_v55 = vmul.f32 %v19610_v1, %v14249_v42  ;;  %v14250_v61 = vsub.f32 1.0, %v19612_v45  ;;  %v14260_v53 = vadd.f32 %v14256_v63, %v14252_v17  ;;  %v14258_v47 = vmul.f32 %v19612_v45, %v20715_v21  ;;  %s19751_s7 = scalar_lea.vmem %s14762_s21, 512  ;;  %p19756_p7 = scmp.lt.s32.totalorder %s14762_s21, %s14762_s21 }
 0xf73   :  { %v19616_v7 = vpop.eup %19615  ;;  %v9815_v21 = vsub.f32 %v20636_v44, %v20836_v59  ;;  %v12260_v1 = vsub.f32 %v20767_v10, %v20854_v39  ;;  %v14335_v63 = vrot.slane %v14330_v31, %v20100_v8  ;;  %v14343_v45 = vrot.slane %v14330_v31, %v20118_v48  ;;  %p19752_p6 = scmp.ne.s32.totalorder %s14762_s21, %s19751_s7  ;;  %p19757_p8 = scmp.lt.s32.totalorder %s19751_s7, %s19751_s7 }
 0xf74   :  { %v14251_v60 = vsub.f32 1.0, %v19616_v7  ;;  %v14261_v54 = vadd.f32 %v14257_v16, %v14253_v55  ;;  %v14254_v33 = vmul.f32 %v19614_v14, %v14250_v61  ;;  %14740 = vst [vmem:[#allocation11] sm:$0xff] %v14260_v53  ;;  %v19618_v9 = vpop.eup %19617  ;;  %v14259_v27 = vmul.f32 %v19616_v7, %v20719_v43 }
 0xf75   :  { %v9816_v43 = vsub.f32 %v20640_v38, %v20836_v59  ;;  %v9821_v6 = vmul.f32 1.442695, %v9815_v21  ;;  %v12271_v16 = vmul.f32 1.442695, %v12260_v1  ;;  %v14339_v61 = vrot.slane %v14330_v31, %v20090_v30  ;;  %p19758_p9 = por %p19757_p8, %p19756_p7 }
 0xf76   :  { %v14255_v24 = vmul.f32 %v19618_v9, %v14251_v60  ;;  %14741 = vst [vmem:[#allocation11 + $0x8] sm:$0xff] %v14261_v54  ;;  %v14262_v51 = vadd.f32 %v14258_v47, %v14254_v33 }
 0xf77   :  { %v9823_v28 = vmul.f32 1.442695, %v9816_v43  ;;  %19619 = vpow2.f32 %v9821_v6  ;;  %p19759_p10 = pnand %p19758_p9, %p19752_p6 }
 0xf78   :  { %v14263_v23 = vadd.f32 %v14259_v27, %v14255_v24  ;;  %14742 = vst [vmem:[#allocation11 + $0x10] sm:$0xff] %v14262_v51  ;;  %v14264_v29 = vpack.c.bf16 %v14262_v51, %v14260_v53 }
 0xf79   :  { %19621 = vpow2.f32 %v9823_v28 }
 0xf7a   :  { %v14265_v40 = vpack.c.bf16 %v14263_v23, %v14261_v54  ;;  %14743 = vst [vmem:[#allocation11 + $0x18] sm:$0xff] %v14263_v23  ;;  %19623 = vpow2.f32 %v9827_v4 }
 0xf7b   :  { %19625 = vpow2.f32 %v9829_v22 }
 0xf7c   :  { %14635 = vmatprep.mubr.bf16.mxu1 %v14265_v40  ;;  %14678 = vmatprep.mubr.bf16.mxu0 %v14265_v40  ;;  %19627 = vpow2.f32 %v12261_v25 }
 0xf7d   :  { %14636 = vmatmul.mubr.bf16.vlgmr.msra.gmra.mxu1 %v14264_v29  ;;  %14679 = vmatmul.mubr.bf16.vlgmr.msra.gmra.mxu0 %v14264_v29  ;;  %19629 = vpow2.f32 %v12263_v57 }
 0xf7e   :  { %19631 = vpow2.f32 %v9825_v18 }
 0xf7f   :  { %19633 = vpow2.f32 %v12267_v49 }
 0xf80   :  { %19635 = vpow2.f32 %v12269_v0 }
 0xf81   :  { %19637 = vpow2.f32 %v9831_v2 }
 0xf82   :  { %19639 = vpow2.f32 %v12265_v20 }
 0xf83   :  { %19641 = vpow2.f32 %v12271_v16 }
 0xf84   :  { %v19620_v54 = vpop.eup %19619 }
 0xf86   :  { %v19622_v9 = vpop.eup %19621 }
 0xf87   :  { %v19624_v8 = vpop.eup %19623  ;;  %v9833_v13 = vadd.f32 %v19622_v9, %v19620_v54 }
 0xf88   :  { %v19626_v23 = vpop.eup %19625 }
 0xf89   :  { %v19628_v40 = vpop.eup %19627  ;;  %v9837_v25 = vadd.f32 %v19626_v23, %v19624_v8 }
 0xf8a   :  { %v19630_v62 = vpop.eup %19629 }
 0xf8b   :  { %v19632_v28 = vpop.eup %19631  ;;  %v12273_v22 = vadd.f32 %v19630_v62, %v19628_v40 }
 0xf8c   :  { %v19634_v32 = vpop.eup %19633  ;;  %v9834_v4 = vadd.f32 %v19632_v28, %v9833_v13 }
 0xf8d   :  { %v19636_v46 = vpop.eup %19635 }
 0xf8e   :  { %v19638_v57 = vpop.eup %19637  ;;  %v12277_v36 = vadd.f32 %v19636_v46, %v19634_v32 }
 0xf8f   :  { %v19640_v34 = vpop.eup %19639  ;;  %v9838_v18 = vadd.f32 %v19638_v57, %v9837_v25 }
 0xf90   :  { %v12274_v37 = vadd.f32 %v19640_v34, %v12273_v22  ;;  %v19642_v49 = vpop.eup %19641 }
 0xf91   :  { %v12278_v0 = vadd.f32 %v19642_v49, %v12277_v36 }
0x103d   :  { %v14637_v42 = vpop.f32.mrf.mxu1  ;;  %v16763_v17 = vpop.f32.mrf.mxu0 }
0x103e   :  { %v20874_v33 = vadd.f32 %v14637_v42, %v14335_v63 }
0x103f   :  { %v14639_v14 = vpop.f32.mrf.mxu1  ;;  %v16764_v55 = vpop.f32.mrf.mxu0 }
0x1040   :  { %v16765_v53 = vadd.f32 %v16764_v55, %v16763_v17  ;;  %v20878_v48 = vadd.f32 %v14639_v14, %v14339_v61 }
0x1041   :  { %v14641_v7 = vpop.f32.mrf.mxu1  ;;  %v16766_v60 = vpop.f32.mrf.mxu0 }
0x1042   :  { %v20876_v47 = vadd.f32 %v16765_v53, %v14343_v45  ;;  %v20882_v29 = vadd.f32 %v14641_v7, %v14335_v63 }
0x1043   :  { %v16767_v24 = vpop.f32.mrf.mxu0  ;;  %v14643_v30 = vpop.f32.mrf.mxu1 }
0x1044   :  { %v16768_v27 = vadd.f32 %v16767_v24, %v16766_v60  ;;  %v14687_v51 = vmax.f32 %v20874_v33, %v20876_v47  ;;  %v20887_v6 = vadd.f32 %v14643_v30, %v14339_v61 }
0x1046   :  { %v20884_v21 = vadd.f32 %v16768_v27, %v14343_v45  ;;  %v14688_v43 = vmax.f32 %v14687_v51, %v20878_v48 }
0x1048   :  { %14689 = vmax.xlane.f32.xlu1 %v14688_v43  ;;  %v14691_v50 = vmax.f32 %v20882_v29, %v20884_v21 }
0x104a   :  { %v14692_v15 = vmax.f32 %v14691_v50, %v20887_v6 }
0x104c   :  { %9835 = vadd.xlane.f32.xlu1 %v9834_v4  ;;  %14693 = vmax.xlane.f32.xlu0 %v14692_v15 }
0x1050   :  { %12275 = vadd.xlane.f32.xlu1 %v12274_v37  ;;  %9839 = vadd.xlane.f32.xlu0 %v9838_v18 }
0x1054   :  { %12279 = vadd.xlane.f32.xlu0 %v12278_v0 }
0x10d1   :  { %v20892_v2 = vpop.xlane.xlu1 %14689 }
0x10d2   :  { %v14695_v31 = vsub.f32 %v20874_v33, %v20892_v2  ;;  %v14696_v20 = vsub.f32 %v20878_v48, %v20892_v2  ;;  %v14697_v1 = vsub.f32 %v20876_v47, %v20892_v2 }
0x10d4   :  { %v14701_v42 = vmul.f32 1.442695, %v14695_v31  ;;  %v14703_v17 = vmul.f32 1.442695, %v14696_v20  ;;  %v14705_v63 = vmul.f32 1.442695, %v14697_v1 }
0x10d5   :  { %v9836_v45 = vpop.xlane.xlu1 %9835  ;;  %v20900_v14 = vpop.xlane.xlu0 %14693 }
0x10d6   :  { %19643 = vpow2.f32 %v14701_v42  ;;  %v14698_v55 = vsub.f32 %v20882_v29, %v20900_v14  ;;  %v14699_v16 = vsub.f32 %v20887_v6, %v20900_v14  ;;  %v14700_v61 = vsub.f32 %v20884_v21, %v20900_v14 }
0x10d7   :  { %19645 = vpow2.f32 %v14703_v17 }
0x10d8   :  { %19647 = vpow2.f32 %v14705_v63  ;;  %v14707_v53 = vmul.f32 1.442695, %v14698_v55  ;;  %v14709_v7 = vmul.f32 1.442695, %v14699_v16  ;;  %v14711_v60 = vmul.f32 1.442695, %v14700_v61 }
0x10d9   :  { %19649 = vlog2.f32 %v9836_v45  ;;  %v9840_v54 = vpop.xlane.xlu0 %9839  ;;  %v12276_v9 = vpop.xlane.xlu1 %12275 }
0x10da   :  { %19651 = vpow2.f32 %v14707_v53 }
0x10db   :  { %19653 = vpow2.f32 %v14709_v7 }
0x10dc   :  { %19655 = vpow2.f32 %v14711_v60 }
0x10dd   :  { %19657 = vlog2.f32 %v12276_v9  ;;  %v12280_v24 = vpop.xlane.xlu0 %12279 }
0x10de   :  { %19659 = vlog2.f32 %v9840_v54 }
0x10df   :  { %19661 = vlog2.f32 %v12280_v24 }
0x10e3   :  { %v19644_v8 = vpop.eup %19643 }
0x10e4   :  { %v19646_v27 = vpop.eup %19645 }
0x10e5   :  { %v19648_v51 = vpop.eup %19647  ;;  %v14713_v23 = vadd.f32 %v19646_v27, %v19644_v8 }
0x10e6   :  { %v19650_v30 = vpop.eup %19649 }
0x10e7   :  { %v19652_v40 = vpop.eup %19651  ;;  %v9842_v43 = vmul.f32 0.6931472, %v19650_v30  ;;  %v14714_v13 = vadd.f32 %v19648_v51, %v14713_v23 }
0x10e8   :  { %v19654_v62 = vpop.eup %19653 }
0x10e9   :  { %v19656_v50 = vpop.eup %19655  ;;  %v9845_v28 = vadd.f32 %v9842_v43, %v20836_v59  ;;  %14715 = vadd.xlane.f32.xlu1 %v14714_v13  ;;  %v14717_v32 = vadd.f32 %v19654_v62, %v19652_v40 }
0x10ea   :  { %v19658_v4 = vpop.eup %19657 }
0x10eb   :  { %v19660_v15 = vpop.eup %19659  ;;  %v9847_v22 = vsub.f32 %v20636_v44, %v9845_v28  ;;  %v9848_v25 = vsub.f32 %v20640_v38, %v9845_v28  ;;  %v9849_v46 = vsub.f32 %v20638_v3, %v9845_v28  ;;  %v12282_v57 = vmul.f32 0.6931472, %v19658_v4 }
0x10ec   :  { %v19662_v34 = vpop.eup %19661  ;;  %v9844_v37 = vmul.f32 0.6931472, %v19660_v15  ;;  %v14718_v18 = vadd.f32 %v19656_v50, %v14717_v32 }
0x10ed   :  { %9854 = vst [vmem:[#allocation10 + $0x90] sm:$0xff] %v9847_v22  ;;  %9855 = vst [vmem:[#allocation10 + $0x98] sm:$0xff] %v9848_v25  ;;  %v12285_v36 = vadd.f32 %v12282_v57, %v20844_v41  ;;  %v12284_v59 = vmul.f32 0.6931472, %v19662_v34 }
0x10ee   :  { %9856 = vst [vmem:[#allocation10 + $0xa0] sm:$0xff] %v9849_v46  ;;  %v9846_v49 = vadd.f32 %v9844_v37, %v20838_v56  ;;  %14719 = vadd.xlane.f32.xlu0 %v14718_v18 }
0x10ef   :  { %v12287_v0 = vsub.f32 %v20757_v11, %v12285_v36  ;;  %v12288_v44 = vsub.f32 %v20761_v35, %v12285_v36  ;;  %v12289_v38 = vsub.f32 %v20759_v12, %v12285_v36  ;;  %v12286_v3 = vadd.f32 %v12284_v59, %v20854_v39 }
0x10f0   :  { %v9850_v31 = vsub.f32 %v20644_v52, %v9846_v49  ;;  %v9851_v20 = vsub.f32 %v20649_v26, %v9846_v49  ;;  %v9852_v1 = vsub.f32 %v20646_v19, %v9846_v49 }
0x10f1   :  { %12294 = vst [vmem:[#allocation10 + $0xc0] sm:$0xff] %v12287_v0  ;;  %12295 = vst [vmem:[#allocation10 + $0xc8] sm:$0xff] %v12288_v44  ;;  %v12290_v56 = vsub.f32 %v20765_v5, %v12286_v3  ;;  %v12291_v41 = vsub.f32 %v20770_v58, %v12286_v3  ;;  %v12292_v11 = vsub.f32 %v20767_v10, %v12286_v3 }
0x10f2   :  { %12296 = vst [vmem:[#allocation10 + $0xd0] sm:$0xff] %v12289_v38  ;;  %9857 = vst [vmem:[#allocation10 + $0xa8] sm:$0xff] %v9850_v31 }
0x10f3   :  { %9858 = vst [vmem:[#allocation10 + $0xb0] sm:$0xff] %v9851_v20  ;;  %9859 = vst [vmem:[#allocation10 + $0xb8] sm:$0xff] %v9852_v1 }
0x10f4   :  { %12297 = vst [vmem:[#allocation10 + $0xd8] sm:$0xff] %v12290_v56  ;;  %12298 = vst [vmem:[#allocation10 + $0xe0] sm:$0xff] %v12291_v41 }
0x10f5   :  { %12299 = vst [vmem:[#allocation10 + $0xe8] sm:$0xff] %v12292_v11 }
0x10f6   :  { %19762 = shalt.err (!%p19759_p10)
}
0x10f7   :  { %s19814_s22 = smov 256   ;;  %s19815_s23 = smov 16  }
0x10f8   :  { %14767 = dma.vmem_to_hbm [thread:$0]  %s14762_s21, 512, %s20951_s10, [#allocation12], %s19814_s22, %s19814_s22, %s19815_s23  }
0x10f9   :  { %s19816_s10 = smov [#allocation10]  }
0x10fa   :  { %s14749_s26 = sshll.u32 %s19816_s10, 4  ;;  %s14750_s26 = int_to_ptr.vmem [resolvable:$true] %s14749_s26 }
0x10fb   :  { %s19771_s27 = scalar_lea.vmem %s14750_s26, 4608  ;;  %p19776_p12 = scmp.lt.s32.totalorder %s14750_s26, %s14750_s26 }
0x10fc   :  { %p19772_p11 = scmp.ne.s32.totalorder %s14750_s26, %s19771_s27  ;;  %p19777_p13 = scmp.lt.s32.totalorder %s19771_s27, %s19771_s27 }
0x10fe   :  { %p19778_p0 = por %p19777_p13, %p19776_p12 }
0x1100   :  { %p19779_p1 = pnand %p19778_p0, %p19772_p11 }
0x1172   :  { %v14716_v52 = vpop.xlane.xlu1 %14715 }
0x1173   :  { %19663 = vlog2.f32 %v14716_v52 }
0x1177   :  { %v14720_v19 = vpop.xlane.xlu0 %14719 }
0x1178   :  { %19665 = vlog2.f32 %v14720_v19 }
0x1180   :  { %v19664_v26 = vpop.eup %19663 }
0x1181   :  { %v14722_v12 = vmul.f32 0.6931472, %v19664_v26 }
0x1183   :  { %v14725_v35 = vadd.f32 %v14722_v12, %v20892_v2 }
0x1185   :  { %v19666_v5 = vpop.eup %19665  ;;  %v14727_v10 = vsub.f32 %v20874_v33, %v14725_v35  ;;  %v14728_v58 = vsub.f32 %v20878_v48, %v14725_v35  ;;  %v14729_v39 = vsub.f32 %v20876_v47, %v14725_v35 }
0x1186   :  { %v14724_v42 = vmul.f32 0.6931472, %v19666_v5 }
0x1187   :  { %14734 = vst [vmem:[#allocation10 + $0xf0] sm:$0xff] %v14727_v10  ;;  %14735 = vst [vmem:[#allocation10 + $0xf8] sm:$0xff] %v14728_v58 }
0x1188   :  { %14736 = vst [vmem:[#allocation10 + $0x100] sm:$0xff] %v14729_v39  ;;  %v14726_v17 = vadd.f32 %v14724_v42, %v20900_v14 }
0x118a   :  { %v14730_v63 = vsub.f32 %v20882_v29, %v14726_v17  ;;  %v14731_v45 = vsub.f32 %v20887_v6, %v14726_v17  ;;  %v14732_v2 = vsub.f32 %v20884_v21, %v14726_v17 }
0x118c   :  { %14737 = vst [vmem:[#allocation10 + $0x108] sm:$0xff] %v14730_v63  ;;  %14738 = vst [vmem:[#allocation10 + $0x110] sm:$0xff] %v14731_v45 }
0x118d   :  { %14739 = vst [vmem:[#allocation10 + $0x118] sm:$0xff] %v14732_v2 }
0x118e   :  { %19782 = shalt.err (!%p19779_p1)
}
0x118f   :  { %14755 = dma.vmem_to_hbm [thread:$0]  %s14750_s26, 4608, %s20950_s9, [#allocation4], %s19802_s16, %s19802_s16, %s19803_s17  }
0x1190   :  { %19797 = dma.done.wait [#allocation4], 4608  }
0x1191   :  { %19798 = vsyncadd [#allocation4], 4294962688 }
0x1192   :  { %19799 = dma.done.wait [#allocation12], 512  }
0x1193   :  { %19800 = vsyncadd [#allocation12], 4294966784 }
0x1194   :  { %14774 = vsyncpa [#allocation3], 1 }
0x1195   :  { %14775 = vsyncpa [#allocation6], 1 }
0x1196   :  { %14776 = vsyncpa [#allocation9], 1 }
0x1197   :  { %14777 = vsyncpa [#allocation4], 1 }
0x1198   :  { %14778 = vsyncpa [#allocation12], 1 }

</bundles_post_ra>
